<compile_context>
chip_gen: v7x
topology: tpu7x:2x2x1
jax: 0.10.0
libtpu: 0.0.40
codegen_flags: <defaults>
</compile_context>

<pallas_src>
import jax
import jax.numpy as jnp
from jax.experimental import pallas as pl
from jax.experimental.pallas import tpu as pltpu


# ------------------------- fused CNN kernel (per image) ---------------------
def _make_fused_cnn_kernel(n_layers, H, W, C, out_dim):
    """Build a kernel computing all conv layers + global avg pool for ONE image."""
    inv_hw = 1.0 / float(H * W)  # exact constant (avoid approx reciprocal bias)

    def kernel(x_ref, *refs):
        # refs = (w_0, b_0, ..., w_{L-1}, b_{L-1}, o_ref, a_pad, patches)
        w_refs = refs[0:2 * n_layers:2]      # each (9*C, C) im2col weights
        b_refs = refs[1:2 * n_layers:2]      # each (1, C)
        o_ref = refs[2 * n_layers]           # (1, 1, out_dim)
        a_pad = refs[2 * n_layers + 1]       # VMEM (H+2, W+2, C) f32, zero halo
        patches = refs[2 * n_layers + 2]     # VMEM (H*W, 9*C) f32, im2col buffer

        # Zero the halo once per grid step; interiors are overwritten below and
        # the border rows/cols are never written again -> stays zero ("same" pad).
        a_pad[...] = jnp.zeros_like(a_pad)

        act_img = x_ref[0].astype(jnp.float32)               # (H, W, C)
        act_flat = None
        for l in range(n_layers):                            # statically unrolled
            # Place this layer's input into the interior of the padded buffer.
            a_pad[1:H + 1, 1:W + 1, :] = act_img
            # im2col: 9 shifted windows packed side by side along the lane axis.
            for dy in range(3):
                for dx in range(3):
                    t = dy * 3 + dx
                    patches[:, t * C:(t + 1) * C] = (
                        a_pad[dy:dy + H, dx:dx + W, :].reshape(H * W, C))
            # One MXU matmul per layer, f32 accumulation, fused bias + ReLU.
            acc = jnp.dot(patches[...], w_refs[l][...],
                          preferred_element_type=jnp.float32)      # (H*W, C)
            act_flat = jnp.maximum(acc + b_refs[l][...], 0.0)
            if l + 1 < n_layers:
                act_img = act_flat.reshape(H, W, C)

        # Fused AdaptiveAvgPool2d((1,1)) + Flatten epilogue.
        pooled = jnp.sum(act_flat, axis=0, keepdims=True) * inv_hw   # (1, C)
        o_ref[...] = pooled[:, :out_dim].reshape(1, 1, out_dim).astype(o_ref.dtype)

    return kernel


def simple_cnn_pallas(x_nhwc, packed_ws, packed_bs, out_dim):
    """x_nhwc: (N,H,W,C) f32, channels already padded to the common width C."""
    N, H, W, C = x_nhwc.shape
    n_layers = len(packed_ws)
    kernel = _make_fused_cnn_kernel(n_layers, H, W, C, out_dim)

    in_specs = [pl.BlockSpec((1, H, W, C), lambda n: (n, 0, 0, 0))]
    args = [x_nhwc]
    for w2d, b2d in zip(packed_ws, packed_bs):
        in_specs.append(pl.BlockSpec(w2d.shape, lambda n: (0, 0)))   # (9*C, C)
        in_specs.append(pl.BlockSpec(b2d.shape, lambda n: (0, 0)))   # (1, C)
        args.extend([w2d, b2d])

    out = pl.pallas_call(
        kernel,
        out_shape=jax.ShapeDtypeStruct((N, 1, out_dim), jnp.float32),
        grid=(N,),
        in_specs=in_specs,
        out_specs=pl.BlockSpec((1, 1, out_dim), lambda n: (n, 0, 0)),
        scratch_shapes=[
            pltpu.VMEM((H + 2, W + 2, C), jnp.float32),   # zero-halo activation
            pltpu.VMEM((H * W, 9 * C), jnp.float32),      # im2col patches
        ],
        compiler_params=pltpu.CompilerParams(
            dimension_semantics=("parallel",)),           # batch over v7x's 2 TCs
    )(*args)
    return out.reshape(N, out_dim)


# ------------------------------- model glue ---------------------------------
def init_conv_params(key, cin, cout):
    """Deterministic init mirroring PyTorch Conv2d default (uniform +/- 1/sqrt(fan_in))."""
    kw, kb = jax.random.split(key)
    bound = 1.0 / jnp.sqrt(cin * 9)
    w = jax.random.uniform(kw, (3, 3, cin, cout), jnp.float32, -bound, bound)
    b = jax.random.uniform(kb, (cout,), jnp.float32, -bound, bound)
    return w, b


def init_simple_cnn_params(key, n_channels, tile_size, out_dim):
    dims = [(n_channels, tile_size), (tile_size, tile_size),
            (tile_size, out_dim), (out_dim, out_dim)]
    keys = jax.random.split(key, len(dims))
    return [init_conv_params(k, ci, co) for k, (ci, co) in zip(keys, dims)]


@jax.jit
def simple_cnn_forward(x_nchw, params):
    out_dim = params[-1][0].shape[-1]
    cmax = max(max(w.shape[2], w.shape[3]) for w, _ in params)

    # PyTorch NCHW -> NHWC; pad channels ONCE to the common width.
    x = jnp.transpose(x_nchw, (0, 2, 3, 1))
    x = jnp.pad(x, ((0, 0), (0, 0), (0, 0), (0, cmax - x.shape[-1])))

    # Pack each conv weight into im2col form (9*cmax, cmax); bias -> (1, cmax).
    # Zero-padded rows/cols keep padded channels mathematically inert.
    packed_ws, packed_bs = [], []
    for w, b in params:
        ci, co = w.shape[2], w.shape[3]
        wp = jnp.pad(w, ((0, 0), (0, 0), (0, cmax - ci), (0, cmax - co)))
        bp = jnp.pad(b, ((0, cmax - co),))
        packed_ws.append(wp.reshape(9 * cmax, cmax))
        packed_bs.append(bp.reshape(1, cmax))

    return simple_cnn_pallas(x, packed_ws, packed_bs, out_dim)


# ------------------------------ pure-JAX reference --------------------------
def _reference_forward(x_nchw, params):
    x = jnp.transpose(x_nchw, (0, 2, 3, 1)).astype(jnp.float32)
    for w, b in params:
        N, H, W, _ = x.shape
        xp = jnp.pad(x, ((0, 0), (1, 1), (1, 1), (0, 0)))
        acc = jnp.zeros((N, H, W, w.shape[-1]), jnp.float32) + b[None, None, None, :]
        for dy in range(3):
            for dx in range(3):
                acc = acc + jnp.einsum(
                    "nhwc,cd->nhwd", xp[:, dy:dy + H, dx:dx + W, :], w[dy, dx],
                    precision=jax.lax.Precision.HIGHEST)
        x = jnp.maximum(acc, 0.0)
    return jnp.mean(x, axis=(1, 2))


# ----------------------------------- main ------------------------------------
if __name__ == "__main__":
    N, n_channels, H, W = 2, 4, 16, 16
    tile_size, out_dim = 8, 8

    root = jax.random.PRNGKey(0)
    k_x, k_p = jax.random.split(root)
    x = jax.random.normal(k_x, (N, n_channels, H, W), jnp.float32)   # NCHW input
    params = init_simple_cnn_params(k_p, n_channels, tile_size, out_dim)

    out = simple_cnn_forward(x, params)
    jax.block_until_ready(out)
    assert out.shape == (N, out_dim), out.shape

    ref = _reference_forward(x, params)
    assert jnp.allclose(out, ref, atol=1e-3, rtol=1e-3), (
        float(jnp.max(jnp.abs(out - ref))))

    print("KERNEL_OK")
</pallas_src>

<mosaic_0001>
module attributes {stable_mosaic.version = 11 : i64} {
  func.func @kernel(%arg0: i32, %arg1: memref<1x16x16x8xf32, #tpu.memory_space<vmem>>, %arg2: memref<72x8xf32, #tpu.memory_space<vmem>>, %arg3: memref<1x8xf32, #tpu.memory_space<vmem>>, %arg4: memref<72x8xf32, #tpu.memory_space<vmem>>, %arg5: memref<1x8xf32, #tpu.memory_space<vmem>>, %arg6: memref<72x8xf32, #tpu.memory_space<vmem>>, %arg7: memref<1x8xf32, #tpu.memory_space<vmem>>, %arg8: memref<72x8xf32, #tpu.memory_space<vmem>>, %arg9: memref<1x8xf32, #tpu.memory_space<vmem>>, %arg10: memref<1x1x8xf32, #tpu.memory_space<vmem>>, %arg11: memref<18x18x8xf32, #tpu.memory_space<vmem>>, %arg12: memref<256x72xf32, #tpu.memory_space<vmem>>) attributes {dimension_semantics = [#tpu.dimension_semantics<parallel>], iteration_bounds = array<i64: 2>, scalar_prefetch = 0 : i64, scratch_operands = 2 : i64, tpu.core_type = #tpu.core_type<tc>, window_params = [{transform_indices = @transform_0, window_bounds = array<i64: 1, 16, 16, 8>}, {pipeline_mode = #tpu.pipeline_mode<synchronous>, transform_indices = @transform_1, window_bounds = array<i64: 72, 8>}, {pipeline_mode = #tpu.pipeline_mode<synchronous>, transform_indices = @transform_2, window_bounds = array<i64: 1, 8>}, {pipeline_mode = #tpu.pipeline_mode<synchronous>, transform_indices = @transform_3, window_bounds = array<i64: 72, 8>}, {pipeline_mode = #tpu.pipeline_mode<synchronous>, transform_indices = @transform_4, window_bounds = array<i64: 1, 8>}, {pipeline_mode = #tpu.pipeline_mode<synchronous>, transform_indices = @transform_5, window_bounds = array<i64: 72, 8>}, {pipeline_mode = #tpu.pipeline_mode<synchronous>, transform_indices = @transform_6, window_bounds = array<i64: 1, 8>}, {pipeline_mode = #tpu.pipeline_mode<synchronous>, transform_indices = @transform_7, window_bounds = array<i64: 72, 8>}, {pipeline_mode = #tpu.pipeline_mode<synchronous>, transform_indices = @transform_8, window_bounds = array<i64: 1, 8>}, {transform_indices = @transform_9, window_bounds = array<i64: 1, 1, 8>}]} {
    %cst = arith.constant 0.000000e+00 : f32
    %0 = vector.broadcast %cst : f32 to vector<18x18x8xf32>
    %c0 = arith.constant 0 : index
    %c0_0 = arith.constant 0 : index
    %c0_1 = arith.constant 0 : index
    %1 = vector.load %arg11[%c0, %c0_0, %c0_1] : memref<18x18x8xf32, #tpu.memory_space<vmem>>, vector<18x18x8xf32>
    tpu.vector_store %arg11[%c0, %c0_0, %c0_1], %0 {strides = array<i32>} : memref<18x18x8xf32, #tpu.memory_space<vmem>>, vector<18x18x8xf32>,
    %c0_2 = arith.constant 0 : index
    %c0_3 = arith.constant 0 : index
    %c0_4 = arith.constant 0 : index
    %c0_5 = arith.constant 0 : index
    %2 = vector.load %arg1[%c0_2, %c0_3, %c0_4, %c0_5] : memref<1x16x16x8xf32, #tpu.memory_space<vmem>>, vector<1x16x16x8xf32>
    %3 = vector.shape_cast %2 : vector<1x16x16x8xf32> to vector<16x16x8xf32>
    %c1 = arith.constant 1 : index
    %c1_6 = arith.constant 1 : index
    %c0_7 = arith.constant 0 : index
    %4 = vector.load %arg11[%c1, %c1_6, %c0_7] : memref<18x18x8xf32, #tpu.memory_space<vmem>>, vector<16x16x8xf32>
    tpu.vector_store %arg11[%c1, %c1_6, %c0_7], %3 {strides = array<i32>} : memref<18x18x8xf32, #tpu.memory_space<vmem>>, vector<16x16x8xf32>,
    %c0_8 = arith.constant 0 : index
    %c0_9 = arith.constant 0 : index
    %c0_10 = arith.constant 0 : index
    %5 = vector.load %arg11[%c0_8, %c0_9, %c0_10] : memref<18x18x8xf32, #tpu.memory_space<vmem>>, vector<16x16x8xf32>
    %6 = vector.shape_cast %5 : vector<16x16x8xf32> to vector<256x8xf32>
    %c0_11 = arith.constant 0 : index
    %c0_12 = arith.constant 0 : index
    %7 = vector.load %arg12[%c0_11, %c0_12] : memref<256x72xf32, #tpu.memory_space<vmem>>, vector<256x8xf32>
    tpu.vector_store %arg12[%c0_11, %c0_12], %6 {strides = array<i32>} : memref<256x72xf32, #tpu.memory_space<vmem>>, vector<256x8xf32>,
    %c0_13 = arith.constant 0 : index
    %c1_14 = arith.constant 1 : index
    %c0_15 = arith.constant 0 : index
    %8 = vector.load %arg11[%c0_13, %c1_14, %c0_15] : memref<18x18x8xf32, #tpu.memory_space<vmem>>, vector<16x16x8xf32>
    %9 = vector.shape_cast %8 : vector<16x16x8xf32> to vector<256x8xf32>
    %c0_16 = arith.constant 0 : index
    %c8 = arith.constant 8 : index
    %10 = vector.load %arg12[%c0_16, %c8] : memref<256x72xf32, #tpu.memory_space<vmem>>, vector<256x8xf32>
    tpu.vector_store %arg12[%c0_16, %c8], %9 {strides = array<i32>} : memref<256x72xf32, #tpu.memory_space<vmem>>, vector<256x8xf32>,
    %c0_17 = arith.constant 0 : index
    %c2 = arith.constant 2 : index
    %c0_18 = arith.constant 0 : index
    %11 = vector.load %arg11[%c0_17, %c2, %c0_18] : memref<18x18x8xf32, #tpu.memory_space<vmem>>, vector<16x16x8xf32>
    %12 = vector.shape_cast %11 : vector<16x16x8xf32> to vector<256x8xf32>
    %c0_19 = arith.constant 0 : index
    %c16 = arith.constant 16 : index
    %13 = vector.load %arg12[%c0_19, %c16] : memref<256x72xf32, #tpu.memory_space<vmem>>, vector<256x8xf32>
    tpu.vector_store %arg12[%c0_19, %c16], %12 {strides = array<i32>} : memref<256x72xf32, #tpu.memory_space<vmem>>, vector<256x8xf32>,
    %c1_20 = arith.constant 1 : index
    %c0_21 = arith.constant 0 : index
    %c0_22 = arith.constant 0 : index
    %14 = vector.load %arg11[%c1_20, %c0_21, %c0_22] : memref<18x18x8xf32, #tpu.memory_space<vmem>>, vector<16x16x8xf32>
    %15 = vector.shape_cast %14 : vector<16x16x8xf32> to vector<256x8xf32>
    %c0_23 = arith.constant 0 : index
    %c24 = arith.constant 24 : index
    %16 = vector.load %arg12[%c0_23, %c24] : memref<256x72xf32, #tpu.memory_space<vmem>>, vector<256x8xf32>
    tpu.vector_store %arg12[%c0_23, %c24], %15 {strides = array<i32>} : memref<256x72xf32, #tpu.memory_space<vmem>>, vector<256x8xf32>,
    %c1_24 = arith.constant 1 : index
    %c1_25 = arith.constant 1 : index
    %c0_26 = arith.constant 0 : index
    %17 = vector.load %arg11[%c1_24, %c1_25, %c0_26] : memref<18x18x8xf32, #tpu.memory_space<vmem>>, vector<16x16x8xf32>
    %18 = vector.shape_cast %17 : vector<16x16x8xf32> to vector<256x8xf32>
    %c0_27 = arith.constant 0 : index
    %c32 = arith.constant 32 : index
    %19 = vector.load %arg12[%c0_27, %c32] : memref<256x72xf32, #tpu.memory_space<vmem>>, vector<256x8xf32>
    tpu.vector_store %arg12[%c0_27, %c32], %18 {strides = array<i32>} : memref<256x72xf32, #tpu.memory_space<vmem>>, vector<256x8xf32>,
    %c1_28 = arith.constant 1 : index
    %c2_29 = arith.constant 2 : index
    %c0_30 = arith.constant 0 : index
    %20 = vector.load %arg11[%c1_28, %c2_29, %c0_30] : memref<18x18x8xf32, #tpu.memory_space<vmem>>, vector<16x16x8xf32>
    %21 = vector.shape_cast %20 : vector<16x16x8xf32> to vector<256x8xf32>
    %c0_31 = arith.constant 0 : index
    %c40 = arith.constant 40 : index
    %22 = vector.load %arg12[%c0_31, %c40] : memref<256x72xf32, #tpu.memory_space<vmem>>, vector<256x8xf32>
    tpu.vector_store %arg12[%c0_31, %c40], %21 {strides = array<i32>} : memref<256x72xf32, #tpu.memory_space<vmem>>, vector<256x8xf32>,
    %c2_32 = arith.constant 2 : index
    %c0_33 = arith.constant 0 : index
    %c0_34 = arith.constant 0 : index
    %23 = vector.load %arg11[%c2_32, %c0_33, %c0_34] : memref<18x18x8xf32, #tpu.memory_space<vmem>>, vector<16x16x8xf32>
    %24 = vector.shape_cast %23 : vector<16x16x8xf32> to vector<256x8xf32>
    %c0_35 = arith.constant 0 : index
    %c48 = arith.constant 48 : index
    %25 = vector.load %arg12[%c0_35, %c48] : memref<256x72xf32, #tpu.memory_space<vmem>>, vector<256x8xf32>
    tpu.vector_store %arg12[%c0_35, %c48], %24 {strides = array<i32>} : memref<256x72xf32, #tpu.memory_space<vmem>>, vector<256x8xf32>,
    %c2_36 = arith.constant 2 : index
    %c1_37 = arith.constant 1 : index
    %c0_38 = arith.constant 0 : index
    %26 = vector.load %arg11[%c2_36, %c1_37, %c0_38] : memref<18x18x8xf32, #tpu.memory_space<vmem>>, vector<16x16x8xf32>
    %27 = vector.shape_cast %26 : vector<16x16x8xf32> to vector<256x8xf32>
    %c0_39 = arith.constant 0 : index
    %c56 = arith.constant 56 : index
    %28 = vector.load %arg12[%c0_39, %c56] : memref<256x72xf32, #tpu.memory_space<vmem>>, vector<256x8xf32>
    tpu.vector_store %arg12[%c0_39, %c56], %27 {strides = array<i32>} : memref<256x72xf32, #tpu.memory_space<vmem>>, vector<256x8xf32>,
    %c2_40 = arith.constant 2 : index
    %c2_41 = arith.constant 2 : index
    %c0_42 = arith.constant 0 : index
    %29 = vector.load %arg11[%c2_40, %c2_41, %c0_42] : memref<18x18x8xf32, #tpu.memory_space<vmem>>, vector<16x16x8xf32>
    %30 = vector.shape_cast %29 : vector<16x16x8xf32> to vector<256x8xf32>
    %c0_43 = arith.constant 0 : index
    %c64 = arith.constant 64 : index
    %31 = vector.load %arg12[%c0_43, %c64] : memref<256x72xf32, #tpu.memory_space<vmem>>, vector<256x8xf32>
    tpu.vector_store %arg12[%c0_43, %c64], %30 {strides = array<i32>} : memref<256x72xf32, #tpu.memory_space<vmem>>, vector<256x8xf32>,
    %c0_44 = arith.constant 0 : index
    %c0_45 = arith.constant 0 : index
    %32 = vector.load %arg12[%c0_44, %c0_45] : memref<256x72xf32, #tpu.memory_space<vmem>>, vector<256x72xf32>
    %c0_46 = arith.constant 0 : index
    %c0_47 = arith.constant 0 : index
    %33 = vector.load %arg2[%c0_46, %c0_47] : memref<72x8xf32, #tpu.memory_space<vmem>>, vector<72x8xf32>
    %cst_48 = arith.constant dense<0.000000e+00> : vector<256x8xf32>
    %34 = tpu.matmul %32, %33, %cst_48 {dimension_numbers = #tpu.dot_dimension_numbers<[1], [0], [0], [1], [0, 0, 1, 1], [], []>} : vector<256x72xf32>, vector<72x8xf32>, vector<256x8xf32> -> vector<256x8xf32>
    %c0_49 = arith.constant 0 : index
    %c0_50 = arith.constant 0 : index
    %35 = vector.load %arg3[%c0_49, %c0_50] : memref<1x8xf32, #tpu.memory_space<vmem>>, vector<1x8xf32>
    %36 = vector.broadcast %35 : vector<1x8xf32> to vector<256x8xf32>
    %37 = arith.addf %34, %36 : vector<256x8xf32>
    %cst_51 = arith.constant 0.000000e+00 : f32
    %38 = vector.broadcast %cst_51 : f32 to vector<256x8xf32>
    %39 = arith.maximumf %37, %38 : vector<256x8xf32>
    %40 = vector.shape_cast %39 : vector<256x8xf32> to vector<16x16x8xf32>
    %c1_52 = arith.constant 1 : index
    %c1_53 = arith.constant 1 : index
    %c0_54 = arith.constant 0 : index
    %41 = vector.load %arg11[%c1_52, %c1_53, %c0_54] : memref<18x18x8xf32, #tpu.memory_space<vmem>>, vector<16x16x8xf32>
    tpu.vector_store %arg11[%c1_52, %c1_53, %c0_54], %40 {strides = array<i32>} : memref<18x18x8xf32, #tpu.memory_space<vmem>>, vector<16x16x8xf32>,
    %c0_55 = arith.constant 0 : index
    %c0_56 = arith.constant 0 : index
    %c0_57 = arith.constant 0 : index
    %42 = vector.load %arg11[%c0_55, %c0_56, %c0_57] : memref<18x18x8xf32, #tpu.memory_space<vmem>>, vector<16x16x8xf32>
    %43 = vector.shape_cast %42 : vector<16x16x8xf32> to vector<256x8xf32>
    %c0_58 = arith.constant 0 : index
    %c0_59 = arith.constant 0 : index
    %44 = vector.load %arg12[%c0_58, %c0_59] : memref<256x72xf32, #tpu.memory_space<vmem>>, vector<256x8xf32>
    tpu.vector_store %arg12[%c0_58, %c0_59], %43 {strides = array<i32>} : memref<256x72xf32, #tpu.memory_space<vmem>>, vector<256x8xf32>,
    %c0_60 = arith.constant 0 : index
    %c1_61 = arith.constant 1 : index
    %c0_62 = arith.constant 0 : index
    %45 = vector.load %arg11[%c0_60, %c1_61, %c0_62] : memref<18x18x8xf32, #tpu.memory_space<vmem>>, vector<16x16x8xf32>
    %46 = vector.shape_cast %45 : vector<16x16x8xf32> to vector<256x8xf32>
    %c0_63 = arith.constant 0 : index
    %c8_64 = arith.constant 8 : index
    %47 = vector.load %arg12[%c0_63, %c8_64] : memref<256x72xf32, #tpu.memory_space<vmem>>, vector<256x8xf32>
    tpu.vector_store %arg12[%c0_63, %c8_64], %46 {strides = array<i32>} : memref<256x72xf32, #tpu.memory_space<vmem>>, vector<256x8xf32>,
    %c0_65 = arith.constant 0 : index
    %c2_66 = arith.constant 2 : index
    %c0_67 = arith.constant 0 : index
    %48 = vector.load %arg11[%c0_65, %c2_66, %c0_67] : memref<18x18x8xf32, #tpu.memory_space<vmem>>, vector<16x16x8xf32>
    %49 = vector.shape_cast %48 : vector<16x16x8xf32> to vector<256x8xf32>
    %c0_68 = arith.constant 0 : index
    %c16_69 = arith.constant 16 : index
    %50 = vector.load %arg12[%c0_68, %c16_69] : memref<256x72xf32, #tpu.memory_space<vmem>>, vector<256x8xf32>
    tpu.vector_store %arg12[%c0_68, %c16_69], %49 {strides = array<i32>} : memref<256x72xf32, #tpu.memory_space<vmem>>, vector<256x8xf32>,
    %c1_70 = arith.constant 1 : index
    %c0_71 = arith.constant 0 : index
    %c0_72 = arith.constant 0 : index
    %51 = vector.load %arg11[%c1_70, %c0_71, %c0_72] : memref<18x18x8xf32, #tpu.memory_space<vmem>>, vector<16x16x8xf32>
    %52 = vector.shape_cast %51 : vector<16x16x8xf32> to vector<256x8xf32>
    %c0_73 = arith.constant 0 : index
    %c24_74 = arith.constant 24 : index
    %53 = vector.load %arg12[%c0_73, %c24_74] : memref<256x72xf32, #tpu.memory_space<vmem>>, vector<256x8xf32>
    tpu.vector_store %arg12[%c0_73, %c24_74], %52 {strides = array<i32>} : memref<256x72xf32, #tpu.memory_space<vmem>>, vector<256x8xf32>,
    %c1_75 = arith.constant 1 : index
    %c1_76 = arith.constant 1 : index
    %c0_77 = arith.constant 0 : index
    %54 = vector.load %arg11[%c1_75, %c1_76, %c0_77] : memref<18x18x8xf32, #tpu.memory_space<vmem>>, vector<16x16x8xf32>
    %55 = vector.shape_cast %54 : vector<16x16x8xf32> to vector<256x8xf32>
    %c0_78 = arith.constant 0 : index
    %c32_79 = arith.constant 32 : index
    %56 = vector.load %arg12[%c0_78, %c32_79] : memref<256x72xf32, #tpu.memory_space<vmem>>, vector<256x8xf32>
    tpu.vector_store %arg12[%c0_78, %c32_79], %55 {strides = array<i32>} : memref<256x72xf32, #tpu.memory_space<vmem>>, vector<256x8xf32>,
    %c1_80 = arith.constant 1 : index
    %c2_81 = arith.constant 2 : index
    %c0_82 = arith.constant 0 : index
    %57 = vector.load %arg11[%c1_80, %c2_81, %c0_82] : memref<18x18x8xf32, #tpu.memory_space<vmem>>, vector<16x16x8xf32>
    %58 = vector.shape_cast %57 : vector<16x16x8xf32> to vector<256x8xf32>
    %c0_83 = arith.constant 0 : index
    %c40_84 = arith.constant 40 : index
    %59 = vector.load %arg12[%c0_83, %c40_84] : memref<256x72xf32, #tpu.memory_space<vmem>>, vector<256x8xf32>
    tpu.vector_store %arg12[%c0_83, %c40_84], %58 {strides = array<i32>} : memref<256x72xf32, #tpu.memory_space<vmem>>, vector<256x8xf32>,
    %c2_85 = arith.constant 2 : index
    %c0_86 = arith.constant 0 : index
    %c0_87 = arith.constant 0 : index
    %60 = vector.load %arg11[%c2_85, %c0_86, %c0_87] : memref<18x18x8xf32, #tpu.memory_space<vmem>>, vector<16x16x8xf32>
    %61 = vector.shape_cast %60 : vector<16x16x8xf32> to vector<256x8xf32>
    %c0_88 = arith.constant 0 : index
    %c48_89 = arith.constant 48 : index
    %62 = vector.load %arg12[%c0_88, %c48_89] : memref<256x72xf32, #tpu.memory_space<vmem>>, vector<256x8xf32>
    tpu.vector_store %arg12[%c0_88, %c48_89], %61 {strides = array<i32>} : memref<256x72xf32, #tpu.memory_space<vmem>>, vector<256x8xf32>,
    %c2_90 = arith.constant 2 : index
    %c1_91 = arith.constant 1 : index
    %c0_92 = arith.constant 0 : index
    %63 = vector.load %arg11[%c2_90, %c1_91, %c0_92] : memref<18x18x8xf32, #tpu.memory_space<vmem>>, vector<16x16x8xf32>
    %64 = vector.shape_cast %63 : vector<16x16x8xf32> to vector<256x8xf32>
    %c0_93 = arith.constant 0 : index
    %c56_94 = arith.constant 56 : index
    %65 = vector.load %arg12[%c0_93, %c56_94] : memref<256x72xf32, #tpu.memory_space<vmem>>, vector<256x8xf32>
    tpu.vector_store %arg12[%c0_93, %c56_94], %64 {strides = array<i32>} : memref<256x72xf32, #tpu.memory_space<vmem>>, vector<256x8xf32>,
    %c2_95 = arith.constant 2 : index
    %c2_96 = arith.constant 2 : index
    %c0_97 = arith.constant 0 : index
    %66 = vector.load %arg11[%c2_95, %c2_96, %c0_97] : memref<18x18x8xf32, #tpu.memory_space<vmem>>, vector<16x16x8xf32>
    %67 = vector.shape_cast %66 : vector<16x16x8xf32> to vector<256x8xf32>
    %c0_98 = arith.constant 0 : index
    %c64_99 = arith.constant 64 : index
    %68 = vector.load %arg12[%c0_98, %c64_99] : memref<256x72xf32, #tpu.memory_space<vmem>>, vector<256x8xf32>
    tpu.vector_store %arg12[%c0_98, %c64_99], %67 {strides = array<i32>} : memref<256x72xf32, #tpu.memory_space<vmem>>, vector<256x8xf32>,
    %c0_100 = arith.constant 0 : index
    %c0_101 = arith.constant 0 : index
    %69 = vector.load %arg12[%c0_100, %c0_101] : memref<256x72xf32, #tpu.memory_space<vmem>>, vector<256x72xf32>
    %c0_102 = arith.constant 0 : index
    %c0_103 = arith.constant 0 : index
    %70 = vector.load %arg4[%c0_102, %c0_103] : memref<72x8xf32, #tpu.memory_space<vmem>>, vector<72x8xf32>
    %cst_104 = arith.constant dense<0.000000e+00> : vector<256x8xf32>
    %71 = tpu.matmul %69, %70, %cst_104 {dimension_numbers = #tpu.dot_dimension_numbers<[1], [0], [0], [1], [0, 0, 1, 1], [], []>} : vector<256x72xf32>, vector<72x8xf32>, vector<256x8xf32> -> vector<256x8xf32>
    %c0_105 = arith.constant 0 : index
    %c0_106 = arith.constant 0 : index
    %72 = vector.load %arg5[%c0_105, %c0_106] : memref<1x8xf32, #tpu.memory_space<vmem>>, vector<1x8xf32>
    %73 = vector.broadcast %72 : vector<1x8xf32> to vector<256x8xf32>
    %74 = arith.addf %71, %73 : vector<256x8xf32>
    %cst_107 = arith.constant 0.000000e+00 : f32
    %75 = vector.broadcast %cst_107 : f32 to vector<256x8xf32>
    %76 = arith.maximumf %74, %75 : vector<256x8xf32>
    %77 = vector.shape_cast %76 : vector<256x8xf32> to vector<16x16x8xf32>
    %c1_108 = arith.constant 1 : index
    %c1_109 = arith.constant 1 : index
    %c0_110 = arith.constant 0 : index
    %78 = vector.load %arg11[%c1_108, %c1_109, %c0_110] : memref<18x18x8xf32, #tpu.memory_space<vmem>>, vector<16x16x8xf32>
    tpu.vector_store %arg11[%c1_108, %c1_109, %c0_110], %77 {strides = array<i32>} : memref<18x18x8xf32, #tpu.memory_space<vmem>>, vector<16x16x8xf32>,
    %c0_111 = arith.constant 0 : index
    %c0_112 = arith.constant 0 : index
    %c0_113 = arith.constant 0 : index
    %79 = vector.load %arg11[%c0_111, %c0_112, %c0_113] : memref<18x18x8xf32, #tpu.memory_space<vmem>>, vector<16x16x8xf32>
    %80 = vector.shape_cast %79 : vector<16x16x8xf32> to vector<256x8xf32>
    %c0_114 = arith.constant 0 : index
    %c0_115 = arith.constant 0 : index
    %81 = vector.load %arg12[%c0_114, %c0_115] : memref<256x72xf32, #tpu.memory_space<vmem>>, vector<256x8xf32>
    tpu.vector_store %arg12[%c0_114, %c0_115], %80 {strides = array<i32>} : memref<256x72xf32, #tpu.memory_space<vmem>>, vector<256x8xf32>,
    %c0_116 = arith.constant 0 : index
    %c1_117 = arith.constant 1 : index
    %c0_118 = arith.constant 0 : index
    %82 = vector.load %arg11[%c0_116, %c1_117, %c0_118] : memref<18x18x8xf32, #tpu.memory_space<vmem>>, vector<16x16x8xf32>
    %83 = vector.shape_cast %82 : vector<16x16x8xf32> to vector<256x8xf32>
    %c0_119 = arith.constant 0 : index
    %c8_120 = arith.constant 8 : index
    %84 = vector.load %arg12[%c0_119, %c8_120] : memref<256x72xf32, #tpu.memory_space<vmem>>, vector<256x8xf32>
    tpu.vector_store %arg12[%c0_119, %c8_120], %83 {strides = array<i32>} : memref<256x72xf32, #tpu.memory_space<vmem>>, vector<256x8xf32>,
    %c0_121 = arith.constant 0 : index
    %c2_122 = arith.constant 2 : index
    %c0_123 = arith.constant 0 : index
    %85 = vector.load %arg11[%c0_121, %c2_122, %c0_123] : memref<18x18x8xf32, #tpu.memory_space<vmem>>, vector<16x16x8xf32>
    %86 = vector.shape_cast %85 : vector<16x16x8xf32> to vector<256x8xf32>
    %c0_124 = arith.constant 0 : index
    %c16_125 = arith.constant 16 : index
    %87 = vector.load %arg12[%c0_124, %c16_125] : memref<256x72xf32, #tpu.memory_space<vmem>>, vector<256x8xf32>
    tpu.vector_store %arg12[%c0_124, %c16_125], %86 {strides = array<i32>} : memref<256x72xf32, #tpu.memory_space<vmem>>, vector<256x8xf32>,
    %c1_126 = arith.constant 1 : index
    %c0_127 = arith.constant 0 : index
    %c0_128 = arith.constant 0 : index
    %88 = vector.load %arg11[%c1_126, %c0_127, %c0_128] : memref<18x18x8xf32, #tpu.memory_space<vmem>>, vector<16x16x8xf32>
    %89 = vector.shape_cast %88 : vector<16x16x8xf32> to vector<256x8xf32>
    %c0_129 = arith.constant 0 : index
    %c24_130 = arith.constant 24 : index
    %90 = vector.load %arg12[%c0_129, %c24_130] : memref<256x72xf32, #tpu.memory_space<vmem>>, vector<256x8xf32>
    tpu.vector_store %arg12[%c0_129, %c24_130], %89 {strides = array<i32>} : memref<256x72xf32, #tpu.memory_space<vmem>>, vector<256x8xf32>,
    %c1_131 = arith.constant 1 : index
    %c1_132 = arith.constant 1 : index
    %c0_133 = arith.constant 0 : index
    %91 = vector.load %arg11[%c1_131, %c1_132, %c0_133] : memref<18x18x8xf32, #tpu.memory_space<vmem>>, vector<16x16x8xf32>
    %92 = vector.shape_cast %91 : vector<16x16x8xf32> to vector<256x8xf32>
    %c0_134 = arith.constant 0 : index
    %c32_135 = arith.constant 32 : index
    %93 = vector.load %arg12[%c0_134, %c32_135] : memref<256x72xf32, #tpu.memory_space<vmem>>, vector<256x8xf32>
    tpu.vector_store %arg12[%c0_134, %c32_135], %92 {strides = array<i32>} : memref<256x72xf32, #tpu.memory_space<vmem>>, vector<256x8xf32>,
    %c1_136 = arith.constant 1 : index
    %c2_137 = arith.constant 2 : index
    %c0_138 = arith.constant 0 : index
    %94 = vector.load %arg11[%c1_136, %c2_137, %c0_138] : memref<18x18x8xf32, #tpu.memory_space<vmem>>, vector<16x16x8xf32>
    %95 = vector.shape_cast %94 : vector<16x16x8xf32> to vector<256x8xf32>
    %c0_139 = arith.constant 0 : index
    %c40_140 = arith.constant 40 : index
    %96 = vector.load %arg12[%c0_139, %c40_140] : memref<256x72xf32, #tpu.memory_space<vmem>>, vector<256x8xf32>
    tpu.vector_store %arg12[%c0_139, %c40_140], %95 {strides = array<i32>} : memref<256x72xf32, #tpu.memory_space<vmem>>, vector<256x8xf32>,
    %c2_141 = arith.constant 2 : index
    %c0_142 = arith.constant 0 : index
    %c0_143 = arith.constant 0 : index
    %97 = vector.load %arg11[%c2_141, %c0_142, %c0_143] : memref<18x18x8xf32, #tpu.memory_space<vmem>>, vector<16x16x8xf32>
    %98 = vector.shape_cast %97 : vector<16x16x8xf32> to vector<256x8xf32>
    %c0_144 = arith.constant 0 : index
    %c48_145 = arith.constant 48 : index
    %99 = vector.load %arg12[%c0_144, %c48_145] : memref<256x72xf32, #tpu.memory_space<vmem>>, vector<256x8xf32>
    tpu.vector_store %arg12[%c0_144, %c48_145], %98 {strides = array<i32>} : memref<256x72xf32, #tpu.memory_space<vmem>>, vector<256x8xf32>,
    %c2_146 = arith.constant 2 : index
    %c1_147 = arith.constant 1 : index
    %c0_148 = arith.constant 0 : index
    %100 = vector.load %arg11[%c2_146, %c1_147, %c0_148] : memref<18x18x8xf32, #tpu.memory_space<vmem>>, vector<16x16x8xf32>
    %101 = vector.shape_cast %100 : vector<16x16x8xf32> to vector<256x8xf32>
    %c0_149 = arith.constant 0 : index
    %c56_150 = arith.constant 56 : index
    %102 = vector.load %arg12[%c0_149, %c56_150] : memref<256x72xf32, #tpu.memory_space<vmem>>, vector<256x8xf32>
    tpu.vector_store %arg12[%c0_149, %c56_150], %101 {strides = array<i32>} : memref<256x72xf32, #tpu.memory_space<vmem>>, vector<256x8xf32>,
    %c2_151 = arith.constant 2 : index
    %c2_152 = arith.constant 2 : index
    %c0_153 = arith.constant 0 : index
    %103 = vector.load %arg11[%c2_151, %c2_152, %c0_153] : memref<18x18x8xf32, #tpu.memory_space<vmem>>, vector<16x16x8xf32>
    %104 = vector.shape_cast %103 : vector<16x16x8xf32> to vector<256x8xf32>
    %c0_154 = arith.constant 0 : index
    %c64_155 = arith.constant 64 : index
    %105 = vector.load %arg12[%c0_154, %c64_155] : memref<256x72xf32, #tpu.memory_space<vmem>>, vector<256x8xf32>
    tpu.vector_store %arg12[%c0_154, %c64_155], %104 {strides = array<i32>} : memref<256x72xf32, #tpu.memory_space<vmem>>, vector<256x8xf32>,
    %c0_156 = arith.constant 0 : index
    %c0_157 = arith.constant 0 : index
    %106 = vector.load %arg12[%c0_156, %c0_157] : memref<256x72xf32, #tpu.memory_space<vmem>>, vector<256x72xf32>
    %c0_158 = arith.constant 0 : index
    %c0_159 = arith.constant 0 : index
    %107 = vector.load %arg6[%c0_158, %c0_159] : memref<72x8xf32, #tpu.memory_space<vmem>>, vector<72x8xf32>
    %cst_160 = arith.constant dense<0.000000e+00> : vector<256x8xf32>
    %108 = tpu.matmul %106, %107, %cst_160 {dimension_numbers = #tpu.dot_dimension_numbers<[1], [0], [0], [1], [0, 0, 1, 1], [], []>} : vector<256x72xf32>, vector<72x8xf32>, vector<256x8xf32> -> vector<256x8xf32>
    %c0_161 = arith.constant 0 : index
    %c0_162 = arith.constant 0 : index
    %109 = vector.load %arg7[%c0_161, %c0_162] : memref<1x8xf32, #tpu.memory_space<vmem>>, vector<1x8xf32>
    %110 = vector.broadcast %109 : vector<1x8xf32> to vector<256x8xf32>
    %111 = arith.addf %108, %110 : vector<256x8xf32>
    %cst_163 = arith.constant 0.000000e+00 : f32
    %112 = vector.broadcast %cst_163 : f32 to vector<256x8xf32>
    %113 = arith.maximumf %111, %112 : vector<256x8xf32>
    %114 = vector.shape_cast %113 : vector<256x8xf32> to vector<16x16x8xf32>
    %c1_164 = arith.constant 1 : index
    %c1_165 = arith.constant 1 : index
    %c0_166 = arith.constant 0 : index
    %115 = vector.load %arg11[%c1_164, %c1_165, %c0_166] : memref<18x18x8xf32, #tpu.memory_space<vmem>>, vector<16x16x8xf32>
    tpu.vector_store %arg11[%c1_164, %c1_165, %c0_166], %114 {strides = array<i32>} : memref<18x18x8xf32, #tpu.memory_space<vmem>>, vector<16x16x8xf32>,
    %c0_167 = arith.constant 0 : index
    %c0_168 = arith.constant 0 : index
    %c0_169 = arith.constant 0 : index
    %116 = vector.load %arg11[%c0_167, %c0_168, %c0_169] : memref<18x18x8xf32, #tpu.memory_space<vmem>>, vector<16x16x8xf32>
    %117 = vector.shape_cast %116 : vector<16x16x8xf32> to vector<256x8xf32>
    %c0_170 = arith.constant 0 : index
    %c0_171 = arith.constant 0 : index
    %118 = vector.load %arg12[%c0_170, %c0_171] : memref<256x72xf32, #tpu.memory_space<vmem>>, vector<256x8xf32>
    tpu.vector_store %arg12[%c0_170, %c0_171], %117 {strides = array<i32>} : memref<256x72xf32, #tpu.memory_space<vmem>>, vector<256x8xf32>,
    %c0_172 = arith.constant 0 : index
    %c1_173 = arith.constant 1 : index
    %c0_174 = arith.constant 0 : index
    %119 = vector.load %arg11[%c0_172, %c1_173, %c0_174] : memref<18x18x8xf32, #tpu.memory_space<vmem>>, vector<16x16x8xf32>
    %120 = vector.shape_cast %119 : vector<16x16x8xf32> to vector<256x8xf32>
    %c0_175 = arith.constant 0 : index
    %c8_176 = arith.constant 8 : index
    %121 = vector.load %arg12[%c0_175, %c8_176] : memref<256x72xf32, #tpu.memory_space<vmem>>, vector<256x8xf32>
    tpu.vector_store %arg12[%c0_175, %c8_176], %120 {strides = array<i32>} : memref<256x72xf32, #tpu.memory_space<vmem>>, vector<256x8xf32>,
    %c0_177 = arith.constant 0 : index
    %c2_178 = arith.constant 2 : index
    %c0_179 = arith.constant 0 : index
    %122 = vector.load %arg11[%c0_177, %c2_178, %c0_179] : memref<18x18x8xf32, #tpu.memory_space<vmem>>, vector<16x16x8xf32>
    %123 = vector.shape_cast %122 : vector<16x16x8xf32> to vector<256x8xf32>
    %c0_180 = arith.constant 0 : index
    %c16_181 = arith.constant 16 : index
    %124 = vector.load %arg12[%c0_180, %c16_181] : memref<256x72xf32, #tpu.memory_space<vmem>>, vector<256x8xf32>
    tpu.vector_store %arg12[%c0_180, %c16_181], %123 {strides = array<i32>} : memref<256x72xf32, #tpu.memory_space<vmem>>, vector<256x8xf32>,
    %c1_182 = arith.constant 1 : index
    %c0_183 = arith.constant 0 : index
    %c0_184 = arith.constant 0 : index
    %125 = vector.load %arg11[%c1_182, %c0_183, %c0_184] : memref<18x18x8xf32, #tpu.memory_space<vmem>>, vector<16x16x8xf32>
    %126 = vector.shape_cast %125 : vector<16x16x8xf32> to vector<256x8xf32>
    %c0_185 = arith.constant 0 : index
    %c24_186 = arith.constant 24 : index
    %127 = vector.load %arg12[%c0_185, %c24_186] : memref<256x72xf32, #tpu.memory_space<vmem>>, vector<256x8xf32>
    tpu.vector_store %arg12[%c0_185, %c24_186], %126 {strides = array<i32>} : memref<256x72xf32, #tpu.memory_space<vmem>>, vector<256x8xf32>,
    %c1_187 = arith.constant 1 : index
    %c1_188 = arith.constant 1 : index
    %c0_189 = arith.constant 0 : index
    %128 = vector.load %arg11[%c1_187, %c1_188, %c0_189] : memref<18x18x8xf32, #tpu.memory_space<vmem>>, vector<16x16x8xf32>
    %129 = vector.shape_cast %128 : vector<16x16x8xf32> to vector<256x8xf32>
    %c0_190 = arith.constant 0 : index
    %c32_191 = arith.constant 32 : index
    %130 = vector.load %arg12[%c0_190, %c32_191] : memref<256x72xf32, #tpu.memory_space<vmem>>, vector<256x8xf32>
    tpu.vector_store %arg12[%c0_190, %c32_191], %129 {strides = array<i32>} : memref<256x72xf32, #tpu.memory_space<vmem>>, vector<256x8xf32>,
    %c1_192 = arith.constant 1 : index
    %c2_193 = arith.constant 2 : index
    %c0_194 = arith.constant 0 : index
    %131 = vector.load %arg11[%c1_192, %c2_193, %c0_194] : memref<18x18x8xf32, #tpu.memory_space<vmem>>, vector<16x16x8xf32>
    %132 = vector.shape_cast %131 : vector<16x16x8xf32> to vector<256x8xf32>
    %c0_195 = arith.constant 0 : index
    %c40_196 = arith.constant 40 : index
    %133 = vector.load %arg12[%c0_195, %c40_196] : memref<256x72xf32, #tpu.memory_space<vmem>>, vector<256x8xf32>
    tpu.vector_store %arg12[%c0_195, %c40_196], %132 {strides = array<i32>} : memref<256x72xf32, #tpu.memory_space<vmem>>, vector<256x8xf32>,
    %c2_197 = arith.constant 2 : index
    %c0_198 = arith.constant 0 : index
    %c0_199 = arith.constant 0 : index
    %134 = vector.load %arg11[%c2_197, %c0_198, %c0_199] : memref<18x18x8xf32, #tpu.memory_space<vmem>>, vector<16x16x8xf32>
    %135 = vector.shape_cast %134 : vector<16x16x8xf32> to vector<256x8xf32>
    %c0_200 = arith.constant 0 : index
    %c48_201 = arith.constant 48 : index
    %136 = vector.load %arg12[%c0_200, %c48_201] : memref<256x72xf32, #tpu.memory_space<vmem>>, vector<256x8xf32>
    tpu.vector_store %arg12[%c0_200, %c48_201], %135 {strides = array<i32>} : memref<256x72xf32, #tpu.memory_space<vmem>>, vector<256x8xf32>,
    %c2_202 = arith.constant 2 : index
    %c1_203 = arith.constant 1 : index
    %c0_204 = arith.constant 0 : index
    %137 = vector.load %arg11[%c2_202, %c1_203, %c0_204] : memref<18x18x8xf32, #tpu.memory_space<vmem>>, vector<16x16x8xf32>
    %138 = vector.shape_cast %137 : vector<16x16x8xf32> to vector<256x8xf32>
    %c0_205 = arith.constant 0 : index
    %c56_206 = arith.constant 56 : index
    %139 = vector.load %arg12[%c0_205, %c56_206] : memref<256x72xf32, #tpu.memory_space<vmem>>, vector<256x8xf32>
    tpu.vector_store %arg12[%c0_205, %c56_206], %138 {strides = array<i32>} : memref<256x72xf32, #tpu.memory_space<vmem>>, vector<256x8xf32>,
    %c2_207 = arith.constant 2 : index
    %c2_208 = arith.constant 2 : index
    %c0_209 = arith.constant 0 : index
    %140 = vector.load %arg11[%c2_207, %c2_208, %c0_209] : memref<18x18x8xf32, #tpu.memory_space<vmem>>, vector<16x16x8xf32>
    %141 = vector.shape_cast %140 : vector<16x16x8xf32> to vector<256x8xf32>
    %c0_210 = arith.constant 0 : index
    %c64_211 = arith.constant 64 : index
    %142 = vector.load %arg12[%c0_210, %c64_211] : memref<256x72xf32, #tpu.memory_space<vmem>>, vector<256x8xf32>
    tpu.vector_store %arg12[%c0_210, %c64_211], %141 {strides = array<i32>} : memref<256x72xf32, #tpu.memory_space<vmem>>, vector<256x8xf32>,
    %c0_212 = arith.constant 0 : index
    %c0_213 = arith.constant 0 : index
    %143 = vector.load %arg12[%c0_212, %c0_213] : memref<256x72xf32, #tpu.memory_space<vmem>>, vector<256x72xf32>
    %c0_214 = arith.constant 0 : index
    %c0_215 = arith.constant 0 : index
    %144 = vector.load %arg8[%c0_214, %c0_215] : memref<72x8xf32, #tpu.memory_space<vmem>>, vector<72x8xf32>
    %cst_216 = arith.constant dense<0.000000e+00> : vector<256x8xf32>
    %145 = tpu.matmul %143, %144, %cst_216 {dimension_numbers = #tpu.dot_dimension_numbers<[1], [0], [0], [1], [0, 0, 1, 1], [], []>} : vector<256x72xf32>, vector<72x8xf32>, vector<256x8xf32> -> vector<256x8xf32>
    %c0_217 = arith.constant 0 : index
    %c0_218 = arith.constant 0 : index
    %146 = vector.load %arg9[%c0_217, %c0_218] : memref<1x8xf32, #tpu.memory_space<vmem>>, vector<1x8xf32>
    %147 = vector.broadcast %146 : vector<1x8xf32> to vector<256x8xf32>
    %148 = arith.addf %145, %147 : vector<256x8xf32>
    %cst_219 = arith.constant 0.000000e+00 : f32
    %149 = vector.broadcast %cst_219 : f32 to vector<256x8xf32>
    %150 = arith.maximumf %148, %149 : vector<256x8xf32>
    %cst_220 = arith.constant dense<0.000000e+00> : vector<8xf32>
    %151 = vector.multi_reduction <add>, %150, %cst_220 [0] : vector<256x8xf32> to vector<8xf32>
    %152 = vector.shape_cast %151 : vector<8xf32> to vector<1x8xf32>
    %cst_221 = arith.constant 3.906250e-03 : f32
    %153 = vector.broadcast %cst_221 : f32 to vector<1x8xf32>
    %154 = arith.mulf %152, %153 : vector<1x8xf32>
    %155 = vector.shape_cast %154 : vector<1x8xf32> to vector<1x1x8xf32>
    %c0_222 = arith.constant 0 : index
    %c0_223 = arith.constant 0 : index
    %c0_224 = arith.constant 0 : index
    %156 = vector.load %arg10[%c0_222, %c0_223, %c0_224] : memref<1x1x8xf32, #tpu.memory_space<vmem>>, vector<1x1x8xf32>
    tpu.vector_store %arg10[%c0_222, %c0_223, %c0_224], %155 {strides = array<i32>} : memref<1x1x8xf32, #tpu.memory_space<vmem>>, vector<1x1x8xf32>,
    return
  }
  func.func @transform_0(%arg0: i32) -> (i32, i32, i32, i32) {
    %c0_i32 = arith.constant 0 : i32
    %c0_i32_0 = arith.constant 0 : i32
    %c0_i32_1 = arith.constant 0 : i32
    %c0_i32_2 = arith.constant 0 : i32
    return %arg0, %c0_i32, %c0_i32_0, %c0_i32_1 : i32, i32, i32, i32
  }
  func.func @transform_1(%arg0: i32) -> (i32, i32) {
    %c0_i32 = arith.constant 0 : i32
    %c0_i32_0 = arith.constant 0 : i32
    %c0_i32_1 = arith.constant 0 : i32
    return %c0_i32, %c0_i32_0 : i32, i32
  }
  func.func @transform_2(%arg0: i32) -> (i32, i32) {
    %c0_i32 = arith.constant 0 : i32
    %c0_i32_0 = arith.constant 0 : i32
    %c0_i32_1 = arith.constant 0 : i32
    return %c0_i32, %c0_i32_0 : i32, i32
  }
  func.func @transform_3(%arg0: i32) -> (i32, i32) {
    %c0_i32 = arith.constant 0 : i32
    %c0_i32_0 = arith.constant 0 : i32
    %c0_i32_1 = arith.constant 0 : i32
    return %c0_i32, %c0_i32_0 : i32, i32
  }
  func.func @transform_4(%arg0: i32) -> (i32, i32) {
    %c0_i32 = arith.constant 0 : i32
    %c0_i32_0 = arith.constant 0 : i32
    %c0_i32_1 = arith.constant 0 : i32
    return %c0_i32, %c0_i32_0 : i32, i32
  }
  func.func @transform_5(%arg0: i32) -> (i32, i32) {
    %c0_i32 = arith.constant 0 : i32
    %c0_i32_0 = arith.constant 0 : i32
    %c0_i32_1 = arith.constant 0 : i32
    return %c0_i32, %c0_i32_0 : i32, i32
  }
  func.func @transform_6(%arg0: i32) -> (i32, i32) {
    %c0_i32 = arith.constant 0 : i32
    %c0_i32_0 = arith.constant 0 : i32
    %c0_i32_1 = arith.constant 0 : i32
    return %c0_i32, %c0_i32_0 : i32, i32
  }
  func.func @transform_7(%arg0: i32) -> (i32, i32) {
    %c0_i32 = arith.constant 0 : i32
    %c0_i32_0 = arith.constant 0 : i32
    %c0_i32_1 = arith.constant 0 : i32
    return %c0_i32, %c0_i32_0 : i32, i32
  }
  func.func @transform_8(%arg0: i32) -> (i32, i32) {
    %c0_i32 = arith.constant 0 : i32
    %c0_i32_0 = arith.constant 0 : i32
    %c0_i32_1 = arith.constant 0 : i32
    return %c0_i32, %c0_i32_0 : i32, i32
  }
  func.func @transform_9(%arg0: i32) -> (i32, i32, i32) {
    %c0_i32 = arith.constant 0 : i32
    %c0_i32_0 = arith.constant 0 : i32
    %c0_i32_1 = arith.constant 0 : i32
    return %arg0, %c0_i32, %c0_i32_0 : i32, i32, i32
  }
}

</mosaic_0001>

<bundles_post_ra>
// kernel: simple_cnn_forward.1
= control target key start
LH: loop header
LB: loop body
LE: loop exit
PB: predicated region body
PF: predicated region fallthrough
CT: control target
= control target key end

     0   :  { %14 = vsyncpa [#allocation5], 0  ;;  %s13895_s0 = inlined_call_operand.vmem [shape: f32[2,16,16,8], index: 0, kind: input, shape index: {}]   ;;  %s13896_s1 = inlined_call_operand.vmem [shape: f32[72,8], index: 1, kind: input, shape index: {}]   ;;  %s13897_s2 = inlined_call_operand.vmem [shape: f32[1,8], index: 2, kind: input, shape index: {}]   ;;  %s13898_s3 = inlined_call_operand.vmem [shape: f32[72,8], index: 3, kind: input, shape index: {}]   ;;  %s13899_s4 = inlined_call_operand.vmem [shape: f32[1,8], index: 4, kind: input, shape index: {}]   ;;  %s13900_s5 = inlined_call_operand.vmem [shape: f32[72,8], index: 5, kind: input, shape index: {}]   ;;  %s13901_s6 = inlined_call_operand.vmem [shape: f32[1,8], index: 6, kind: input, shape index: {}]   ;;  %s13902_s7 = inlined_call_operand.vmem [shape: f32[72,8], index: 7, kind: input, shape index: {}]   ;;  %s13903_s8 = inlined_call_operand.vmem [shape: f32[1,8], index: 8, kind: input, shape index: {}]   ;;  %s13904_s9 = inlined_call_operand.hbm [shape: f32[2,1,8], index: 9, kind: output, shape index: {}]  }
   0x1   :  { %16 = vsyncpa [#allocation5 + $0x1], 0  ;;  %s9507_s30 = smov 0   ;;  %s9509_s10 = smov 0  }
   0x2   :  { %s9511_s11 = smov 0   ;;  %s9513_s12 = smov 0  }
   0x3 LB: > { %s9528_s13 = sadd.s32 4294967295, %s9445_s12   ;;  %s8701_s14 = sadd.s32 4294967294, %s9445_s12   ;;  %s9445_s12 = sphi %s9513_s12, %s14183_s12   ;;  %s9441_s11 = sphi %s9511_s11, %s14182_s11   ;;  %s9437_s10 = sphi %s9509_s10, %s14181_s10   ;;  %s9433_s30 = sphi %s9507_s30, %s14180_s30  }
   0x4   : > { %s9532_s15 = sadd.s32 1, %s9445_s12   ;;  %s223_s16 = sadd.s32 1, %s9441_s11 }
   0x5   : > { %s220_s17 = ssub.s32 %s9445_s12, %s9532_s15  ;;  %p233_p0 = scmp.ne.s32.totalorder %s9441_s11, %s9437_s10 }
   0x6   : > { %p221_p1 = scmp.eq.s32.totalorder %s220_s17, 0  ;;  %p234_p2 = scmp.eq.s32.totalorder %s9528_s13, 1 }
   0x7   : > { %p239_p3 = scmp.ne.s32.totalorder %s9437_s10, %s9433_s30  ;;  %p240_p4 = scmp.eq.s32.totalorder %s8701_s14, 1 }
   0x8   : > { %s9543_s18 = scalar_select %p221_p1, %s9441_s11, %s223_s16  }
   0x9   : > { %p9545_p5 = por %p234_p2, %p233_p0  ;;  %p9549_p6 = por %p240_p4, %p239_p3 }
   0xa   : > { %p8704_p7 = scmp.ge.s32.totalorder %s9445_s12, 1  ;;  %p290_p8 = scmp.lt.s32.totalorder %s9445_s12, 3 }
   0xc   : > { %p291_p9 = pnand %p8704_p7, %p290_p8 }
   0xe   : > { %294 = sbr.rel (%p291_p9) target bundleno = 3309 (0xced), region = 56 }
  0x15   : > { %vm330_vm0 = vcmask 64512   ;;  %p325_p10 = scmp.lt.s32.totalorder %s9528_s13, 1  ;;  %vm333_vm1 = vcmask 58368   ;;  %v9447_v0 = vmov 0.0   ;;  %s9448_s26 = smov 8   ;;  %vm675_vm2 = vcmask 130112  }
  0x16   : > { %331 = vst.msk [vmem:[#allocation2] sm:$0xff] %vm330_vm0, %v9447_v0  ;;  %332 = vst.msk [vmem:[#allocation2 + $0x8] sm:$0xff] %vm330_vm0, %v9447_v0  ;;  %s9449_s27 = smov 16   ;;  %s13995_s28 = smov 24   ;;  %vm868_vm3 = vcmask 195712   ;;  %vm1061_vm4 = vcmask 261312  }
  0x17   : > { %335 = vst.msk [vmem:[#allocation2 + $0x18] sm:$0xff] %vm330_vm0, %v9447_v0  ;;  %336 = vst.msk [vmem:[#allocation2 + $0x20] sm:$0xff] %vm330_vm0, %v9447_v0  ;;  %s326_s21 = scalar_select %p325_p10, %s9528_s13, 1  ;;  %vm1254_vm5 = vcmask 326912   ;;  %vm1447_vm6 = vcmask 392512   ;;  %vm1641_vm7 = vcmask 458112  }
  0x18   : > { %338 = vst.msk [vmem:[#allocation2 + $0x30] sm:$0xff] %vm330_vm0, %v9447_v0  ;;  %339 = vst.msk [vmem:[#allocation2 + $0x38] sm:$0xff] %vm330_vm0, %v9447_v0  ;;  %s9451_s29 = smov 32   ;;  %s9452_s14 = smov 40   ;;  %vm1834_vm8 = vcmask 523712   ;;  %vm2027_vm9 = vcmask 589312  }
  0x19   : > { %341 = vst.msk [vmem:[#allocation2 + $0x48] sm:$0xff] %vm330_vm0, %v9447_v0  ;;  %342 = vst.msk [vmem:[#allocation2 + $0x50] sm:$0xff] %vm330_vm0, %v9447_v0  ;;  %s8842_s22 = sshll.u32 %s326_s21, 8  ;;  %s9453_s16 = smov 48   ;;  %vm2108_vm10 = vcmask 588800   ;;  %vm8631_vm11 = vcmask 57344  }
  0x1a   : > { %344 = vst.msk [vmem:[#allocation2 + $0x60] sm:$0xff] %vm330_vm0, %v9447_v0  ;;  %345 = vst.msk [vmem:[#allocation2 + $0x68] sm:$0xff] %vm330_vm0, %v9447_v0  ;;  %s9616_s25 = scalar_lea.vmem %s13895_s0, %s8842_s22  ;;  %s9454_s17 = smov 56  }
  0x1b   : > { %347 = vst.msk [vmem:[#allocation2 + $0x78] sm:$0xff] %vm330_vm0, %v9447_v0  ;;  %348 = vst.msk [vmem:[#allocation2 + $0x80] sm:$0xff] %vm330_vm0, %v9447_v0  ;;  %v386_v1 = vld [vmem:[%s9616_s25] sm:$0xff]  ;;  %v387_v2 = vld [vmem:[%s9616_s25 + $0x8] sm:$0xff]  ;;  %s9455_s24 = smov 64   ;;  %s14179_s23 = smov 24  }
  0x1c   : > { %350 = vst.msk [vmem:[#allocation2 + $0x90] sm:$0xff] %vm330_vm0, %v9447_v0  ;;  %351 = vst.msk [vmem:[#allocation2 + $0x98] sm:$0xff] %vm330_vm0, %v9447_v0  ;;  %v388_v3 = vld [vmem:[%s9616_s25 + $0x10] sm:$0xff]  ;;  %v389_v4 = vld [vmem:[%s9616_s25 + $0x18] sm:$0xff] }
  0x1d   : > { %353 = vst.msk [vmem:[#allocation2 + $0xa8] sm:$0xff] %vm330_vm0, %v9447_v0  ;;  %354 = vst.msk [vmem:[#allocation2 + $0xb0] sm:$0xff] %vm330_vm0, %v9447_v0  ;;  %v390_v5 = vld [vmem:[%s9616_s25 + $0x20] sm:$0xff]  ;;  %v391_v6 = vld [vmem:[%s9616_s25 + $0x28] sm:$0xff] }
  0x1e   : > { %356 = vst.msk [vmem:[#allocation2 + $0xc0] sm:$0xff] %vm330_vm0, %v9447_v0  ;;  %357 = vst.msk [vmem:[#allocation2 + $0xc8] sm:$0xff] %vm330_vm0, %v9447_v0  ;;  %v515_v7 = vld [vmem:[#allocation2 + $0x1] sm:$0xff]  ;;  %v392_v9 = vld [vmem:[%s9616_s25 + $0x30] sm:$0xff] }
  0x1f   : > { %359 = vst.msk [vmem:[#allocation2 + $0xd8] sm:$0xff] %vm330_vm0, %v9447_v0  ;;  %360 = vst.msk [vmem:[#allocation2 + $0xe0] sm:$0xff] %vm330_vm0, %v9447_v0  ;;  %579 = vrot.lane.b32.xlu0 %v515_v7, %s9448_s26  ;;  %v393_v10 = vld [vmem:[%s9616_s25 + $0x38] sm:$0xff]  ;;  %v394_v11 = vld [vmem:[%s9616_s25 + $0x40] sm:$0xff] }
  0x20   : > { %362 = vst.msk [vmem:[#allocation2 + $0xf0] sm:$0xff] %vm330_vm0, %v9447_v0  ;;  %363 = vst.msk [vmem:[#allocation2 + $0xf8] sm:$0xff] %vm330_vm0, %v9447_v0  ;;  %v395_v12 = vld [vmem:[%s9616_s25 + $0x48] sm:$0xff]  ;;  %v396_v13 = vld [vmem:[%s9616_s25 + $0x50] sm:$0xff] }
  0x21   : > { %365 = vst.msk [vmem:[#allocation2 + $0x108] sm:$0xff] %vm330_vm0, %v9447_v0  ;;  %366 = vst.msk [vmem:[#allocation2 + $0x110] sm:$0xff] %vm330_vm0, %v9447_v0  ;;  %v397_v14 = vld [vmem:[%s9616_s25 + $0x58] sm:$0xff]  ;;  %v398_v15 = vld [vmem:[%s9616_s25 + $0x60] sm:$0xff] }
  0x22   : > { %368 = vst.msk [vmem:[#allocation2 + $0x120] sm:$0xff] %vm330_vm0, %v9447_v0  ;;  %369 = vst.msk [vmem:[#allocation2 + $0x128] sm:$0xff] %vm330_vm0, %v9447_v0  ;;  %v399_v16 = vld [vmem:[%s9616_s25 + $0x68] sm:$0xff]  ;;  %v400_v17 = vld [vmem:[%s9616_s25 + $0x70] sm:$0xff] }
  0x23   : > { %371 = vst.msk [vmem:[#allocation2 + $0x138] sm:$0xff] %vm330_vm0, %v9447_v0  ;;  %372 = vst.msk [vmem:[#allocation2 + $0x140] sm:$0xff] %vm330_vm0, %v9447_v0  ;;  %v401_v18 = vld [vmem:[%s9616_s25 + $0x78] sm:$0xff]  ;;  %v402_v19 = vld [vmem:[%s9616_s25 + $0x80] sm:$0xff] }
  0x24   : > { %374 = vst.msk [vmem:[#allocation2 + $0x150] sm:$0xff] %vm330_vm0, %v9447_v0  ;;  %375 = vst.msk [vmem:[#allocation2 + $0x158] sm:$0xff] %vm330_vm0, %v9447_v0  ;;  %v403_v20 = vld [vmem:[%s9616_s25 + $0x88] sm:$0xff]  ;;  %v404_v21 = vld [vmem:[%s9616_s25 + $0x90] sm:$0xff] }
  0x25   : > { %377 = vst.msk [vmem:[#allocation2 + $0x168] sm:$0xff] %vm330_vm0, %v9447_v0  ;;  %378 = vst.msk [vmem:[#allocation2 + $0x170] sm:$0xff] %vm330_vm0, %v9447_v0  ;;  %v405_v22 = vld [vmem:[%s9616_s25 + $0x98] sm:$0xff]  ;;  %v406_v23 = vld [vmem:[%s9616_s25 + $0xa0] sm:$0xff] }
  0x26   : > { %380 = vst.msk [vmem:[#allocation2 + $0x180] sm:$0xff] %vm330_vm0, %v9447_v0  ;;  %381 = vst.msk [vmem:[#allocation2 + $0x188] sm:$0xff] %vm330_vm0, %v9447_v0  ;;  %v407_v24 = vld [vmem:[%s9616_s25 + $0xa8] sm:$0xff]  ;;  %v408_v28 = vld [vmem:[%s9616_s25 + $0xb0] sm:$0xff] }
  0x27   : > { %383 = vst.msk [vmem:[#allocation2 + $0x198] sm:$0xff] %vm330_vm0, %v9447_v0  ;;  %384 = vst.msk [vmem:[#allocation2 + $0x1a0] sm:$0xff] %vm330_vm0, %v9447_v0  ;;  %v409_v29 = vld [vmem:[%s9616_s25 + $0xb8] sm:$0xff]  ;;  %v410_v33 = vld [vmem:[%s9616_s25 + $0xc0] sm:$0xff] }
  0x28   : > { %334 = vst.msk [vmem:[#allocation2 + $0x10] sm:$0x3] %vm333_vm1, %v9447_v0  ;;  %337 = vst.msk [vmem:[#allocation2 + $0x28] sm:$0x3] %vm333_vm1, %v9447_v0  ;;  %v411_v34 = vld [vmem:[%s9616_s25 + $0xc8] sm:$0xff]  ;;  %v412_v35 = vld [vmem:[%s9616_s25 + $0xd0] sm:$0xff] }
  0x29   : > { %340 = vst.msk [vmem:[#allocation2 + $0x40] sm:$0x3] %vm333_vm1, %v9447_v0  ;;  %343 = vst.msk [vmem:[#allocation2 + $0x58] sm:$0x3] %vm333_vm1, %v9447_v0  ;;  %v413_v36 = vld [vmem:[%s9616_s25 + $0xd8] sm:$0xff]  ;;  %v414_v37 = vld [vmem:[%s9616_s25 + $0xe0] sm:$0xff] }
  0x2a   : > { %346 = vst.msk [vmem:[#allocation2 + $0x70] sm:$0x3] %vm333_vm1, %v9447_v0  ;;  %349 = vst.msk [vmem:[#allocation2 + $0x88] sm:$0x3] %vm333_vm1, %v9447_v0  ;;  %v415_v38 = vld [vmem:[%s9616_s25 + $0xe8] sm:$0xff]  ;;  %v451_v45 = vld [vmem:[#allocation2] sm:$0xff] }
  0x2b   : > { %352 = vst.msk [vmem:[#allocation2 + $0xa0] sm:$0x3] %vm333_vm1, %v9447_v0  ;;  %355 = vst.msk [vmem:[#allocation2 + $0xb8] sm:$0x3] %vm333_vm1, %v9447_v0  ;;  %v452_v48 = vld [vmem:[#allocation2 + $0x8] sm:$0xff] }
  0x2c   : > { %358 = vst.msk [vmem:[#allocation2 + $0xd0] sm:$0x3] %vm333_vm1, %v9447_v0  ;;  %361 = vst.msk [vmem:[#allocation2 + $0xe8] sm:$0x3] %vm333_vm1, %v9447_v0 }
  0x2d   : > { %364 = vst.msk [vmem:[#allocation2 + $0x100] sm:$0x3] %vm333_vm1, %v9447_v0  ;;  %367 = vst.msk [vmem:[#allocation2 + $0x118] sm:$0x3] %vm333_vm1, %v9447_v0 }
  0x2e   : > { %370 = vst.msk [vmem:[#allocation2 + $0x130] sm:$0x3] %vm333_vm1, %v9447_v0  ;;  %373 = vst.msk [vmem:[#allocation2 + $0x148] sm:$0x3] %vm333_vm1, %v9447_v0 }
  0x2f   : > { %376 = vst.msk [vmem:[#allocation2 + $0x160] sm:$0x3] %vm333_vm1, %v9447_v0  ;;  %379 = vst.msk [vmem:[#allocation2 + $0x178] sm:$0x3] %vm333_vm1, %v9447_v0  ;;  %v516_v8 = vld [vmem:[#allocation2 + $0x9] sm:$0xff] }
  0x30   : > { %382 = vst.msk [vmem:[#allocation2 + $0x190] sm:$0x3] %vm333_vm1, %v9447_v0  ;;  %385 = vst.msk [vmem:[#allocation2 + $0x1a8] sm:$0x3] %vm333_vm1, %v9447_v0  ;;  %581 = vrot.lane.b32.xlu0 %v516_v8, %s9448_s26 }
  0x31   : > { %419 = vst.msk [vmem:[#allocation2 + $0x19] sm:$0xff] %vm330_vm0, %v386_v1  ;;  %420 = vst.msk [vmem:[#allocation2 + $0x21] sm:$0xff] %vm330_vm0, %v387_v2 }
  0x32   : > { %421 = vst.msk [vmem:[#allocation2 + $0x31] sm:$0xff] %vm330_vm0, %v388_v3  ;;  %422 = vst.msk [vmem:[#allocation2 + $0x39] sm:$0xff] %vm330_vm0, %v389_v4 }
  0x33   : > { %423 = vst.msk [vmem:[#allocation2 + $0x49] sm:$0xff] %vm330_vm0, %v390_v5  ;;  %424 = vst.msk [vmem:[#allocation2 + $0x51] sm:$0xff] %vm330_vm0, %v391_v6 }
  0x34   : > { %425 = vst.msk [vmem:[#allocation2 + $0x61] sm:$0xff] %vm330_vm0, %v392_v9  ;;  %426 = vst.msk [vmem:[#allocation2 + $0x69] sm:$0xff] %vm330_vm0, %v393_v10 }
  0x35   : > { %427 = vst.msk [vmem:[#allocation2 + $0x79] sm:$0xff] %vm330_vm0, %v394_v11  ;;  %428 = vst.msk [vmem:[#allocation2 + $0x81] sm:$0xff] %vm330_vm0, %v395_v12 }
  0x36   : > { %429 = vst.msk [vmem:[#allocation2 + $0x91] sm:$0xff] %vm330_vm0, %v396_v13  ;;  %430 = vst.msk [vmem:[#allocation2 + $0x99] sm:$0xff] %vm330_vm0, %v397_v14 }
  0x37   : > { %431 = vst.msk [vmem:[#allocation2 + $0xa9] sm:$0xff] %vm330_vm0, %v398_v15  ;;  %432 = vst.msk [vmem:[#allocation2 + $0xb1] sm:$0xff] %vm330_vm0, %v399_v16 }
  0x38   : > { %433 = vst.msk [vmem:[#allocation2 + $0xc1] sm:$0xff] %vm330_vm0, %v400_v17  ;;  %434 = vst.msk [vmem:[#allocation2 + $0xc9] sm:$0xff] %vm330_vm0, %v401_v18  ;;  %v9661_v25 = vld [vmem:[#allocation2 + $0x19] sm:$0xff]  ;;  %v9670_v27 = vld [vmem:[#allocation2 + $0x21] sm:$0xff] }
  0x39   : > { %435 = vst.msk [vmem:[#allocation2 + $0xd9] sm:$0xff] %vm330_vm0, %v402_v19  ;;  %436 = vst.msk [vmem:[#allocation2 + $0xe1] sm:$0xff] %vm330_vm0, %v403_v20  ;;  %v9663_v26 = vld [vmem:[#allocation2 + $0x31] sm:$0xff]  ;;  %583 = vrot.lane.b32.xlu1 %v9661_v25, %s9448_s26  ;;  %v9682_v31 = vld [vmem:[#allocation2 + $0x39] sm:$0xff] }
  0x3a   : > { %437 = vst.msk [vmem:[#allocation2 + $0xf1] sm:$0xff] %vm330_vm0, %v404_v21  ;;  %438 = vst.msk [vmem:[#allocation2 + $0xf9] sm:$0xff] %vm330_vm0, %v405_v22  ;;  %587 = vrot.lane.b32.xlu0 %v9663_v26, %s9448_s26  ;;  %v9678_v30 = vld [vmem:[#allocation2 + $0x49] sm:$0xff]  ;;  %v9699_v39 = vld [vmem:[#allocation2 + $0x51] sm:$0xff] }
  0x3b   : > { %439 = vst.msk [vmem:[#allocation2 + $0x109] sm:$0xff] %vm330_vm0, %v406_v23  ;;  %440 = vst.msk [vmem:[#allocation2 + $0x111] sm:$0xff] %vm330_vm0, %v407_v24  ;;  %v9686_v32 = vld [vmem:[#allocation2 + $0x61] sm:$0xff]  ;;  %v9710_v41 = vld [vmem:[#allocation2 + $0x69] sm:$0xff] }
  0x3c   : > { %441 = vst.msk [vmem:[#allocation2 + $0x121] sm:$0xff] %vm330_vm0, %v408_v28  ;;  %442 = vst.msk [vmem:[#allocation2 + $0x129] sm:$0xff] %vm330_vm0, %v409_v29  ;;  %v9706_v40 = vld [vmem:[#allocation2 + $0x79] sm:$0xff]  ;;  %v9718_v43 = vld [vmem:[#allocation2 + $0x81] sm:$0xff] }
  0x3d   : > { %585 = vrot.lane.b32.xlu1 %v9670_v27, %s9448_s26  ;;  %443 = vst.msk [vmem:[#allocation2 + $0x139] sm:$0xff] %vm330_vm0, %v410_v33  ;;  %444 = vst.msk [vmem:[#allocation2 + $0x141] sm:$0xff] %vm330_vm0, %v411_v34  ;;  %v9714_v42 = vld [vmem:[#allocation2 + $0x91] sm:$0xff]  ;;  %v9728_v47 = vld [vmem:[#allocation2 + $0x99] sm:$0xff] }
  0x3e   : > { %591 = vrot.lane.b32.xlu0 %v9678_v30, %s9448_s26  ;;  %445 = vst.msk [vmem:[#allocation2 + $0x151] sm:$0xff] %vm330_vm0, %v412_v35  ;;  %446 = vst.msk [vmem:[#allocation2 + $0x159] sm:$0xff] %vm330_vm0, %v413_v36  ;;  %v9722_v44 = vld [vmem:[#allocation2 + $0xa9] sm:$0xff]  ;;  %v9726_v46 = vld [vmem:[#allocation2 + $0x18] sm:$0xff] }
  0x3f   : > { %447 = vst.msk [vmem:[#allocation2 + $0x169] sm:$0xff] %vm330_vm0, %v414_v37  ;;  %448 = vst.msk [vmem:[#allocation2 + $0x171] sm:$0xff] %vm330_vm0, %v415_v38  ;;  %v9736_v49 = vld [vmem:[#allocation2 + $0x20] sm:$0xff]  ;;  %v9742_v51 = vld [vmem:[#allocation2 + $0x30] sm:$0xff] }
  0x40   : > { %483 = vst.msk [vmem:[#allocation3] sm:$0xff] %vm330_vm0, %v451_v45  ;;  %485 = vst.msk [vmem:[#allocation3 + $0x10] sm:$0xff] %vm330_vm0, %v9726_v46  ;;  %v9738_v50 = vld [vmem:[#allocation2 + $0xc1] sm:$0xff]  ;;  %v9744_v52 = vld [vmem:[#allocation2 + $0x38] sm:$0xff] }
  0x41   : > { %589 = vrot.lane.b32.xlu1 %v9682_v31, %s9448_s26  ;;  %484 = vst.msk [vmem:[#allocation3 + $0x8] sm:$0xff] %vm330_vm0, %v452_v48  ;;  %486 = vst.msk [vmem:[#allocation3 + $0x18] sm:$0xff] %vm330_vm0, %v9736_v49  ;;  %v9748_v53 = vld [vmem:[#allocation2 + $0xb1] sm:$0xff]  ;;  %v9754_v54 = vld [vmem:[#allocation2 + $0x48] sm:$0xff] }
  0x42   : > { %595 = vrot.lane.b32.xlu0 %v9686_v32, %s9448_s26  ;;  %487 = vst.msk [vmem:[#allocation3 + $0x20] sm:$0xff] %vm330_vm0, %v9742_v51  ;;  %488 = vst.msk [vmem:[#allocation3 + $0x28] sm:$0xff] %vm330_vm0, %v9744_v52  ;;  %v9756_v55 = vld [vmem:[#allocation2 + $0x50] sm:$0xff]  ;;  %v9758_v56 = vld [vmem:[#allocation2 + $0xd9] sm:$0xff] }
  0x43   : > { %489 = vst.msk [vmem:[#allocation3 + $0x30] sm:$0xff] %vm330_vm0, %v9754_v54  ;;  %490 = vst.msk [vmem:[#allocation3 + $0x38] sm:$0xff] %vm330_vm0, %v9756_v55  ;;  %v9764_v57 = vld [vmem:[#allocation2 + $0x60] sm:$0xff]  ;;  %v9766_v58 = vld [vmem:[#allocation2 + $0x68] sm:$0xff] }
  0x44   : > { %v9768_v59 = vld [vmem:[#allocation2 + $0x78] sm:$0xff]  ;;  %491 = vst.msk [vmem:[#allocation3 + $0x40] sm:$0xff] %vm330_vm0, %v9764_v57  ;;  %492 = vst.msk [vmem:[#allocation3 + $0x48] sm:$0xff] %vm330_vm0, %v9766_v58  ;;  %v9778_v60 = vld [vmem:[#allocation2 + $0x80] sm:$0xff] }
  0x45   : > { %593 = vrot.lane.b32.xlu1 %v9699_v39, %s9448_s26  ;;  %493 = vst.msk [vmem:[#allocation3 + $0x50] sm:$0xff] %vm330_vm0, %v9768_v59  ;;  %v9780_v61 = vld [vmem:[#allocation2 + $0x90] sm:$0xff]  ;;  %v9782_v62 = vld [vmem:[#allocation2 + $0x98] sm:$0xff]  ;;  %494 = vst.msk [vmem:[#allocation3 + $0x58] sm:$0xff] %vm330_vm0, %v9778_v60 }
  0x46   : > { %599 = vrot.lane.b32.xlu0 %v9706_v40, %s9448_s26  ;;  %v9784_v63 = vld [vmem:[#allocation2 + $0xc9] sm:$0xff]  ;;  %495 = vst.msk [vmem:[#allocation3 + $0x60] sm:$0xff] %vm330_vm0, %v9780_v61  ;;  %496 = vst.msk [vmem:[#allocation3 + $0x68] sm:$0xff] %vm330_vm0, %v9782_v62  ;;  %v9796_v2 = vld [vmem:[#allocation2 + $0xc0] sm:$0xff] }
  0x47   : > { %v9792_v0 = vld [vmem:[#allocation2 + $0xa8] sm:$0xff]  ;;  %v9794_v1 = vld [vmem:[#allocation2 + $0xb0] sm:$0xff]  ;;  %499 = vst.msk [vmem:[#allocation3 + $0x80] sm:$0xff] %vm330_vm0, %v9796_v2  ;;  %v9808_v4 = vld [vmem:[#allocation2 + $0xd8] sm:$0xff] }
  0x48   : > { %497 = vst.msk [vmem:[#allocation3 + $0x70] sm:$0xff] %vm330_vm0, %v9792_v0  ;;  %498 = vst.msk [vmem:[#allocation3 + $0x78] sm:$0xff] %vm330_vm0, %v9794_v1  ;;  %v9806_v3 = vld [vmem:[#allocation2 + $0xc8] sm:$0xff]  ;;  %v9810_v5 = vld [vmem:[#allocation2 + $0xe0] sm:$0xff] }
  0x49   : > { %597 = vrot.lane.b32.xlu1 %v9710_v41, %s9448_s26  ;;  %500 = vst.msk [vmem:[#allocation3 + $0x88] sm:$0xff] %vm330_vm0, %v9806_v3  ;;  %501 = vst.msk [vmem:[#allocation3 + $0x90] sm:$0xff] %vm330_vm0, %v9808_v4  ;;  %v9818_v6 = vld [vmem:[#allocation2 + $0xf0] sm:$0xff]  ;;  %v9820_v7 = vld [vmem:[#allocation2 + $0xf8] sm:$0xff] }
  0x4a   : > { %603 = vrot.lane.b32.xlu0 %v9714_v42, %s9448_s26  ;;  %502 = vst.msk [vmem:[#allocation3 + $0x98] sm:$0xff] %vm330_vm0, %v9810_v5  ;;  %v9822_v8 = vld [vmem:[#allocation2 + $0x108] sm:$0xff]  ;;  %503 = vst.msk [vmem:[#allocation3 + $0xa0] sm:$0xff] %vm330_vm0, %v9818_v6  ;;  %v9832_v9 = vld [vmem:[#allocation2 + $0x110] sm:$0xff] }
  0x4b   : > { %504 = vst.msk [vmem:[#allocation3 + $0xa8] sm:$0xff] %vm330_vm0, %v9820_v7  ;;  %505 = vst.msk [vmem:[#allocation3 + $0xb0] sm:$0xff] %vm330_vm0, %v9822_v8  ;;  %v9834_v10 = vld [vmem:[#allocation2 + $0xf1] sm:$0xff]  ;;  %v9840_v11 = vld [vmem:[#allocation2 + $0x120] sm:$0xff] }
  0x4c   : > { %506 = vst.msk [vmem:[#allocation3 + $0xb8] sm:$0xff] %vm330_vm0, %v9832_v9  ;;  %v9842_v12 = vld [vmem:[#allocation2 + $0x128] sm:$0xff]  ;;  %507 = vst.msk [vmem:[#allocation3 + $0xc0] sm:$0xff] %vm330_vm0, %v9840_v11  ;;  %v9856_v15 = vld [vmem:[#allocation2 + $0x138] sm:$0xff] }
  0x4d   : > { %601 = vrot.lane.b32.xlu1 %v9718_v43, %s9448_s26  ;;  %v9844_v13 = vld [vmem:[#allocation2 + $0xe1] sm:$0xff]  ;;  %508 = vst.msk [vmem:[#allocation3 + $0xc8] sm:$0xff] %vm330_vm0, %v9842_v12  ;;  %v9852_v14 = vld [vmem:[#allocation2 + $0x109] sm:$0xff]  ;;  %v9860_v17 = vld [vmem:[#allocation2 + $0xf9] sm:$0xff] }
  0x4e   : > { %607 = vrot.lane.b32.xlu0 %v9722_v44, %s9448_s26  ;;  %v9858_v16 = vld [vmem:[#allocation2 + $0x140] sm:$0xff]  ;;  %509 = vst.msk [vmem:[#allocation3 + $0xd0] sm:$0xff] %vm330_vm0, %v9856_v15  ;;  %v9872_v19 = vld [vmem:[#allocation2 + $0x150] sm:$0xff]  ;;  %v9874_v20 = vld [vmem:[#allocation2 + $0x158] sm:$0xff] }
  0x4f   : > { %510 = vst.msk [vmem:[#allocation3 + $0xd8] sm:$0xff] %vm330_vm0, %v9858_v16  ;;  %v9868_v18 = vld [vmem:[#allocation2 + $0x121] sm:$0xff]  ;;  %v9876_v21 = vld [vmem:[#allocation2 + $0x111] sm:$0xff]  ;;  %511 = vst.msk [vmem:[#allocation3 + $0xe0] sm:$0xff] %vm330_vm0, %v9872_v19 }
  0x50   : > { %512 = vst.msk [vmem:[#allocation3 + $0xe8] sm:$0xff] %vm330_vm0, %v9874_v20  ;;  %v9884_v22 = vld [vmem:[#allocation2 + $0x139] sm:$0xff]  ;;  %v9888_v23 = vld [vmem:[#allocation2 + $0x168] sm:$0xff]  ;;  %v9890_v24 = vld [vmem:[#allocation2 + $0x170] sm:$0xff] }
  0x51   : > { %605 = vrot.lane.b32.xlu1 %v9728_v47, %s9448_s26  ;;  %v9892_v28 = vld [vmem:[#allocation2 + $0x129] sm:$0xff]  ;;  %513 = vst.msk [vmem:[#allocation3 + $0xf0] sm:$0xff] %vm330_vm0, %v9888_v23  ;;  %514 = vst.msk [vmem:[#allocation3 + $0xf8] sm:$0xff] %vm330_vm0, %v9890_v24  ;;  %v9900_v29 = vld [vmem:[#allocation2 + $0x151] sm:$0xff] }
  0x52   : > { %611 = vrot.lane.b32.xlu0 %v9738_v50, %s9448_s26  ;;  %v9904_v33 = vld [vmem:[#allocation2 + $0x141] sm:$0xff]  ;;  %v416_v34 = vld [vmem:[%s9616_s25 + $0xf0] sm:$0xff]  ;;  %v417_v36 = vld [vmem:[%s9616_s25 + $0xf8] sm:$0xff] }
  0x53   : > { %13999 = vst [vmem:[#allocation7_spill] sm:$0xff] %v9904_v33  ;;  %v9909_v35 = vld [vmem:[#allocation2 + $0x169] sm:$0xff]  ;;  %449 = vst.msk [vmem:[#allocation2 + $0x181] sm:$0xff] %vm330_vm0, %v416_v34  ;;  %v9916_v37 = vld [vmem:[#allocation2 + $0x159] sm:$0xff] }
  0x54   : > { %14000 = vst [vmem:[#allocation8_spill] sm:$0xff] %v9909_v35  ;;  %450 = vst.msk [vmem:[#allocation2 + $0x189] sm:$0xff] %vm330_vm0, %v417_v36  ;;  %v708_v38 = vld [vmem:[#allocation2 + $0x2] sm:$0xff]  ;;  %v9922_v45 = vld [vmem:[#allocation2 + $0x171] sm:$0xff] }
  0x55   : > { %609 = vrot.lane.b32.xlu1 %v9748_v53, %s9448_s26  ;;  %14001 = vst [vmem:[#allocation9_spill] sm:$0xff] %v9916_v37  ;;  %14002 = vst [vmem:[#allocation10_spill] sm:$0xff] %v9922_v45  ;;  %v9925_v48 = vld [vmem:[#allocation2 + $0x1a] sm:$0xff]  ;;  %v709_v34 = vld [vmem:[#allocation2 + $0xa] sm:$0xff] }
  0x56   : > { %615 = vrot.lane.b32.xlu0 %v9758_v56, %s9448_s26  ;;  %14003 = vst [vmem:[#allocation11_spill] sm:$0xff] %v9925_v48  ;;  %v9931_v36 = vld [vmem:[#allocation2 + $0x32] sm:$0xff] }
  0x57   : > { %14004 = vst [vmem:[#allocation12_spill] sm:$0xff] %v9931_v36 }
  0x59   : > { %613 = vrot.lane.b32.xlu1 %v9784_v63, %s9448_s26 }
  0x5a   : > { %619 = vrot.lane.b32.xlu0 %v9834_v10, %s9448_s26 }
  0x5d   : > { %617 = vrot.lane.b32.xlu1 %v9844_v13, %s9448_s26 }
  0x5e   : > { %623 = vrot.lane.b32.xlu0 %v9852_v14, %s9448_s26 }
  0x61   : > { %621 = vrot.lane.b32.xlu1 %v9860_v17, %s9448_s26 }
  0x62   : > { %627 = vrot.lane.b32.xlu0 %v9868_v18, %s9448_s26 }
  0x65   : > { %625 = vrot.lane.b32.xlu1 %v9876_v21, %s9448_s26 }
  0x66   : > { %631 = vrot.lane.b32.xlu0 %v9884_v22, %s9448_s26 }
  0x69   : > { %629 = vrot.lane.b32.xlu1 %v9892_v28, %s9448_s26 }
  0x6a   : > { %635 = vrot.lane.b32.xlu0 %v9900_v29, %s9448_s26 }
  0x6d   : > { %633 = vrot.lane.b32.xlu1 %v9904_v33, %s9448_s26 }
  0x6e   : > { %639 = vrot.lane.b32.xlu0 %v9909_v35, %s9448_s26  ;;  %v9934_v35 = vld [vmem:[#allocation2 + $0x22] sm:$0xff] }
  0x6f   : > { %14005 = vst [vmem:[#allocation13_spill] sm:$0xff] %v9934_v35 }
  0x71   : > { %637 = vrot.lane.b32.xlu1 %v9916_v37, %s9448_s26  ;;  %v9938_v37 = vld [vmem:[#allocation2 + $0x4a] sm:$0xff] }
  0x72   : > { %772 = vrot.lane.b32.xlu0 %v708_v38, %s9449_s27  ;;  %14006 = vst [vmem:[#allocation14_spill] sm:$0xff] %v9938_v37  ;;  %v9942_v38 = vld [vmem:[#allocation2 + $0x3a] sm:$0xff] }
  0x73   : > { %14007 = vst [vmem:[#allocation15_spill] sm:$0xff] %v9942_v38 }
  0x75   : > { %641 = vrot.lane.b32.xlu1 %v9922_v45, %s9448_s26  ;;  %v10022_v45 = vld [vmem:[#allocation2 + $0x12a] sm:$0xff] }
  0x76   : > { %776 = vrot.lane.b32.xlu0 %v9925_v48, %s9449_s27  ;;  %v9946_v48 = vld [vmem:[#allocation2 + $0x62] sm:$0xff]  ;;  %14027 = vst [vmem:[#allocation35_spill] sm:$0xff] %v10022_v45 }
  0x77   : > { %14008 = vst [vmem:[#allocation16_spill] sm:$0xff] %v9946_v48 }
  0x79   : > { %774 = vrot.lane.b32.xlu1 %v709_v34, %s9449_s27  ;;  %v9950_v34 = vld [vmem:[#allocation2 + $0x52] sm:$0xff] }
  0x7a   : > { %780 = vrot.lane.b32.xlu0 %v9931_v36, %s9449_s27  ;;  %14009 = vst [vmem:[#allocation17_spill] sm:$0xff] %v9950_v34  ;;  %v9954_v36 = vld [vmem:[#allocation2 + $0x7a] sm:$0xff] }
  0x7b   : > { %14010 = vst [vmem:[#allocation18_spill] sm:$0xff] %v9954_v36 }
  0x7d   : > { %778 = vrot.lane.b32.xlu1 %v9934_v35, %s9449_s27  ;;  %v9958_v35 = vld [vmem:[#allocation2 + $0x6a] sm:$0xff] }
  0x7e   : > { %784 = vrot.lane.b32.xlu0 %v9938_v37, %s9449_s27  ;;  %14011 = vst [vmem:[#allocation19_spill] sm:$0xff] %v9958_v35  ;;  %v9962_v37 = vld [vmem:[#allocation2 + $0x92] sm:$0xff] }
  0x7f   : > { %14012 = vst [vmem:[#allocation20_spill] sm:$0xff] %v9962_v37 }
  0x81   : > { %782 = vrot.lane.b32.xlu1 %v9942_v38, %s9449_s27  ;;  %v9966_v38 = vld [vmem:[#allocation2 + $0x82] sm:$0xff] }
  0x82   : > { %788 = vrot.lane.b32.xlu0 %v9946_v48, %s9449_s27  ;;  %14013 = vst [vmem:[#allocation21_spill] sm:$0xff] %v9966_v38  ;;  %v9970_v48 = vld [vmem:[#allocation2 + $0xaa] sm:$0xff] }
  0x83   : > { %14014 = vst [vmem:[#allocation22_spill] sm:$0xff] %v9970_v48 }
  0x85   : > { %786 = vrot.lane.b32.xlu1 %v9950_v34, %s9449_s27  ;;  %v9974_v34 = vld [vmem:[#allocation2 + $0x9a] sm:$0xff] }
  0x86   : > { %792 = vrot.lane.b32.xlu0 %v9954_v36, %s9449_s27  ;;  %14015 = vst [vmem:[#allocation23_spill] sm:$0xff] %v9974_v34  ;;  %v9978_v36 = vld [vmem:[#allocation2 + $0xc2] sm:$0xff] }
  0x87   : > { %14016 = vst [vmem:[#allocation24_spill] sm:$0xff] %v9978_v36 }
  0x89   : > { %790 = vrot.lane.b32.xlu1 %v9958_v35, %s9449_s27  ;;  %v9982_v35 = vld [vmem:[#allocation2 + $0xb2] sm:$0xff] }
  0x8a   : > { %796 = vrot.lane.b32.xlu0 %v9962_v37, %s9449_s27  ;;  %14017 = vst [vmem:[#allocation25_spill] sm:$0xff] %v9982_v35  ;;  %v9986_v37 = vld [vmem:[#allocation2 + $0xda] sm:$0xff] }
  0x8b   : > { %14018 = vst [vmem:[#allocation26_spill] sm:$0xff] %v9986_v37 }
  0x8d   : > { %794 = vrot.lane.b32.xlu1 %v9966_v38, %s9449_s27  ;;  %v9990_v38 = vld [vmem:[#allocation2 + $0xca] sm:$0xff] }
  0x8e   : > { %800 = vrot.lane.b32.xlu0 %v9970_v48, %s9449_s27  ;;  %14019 = vst [vmem:[#allocation27_spill] sm:$0xff] %v9990_v38  ;;  %v9994_v48 = vld [vmem:[#allocation2 + $0xf2] sm:$0xff] }
  0x8f   : > { %14020 = vst [vmem:[#allocation28_spill] sm:$0xff] %v9994_v48 }
  0x91   : > { %798 = vrot.lane.b32.xlu1 %v9974_v34, %s9449_s27  ;;  %v9998_v34 = vld [vmem:[#allocation2 + $0xe2] sm:$0xff] }
  0x92   : > { %804 = vrot.lane.b32.xlu0 %v9978_v36, %s9449_s27  ;;  %14021 = vst [vmem:[#allocation29_spill] sm:$0xff] %v9998_v34  ;;  %v10002_v36 = vld [vmem:[#allocation2 + $0x10a] sm:$0xff] }
  0x93   : > { %14022 = vst [vmem:[#allocation30_spill] sm:$0xff] %v10002_v36 }
  0x95   : > { %802 = vrot.lane.b32.xlu1 %v9982_v35, %s9449_s27  ;;  %v10006_v35 = vld [vmem:[#allocation2 + $0xfa] sm:$0xff] }
  0x96   : > { %808 = vrot.lane.b32.xlu0 %v9986_v37, %s9449_s27  ;;  %14023 = vst [vmem:[#allocation31_spill] sm:$0xff] %v10006_v35  ;;  %v10010_v37 = vld [vmem:[#allocation2 + $0x122] sm:$0xff] }
  0x97   : > { %14024 = vst [vmem:[#allocation32_spill] sm:$0xff] %v10010_v37 }
  0x99   : > { %806 = vrot.lane.b32.xlu1 %v9990_v38, %s9449_s27  ;;  %v10014_v38 = vld [vmem:[#allocation2 + $0x112] sm:$0xff] }
  0x9a   : > { %812 = vrot.lane.b32.xlu0 %v9994_v48, %s9449_s27  ;;  %14025 = vst [vmem:[#allocation33_spill] sm:$0xff] %v10014_v38  ;;  %v10018_v48 = vld [vmem:[#allocation2 + $0x13a] sm:$0xff] }
  0x9b   : > { %14026 = vst [vmem:[#allocation34_spill] sm:$0xff] %v10018_v48 }
  0x9d   : > { %810 = vrot.lane.b32.xlu1 %v9998_v34, %s9449_s27  ;;  %v580_v34 = vpop.permute.xlu0 %579 }
  0x9e   : > { %816 = vrot.lane.b32.xlu0 %v10002_v36, %s9449_s27  ;;  %676 = vst.msk [vmem:[#allocation3] sm:$0xff] %vm675_vm2, %v580_v34  ;;  %v10031_v36 = vld [vmem:[#allocation2 + $0x142] sm:$0xff]  ;;  %v10037_v34 = vld [vmem:[#allocation2 + $0x16a] sm:$0xff] }
  0x9f   : > { %14028 = vst [vmem:[#allocation36_spill] sm:$0xff] %v10031_v36 }
  0xa1   : > { %814 = vrot.lane.b32.xlu1 %v10006_v35, %s9449_s27  ;;  %v10027_v35 = vld [vmem:[#allocation2 + $0x152] sm:$0xff] }
  0xa2   : > { %820 = vrot.lane.b32.xlu0 %v10010_v37, %s9449_s27  ;;  %v582_v37 = vpop.permute.xlu0 %581 }
  0xa3   : > { %677 = vst.msk [vmem:[#allocation3 + $0x8] sm:$0xff] %vm675_vm2, %v582_v37  ;;  %v10049_v37 = vld [vmem:[#allocation2 + $0x172] sm:$0xff] }
  0xa5   : > { %818 = vrot.lane.b32.xlu1 %v10014_v38, %s9449_s27  ;;  %v10041_v38 = vld [vmem:[#allocation2 + $0x15a] sm:$0xff] }
  0xa6   : > { %824 = vrot.lane.b32.xlu0 %v10018_v48, %s9449_s27 }
  0xa9   : > { %822 = vrot.lane.b32.xlu1 %v10022_v45, %s9449_s27 }
  0xaa   : > { %828 = vrot.lane.b32.xlu0 %v10027_v35, %s9449_s27 }
  0xab   : > { %v584_v33 = vpop.permute.xlu1 %583 }
  0xac   : > { %678 = vst.msk [vmem:[#allocation3 + $0x10] sm:$0xff] %vm675_vm2, %v584_v33  ;;  %v588_v48 = vpop.permute.xlu0 %587 }
  0xad   : > { %826 = vrot.lane.b32.xlu1 %v10031_v36, %s9449_s27  ;;  %680 = vst.msk [vmem:[#allocation3 + $0x20] sm:$0xff] %vm675_vm2, %v588_v48 }
  0xae   : > { %832 = vrot.lane.b32.xlu0 %v10037_v34, %s9449_s27 }
  0xaf   : > { %v586_v45 = vpop.permute.xlu1 %585 }
  0xb0   : > { %679 = vst.msk [vmem:[#allocation3 + $0x18] sm:$0xff] %vm675_vm2, %v586_v45  ;;  %v592_v33 = vpop.permute.xlu0 %591 }
  0xb1   : > { %830 = vrot.lane.b32.xlu1 %v10041_v38, %s9449_s27  ;;  %682 = vst.msk [vmem:[#allocation3 + $0x30] sm:$0xff] %vm675_vm2, %v592_v33 }
  0xb2   : > { %965 = vrot.lane.b32.xlu0 %v9726_v46, %s13995_s28 }
  0xb3   : > { %v590_v36 = vpop.permute.xlu1 %589 }
  0xb4   : > { %681 = vst.msk [vmem:[#allocation3 + $0x28] sm:$0xff] %vm675_vm2, %v590_v36  ;;  %v596_v48 = vpop.permute.xlu0 %595 }
  0xb5   : > { %834 = vrot.lane.b32.xlu1 %v10049_v37, %s9449_s27  ;;  %684 = vst.msk [vmem:[#allocation3 + $0x40] sm:$0xff] %vm675_vm2, %v596_v48 }
  0xb6   : > { %969 = vrot.lane.b32.xlu0 %v9742_v51, %s13995_s28 }
  0xb7   : > { %v594_v45 = vpop.permute.xlu1 %593 }
  0xb8   : > { %683 = vst.msk [vmem:[#allocation3 + $0x38] sm:$0xff] %vm675_vm2, %v594_v45  ;;  %v600_v33 = vpop.permute.xlu0 %599 }
  0xb9   : > { %967 = vrot.lane.b32.xlu1 %v9736_v49, %s13995_s28  ;;  %686 = vst.msk [vmem:[#allocation3 + $0x50] sm:$0xff] %vm675_vm2, %v600_v33 }
  0xba   : > { %973 = vrot.lane.b32.xlu0 %v9754_v54, %s13995_s28 }
  0xbb   : > { %v598_v46 = vpop.permute.xlu1 %597 }
  0xbc   : > { %685 = vst.msk [vmem:[#allocation3 + $0x48] sm:$0xff] %vm675_vm2, %v598_v46  ;;  %v604_v36 = vpop.permute.xlu0 %603 }
  0xbd   : > { %971 = vrot.lane.b32.xlu1 %v9744_v52, %s13995_s28  ;;  %688 = vst.msk [vmem:[#allocation3 + $0x60] sm:$0xff] %vm675_vm2, %v604_v36 }
  0xbe   : > { %977 = vrot.lane.b32.xlu0 %v9764_v57, %s13995_s28 }
  0xbf   : > { %v602_v48 = vpop.permute.xlu1 %601 }
  0xc0   : > { %687 = vst.msk [vmem:[#allocation3 + $0x58] sm:$0xff] %vm675_vm2, %v602_v48  ;;  %v608_v49 = vpop.permute.xlu0 %607 }
  0xc1   : > { %975 = vrot.lane.b32.xlu1 %v9756_v55, %s13995_s28  ;;  %690 = vst.msk [vmem:[#allocation3 + $0x70] sm:$0xff] %vm675_vm2, %v608_v49 }
  0xc2   : > { %981 = vrot.lane.b32.xlu0 %v9768_v59, %s13995_s28 }
  0xc3   : > { %v606_v45 = vpop.permute.xlu1 %605 }
  0xc4   : > { %689 = vst.msk [vmem:[#allocation3 + $0x68] sm:$0xff] %vm675_vm2, %v606_v45  ;;  %v612_v33 = vpop.permute.xlu0 %611 }
  0xc5   : > { %979 = vrot.lane.b32.xlu1 %v9766_v58, %s13995_s28  ;;  %692 = vst.msk [vmem:[#allocation3 + $0x80] sm:$0xff] %vm675_vm2, %v612_v33 }
  0xc6   : > { %985 = vrot.lane.b32.xlu0 %v9780_v61, %s13995_s28 }
  0xc7   : > { %v610_v46 = vpop.permute.xlu1 %609 }
  0xc8   : > { %691 = vst.msk [vmem:[#allocation3 + $0x78] sm:$0xff] %vm675_vm2, %v610_v46  ;;  %v616_v36 = vpop.permute.xlu0 %615 }
  0xc9   : > { %983 = vrot.lane.b32.xlu1 %v9778_v60, %s13995_s28  ;;  %694 = vst.msk [vmem:[#allocation3 + $0x90] sm:$0xff] %vm675_vm2, %v616_v36 }
  0xca   : > { %989 = vrot.lane.b32.xlu0 %v9792_v0, %s13995_s28 }
  0xcb   : > { %v614_v48 = vpop.permute.xlu1 %613 }
  0xcc   : > { %693 = vst.msk [vmem:[#allocation3 + $0x88] sm:$0xff] %vm675_vm2, %v614_v48  ;;  %v620_v49 = vpop.permute.xlu0 %619 }
  0xcd   : > { %987 = vrot.lane.b32.xlu1 %v9782_v62, %s13995_s28  ;;  %696 = vst.msk [vmem:[#allocation3 + $0xa0] sm:$0xff] %vm675_vm2, %v620_v49 }
  0xce   : > { %993 = vrot.lane.b32.xlu0 %v9796_v2, %s13995_s28 }
  0xcf   : > { %v618_v45 = vpop.permute.xlu1 %617 }
  0xd0   : > { %695 = vst.msk [vmem:[#allocation3 + $0x98] sm:$0xff] %vm675_vm2, %v618_v45  ;;  %v624_v33 = vpop.permute.xlu0 %623 }
  0xd1   : > { %991 = vrot.lane.b32.xlu1 %v9794_v1, %s13995_s28  ;;  %698 = vst.msk [vmem:[#allocation3 + $0xb0] sm:$0xff] %vm675_vm2, %v624_v33 }
  0xd2   : > { %997 = vrot.lane.b32.xlu0 %v9808_v4, %s13995_s28 }
  0xd3   : > { %v622_v46 = vpop.permute.xlu1 %621 }
  0xd4   : > { %697 = vst.msk [vmem:[#allocation3 + $0xa8] sm:$0xff] %vm675_vm2, %v622_v46  ;;  %v628_v36 = vpop.permute.xlu0 %627 }
  0xd5   : > { %995 = vrot.lane.b32.xlu1 %v9806_v3, %s13995_s28  ;;  %700 = vst.msk [vmem:[#allocation3 + $0xc0] sm:$0xff] %vm675_vm2, %v628_v36 }
  0xd6   : > { %1001 = vrot.lane.b32.xlu0 %v9818_v6, %s13995_s28 }
  0xd7   : > { %v626_v48 = vpop.permute.xlu1 %625 }
  0xd8   : > { %699 = vst.msk [vmem:[#allocation3 + $0xb8] sm:$0xff] %vm675_vm2, %v626_v48  ;;  %v632_v49 = vpop.permute.xlu0 %631 }
  0xd9   : > { %999 = vrot.lane.b32.xlu1 %v9810_v5, %s13995_s28  ;;  %702 = vst.msk [vmem:[#allocation3 + $0xd0] sm:$0xff] %vm675_vm2, %v632_v49 }
  0xda   : > { %1005 = vrot.lane.b32.xlu0 %v9822_v8, %s13995_s28 }
  0xdb   : > { %v630_v45 = vpop.permute.xlu1 %629 }
  0xdc   : > { %701 = vst.msk [vmem:[#allocation3 + $0xc8] sm:$0xff] %vm675_vm2, %v630_v45  ;;  %v636_v33 = vpop.permute.xlu0 %635 }
  0xdd   : > { %1003 = vrot.lane.b32.xlu1 %v9820_v7, %s13995_s28  ;;  %704 = vst.msk [vmem:[#allocation3 + $0xe0] sm:$0xff] %vm675_vm2, %v636_v33 }
  0xde   : > { %1009 = vrot.lane.b32.xlu0 %v9840_v11, %s13995_s28 }
  0xdf   : > { %v634_v46 = vpop.permute.xlu1 %633 }
  0xe0   : > { %703 = vst.msk [vmem:[#allocation3 + $0xd8] sm:$0xff] %vm675_vm2, %v634_v46  ;;  %v640_v36 = vpop.permute.xlu0 %639 }
  0xe1   : > { %1007 = vrot.lane.b32.xlu1 %v9832_v9, %s13995_s28  ;;  %706 = vst.msk [vmem:[#allocation3 + $0xf0] sm:$0xff] %vm675_vm2, %v640_v36  ;;  %v10139_v36 = vld [vmem:[#allocation2 + $0x180] sm:$0xff] }
  0xe2   : > { %1013 = vrot.lane.b32.xlu0 %v9856_v15, %s13995_s28 }
  0xe3   : > { %v638_v48 = vpop.permute.xlu1 %637 }
  0xe4   : > { %705 = vst.msk [vmem:[#allocation3 + $0xe8] sm:$0xff] %vm675_vm2, %v638_v48  ;;  %v773_v49 = vpop.permute.xlu0 %772 }
  0xe5   : > { %1011 = vrot.lane.b32.xlu1 %v9842_v12, %s13995_s28  ;;  %869 = vst.msk [vmem:[#allocation3] sm:$0xff] %vm868_vm3, %v773_v49 }
  0xe6   : > { %1017 = vrot.lane.b32.xlu0 %v9872_v19, %s13995_s28 }
  0xe7   : > { %v642_v45 = vpop.permute.xlu1 %641 }
  0xe8   : > { %707 = vst.msk [vmem:[#allocation3 + $0xf8] sm:$0xff] %vm675_vm2, %v642_v45  ;;  %v777_v33 = vpop.permute.xlu0 %776 }
  0xe9   : > { %1015 = vrot.lane.b32.xlu1 %v9858_v16, %s13995_s28  ;;  %871 = vst.msk [vmem:[#allocation3 + $0x10] sm:$0xff] %vm868_vm3, %v777_v33  ;;  %v10149_v33 = vld [vmem:[#allocation2 + $0x188] sm:$0xff] }
  0xea   : > { %1021 = vrot.lane.b32.xlu0 %v9888_v23, %s13995_s28 }
  0xeb   : > { %v775_v46 = vpop.permute.xlu1 %774 }
  0xec   : > { %870 = vst.msk [vmem:[#allocation3 + $0x8] sm:$0xff] %vm868_vm3, %v775_v46  ;;  %v781_v48 = vpop.permute.xlu0 %780 }
  0xed   : > { %1019 = vrot.lane.b32.xlu1 %v9874_v20, %s13995_s28  ;;  %873 = vst.msk [vmem:[#allocation3 + $0x20] sm:$0xff] %vm868_vm3, %v781_v48 }
  0xee   : > { %1025 = vrot.lane.b32.xlu0 %v10139_v36, %s13995_s28 }
  0xef   : > { %v779_v49 = vpop.permute.xlu1 %778 }
  0xf0   : > { %872 = vst.msk [vmem:[#allocation3 + $0x18] sm:$0xff] %vm868_vm3, %v779_v49  ;;  %v785_v45 = vpop.permute.xlu0 %784 }
  0xf1   : > { %1023 = vrot.lane.b32.xlu1 %v9890_v24, %s13995_s28  ;;  %875 = vst.msk [vmem:[#allocation3 + $0x30] sm:$0xff] %vm868_vm3, %v785_v45 }
  0xf2   : > { %1158 = vrot.lane.b32.xlu0 %v9661_v25, %s9451_s29 }
  0xf3   : > { %v783_v46 = vpop.permute.xlu1 %782 }
  0xf4   : > { %874 = vst.msk [vmem:[#allocation3 + $0x28] sm:$0xff] %vm868_vm3, %v783_v46  ;;  %v789_v48 = vpop.permute.xlu0 %788 }
  0xf5   : > { %1027 = vrot.lane.b32.xlu1 %v10149_v33, %s13995_s28  ;;  %877 = vst.msk [vmem:[#allocation3 + $0x40] sm:$0xff] %vm868_vm3, %v789_v48 }
  0xf6   : > { %1162 = vrot.lane.b32.xlu0 %v9663_v26, %s9451_s29 }
  0xf7   : > { %v787_v49 = vpop.permute.xlu1 %786 }
  0xf8   : > { %876 = vst.msk [vmem:[#allocation3 + $0x38] sm:$0xff] %vm868_vm3, %v787_v49  ;;  %v793_v45 = vpop.permute.xlu0 %792  ;;  %v14030_v49 = vld [vmem:[#allocation8_spill] sm:$0xff] }
  0xf9   : > { %1160 = vrot.lane.b32.xlu1 %v9670_v27, %s9451_s29  ;;  %879 = vst.msk [vmem:[#allocation3 + $0x50] sm:$0xff] %vm868_vm3, %v793_v45  ;;  %v14031_v45 = vld [vmem:[#allocation9_spill] sm:$0xff] }
  0xfa   : > { %1166 = vrot.lane.b32.xlu0 %v9678_v30, %s9451_s29 }
  0xfb   : > { %v791_v25 = vpop.permute.xlu1 %790 }
  0xfc   : > { %878 = vst.msk [vmem:[#allocation3 + $0x48] sm:$0xff] %vm868_vm3, %v791_v25  ;;  %v797_v46 = vpop.permute.xlu0 %796 }
  0xfd   : > { %1164 = vrot.lane.b32.xlu1 %v9682_v31, %s9451_s29  ;;  %881 = vst.msk [vmem:[#allocation3 + $0x60] sm:$0xff] %vm868_vm3, %v797_v46  ;;  %v14032_v46 = vld [vmem:[#allocation10_spill] sm:$0xff] }
  0xfe   : > { %1170 = vrot.lane.b32.xlu0 %v9686_v32, %s9451_s29 }
  0xff   : > { %v795_v26 = vpop.permute.xlu1 %794 }
 0x100   : > { %880 = vst.msk [vmem:[#allocation3 + $0x58] sm:$0xff] %vm868_vm3, %v795_v26  ;;  %v801_v27 = vpop.permute.xlu0 %800 }
 0x101   : > { %1168 = vrot.lane.b32.xlu1 %v9699_v39, %s9451_s29  ;;  %883 = vst.msk [vmem:[#allocation3 + $0x70] sm:$0xff] %vm868_vm3, %v801_v27  ;;  %v10249_v27 = vld [vmem:[#allocation2 + $0x189] sm:$0xff] }
 0x102   : > { %1174 = vrot.lane.b32.xlu0 %v9706_v40, %s9451_s29 }
 0x103   : > { %v799_v30 = vpop.permute.xlu1 %798 }
 0x104   : > { %882 = vst.msk [vmem:[#allocation3 + $0x68] sm:$0xff] %vm868_vm3, %v799_v30  ;;  %v805_v31 = vpop.permute.xlu0 %804 }
 0x105   : > { %1172 = vrot.lane.b32.xlu1 %v9710_v41, %s9451_s29  ;;  %885 = vst.msk [vmem:[#allocation3 + $0x80] sm:$0xff] %vm868_vm3, %v805_v31  ;;  %v14033_v31 = vld [vmem:[#allocation11_spill] sm:$0xff] }
 0x106   : > { %1178 = vrot.lane.b32.xlu0 %v9714_v42, %s9451_s29 }
 0x107   : > { %v803_v32 = vpop.permute.xlu1 %802 }
 0x108   : > { %884 = vst.msk [vmem:[#allocation3 + $0x78] sm:$0xff] %vm868_vm3, %v803_v32  ;;  %v809_v39 = vpop.permute.xlu0 %808 }
 0x109   : > { %1176 = vrot.lane.b32.xlu1 %v9718_v43, %s9451_s29  ;;  %887 = vst.msk [vmem:[#allocation3 + $0x90] sm:$0xff] %vm868_vm3, %v809_v39 }
 0x10a   : > { %1182 = vrot.lane.b32.xlu0 %v9722_v44, %s9451_s29 }
 0x10b   : > { %v807_v40 = vpop.permute.xlu1 %806 }
 0x10c   : > { %886 = vst.msk [vmem:[#allocation3 + $0x88] sm:$0xff] %vm868_vm3, %v807_v40  ;;  %v813_v41 = vpop.permute.xlu0 %812  ;;  %v14034_v40 = vld [vmem:[#allocation12_spill] sm:$0xff] }
 0x10d   : > { %1180 = vrot.lane.b32.xlu1 %v9728_v47, %s9451_s29  ;;  %889 = vst.msk [vmem:[#allocation3 + $0xa0] sm:$0xff] %vm868_vm3, %v813_v41  ;;  %v14035_v41 = vld [vmem:[#allocation13_spill] sm:$0xff] }
 0x10e   : > { %1186 = vrot.lane.b32.xlu0 %v9738_v50, %s9451_s29 }
 0x10f   : > { %v811_v42 = vpop.permute.xlu1 %810 }
 0x110   : > { %888 = vst.msk [vmem:[#allocation3 + $0x98] sm:$0xff] %vm868_vm3, %v811_v42  ;;  %v817_v43 = vpop.permute.xlu0 %816 }
 0x111   : > { %1184 = vrot.lane.b32.xlu1 %v9748_v53, %s9451_s29  ;;  %891 = vst.msk [vmem:[#allocation3 + $0xb0] sm:$0xff] %vm868_vm3, %v817_v43 }
 0x112   : > { %1190 = vrot.lane.b32.xlu0 %v9758_v56, %s9451_s29 }
 0x113   : > { %v815_v44 = vpop.permute.xlu1 %814 }
 0x114   : > { %890 = vst.msk [vmem:[#allocation3 + $0xa8] sm:$0xff] %vm868_vm3, %v815_v44  ;;  %v821_v47 = vpop.permute.xlu0 %820  ;;  %v14036_v44 = vld [vmem:[#allocation14_spill] sm:$0xff] }
 0x115   : > { %1188 = vrot.lane.b32.xlu1 %v9784_v63, %s9451_s29  ;;  %893 = vst.msk [vmem:[#allocation3 + $0xc0] sm:$0xff] %vm868_vm3, %v821_v47  ;;  %v14037_v47 = vld [vmem:[#allocation15_spill] sm:$0xff] }
 0x116   : > { %1194 = vrot.lane.b32.xlu0 %v9834_v10, %s9451_s29 }
 0x117   : > { %v819_v50 = vpop.permute.xlu1 %818 }
 0x118   : > { %892 = vst.msk [vmem:[#allocation3 + $0xb8] sm:$0xff] %vm868_vm3, %v819_v50  ;;  %v825_v53 = vpop.permute.xlu0 %824 }
 0x119   : > { %1192 = vrot.lane.b32.xlu1 %v9844_v13, %s9451_s29  ;;  %895 = vst.msk [vmem:[#allocation3 + $0xd0] sm:$0xff] %vm868_vm3, %v825_v53 }
 0x11a   : > { %1198 = vrot.lane.b32.xlu0 %v9852_v14, %s9451_s29 }
 0x11b   : > { %v823_v56 = vpop.permute.xlu1 %822 }
 0x11c   : > { %894 = vst.msk [vmem:[#allocation3 + $0xc8] sm:$0xff] %vm868_vm3, %v823_v56  ;;  %v829_v63 = vpop.permute.xlu0 %828  ;;  %v14038_v56 = vld [vmem:[#allocation16_spill] sm:$0xff] }
 0x11d   : > { %1196 = vrot.lane.b32.xlu1 %v9860_v17, %s9451_s29  ;;  %897 = vst.msk [vmem:[#allocation3 + $0xe0] sm:$0xff] %vm868_vm3, %v829_v63  ;;  %v14039_v63 = vld [vmem:[#allocation17_spill] sm:$0xff] }
 0x11e   : > { %1202 = vrot.lane.b32.xlu0 %v9868_v18, %s9451_s29 }
 0x11f   : > { %v827_v10 = vpop.permute.xlu1 %826 }
 0x120   : > { %896 = vst.msk [vmem:[#allocation3 + $0xd8] sm:$0xff] %vm868_vm3, %v827_v10  ;;  %v833_v13 = vpop.permute.xlu0 %832 }
 0x121   : > { %1200 = vrot.lane.b32.xlu1 %v9876_v21, %s9451_s29  ;;  %899 = vst.msk [vmem:[#allocation3 + $0xf0] sm:$0xff] %vm868_vm3, %v833_v13  ;;  %v14029_v21 = vld [vmem:[#allocation7_spill] sm:$0xff] }
 0x122   : > { %1206 = vrot.lane.b32.xlu0 %v9884_v22, %s9451_s29 }
 0x123   : > { %v831_v14 = vpop.permute.xlu1 %830 }
 0x124   : > { %898 = vst.msk [vmem:[#allocation3 + $0xe8] sm:$0xff] %vm868_vm3, %v831_v14  ;;  %v966_v17 = vpop.permute.xlu0 %965  ;;  %v14040_v14 = vld [vmem:[#allocation18_spill] sm:$0xff] }
 0x125   : > { %1204 = vrot.lane.b32.xlu1 %v9892_v28, %s9451_s29  ;;  %1062 = vst.msk [vmem:[#allocation3] sm:$0xff] %vm1061_vm4, %v966_v17  ;;  %v10239_v28 = vld [vmem:[#allocation2 + $0x181] sm:$0xff]  ;;  %v14041_v17 = vld [vmem:[#allocation19_spill] sm:$0xff] }
 0x126   : > { %1210 = vrot.lane.b32.xlu0 %v9900_v29, %s9451_s29 }
 0x127   : > { %v835_v18 = vpop.permute.xlu1 %834 }
 0x128   : > { %900 = vst.msk [vmem:[#allocation3 + $0xf8] sm:$0xff] %vm868_vm3, %v835_v18  ;;  %v970_v48 = vpop.permute.xlu0 %969 }
 0x129   : > { %1208 = vrot.lane.b32.xlu1 %v14029_v21, %s9451_s29  ;;  %1064 = vst.msk [vmem:[#allocation3 + $0x10] sm:$0xff] %vm1061_vm4, %v970_v48  ;;  %v14042_v48 = vld [vmem:[#allocation20_spill] sm:$0xff] }
 0x12a   : > { %1214 = vrot.lane.b32.xlu0 %v14030_v49, %s9451_s29 }
 0x12b   : > { %v968_v22 = vpop.permute.xlu1 %967 }
 0x12c   : > { %1063 = vst.msk [vmem:[#allocation3 + $0x8] sm:$0xff] %vm1061_vm4, %v968_v22  ;;  %v974_v29 = vpop.permute.xlu0 %973  ;;  %v14043_v22 = vld [vmem:[#allocation21_spill] sm:$0xff] }
 0x12d   : > { %1212 = vrot.lane.b32.xlu1 %v14031_v45, %s9451_s29  ;;  %1066 = vst.msk [vmem:[#allocation3 + $0x20] sm:$0xff] %vm1061_vm4, %v974_v29  ;;  %v14044_v29 = vld [vmem:[#allocation22_spill] sm:$0xff] }
 0x12e   : > { %1218 = vrot.lane.b32.xlu0 %v10239_v28, %s9451_s29 }
 0x12f   : > { %v972_v25 = vpop.permute.xlu1 %971 }
 0x130   : > { %1065 = vst.msk [vmem:[#allocation3 + $0x18] sm:$0xff] %vm1061_vm4, %v972_v25  ;;  %v978_v26 = vpop.permute.xlu0 %977  ;;  %v14045_v25 = vld [vmem:[#allocation23_spill] sm:$0xff] }
 0x131   : > { %1216 = vrot.lane.b32.xlu1 %v14032_v46, %s9451_s29  ;;  %1068 = vst.msk [vmem:[#allocation3 + $0x30] sm:$0xff] %vm1061_vm4, %v978_v26 }
 0x132   : > { %1351 = vrot.lane.b32.xlu0 %v14033_v31, %s9452_s14  ;;  %v14047_v31 = vld [vmem:[#allocation25_spill] sm:$0xff] }
 0x133   : > { %v976_v30 = vpop.permute.xlu1 %975 }
 0x134   : > { %1067 = vst.msk [vmem:[#allocation3 + $0x28] sm:$0xff] %vm1061_vm4, %v976_v30  ;;  %v982_v32 = vpop.permute.xlu0 %981  ;;  %v14046_v30 = vld [vmem:[#allocation24_spill] sm:$0xff] }
 0x135   : > { %1220 = vrot.lane.b32.xlu1 %v10249_v27, %s9451_s29  ;;  %1070 = vst.msk [vmem:[#allocation3 + $0x40] sm:$0xff] %vm1061_vm4, %v982_v32 }
 0x136   : > { %1355 = vrot.lane.b32.xlu0 %v14034_v40, %s9452_s14  ;;  %v14048_v40 = vld [vmem:[#allocation26_spill] sm:$0xff] }
 0x137   : > { %v980_v39 = vpop.permute.xlu1 %979 }
 0x138   : > { %1069 = vst.msk [vmem:[#allocation3 + $0x38] sm:$0xff] %vm1061_vm4, %v980_v39  ;;  %v986_v42 = vpop.permute.xlu0 %985 }
 0x139   : > { %1353 = vrot.lane.b32.xlu1 %v14035_v41, %s9452_s14  ;;  %1072 = vst.msk [vmem:[#allocation3 + $0x50] sm:$0xff] %vm1061_vm4, %v986_v42  ;;  %v14049_v41 = vld [vmem:[#allocation27_spill] sm:$0xff] }
 0x13a   : > { %1359 = vrot.lane.b32.xlu0 %v14036_v44, %s9452_s14  ;;  %v14050_v44 = vld [vmem:[#allocation28_spill] sm:$0xff] }
 0x13b   : > { %v984_v43 = vpop.permute.xlu1 %983 }
 0x13c   : > { %1071 = vst.msk [vmem:[#allocation3 + $0x48] sm:$0xff] %vm1061_vm4, %v984_v43  ;;  %v990_v50 = vpop.permute.xlu0 %989 }
 0x13d   : > { %1357 = vrot.lane.b32.xlu1 %v14037_v47, %s9452_s14  ;;  %1074 = vst.msk [vmem:[#allocation3 + $0x60] sm:$0xff] %vm1061_vm4, %v990_v50  ;;  %v14051_v47 = vld [vmem:[#allocation29_spill] sm:$0xff] }
 0x13e   : > { %1363 = vrot.lane.b32.xlu0 %v14038_v56, %s9452_s14  ;;  %v14052_v56 = vld [vmem:[#allocation30_spill] sm:$0xff] }
 0x13f   : > { %v988_v53 = vpop.permute.xlu1 %987 }
 0x140   : > { %1073 = vst.msk [vmem:[#allocation3 + $0x58] sm:$0xff] %vm1061_vm4, %v988_v53  ;;  %v994_v10 = vpop.permute.xlu0 %993 }
 0x141   : > { %1361 = vrot.lane.b32.xlu1 %v14039_v63, %s9452_s14  ;;  %1076 = vst.msk [vmem:[#allocation3 + $0x70] sm:$0xff] %vm1061_vm4, %v994_v10  ;;  %v14053_v63 = vld [vmem:[#allocation31_spill] sm:$0xff] }
 0x142   : > { %1367 = vrot.lane.b32.xlu0 %v14040_v14, %s9452_s14  ;;  %v14054_v14 = vld [vmem:[#allocation32_spill] sm:$0xff] }
 0x143   : > { %v992_v13 = vpop.permute.xlu1 %991 }
 0x144   : > { %1075 = vst.msk [vmem:[#allocation3 + $0x68] sm:$0xff] %vm1061_vm4, %v992_v13  ;;  %v998_v18 = vpop.permute.xlu0 %997 }
 0x145   : > { %1365 = vrot.lane.b32.xlu1 %v14041_v17, %s9452_s14  ;;  %1078 = vst.msk [vmem:[#allocation3 + $0x80] sm:$0xff] %vm1061_vm4, %v998_v18  ;;  %v14055_v17 = vld [vmem:[#allocation33_spill] sm:$0xff] }
 0x146   : > { %1371 = vrot.lane.b32.xlu0 %v14042_v48, %s9452_s14  ;;  %v14056_v48 = vld [vmem:[#allocation34_spill] sm:$0xff] }
 0x147   : > { %v996_v21 = vpop.permute.xlu1 %995 }
 0x148   : > { %1077 = vst.msk [vmem:[#allocation3 + $0x78] sm:$0xff] %vm1061_vm4, %v996_v21  ;;  %v1002_v49 = vpop.permute.xlu0 %1001 }
 0x149   : > { %1369 = vrot.lane.b32.xlu1 %v14043_v22, %s9452_s14  ;;  %1080 = vst.msk [vmem:[#allocation3 + $0x90] sm:$0xff] %vm1061_vm4, %v1002_v49  ;;  %v14057_v22 = vld [vmem:[#allocation35_spill] sm:$0xff] }
 0x14a   : > { %1375 = vrot.lane.b32.xlu0 %v14044_v29, %s9452_s14  ;;  %v14058_v29 = vld [vmem:[#allocation36_spill] sm:$0xff] }
 0x14b   : > { %v1000_v45 = vpop.permute.xlu1 %999 }
 0x14c   : > { %1079 = vst.msk [vmem:[#allocation3 + $0x88] sm:$0xff] %vm1061_vm4, %v1000_v45  ;;  %v1006_v46 = vpop.permute.xlu0 %1005 }
 0x14d   : > { %1373 = vrot.lane.b32.xlu1 %v14045_v25, %s9452_s14  ;;  %1082 = vst.msk [vmem:[#allocation3 + $0xa0] sm:$0xff] %vm1061_vm4, %v1006_v46 }
 0x14e   : > { %1379 = vrot.lane.b32.xlu0 %v14046_v30, %s9452_s14 }
 0x14f   : > { %v1004_v26 = vpop.permute.xlu1 %1003 }
 0x150   : > { %1081 = vst.msk [vmem:[#allocation3 + $0x98] sm:$0xff] %vm1061_vm4, %v1004_v26  ;;  %v1010_v32 = vpop.permute.xlu0 %1009  ;;  %v10339_v26 = vld [vmem:[#allocation2 + $0x182] sm:$0xff] }
 0x151   : > { %1377 = vrot.lane.b32.xlu1 %v14047_v31, %s9452_s14  ;;  %1084 = vst.msk [vmem:[#allocation3 + $0xb0] sm:$0xff] %vm1061_vm4, %v1010_v32  ;;  %v10349_v31 = vld [vmem:[#allocation2 + $0x18a] sm:$0xff] }
 0x152   : > { %1383 = vrot.lane.b32.xlu0 %v14048_v40, %s9452_s14 }
 0x153   : > { %v1008_v39 = vpop.permute.xlu1 %1007 }
 0x154   : > { %1083 = vst.msk [vmem:[#allocation3 + $0xa8] sm:$0xff] %vm1061_vm4, %v1008_v39  ;;  %v1014_v42 = vpop.permute.xlu0 %1013 }
 0x155   : > { %1381 = vrot.lane.b32.xlu1 %v14049_v41, %s9452_s14  ;;  %1086 = vst.msk [vmem:[#allocation3 + $0xc0] sm:$0xff] %vm1061_vm4, %v1014_v42 }
 0x156   : > { %1387 = vrot.lane.b32.xlu0 %v14050_v44, %s9452_s14 }
 0x157   : > { %v1012_v43 = vpop.permute.xlu1 %1011 }
 0x158   : > { %1085 = vst.msk [vmem:[#allocation3 + $0xb8] sm:$0xff] %vm1061_vm4, %v1012_v43  ;;  %v1018_v50 = vpop.permute.xlu0 %1017 }
 0x159   : > { %1385 = vrot.lane.b32.xlu1 %v14051_v47, %s9452_s14  ;;  %1088 = vst.msk [vmem:[#allocation3 + $0xd0] sm:$0xff] %vm1061_vm4, %v1018_v50  ;;  %v1675_v47 = vld [vmem:[#allocation2 + $0x39] sm:$0xff] }
 0x15a   : > { %1391 = vrot.lane.b32.xlu0 %v14052_v56, %s9452_s14  ;;  %v1677_v56 = vld [vmem:[#allocation2 + $0x51] sm:$0xff] }
 0x15b   : > { %v1016_v53 = vpop.permute.xlu1 %1015 }
 0x15c   : > { %1087 = vst.msk [vmem:[#allocation3 + $0xc8] sm:$0xff] %vm1061_vm4, %v1016_v53  ;;  %v1022_v10 = vpop.permute.xlu0 %1021 }
 0x15d   : > { %1389 = vrot.lane.b32.xlu1 %v14053_v63, %s9452_s14  ;;  %1090 = vst.msk [vmem:[#allocation3 + $0xe0] sm:$0xff] %vm1061_vm4, %v1022_v10  ;;  %v1680_v10 = vld [vmem:[#allocation2 + $0x79] sm:$0xff] }
 0x15e   : > { %1395 = vrot.lane.b32.xlu0 %v14054_v14, %s9452_s14  ;;  %v1679_v14 = vld [vmem:[#allocation2 + $0x69] sm:$0xff] }
 0x15f   : > { %v1020_v13 = vpop.permute.xlu1 %1019 }
 0x160   : > { %1089 = vst.msk [vmem:[#allocation3 + $0xd8] sm:$0xff] %vm1061_vm4, %v1020_v13  ;;  %v1026_v18 = vpop.permute.xlu0 %1025 }
 0x161   : > { %1393 = vrot.lane.b32.xlu1 %v14055_v17, %s9452_s14  ;;  %1092 = vst.msk [vmem:[#allocation3 + $0xf0] sm:$0xff] %vm1061_vm4, %v1026_v18  ;;  %v1682_v18 = vld [vmem:[#allocation2 + $0x91] sm:$0xff] }
 0x162   : > { %1399 = vrot.lane.b32.xlu0 %v14056_v48, %s9452_s14  ;;  %v1681_v48 = vld [vmem:[#allocation2 + $0x81] sm:$0xff] }
 0x163   : > { %v1024_v21 = vpop.permute.xlu1 %1023 }
 0x164   : > { %1091 = vst.msk [vmem:[#allocation3 + $0xe8] sm:$0xff] %vm1061_vm4, %v1024_v21  ;;  %v1159_v49 = vpop.permute.xlu0 %1158 }
 0x165   : > { %1397 = vrot.lane.b32.xlu1 %v14057_v22, %s9452_s14  ;;  %1255 = vst.msk [vmem:[#allocation3] sm:$0xff] %vm1254_vm5, %v1159_v49  ;;  %v1684_v49 = vld [vmem:[#allocation2 + $0xa9] sm:$0xff] }
 0x166   : > { %1403 = vrot.lane.b32.xlu0 %v10027_v35, %s9452_s14 }
 0x167   : > { %v1028_v45 = vpop.permute.xlu1 %1027 }
 0x168   : > { %1093 = vst.msk [vmem:[#allocation3 + $0xf8] sm:$0xff] %vm1061_vm4, %v1028_v45  ;;  %v1163_v25 = vpop.permute.xlu0 %1162 }
 0x169   : > { %1401 = vrot.lane.b32.xlu1 %v14058_v29, %s9452_s14  ;;  %1257 = vst.msk [vmem:[#allocation3 + $0x10] sm:$0xff] %vm1254_vm5, %v1163_v25  ;;  %v1683_v29 = vld [vmem:[#allocation2 + $0x99] sm:$0xff] }
 0x16a   : > { %1407 = vrot.lane.b32.xlu0 %v10037_v34, %s9452_s14 }
 0x16b   : > { %v1161_v46 = vpop.permute.xlu1 %1160 }
 0x16c   : > { %1256 = vst.msk [vmem:[#allocation3 + $0x8] sm:$0xff] %vm1254_vm5, %v1161_v46  ;;  %v1167_v35 = vpop.permute.xlu0 %1166  ;;  %v1686_v46 = vld [vmem:[#allocation2 + $0xc1] sm:$0xff] }
 0x16d   : > { %1405 = vrot.lane.b32.xlu1 %v10041_v38, %s9452_s14  ;;  %1259 = vst.msk [vmem:[#allocation3 + $0x20] sm:$0xff] %vm1254_vm5, %v1167_v35 }
 0x16e   : > { %1411 = vrot.lane.b32.xlu0 %v10339_v26, %s9452_s14 }
 0x16f   : > { %v1165_v30 = vpop.permute.xlu1 %1164 }
 0x170   : > { %1258 = vst.msk [vmem:[#allocation3 + $0x18] sm:$0xff] %vm1254_vm5, %v1165_v30  ;;  %v1171_v34 = vpop.permute.xlu0 %1170  ;;  %v1685_v30 = vld [vmem:[#allocation2 + $0xb1] sm:$0xff] }
 0x171   : > { %1409 = vrot.lane.b32.xlu1 %v10049_v37, %s9452_s14  ;;  %1261 = vst.msk [vmem:[#allocation3 + $0x30] sm:$0xff] %vm1254_vm5, %v1171_v34 }
 0x172   : > { %1545 = vrot.lane.b32.xlu0 %v9742_v51, %s9453_s16 }
 0x173   : > { %v1169_v32 = vpop.permute.xlu1 %1168 }
 0x174   : > { %1260 = vst.msk [vmem:[#allocation3 + $0x28] sm:$0xff] %vm1254_vm5, %v1169_v32  ;;  %v1175_v38 = vpop.permute.xlu0 %1174  ;;  %v1688_v32 = vld [vmem:[#allocation2 + $0xd9] sm:$0xff] }
 0x175   : > { %1413 = vrot.lane.b32.xlu1 %v10349_v31, %s9452_s14  ;;  %1263 = vst.msk [vmem:[#allocation3 + $0x40] sm:$0xff] %vm1254_vm5, %v1175_v38 }
 0x176   : > { %1549 = vrot.lane.b32.xlu0 %v9754_v54, %s9453_s16 }
 0x177   : > { %v1173_v39 = vpop.permute.xlu1 %1172 }
 0x178   : > { %1262 = vst.msk [vmem:[#allocation3 + $0x38] sm:$0xff] %vm1254_vm5, %v1173_v39  ;;  %v1179_v37 = vpop.permute.xlu0 %1178  ;;  %v1687_v39 = vld [vmem:[#allocation2 + $0xc9] sm:$0xff] }
 0x179   : > { %1547 = vrot.lane.b32.xlu1 %v9744_v52, %s9453_s16  ;;  %1265 = vst.msk [vmem:[#allocation3 + $0x50] sm:$0xff] %vm1254_vm5, %v1179_v37 }
 0x17a   : > { %1553 = vrot.lane.b32.xlu0 %v9764_v57, %s9453_s16 }
 0x17b   : > { %v1177_v51 = vpop.permute.xlu1 %1176 }
 0x17c   : > { %1264 = vst.msk [vmem:[#allocation3 + $0x48] sm:$0xff] %vm1254_vm5, %v1177_v51  ;;  %v1183_v40 = vpop.permute.xlu0 %1182  ;;  %v1690_v51 = vld [vmem:[#allocation2 + $0xf1] sm:$0xff] }
 0x17d   : > { %1551 = vrot.lane.b32.xlu1 %v9756_v55, %s9453_s16  ;;  %1267 = vst.msk [vmem:[#allocation3 + $0x60] sm:$0xff] %vm1254_vm5, %v1183_v40 }
 0x17e   : > { %1557 = vrot.lane.b32.xlu0 %v9768_v59, %s9453_s16 }
 0x17f   : > { %v1181_v54 = vpop.permute.xlu1 %1180 }
 0x180   : > { %1266 = vst.msk [vmem:[#allocation3 + $0x58] sm:$0xff] %vm1254_vm5, %v1181_v54  ;;  %v1187_v52 = vpop.permute.xlu0 %1186  ;;  %v1689_v54 = vld [vmem:[#allocation2 + $0xe1] sm:$0xff] }
 0x181   : > { %1555 = vrot.lane.b32.xlu1 %v9766_v58, %s9453_s16  ;;  %1269 = vst.msk [vmem:[#allocation3 + $0x70] sm:$0xff] %vm1254_vm5, %v1187_v52 }
 0x182   : > { %1561 = vrot.lane.b32.xlu0 %v9780_v61, %s9453_s16 }
 0x183   : > { %v1185_v57 = vpop.permute.xlu1 %1184 }
 0x184   : > { %1268 = vst.msk [vmem:[#allocation3 + $0x68] sm:$0xff] %vm1254_vm5, %v1185_v57  ;;  %v1191_v55 = vpop.permute.xlu0 %1190  ;;  %v1692_v57 = vld [vmem:[#allocation2 + $0x109] sm:$0xff] }
 0x185   : > { %1559 = vrot.lane.b32.xlu1 %v9778_v60, %s9453_s16  ;;  %1271 = vst.msk [vmem:[#allocation3 + $0x80] sm:$0xff] %vm1254_vm5, %v1191_v55 }
 0x186   : > { %1565 = vrot.lane.b32.xlu0 %v9792_v0, %s9453_s16 }
 0x187   : > { %v1189_v59 = vpop.permute.xlu1 %1188 }
 0x188   : > { %1270 = vst.msk [vmem:[#allocation3 + $0x78] sm:$0xff] %vm1254_vm5, %v1189_v59  ;;  %v1195_v58 = vpop.permute.xlu0 %1194  ;;  %v1691_v59 = vld [vmem:[#allocation2 + $0xf9] sm:$0xff] }
 0x189   : > { %1563 = vrot.lane.b32.xlu1 %v9782_v62, %s9453_s16  ;;  %1273 = vst.msk [vmem:[#allocation3 + $0x90] sm:$0xff] %vm1254_vm5, %v1195_v58 }
 0x18a   : > { %1569 = vrot.lane.b32.xlu0 %v9796_v2, %s9453_s16 }
 0x18b   : > { %v1193_v61 = vpop.permute.xlu1 %1192 }
 0x18c   : > { %1272 = vst.msk [vmem:[#allocation3 + $0x88] sm:$0xff] %vm1254_vm5, %v1193_v61  ;;  %v1199_v60 = vpop.permute.xlu0 %1198  ;;  %v1694_v61 = vld [vmem:[#allocation2 + $0x121] sm:$0xff] }
 0x18d   : > { %1567 = vrot.lane.b32.xlu1 %v9794_v1, %s9453_s16  ;;  %1275 = vst.msk [vmem:[#allocation3 + $0xa0] sm:$0xff] %vm1254_vm5, %v1199_v60 }
 0x18e   : > { %1573 = vrot.lane.b32.xlu0 %v9808_v4, %s9453_s16 }
 0x18f   : > { %v1197_v0 = vpop.permute.xlu1 %1196 }
 0x190   : > { %1274 = vst.msk [vmem:[#allocation3 + $0x98] sm:$0xff] %vm1254_vm5, %v1197_v0  ;;  %v1203_v62 = vpop.permute.xlu0 %1202  ;;  %v1693_v0 = vld [vmem:[#allocation2 + $0x111] sm:$0xff] }
 0x191   : > { %1571 = vrot.lane.b32.xlu1 %v9806_v3, %s9453_s16  ;;  %1277 = vst.msk [vmem:[#allocation3 + $0xb0] sm:$0xff] %vm1254_vm5, %v1203_v62 }
 0x192   : > { %1577 = vrot.lane.b32.xlu0 %v9818_v6, %s9453_s16 }
 0x193   : > { %v1201_v2 = vpop.permute.xlu1 %1200 }
 0x194   : > { %1276 = vst.msk [vmem:[#allocation3 + $0xa8] sm:$0xff] %vm1254_vm5, %v1201_v2  ;;  %v1207_v1 = vpop.permute.xlu0 %1206  ;;  %v1696_v2 = vld [vmem:[#allocation2 + $0x139] sm:$0xff] }
 0x195   : > { %1575 = vrot.lane.b32.xlu1 %v9810_v5, %s9453_s16  ;;  %1279 = vst.msk [vmem:[#allocation3 + $0xc0] sm:$0xff] %vm1254_vm5, %v1207_v1 }
 0x196   : > { %1581 = vrot.lane.b32.xlu0 %v9822_v8, %s9453_s16 }
 0x197   : > { %v1205_v4 = vpop.permute.xlu1 %1204 }
 0x198   : > { %1278 = vst.msk [vmem:[#allocation3 + $0xb8] sm:$0xff] %vm1254_vm5, %v1205_v4  ;;  %v1211_v3 = vpop.permute.xlu0 %1210  ;;  %v1695_v4 = vld [vmem:[#allocation2 + $0x129] sm:$0xff] }
 0x199   : > { %1579 = vrot.lane.b32.xlu1 %v9820_v7, %s9453_s16  ;;  %1281 = vst.msk [vmem:[#allocation3 + $0xd0] sm:$0xff] %vm1254_vm5, %v1211_v3 }
 0x19a   : > { %1585 = vrot.lane.b32.xlu0 %v9840_v11, %s9453_s16 }
 0x19b   : > { %v1209_v6 = vpop.permute.xlu1 %1208 }
 0x19c   : > { %1280 = vst.msk [vmem:[#allocation3 + $0xc8] sm:$0xff] %vm1254_vm5, %v1209_v6  ;;  %v1215_v5 = vpop.permute.xlu0 %1214  ;;  %v2092_v6 = vld [vmem:[%s13896_s1] sm:$0xff] }
 0x19d   : > { %1583 = vrot.lane.b32.xlu1 %v9832_v9, %s9453_s16  ;;  %1283 = vst.msk [vmem:[#allocation3 + $0xe0] sm:$0xff] %vm1254_vm5, %v1215_v5  ;;  %v2093_v5 = vld [vmem:[%s13896_s1 + $0x8] sm:$0xff] }
 0x19e   : > { %1589 = vrot.lane.b32.xlu0 %v9856_v15, %s9453_s16 }
 0x19f   : > { %v1213_v8 = vpop.permute.xlu1 %1212 }
 0x1a0   : > { %1282 = vst.msk [vmem:[#allocation3 + $0xd8] sm:$0xff] %vm1254_vm5, %v1213_v8  ;;  %v1219_v7 = vpop.permute.xlu0 %1218  ;;  %v1698_v8 = vld [vmem:[#allocation2 + $0x151] sm:$0xff] }
 0x1a1   : > { %1587 = vrot.lane.b32.xlu1 %v9842_v12, %s9453_s16  ;;  %1285 = vst.msk [vmem:[#allocation3 + $0xf0] sm:$0xff] %vm1254_vm5, %v1219_v7  ;;  %v9271_v7 = vpack.c.bf16 %v2093_v5, %v2092_v6  ;;  %v1885_v5 = vld [vmem:[#allocation2 + $0x10a] sm:$0xff] }
 0x1a2   : > { %1593 = vrot.lane.b32.xlu0 %v9872_v19, %s9453_s16 }
 0x1a3   : > { %v1217_v11 = vpop.permute.xlu1 %1216  ;;  %9272 = vmatprep.subr.bf16.mxu0 %v9271_v7 }
 0x1a4   : > { %1284 = vst.msk [vmem:[#allocation3 + $0xe8] sm:$0xff] %vm1254_vm5, %v1217_v11  ;;  %v1352_v9 = vpop.permute.xlu0 %1351  ;;  %9274 = vmatpush3.bf16.msra.mxu0 %v9271_v7  ;;  %v1884_v7 = vld [vmem:[#allocation2 + $0xfa] sm:$0xff] }
 0x1a5   : > { %1591 = vrot.lane.b32.xlu1 %v9858_v16, %s9453_s16  ;;  %1448 = vst.msk [vmem:[#allocation3] sm:$0xff] %vm1447_vm6, %v1352_v9  ;;  %v1511_v16 = vld [vmem:[#allocation2 + $0x198] sm:$0xff]  ;;  %v1697_v9 = vld [vmem:[#allocation2 + $0x141] sm:$0xff] }
 0x1a6   : > { %1597 = vrot.lane.b32.xlu0 %v9888_v23, %s9453_s16 }
 0x1a7   : > { %v1221_v15 = vpop.permute.xlu1 %1220 }
 0x1a8   : > { %1286 = vst.msk [vmem:[#allocation3 + $0xf8] sm:$0xff] %vm1254_vm5, %v1221_v15  ;;  %v1356_v12 = vpop.permute.xlu0 %1355 }
 0x1a9   : > { %1595 = vrot.lane.b32.xlu1 %v9874_v20, %s9453_s16  ;;  %1450 = vst.msk [vmem:[#allocation3 + $0x10] sm:$0xff] %vm1447_vm6, %v1356_v12  ;;  %v1674_v20 = vld [vmem:[#allocation2 + $0x31] sm:$0xff] }
 0x1aa   : > { %1601 = vrot.lane.b32.xlu0 %v10139_v36, %s9453_s16  ;;  %v1512_v36 = vld [vmem:[#allocation2 + $0x1a0] sm:$0xff]  ;;  %v2094_v12 = vld [vmem:[%s13896_s1 + $0x10] sm:$0xff] }
 0x1ab   : > { %v1354_v19 = vpop.permute.xlu1 %1353 }
 0x1ac   : > { %1449 = vst.msk [vmem:[#allocation3 + $0x8] sm:$0xff] %vm1447_vm6, %v1354_v19  ;;  %v1360_v41 = vpop.permute.xlu0 %1359  ;;  %v2095_v19 = vld [vmem:[%s13896_s1 + $0x18] sm:$0xff] }
 0x1ad   : > { %1599 = vrot.lane.b32.xlu1 %v9890_v24, %s9453_s16  ;;  %1452 = vst.msk [vmem:[#allocation3 + $0x20] sm:$0xff] %vm1447_vm6, %v1360_v41  ;;  %v1676_v24 = vld [vmem:[#allocation2 + $0x49] sm:$0xff]  ;;  %v9275_v41 = vpack.c.bf16 %v2095_v19, %v2094_v12  ;;  %v1886_v12 = vld [vmem:[#allocation2 + $0x112] sm:$0xff] }
 0x1ae   : > { %1605 = vrot.lane.b32.xlu0 %v1511_v16, %s9453_s16  ;;  %v1700_v16 = vld [vmem:[#allocation2 + $0x169] sm:$0xff] }
 0x1af   : > { %v1358_v23 = vpop.permute.xlu1 %1357  ;;  %9276 = vmatprep.subr.bf16.mxu0 %v9275_v41 }
 0x1b0   : > { %1451 = vst.msk [vmem:[#allocation3 + $0x18] sm:$0xff] %vm1447_vm6, %v1358_v23  ;;  %v1364_v42 = vpop.permute.xlu0 %1363  ;;  %9278 = vmatpush3.bf16.msra.mxu0 %v9275_v41 }
 0x1b1   : > { %1603 = vrot.lane.b32.xlu1 %v10149_v33, %s9453_s16  ;;  %1454 = vst.msk [vmem:[#allocation3 + $0x30] sm:$0xff] %vm1447_vm6, %v1364_v42  ;;  %v1678_v33 = vld [vmem:[#allocation2 + $0x61] sm:$0xff] }
 0x1b2   : > { %1738 = vrot.lane.b32.xlu0 %v1674_v20, %s9454_s17  ;;  %v1699_v20 = vld [vmem:[#allocation2 + $0x159] sm:$0xff] }
 0x1b3   : > { %v1362_v43 = vpop.permute.xlu1 %1361 }
 0x1b4   : > { %1453 = vst.msk [vmem:[#allocation3 + $0x28] sm:$0xff] %vm1447_vm6, %v1362_v43  ;;  %v1368_v44 = vpop.permute.xlu0 %1367  ;;  %v2097_v43 = vld [vmem:[%s13896_s1 + $0x28] sm:$0xff] }
 0x1b5   : > { %1607 = vrot.lane.b32.xlu1 %v1512_v36, %s9453_s16  ;;  %1456 = vst.msk [vmem:[#allocation3 + $0x40] sm:$0xff] %vm1447_vm6, %v1368_v44  ;;  %v2096_v36 = vld [vmem:[%s13896_s1 + $0x20] sm:$0xff] }
 0x1b6   : > { %1742 = vrot.lane.b32.xlu0 %v1676_v24, %s9454_s17  ;;  %v9279_v24 = vpack.c.bf16 %v2097_v43, %v2096_v36  ;;  %v1890_v43 = vld [vmem:[#allocation2 + $0x142] sm:$0xff] }
 0x1b7   : > { %v1366_v50 = vpop.permute.xlu1 %1365 }
 0x1b8   : > { %1455 = vst.msk [vmem:[#allocation3 + $0x38] sm:$0xff] %vm1447_vm6, %v1366_v50  ;;  %v1372_v53 = vpop.permute.xlu0 %1371  ;;  %9280 = vmatprep.subr.bf16.mxu0 %v9279_v24 }
 0x1b9   : > { %1740 = vrot.lane.b32.xlu1 %v1675_v47, %s9454_s17  ;;  %1458 = vst.msk [vmem:[#allocation3 + $0x50] sm:$0xff] %vm1447_vm6, %v1372_v53  ;;  %v1701_v47 = vld [vmem:[#allocation2 + $0x171] sm:$0xff]  ;;  %9282 = vmatpush3.bf16.msra.mxu0 %v9279_v24 }
 0x1ba   : > { %1746 = vrot.lane.b32.xlu0 %v1678_v33, %s9454_s17  ;;  %v2098_v33 = vld [vmem:[%s13896_s1 + $0x30] sm:$0xff]  ;;  %v2099_v53 = vld [vmem:[%s13896_s1 + $0x38] sm:$0xff] }
 0x1bb   : > { %v1370_v63 = vpop.permute.xlu1 %1369 }
 0x1bc   : > { %1457 = vst.msk [vmem:[#allocation3 + $0x48] sm:$0xff] %vm1447_vm6, %v1370_v63  ;;  %v1376_v13 = vpop.permute.xlu0 %1375  ;;  %v9283_v63 = vpack.c.bf16 %v2099_v53, %v2098_v33 }
 0x1bd   : > { %1744 = vrot.lane.b32.xlu1 %v1677_v56, %s9454_s17  ;;  %1460 = vst.msk [vmem:[#allocation3 + $0x60] sm:$0xff] %vm1447_vm6, %v1376_v13  ;;  %v1704_v56 = vld [vmem:[#allocation2 + $0x199] sm:$0xff] }
 0x1be   : > { %1750 = vrot.lane.b32.xlu0 %v1680_v10, %s9454_s17  ;;  %9284 = vmatprep.subr.bf16.mxu0 %v9283_v63  ;;  %v1867_v13 = vld [vmem:[#allocation2 + $0x32] sm:$0xff] }
 0x1bf   : > { %v1374_v17 = vpop.permute.xlu1 %1373  ;;  %9286 = vmatpush3.bf16.msra.mxu0 %v9283_v63 }
 0x1c0   : > { %1459 = vst.msk [vmem:[#allocation3 + $0x58] sm:$0xff] %vm1447_vm6, %v1374_v17  ;;  %v1380_v21 = vpop.permute.xlu0 %1379 }
 0x1c1   : > { %1748 = vrot.lane.b32.xlu1 %v1679_v14, %s9454_s17  ;;  %1462 = vst.msk [vmem:[#allocation3 + $0x70] sm:$0xff] %vm1447_vm6, %v1380_v21  ;;  %v2100_v14 = vld [vmem:[%s13896_s1 + $0x40] sm:$0xff] }
 0x1c2   : > { %1754 = vrot.lane.b32.xlu0 %v1682_v18, %s9454_s17  ;;  %9023 = vmatprep.subr.mxu0 %v2100_v14  ;;  %v1705_v18 = vld [vmem:[#allocation2 + $0x1a1] sm:$0xff] }
 0x1c3   : > { %v1378_v22 = vpop.permute.xlu1 %1377  ;;  %9024 = vmatpush3.msra.mxu0 %v2100_v14 }
 0x1c4   : > { %1461 = vst.msk [vmem:[#allocation3 + $0x68] sm:$0xff] %vm1447_vm6, %v1378_v22  ;;  %v1384_v45 = vpop.permute.xlu0 %1383 }
 0x1c5   : > { %1752 = vrot.lane.b32.xlu1 %v1681_v48, %s9454_s17  ;;  %1464 = vst.msk [vmem:[#allocation3 + $0x80] sm:$0xff] %vm1447_vm6, %v1384_v45  ;;  %v1869_v48 = vld [vmem:[#allocation2 + $0x4a] sm:$0xff]  ;;  %v1871_v45 = vld [vmem:[#allocation2 + $0x62] sm:$0xff] }
 0x1c6   : > { %1758 = vrot.lane.b32.xlu0 %v1684_v49, %s9454_s17  ;;  %v1868_v49 = vld [vmem:[#allocation2 + $0x3a] sm:$0xff] }
 0x1c7   : > { %v1382_v25 = vpop.permute.xlu1 %1381 }
 0x1c8   : > { %1463 = vst.msk [vmem:[#allocation3 + $0x78] sm:$0xff] %vm1447_vm6, %v1382_v25  ;;  %v1388_v35 = vpop.permute.xlu0 %1387  ;;  %v1870_v25 = vld [vmem:[#allocation2 + $0x52] sm:$0xff] }
 0x1c9   : > { %1756 = vrot.lane.b32.xlu1 %v1683_v29, %s9454_s17  ;;  %1466 = vst.msk [vmem:[#allocation3 + $0x90] sm:$0xff] %vm1447_vm6, %v1388_v35  ;;  %v1873_v35 = vld [vmem:[#allocation2 + $0x7a] sm:$0xff] }
 0x1ca   : > { %1762 = vrot.lane.b32.xlu0 %v1686_v46, %s9454_s17 }
 0x1cb   : > { %v1386_v34 = vpop.permute.xlu1 %1385 }
 0x1cc   : > { %1465 = vst.msk [vmem:[#allocation3 + $0x88] sm:$0xff] %vm1447_vm6, %v1386_v34  ;;  %v1392_v38 = vpop.permute.xlu0 %1391  ;;  %v1872_v34 = vld [vmem:[#allocation2 + $0x6a] sm:$0xff] }
 0x1cd   : > { %1760 = vrot.lane.b32.xlu1 %v1685_v30, %s9454_s17  ;;  %1468 = vst.msk [vmem:[#allocation3 + $0xa0] sm:$0xff] %vm1447_vm6, %v1392_v38  ;;  %v1875_v38 = vld [vmem:[#allocation2 + $0x92] sm:$0xff] }
 0x1ce   : > { %1766 = vrot.lane.b32.xlu0 %v1688_v32, %s9454_s17 }
 0x1cf   : > { %v1390_v37 = vpop.permute.xlu1 %1389 }
 0x1d0   : > { %1467 = vst.msk [vmem:[#allocation3 + $0x98] sm:$0xff] %vm1447_vm6, %v1390_v37  ;;  %v1396_v40 = vpop.permute.xlu0 %1395  ;;  %v1874_v37 = vld [vmem:[#allocation2 + $0x82] sm:$0xff] }
 0x1d1   : > { %1764 = vrot.lane.b32.xlu1 %v1687_v39, %s9454_s17  ;;  %1470 = vst.msk [vmem:[#allocation3 + $0xb0] sm:$0xff] %vm1447_vm6, %v1396_v40  ;;  %v1877_v40 = vld [vmem:[#allocation2 + $0xaa] sm:$0xff] }
 0x1d2   : > { %1770 = vrot.lane.b32.xlu0 %v1690_v51, %s9454_s17 }
 0x1d3   : > { %v1394_v52 = vpop.permute.xlu1 %1393 }
 0x1d4   : > { %1469 = vst.msk [vmem:[#allocation3 + $0xa8] sm:$0xff] %vm1447_vm6, %v1394_v52  ;;  %v1400_v55 = vpop.permute.xlu0 %1399  ;;  %v1876_v52 = vld [vmem:[#allocation2 + $0x9a] sm:$0xff] }
 0x1d5   : > { %1768 = vrot.lane.b32.xlu1 %v1689_v54, %s9454_s17  ;;  %1472 = vst.msk [vmem:[#allocation3 + $0xc0] sm:$0xff] %vm1447_vm6, %v1400_v55  ;;  %v1879_v55 = vld [vmem:[#allocation2 + $0xc2] sm:$0xff] }
 0x1d6   : > { %1774 = vrot.lane.b32.xlu0 %v1692_v57, %s9454_s17 }
 0x1d7   : > { %v1398_v58 = vpop.permute.xlu1 %1397 }
 0x1d8   : > { %1471 = vst.msk [vmem:[#allocation3 + $0xb8] sm:$0xff] %vm1447_vm6, %v1398_v58  ;;  %v1404_v60 = vpop.permute.xlu0 %1403  ;;  %v1878_v58 = vld [vmem:[#allocation2 + $0xb2] sm:$0xff] }
 0x1d9   : > { %1772 = vrot.lane.b32.xlu1 %v1691_v59, %s9454_s17  ;;  %1474 = vst.msk [vmem:[#allocation3 + $0xd0] sm:$0xff] %vm1447_vm6, %v1404_v60  ;;  %v1881_v60 = vld [vmem:[#allocation2 + $0xda] sm:$0xff] }
 0x1da   : > { %1778 = vrot.lane.b32.xlu0 %v1694_v61, %s9454_s17 }
 0x1db   : > { %v1402_v62 = vpop.permute.xlu1 %1401 }
 0x1dc   : > { %1473 = vst.msk [vmem:[#allocation3 + $0xc8] sm:$0xff] %vm1447_vm6, %v1402_v62  ;;  %v1408_v1 = vpop.permute.xlu0 %1407  ;;  %v1880_v62 = vld [vmem:[#allocation2 + $0xca] sm:$0xff] }
 0x1dd   : > { %1776 = vrot.lane.b32.xlu1 %v1693_v0, %s9454_s17  ;;  %1476 = vst.msk [vmem:[#allocation3 + $0xe0] sm:$0xff] %vm1447_vm6, %v1408_v1  ;;  %v1883_v1 = vld [vmem:[#allocation2 + $0xf2] sm:$0xff] }
 0x1de   : > { %1782 = vrot.lane.b32.xlu0 %v1696_v2, %s9454_s17 }
 0x1df   : > { %v1406_v3 = vpop.permute.xlu1 %1405 }
 0x1e0   : > { %1475 = vst.msk [vmem:[#allocation3 + $0xd8] sm:$0xff] %vm1447_vm6, %v1406_v3  ;;  %v1412_v11 = vpop.permute.xlu0 %1411  ;;  %v1882_v3 = vld [vmem:[#allocation2 + $0xe2] sm:$0xff] }
 0x1e1   : > { %1780 = vrot.lane.b32.xlu1 %v1695_v4, %s9454_s17  ;;  %1478 = vst.msk [vmem:[#allocation3 + $0xf0] sm:$0xff] %vm1447_vm6, %v1412_v11 }
 0x1e2   : > { %1786 = vrot.lane.b32.xlu0 %v1698_v8, %s9454_s17 }
 0x1e3   : > { %v1410_v15 = vpop.permute.xlu1 %1409 }
 0x1e4   : > { %1477 = vst.msk [vmem:[#allocation3 + $0xe8] sm:$0xff] %vm1447_vm6, %v1410_v15  ;;  %v1546_v23 = vpop.permute.xlu0 %1545 }
 0x1e5   : > { %1784 = vrot.lane.b32.xlu1 %v1697_v9, %s9454_s17  ;;  %1642 = vst.msk [vmem:[#allocation3] sm:$0xff] %vm1641_vm7, %v1546_v23  ;;  %v1887_v9 = vld [vmem:[#allocation2 + $0x122] sm:$0xff]  ;;  %v1888_v23 = vld [vmem:[#allocation2 + $0x12a] sm:$0xff] }
 0x1e6   : > { %1790 = vrot.lane.b32.xlu0 %v1700_v16, %s9454_s17  ;;  %v1889_v16 = vld [vmem:[#allocation2 + $0x13a] sm:$0xff] }
 0x1e7   : > { %v1414_v42 = vpop.permute.xlu1 %1413 }
 0x1e8   : > { %1479 = vst.msk [vmem:[#allocation3 + $0xf8] sm:$0xff] %vm1447_vm6, %v1414_v42  ;;  %v1550_v44 = vpop.permute.xlu0 %1549  ;;  %v1891_v42 = vld [vmem:[#allocation2 + $0x152] sm:$0xff] }
 0x1e9   : > { %1788 = vrot.lane.b32.xlu1 %v1699_v20, %s9454_s17  ;;  %1644 = vst.msk [vmem:[#allocation3 + $0x10] sm:$0xff] %vm1641_vm7, %v1550_v44  ;;  %v1893_v44 = vld [vmem:[#allocation2 + $0x16a] sm:$0xff] }
 0x1ea   : > { %1794 = vrot.lane.b32.xlu0 %v10239_v28, %s9454_s17 }
 0x1eb   : > { %v1548_v50 = vpop.permute.xlu1 %1547 }
 0x1ec   : > { %1643 = vst.msk [vmem:[#allocation3 + $0x8] sm:$0xff] %vm1641_vm7, %v1548_v50  ;;  %v1554_v10 = vpop.permute.xlu0 %1553  ;;  %v1892_v50 = vld [vmem:[#allocation2 + $0x15a] sm:$0xff] }
 0x1ed   : > { %1792 = vrot.lane.b32.xlu1 %v1701_v47, %s9454_s17  ;;  %1646 = vst.msk [vmem:[#allocation3 + $0x20] sm:$0xff] %vm1641_vm7, %v1554_v10  ;;  %v1897_v10 = vld [vmem:[#allocation2 + $0x19a] sm:$0xff] }
 0x1ee   : > { %1798 = vrot.lane.b32.xlu0 %v1704_v56, %s9454_s17  ;;  %v1894_v56 = vld [vmem:[#allocation2 + $0x172] sm:$0xff] }
 0x1ef   : > { %v1552_v28 = vpop.permute.xlu1 %1551 }
 0x1f0   : > { %1645 = vst.msk [vmem:[#allocation3 + $0x18] sm:$0xff] %vm1641_vm7, %v1552_v28  ;;  %v1558_v17 = vpop.permute.xlu0 %1557 }
 0x1f1   : > { %1796 = vrot.lane.b32.xlu1 %v10249_v27, %s9454_s17  ;;  %1648 = vst.msk [vmem:[#allocation3 + $0x30] sm:$0xff] %vm1641_vm7, %v1558_v17 }
 0x1f2   : > { %1931 = vrot.lane.b32.xlu0 %v1867_v13, %s9455_s24 }
 0x1f3   : > { %v1556_v21 = vpop.permute.xlu1 %1555 }
 0x1f4   : > { %1647 = vst.msk [vmem:[#allocation3 + $0x28] sm:$0xff] %vm1641_vm7, %v1556_v21  ;;  %v1562_v22 = vpop.permute.xlu0 %1561 }
 0x1f5   : > { %1800 = vrot.lane.b32.xlu1 %v1705_v18, %s9454_s17  ;;  %1650 = vst.msk [vmem:[#allocation3 + $0x40] sm:$0xff] %vm1641_vm7, %v1562_v22 }
 0x1f6   : > { %1935 = vrot.lane.b32.xlu0 %v1869_v48, %s9455_s24 }
 0x1f7   : > { %v1560_v27 = vpop.permute.xlu1 %1559 }
 0x1f8   : > { %1649 = vst.msk [vmem:[#allocation3 + $0x38] sm:$0xff] %vm1641_vm7, %v1560_v27  ;;  %v1566_v29 = vpop.permute.xlu0 %1565 }
 0x1f9   : > { %1933 = vrot.lane.b32.xlu1 %v1868_v49, %s9455_s24  ;;  %1652 = vst.msk [vmem:[#allocation3 + $0x50] sm:$0xff] %vm1641_vm7, %v1566_v29 }
 0x1fa   : > { %1939 = vrot.lane.b32.xlu0 %v1871_v45, %s9455_s24 }
 0x1fb   : > { %v1564_v46 = vpop.permute.xlu1 %1563 }
 0x1fc   : > { %1651 = vst.msk [vmem:[#allocation3 + $0x48] sm:$0xff] %vm1641_vm7, %v1564_v46  ;;  %v1570_v30 = vpop.permute.xlu0 %1569 }
 0x1fd   : > { %1937 = vrot.lane.b32.xlu1 %v1870_v25, %s9455_s24  ;;  %1654 = vst.msk [vmem:[#allocation3 + $0x60] sm:$0xff] %vm1641_vm7, %v1570_v30 }
 0x1fe   : > { %1943 = vrot.lane.b32.xlu0 %v1873_v35, %s9455_s24 }
 0x1ff   : > { %v1568_v32 = vpop.permute.xlu1 %1567 }
 0x200   : > { %1653 = vst.msk [vmem:[#allocation3 + $0x58] sm:$0xff] %vm1641_vm7, %v1568_v32  ;;  %v1574_v39 = vpop.permute.xlu0 %1573 }
 0x201   : > { %1941 = vrot.lane.b32.xlu1 %v1872_v34, %s9455_s24  ;;  %1656 = vst.msk [vmem:[#allocation3 + $0x70] sm:$0xff] %vm1641_vm7, %v1574_v39 }
 0x202   : > { %1947 = vrot.lane.b32.xlu0 %v1875_v38, %s9455_s24 }
 0x203   : > { %v1572_v51 = vpop.permute.xlu1 %1571 }
 0x204   : > { %1655 = vst.msk [vmem:[#allocation3 + $0x68] sm:$0xff] %vm1641_vm7, %v1572_v51  ;;  %v1578_v54 = vpop.permute.xlu0 %1577 }
 0x205   : > { %1945 = vrot.lane.b32.xlu1 %v1874_v37, %s9455_s24  ;;  %1658 = vst.msk [vmem:[#allocation3 + $0x80] sm:$0xff] %vm1641_vm7, %v1578_v54 }
 0x206   : > { %1951 = vrot.lane.b32.xlu0 %v1877_v40, %s9455_s24 }
 0x207   : > { %v1576_v57 = vpop.permute.xlu1 %1575 }
 0x208   : > { %1657 = vst.msk [vmem:[#allocation3 + $0x78] sm:$0xff] %vm1641_vm7, %v1576_v57  ;;  %v1582_v59 = vpop.permute.xlu0 %1581 }
 0x209   : > { %1949 = vrot.lane.b32.xlu1 %v1876_v52, %s9455_s24  ;;  %1660 = vst.msk [vmem:[#allocation3 + $0x90] sm:$0xff] %vm1641_vm7, %v1582_v59 }
 0x20a   : > { %1955 = vrot.lane.b32.xlu0 %v1879_v55, %s9455_s24 }
 0x20b   : > { %v1580_v61 = vpop.permute.xlu1 %1579 }
 0x20c   : > { %1659 = vst.msk [vmem:[#allocation3 + $0x88] sm:$0xff] %vm1641_vm7, %v1580_v61  ;;  %v1586_v0 = vpop.permute.xlu0 %1585 }
 0x20d   : > { %1953 = vrot.lane.b32.xlu1 %v1878_v58, %s9455_s24  ;;  %1662 = vst.msk [vmem:[#allocation3 + $0xa0] sm:$0xff] %vm1641_vm7, %v1586_v0 }
 0x20e   : > { %1959 = vrot.lane.b32.xlu0 %v1881_v60, %s9455_s24 }
 0x20f   : > { %v1584_v2 = vpop.permute.xlu1 %1583 }
 0x210   : > { %1661 = vst.msk [vmem:[#allocation3 + $0x98] sm:$0xff] %vm1641_vm7, %v1584_v2  ;;  %v1590_v4 = vpop.permute.xlu0 %1589 }
 0x211   : > { %1957 = vrot.lane.b32.xlu1 %v1880_v62, %s9455_s24  ;;  %1664 = vst.msk [vmem:[#allocation3 + $0xb0] sm:$0xff] %vm1641_vm7, %v1590_v4 }
 0x212   : > { %1963 = vrot.lane.b32.xlu0 %v1883_v1, %s9455_s24 }
 0x213   : > { %v1588_v6 = vpop.permute.xlu1 %1587 }
 0x214   : > { %1663 = vst.msk [vmem:[#allocation3 + $0xa8] sm:$0xff] %vm1641_vm7, %v1588_v6  ;;  %v1594_v8 = vpop.permute.xlu0 %1593 }
 0x215   : > { %1961 = vrot.lane.b32.xlu1 %v1882_v3, %s9455_s24  ;;  %1666 = vst.msk [vmem:[#allocation3 + $0xc0] sm:$0xff] %vm1641_vm7, %v1594_v8 }
 0x216   : > { %1967 = vrot.lane.b32.xlu0 %v1885_v5, %s9455_s24 }
 0x217   : > { %v1592_v11 = vpop.permute.xlu1 %1591 }
 0x218   : > { %1665 = vst.msk [vmem:[#allocation3 + $0xb8] sm:$0xff] %vm1641_vm7, %v1592_v11  ;;  %v1598_v15 = vpop.permute.xlu0 %1597 }
 0x219   : > { %1965 = vrot.lane.b32.xlu1 %v1884_v7, %s9455_s24  ;;  %1668 = vst.msk [vmem:[#allocation3 + $0xd0] sm:$0xff] %vm1641_vm7, %v1598_v15 }
 0x21a   : > { %1971 = vrot.lane.b32.xlu0 %v1887_v9, %s9455_s24 }
 0x21b   : > { %v1596_v19 = vpop.permute.xlu1 %1595 }
 0x21c   : > { %1667 = vst.msk [vmem:[#allocation3 + $0xc8] sm:$0xff] %vm1641_vm7, %v1596_v19  ;;  %v1602_v41 = vpop.permute.xlu0 %1601 }
 0x21d   : > { %1969 = vrot.lane.b32.xlu1 %v1886_v12, %s9455_s24  ;;  %1670 = vst.msk [vmem:[#allocation3 + $0xe0] sm:$0xff] %vm1641_vm7, %v1602_v41 }
 0x21e   : > { %1975 = vrot.lane.b32.xlu0 %v1889_v16, %s9455_s24 }
 0x21f   : > { %v1600_v20 = vpop.permute.xlu1 %1599 }
 0x220   : > { %1669 = vst.msk [vmem:[#allocation3 + $0xd8] sm:$0xff] %vm1641_vm7, %v1600_v20  ;;  %v1606_v36 = vpop.permute.xlu0 %1605 }
 0x221   : > { %1973 = vrot.lane.b32.xlu1 %v1888_v23, %s9455_s24  ;;  %1672 = vst.msk [vmem:[#allocation3 + $0xf0] sm:$0xff] %vm1641_vm7, %v1606_v36 }
 0x222   : > { %1979 = vrot.lane.b32.xlu0 %v1891_v42, %s9455_s24 }
 0x223   : > { %v1604_v24 = vpop.permute.xlu1 %1603 }
 0x224   : > { %1671 = vst.msk [vmem:[#allocation3 + $0xe8] sm:$0xff] %vm1641_vm7, %v1604_v24  ;;  %v1739_v47 = vpop.permute.xlu0 %1738 }
 0x225   : > { %1977 = vrot.lane.b32.xlu1 %v1890_v43, %s9455_s24  ;;  %1835 = vst.msk [vmem:[#allocation3] sm:$0xff] %vm1834_vm8, %v1739_v47 }
 0x226   : > { %1983 = vrot.lane.b32.xlu0 %v1893_v44, %s9455_s24 }
 0x227   : > { %v1608_v33 = vpop.permute.xlu1 %1607 }
 0x228   : > { %1673 = vst.msk [vmem:[#allocation3 + $0xf8] sm:$0xff] %vm1641_vm7, %v1608_v33  ;;  %v1743_v53 = vpop.permute.xlu0 %1742 }
 0x229   : > { %1981 = vrot.lane.b32.xlu1 %v1892_v50, %s9455_s24  ;;  %1837 = vst.msk [vmem:[#allocation3 + $0x10] sm:$0xff] %vm1834_vm8, %v1743_v53 }
 0x22a   : > { %1987 = vrot.lane.b32.xlu0 %v10339_v26, %s9455_s24  ;;  %v1898_v26 = vld [vmem:[#allocation2 + $0x1a2] sm:$0xff] }
 0x22b   : > { %v1741_v63 = vpop.permute.xlu1 %1740 }
 0x22c   : > { %1836 = vst.msk [vmem:[#allocation3 + $0x8] sm:$0xff] %vm1834_vm8, %v1741_v63  ;;  %v1747_v28 = vpop.permute.xlu0 %1746 }
 0x22d   : > { %1985 = vrot.lane.b32.xlu1 %v1894_v56, %s9455_s24  ;;  %1839 = vst.msk [vmem:[#allocation3 + $0x20] sm:$0xff] %vm1834_vm8, %v1747_v28 }
 0x22e   : > { %1991 = vrot.lane.b32.xlu0 %v1897_v10, %s9455_s24 }
 0x22f   : > { %v1745_v13 = vpop.permute.xlu1 %1744 }
 0x230   : > { %1838 = vst.msk [vmem:[#allocation3 + $0x18] sm:$0xff] %vm1834_vm8, %v1745_v13  ;;  %v1751_v14 = vpop.permute.xlu0 %1750 }
 0x231   : > { %1989 = vrot.lane.b32.xlu1 %v10349_v31, %s9455_s24  ;;  %1841 = vst.msk [vmem:[#allocation3 + $0x30] sm:$0xff] %vm1834_vm8, %v1751_v14 }
 0x233   : > { %v1749_v17 = vpop.permute.xlu1 %1748 }
 0x234   : > { %1840 = vst.msk [vmem:[#allocation3 + $0x28] sm:$0xff] %vm1834_vm8, %v1749_v17  ;;  %v1755_v18 = vpop.permute.xlu0 %1754 }
 0x235   : > { %1993 = vrot.lane.b32.xlu1 %v1898_v26, %s9455_s24  ;;  %1843 = vst.msk [vmem:[#allocation3 + $0x40] sm:$0xff] %vm1834_vm8, %v1755_v18 }
 0x237   : > { %v1753_v21 = vpop.permute.xlu1 %1752 }
 0x238   : > { %1842 = vst.msk [vmem:[#allocation3 + $0x38] sm:$0xff] %vm1834_vm8, %v1753_v21  ;;  %v1759_v48 = vpop.permute.xlu0 %1758 }
 0x239   : > { %1845 = vst.msk [vmem:[#allocation3 + $0x50] sm:$0xff] %vm1834_vm8, %v1759_v48 }
 0x23b   : > { %v1757_v22 = vpop.permute.xlu1 %1756 }
 0x23c   : > { %1844 = vst.msk [vmem:[#allocation3 + $0x48] sm:$0xff] %vm1834_vm8, %v1757_v22  ;;  %v1763_v31 = vpop.permute.xlu0 %1762 }
 0x23d   : > { %1847 = vst.msk [vmem:[#allocation3 + $0x60] sm:$0xff] %vm1834_vm8, %v1763_v31 }
 0x23f   : > { %v1761_v49 = vpop.permute.xlu1 %1760 }
 0x240   : > { %1846 = vst.msk [vmem:[#allocation3 + $0x58] sm:$0xff] %vm1834_vm8, %v1761_v49  ;;  %v1767_v27 = vpop.permute.xlu0 %1766 }
 0x241   : > { %1849 = vst.msk [vmem:[#allocation3 + $0x70] sm:$0xff] %vm1834_vm8, %v1767_v27 }
 0x243   : > { %v1765_v45 = vpop.permute.xlu1 %1764 }
 0x244   : > { %1848 = vst.msk [vmem:[#allocation3 + $0x68] sm:$0xff] %vm1834_vm8, %v1765_v45  ;;  %v1771_v29 = vpop.permute.xlu0 %1770 }
 0x245   : > { %1851 = vst.msk [vmem:[#allocation3 + $0x80] sm:$0xff] %vm1834_vm8, %v1771_v29 }
 0x247   : > { %v1769_v25 = vpop.permute.xlu1 %1768 }
 0x248   : > { %1850 = vst.msk [vmem:[#allocation3 + $0x78] sm:$0xff] %vm1834_vm8, %v1769_v25  ;;  %v1775_v46 = vpop.permute.xlu0 %1774 }
 0x249   : > { %1853 = vst.msk [vmem:[#allocation3 + $0x90] sm:$0xff] %vm1834_vm8, %v1775_v46 }
 0x24b   : > { %v1773_v35 = vpop.permute.xlu1 %1772 }
 0x24c   : > { %1852 = vst.msk [vmem:[#allocation3 + $0x88] sm:$0xff] %vm1834_vm8, %v1773_v35  ;;  %v1779_v30 = vpop.permute.xlu0 %1778 }
 0x24d   : > { %1855 = vst.msk [vmem:[#allocation3 + $0xa0] sm:$0xff] %vm1834_vm8, %v1779_v30 }
 0x24f   : > { %v1777_v34 = vpop.permute.xlu1 %1776 }
 0x250   : > { %1854 = vst.msk [vmem:[#allocation3 + $0x98] sm:$0xff] %vm1834_vm8, %v1777_v34  ;;  %v1783_v32 = vpop.permute.xlu0 %1782 }
 0x251   : > { %1857 = vst.msk [vmem:[#allocation3 + $0xb0] sm:$0xff] %vm1834_vm8, %v1783_v32 }
 0x253   : > { %v1781_v38 = vpop.permute.xlu1 %1780 }
 0x254   : > { %1856 = vst.msk [vmem:[#allocation3 + $0xa8] sm:$0xff] %vm1834_vm8, %v1781_v38  ;;  %v1787_v39 = vpop.permute.xlu0 %1786 }
 0x255   : > { %1859 = vst.msk [vmem:[#allocation3 + $0xc0] sm:$0xff] %vm1834_vm8, %v1787_v39 }
 0x257   : > { %v1785_v37 = vpop.permute.xlu1 %1784 }
 0x258   : > { %1858 = vst.msk [vmem:[#allocation3 + $0xb8] sm:$0xff] %vm1834_vm8, %v1785_v37  ;;  %v1791_v51 = vpop.permute.xlu0 %1790 }
 0x259   : > { %1861 = vst.msk [vmem:[#allocation3 + $0xd0] sm:$0xff] %vm1834_vm8, %v1791_v51 }
 0x25b   : > { %v1789_v40 = vpop.permute.xlu1 %1788 }
 0x25c   : > { %1860 = vst.msk [vmem:[#allocation3 + $0xc8] sm:$0xff] %vm1834_vm8, %v1789_v40  ;;  %v1795_v54 = vpop.permute.xlu0 %1794 }
 0x25d   : > { %1863 = vst.msk [vmem:[#allocation3 + $0xe0] sm:$0xff] %vm1834_vm8, %v1795_v54 }
 0x25f   : > { %v1793_v52 = vpop.permute.xlu1 %1792 }
 0x260   : > { %1862 = vst.msk [vmem:[#allocation3 + $0xd8] sm:$0xff] %vm1834_vm8, %v1793_v52  ;;  %v1799_v57 = vpop.permute.xlu0 %1798 }
 0x261   : > { %1865 = vst.msk [vmem:[#allocation3 + $0xf0] sm:$0xff] %vm1834_vm8, %v1799_v57 }
 0x263   : > { %v1797_v55 = vpop.permute.xlu1 %1796 }
 0x264   : > { %1864 = vst.msk [vmem:[#allocation3 + $0xe8] sm:$0xff] %vm1834_vm8, %v1797_v55  ;;  %v1932_v59 = vpop.permute.xlu0 %1931 }
 0x265   : > { %2028 = vst.msk [vmem:[#allocation3] sm:$0xff] %vm2027_vm9, %v1932_v59 }
 0x267   : > { %v1801_v58 = vpop.permute.xlu1 %1800 }
 0x268   : > { %1866 = vst.msk [vmem:[#allocation3 + $0xf8] sm:$0xff] %vm1834_vm8, %v1801_v58  ;;  %v1936_v61 = vpop.permute.xlu0 %1935  ;;  %v2559_v58 = vld [vmem:[#allocation2 + $0x9] sm:$0xff] }
 0x269   : > { %2030 = vst.msk [vmem:[#allocation3 + $0x10] sm:$0xff] %vm2027_vm9, %v1936_v61  ;;  %2624 = vrot.lane.b32.xlu1 %v2559_v58, %s9448_s26  ;;  %v2558_v61 = vld [vmem:[#allocation2 + $0x1] sm:$0xff] }
 0x26a   : > { %2622 = vrot.lane.b32.xlu0 %v2558_v61, %s9448_s26 }
 0x26b   : > { %v1934_v60 = vpop.permute.xlu1 %1933 }
 0x26c   : > { %2029 = vst.msk [vmem:[#allocation3 + $0x8] sm:$0xff] %vm2027_vm9, %v1934_v60  ;;  %v1940_v0 = vpop.permute.xlu0 %1939  ;;  %v2060_v62 = vld [vmem:[#allocation3] sm:$0xff]  ;;  %v2495_v60 = vld [vmem:[#allocation2 + $0x8] sm:$0xff] }
 0x26d   : > { %2032 = vst.msk [vmem:[#allocation3 + $0x20] sm:$0xff] %vm2027_vm9, %v1940_v0  ;;  %9025 = vmatprep.mubr.msk.f32.mxu0 %vm2108_vm10, %v2060_v62  ;;  %v2494_v0 = vld [vmem:[#allocation2] sm:$0xff] }
 0x26e   : > { %2526 = vst.msk [vmem:[#allocation3] sm:$0xff] %vm330_vm0, %v2494_v0 }
 0x26f   : > { %v1938_v2 = vpop.permute.xlu1 %1937 }
 0x270   : > { %2031 = vst.msk [vmem:[#allocation3 + $0x18] sm:$0xff] %vm2027_vm9, %v1938_v2  ;;  %v1944_v1 = vpop.permute.xlu0 %1943  ;;  %v2062_v4 = vld [vmem:[#allocation3 + $0x10] sm:$0xff] }
 0x271   : > { %2034 = vst.msk [vmem:[#allocation3 + $0x30] sm:$0xff] %vm2027_vm9, %v1944_v1  ;;  %v10706_v1 = vld [vmem:[%s13897_s2] ss:$0 sm:$0xff] }
 0x273   : > { %v1942_v3 = vpop.permute.xlu1 %1941  ;;  %v2061_v6 = vld [vmem:[#allocation3 + $0x8] sm:$0xff] }
 0x274   : > { %2033 = vst.msk [vmem:[#allocation3 + $0x28] sm:$0xff] %vm2027_vm9, %v1942_v3  ;;  %9026 = vmatmul.mubr.msk.f32.vlgmr.msra.gmra.mrb[0].mxu0 %vm2108_vm10, %v2061_v6  ;;  %v1948_v5 = vpop.permute.xlu0 %1947  ;;  %v2064_v8 = vld [vmem:[#allocation3 + $0x20] sm:$0xff] }
 0x275   : > { %9028 = vmatprep.mubr.msk.f32.mxu0 %vm2108_vm10, %v2062_v4  ;;  %2036 = vst.msk [vmem:[#allocation3 + $0x40] sm:$0xff] %vm2027_vm9, %v1948_v5 }
 0x276   : > { %2527 = vst.msk [vmem:[#allocation3 + $0x8] sm:$0xff] %vm330_vm0, %v2495_v60 }
 0x277   : > { %v1946_v7 = vpop.permute.xlu1 %1945  ;;  %v2063_v11 = vld [vmem:[#allocation3 + $0x18] sm:$0xff] }
 0x278   : > { %2035 = vst.msk [vmem:[#allocation3 + $0x38] sm:$0xff] %vm2027_vm9, %v1946_v7  ;;  %9029 = vmatmul.mubr.msk.f32.gmra.mrb[2].mxu0 %vm2108_vm10, %v2063_v11  ;;  %v1952_v9 = vpop.permute.xlu0 %1951  ;;  %v2066_v15 = vld [vmem:[#allocation3 + $0x30] sm:$0xff] }
 0x279   : > { %9031 = vmatprep.mubr.msk.f32.mxu0 %vm2108_vm10, %v2064_v8  ;;  %2038 = vst.msk [vmem:[#allocation3 + $0x50] sm:$0xff] %vm2027_vm9, %v1952_v9 }
 0x27b   : > { %v1950_v12 = vpop.permute.xlu1 %1949  ;;  %v2065_v19 = vld [vmem:[#allocation3 + $0x28] sm:$0xff] }
 0x27c   : > { %2037 = vst.msk [vmem:[#allocation3 + $0x48] sm:$0xff] %vm2027_vm9, %v1950_v12  ;;  %9032 = vmatmul.mubr.msk.f32.gmra.mrb[4].mxu0 %vm2108_vm10, %v2065_v19  ;;  %v1956_v16 = vpop.permute.xlu0 %1955  ;;  %v2068_v41 = vld [vmem:[#allocation3 + $0x40] sm:$0xff] }
 0x27d   : > { %9034 = vmatprep.mubr.msk.f32.mxu0 %vm2108_vm10, %v2066_v15  ;;  %2040 = vst.msk [vmem:[#allocation3 + $0x60] sm:$0xff] %vm2027_vm9, %v1956_v16 }
 0x27f   : > { %v1954_v23 = vpop.permute.xlu1 %1953  ;;  %v2067_v20 = vld [vmem:[#allocation3 + $0x38] sm:$0xff] }
 0x280   : > { %2039 = vst.msk [vmem:[#allocation3 + $0x58] sm:$0xff] %vm2027_vm9, %v1954_v23  ;;  %9035 = vmatmul.mubr.msk.f32.gmra.mrb[6].mxu0 %vm2108_vm10, %v2067_v20  ;;  %v1960_v42 = vpop.permute.xlu0 %1959  ;;  %v2070_v36 = vld [vmem:[#allocation3 + $0x50] sm:$0xff] }
 0x281   : > { %9037 = vmatprep.mubr.msk.f32.mxu0 %vm2108_vm10, %v2068_v41  ;;  %2042 = vst.msk [vmem:[#allocation3 + $0x70] sm:$0xff] %vm2027_vm9, %v1960_v42 }
 0x283   : > { %v1958_v43 = vpop.permute.xlu1 %1957  ;;  %v2069_v24 = vld [vmem:[#allocation3 + $0x48] sm:$0xff] }
 0x284   : > { %2041 = vst.msk [vmem:[#allocation3 + $0x68] sm:$0xff] %vm2027_vm9, %v1958_v43  ;;  %9038 = vmatmul.mubr.msk.f32.gmra.mrb[8].mxu0 %vm2108_vm10, %v2069_v24  ;;  %v1964_v44 = vpop.permute.xlu0 %1963  ;;  %v2072_v47 = vld [vmem:[#allocation3 + $0x60] sm:$0xff] }
 0x285   : > { %9040 = vmatprep.mubr.msk.f32.mxu0 %vm2108_vm10, %v2070_v36  ;;  %2044 = vst.msk [vmem:[#allocation3 + $0x80] sm:$0xff] %vm2027_vm9, %v1964_v44 }
 0x287   : > { %v1962_v50 = vpop.permute.xlu1 %1961  ;;  %v2071_v33 = vld [vmem:[#allocation3 + $0x58] sm:$0xff] }
 0x288   : > { %2043 = vst.msk [vmem:[#allocation3 + $0x78] sm:$0xff] %vm2027_vm9, %v1962_v50  ;;  %9041 = vmatmul.mubr.msk.f32.gmra.mrb[10].mxu0 %vm2108_vm10, %v2071_v33  ;;  %v1968_v53 = vpop.permute.xlu0 %1967  ;;  %v2074_v56 = vld [vmem:[#allocation3 + $0x70] sm:$0xff] }
 0x289   : > { %9043 = vmatprep.mubr.msk.f32.mxu0 %vm2108_vm10, %v2072_v47  ;;  %2046 = vst.msk [vmem:[#allocation3 + $0x90] sm:$0xff] %vm2027_vm9, %v1968_v53 }
 0x28b   : > { %v1966_v63 = vpop.permute.xlu1 %1965  ;;  %v2073_v10 = vld [vmem:[#allocation3 + $0x68] sm:$0xff] }
 0x28c   : > { %2045 = vst.msk [vmem:[#allocation3 + $0x88] sm:$0xff] %vm2027_vm9, %v1966_v63  ;;  %9044 = vmatmul.mubr.msk.f32.gmra.mrb[12].mxu0 %vm2108_vm10, %v2073_v10  ;;  %v1972_v28 = vpop.permute.xlu0 %1971  ;;  %v2076_v13 = vld [vmem:[#allocation3 + $0x80] sm:$0xff] }
 0x28d   : > { %9046 = vmatprep.mubr.msk.f32.mxu0 %vm2108_vm10, %v2074_v56  ;;  %2048 = vst.msk [vmem:[#allocation3 + $0xa0] sm:$0xff] %vm2027_vm9, %v1972_v28 }
 0x28f   : > { %v1970_v14 = vpop.permute.xlu1 %1969  ;;  %v2075_v26 = vld [vmem:[#allocation3 + $0x78] sm:$0xff] }
 0x290   : > { %2047 = vst.msk [vmem:[#allocation3 + $0x98] sm:$0xff] %vm2027_vm9, %v1970_v14  ;;  %9047 = vmatmul.mubr.msk.f32.gmra.mrb[14].mxu0 %vm2108_vm10, %v2075_v26  ;;  %v1976_v17 = vpop.permute.xlu0 %1975  ;;  %v2078_v18 = vld [vmem:[#allocation3 + $0x90] sm:$0xff] }
 0x291   : > { %9049 = vmatprep.mubr.msk.f32.mxu0 %vm2108_vm10, %v2076_v13  ;;  %2050 = vst.msk [vmem:[#allocation3 + $0xb0] sm:$0xff] %vm2027_vm9, %v1976_v17 }
 0x293   : > { %v1974_v21 = vpop.permute.xlu1 %1973  ;;  %v2077_v48 = vld [vmem:[#allocation3 + $0x88] sm:$0xff] }
 0x294   : > { %2049 = vst.msk [vmem:[#allocation3 + $0xa8] sm:$0xff] %vm2027_vm9, %v1974_v21  ;;  %9050 = vmatmul.mubr.msk.f32.gmra.mrb[16].mxu0 %vm2108_vm10, %v2077_v48  ;;  %v1980_v22 = vpop.permute.xlu0 %1979  ;;  %v2080_v31 = vld [vmem:[#allocation3 + $0xa0] sm:$0xff] }
 0x295   : > { %9052 = vmatprep.mubr.msk.f32.mxu0 %vm2108_vm10, %v2078_v18  ;;  %2052 = vst.msk [vmem:[#allocation3 + $0xc0] sm:$0xff] %vm2027_vm9, %v1980_v22 }
 0x297   : > { %v1978_v49 = vpop.permute.xlu1 %1977  ;;  %v2079_v27 = vld [vmem:[#allocation3 + $0x98] sm:$0xff] }
 0x298   : > { %2051 = vst.msk [vmem:[#allocation3 + $0xb8] sm:$0xff] %vm2027_vm9, %v1978_v49  ;;  %9053 = vmatmul.mubr.msk.f32.gmra.mrb[18].mxu0 %vm2108_vm10, %v2079_v27  ;;  %v1984_v45 = vpop.permute.xlu0 %1983  ;;  %v2082_v29 = vld [vmem:[#allocation3 + $0xb0] sm:$0xff] }
 0x299   : > { %9055 = vmatprep.mubr.msk.f32.mxu0 %vm2108_vm10, %v2080_v31  ;;  %2054 = vst.msk [vmem:[#allocation3 + $0xd0] sm:$0xff] %vm2027_vm9, %v1984_v45 }
 0x29b   : > { %v1982_v25 = vpop.permute.xlu1 %1981  ;;  %v2081_v46 = vld [vmem:[#allocation3 + $0xa8] sm:$0xff] }
 0x29c   : > { %2053 = vst.msk [vmem:[#allocation3 + $0xc8] sm:$0xff] %vm2027_vm9, %v1982_v25  ;;  %9056 = vmatmul.mubr.msk.f32.gmra.mrb[20].mxu0 %vm2108_vm10, %v2081_v46  ;;  %v1988_v35 = vpop.permute.xlu0 %1987  ;;  %v2084_v30 = vld [vmem:[#allocation3 + $0xc0] sm:$0xff] }
 0x29d   : > { %9058 = vmatprep.mubr.msk.f32.mxu0 %vm2108_vm10, %v2082_v29  ;;  %2056 = vst.msk [vmem:[#allocation3 + $0xe0] sm:$0xff] %vm2027_vm9, %v1988_v35 }
 0x29f   : > { %v1986_v34 = vpop.permute.xlu1 %1985  ;;  %v2083_v32 = vld [vmem:[#allocation3 + $0xb8] sm:$0xff] }
 0x2a0   : > { %2055 = vst.msk [vmem:[#allocation3 + $0xd8] sm:$0xff] %vm2027_vm9, %v1986_v34  ;;  %9059 = vmatmul.mubr.msk.f32.gmra.mrb[22].mxu0 %vm2108_vm10, %v2083_v32  ;;  %v1992_v38 = vpop.permute.xlu0 %1991  ;;  %v2086_v39 = vld [vmem:[#allocation3 + $0xd0] sm:$0xff] }
 0x2a1   : > { %9061 = vmatprep.mubr.msk.f32.mxu0 %vm2108_vm10, %v2084_v30  ;;  %2058 = vst.msk [vmem:[#allocation3 + $0xf0] sm:$0xff] %vm2027_vm9, %v1992_v38 }
 0x2a3   : > { %v1990_v37 = vpop.permute.xlu1 %1989  ;;  %v2085_v51 = vld [vmem:[#allocation3 + $0xc8] sm:$0xff] }
 0x2a4   : > { %2057 = vst.msk [vmem:[#allocation3 + $0xe8] sm:$0xff] %vm2027_vm9, %v1990_v37  ;;  %9062 = vmatmul.mubr.msk.f32.gmra.mrb[24].mxu0 %vm2108_vm10, %v2085_v51  ;;  %v2088_v40 = vld [vmem:[#allocation3 + $0xe0] sm:$0xff] }
 0x2a5   : > { %9064 = vmatprep.mubr.msk.f32.mxu0 %vm2108_vm10, %v2086_v39 }
 0x2a7   : > { %v2087_v54 = vld [vmem:[#allocation3 + $0xd8] sm:$0xff]  ;;  %v1994_v52 = vpop.permute.xlu1 %1993 }
 0x2a8   : > { %9065 = vmatmul.mubr.msk.f32.gmra.mrb[26].mxu0 %vm2108_vm10, %v2087_v54  ;;  %2059 = vst.msk [vmem:[#allocation3 + $0xf8] sm:$0xff] %vm2027_vm9, %v1994_v52  ;;  %v2090_v57 = vld [vmem:[#allocation3 + $0xf0] sm:$0xff] }
 0x2a9   : > { %9067 = vmatprep.mubr.msk.f32.mxu0 %vm2108_vm10, %v2088_v40 }
 0x2ab   : > { %v2089_v55 = vld [vmem:[#allocation3 + $0xe8] sm:$0xff] }
 0x2ac   : > { %9068 = vmatmul.mubr.msk.f32.gmra.mrb[28].mxu0 %vm2108_vm10, %v2089_v55 }
 0x2ad   : > { %9070 = vmatprep.mubr.msk.f32.mxu0 %vm2108_vm10, %v2090_v57 }
 0x2af   : > { %v2091_v59 = vld [vmem:[#allocation3 + $0xf8] sm:$0xff] }
 0x2b0   : > { %9071 = vmatmul.mubr.msk.f32.gmra.mrb[30].mxu0 %vm2108_vm10, %v2091_v59 }
 0x2db   : > { %v2625_v62 = vpop.permute.xlu1 %2624 }
 0x2dc   : > { %2719 = vst.msk [vmem:[#allocation3 + $0x8] sm:$0xff] %vm675_vm2, %v2625_v62  ;;  %v2623_v2 = vpop.permute.xlu0 %2622 }
 0x2dd   : > { %2718 = vst.msk [vmem:[#allocation3] sm:$0xff] %vm675_vm2, %v2623_v2 }
 0x347   : > { %v9027_v4 = vpop.f32.mrb[0].mxu0 }
 0x348   : > { %v2277_v3 = vadd.f32 %v9027_v4, %v10706_v1  ;;  %v2271_v6 = vpop.f32.mrb[1].mxu0 }
 0x349   : > { %v2272_v5 = vadd.f32 %v10706_v1, %v2271_v6 }
 0x34a   : > { %v2431_v8 = vmax.f32 %v2277_v3, 0.0 }
 0x34b   : > { %v2430_v7 = vmax.f32 %v2272_v5, 0.0  ;;  %v9030_v11 = vpop.f32.mrb[2].mxu0 }
 0x34c   : > { %2463 = vst.msk [vmem:[#allocation2 + $0x21] sm:$0xff] %vm330_vm0, %v2431_v8  ;;  %v2287_v9 = vadd.f32 %v9030_v11, %v10706_v1  ;;  %v2281_v15 = vpop.f32.mrb[3].mxu0 }
 0x34d   : > { %2462 = vst.msk [vmem:[#allocation2 + $0x19] sm:$0xff] %vm330_vm0, %v2430_v7  ;;  %v2282_v12 = vadd.f32 %v10706_v1, %v2281_v15 }
 0x34e   : > { %v2433_v19 = vmax.f32 %v2287_v9, 0.0 }
 0x34f   : > { %v2432_v16 = vmax.f32 %v2282_v12, 0.0  ;;  %v9033_v41 = vpop.f32.mrb[4].mxu0 }
 0x350   : > { %2465 = vst.msk [vmem:[#allocation2 + $0x39] sm:$0xff] %vm330_vm0, %v2433_v19  ;;  %v2297_v23 = vadd.f32 %v9033_v41, %v10706_v1  ;;  %v2291_v20 = vpop.f32.mrb[5].mxu0 }
 0x351   : > { %2464 = vst.msk [vmem:[#allocation2 + $0x31] sm:$0xff] %vm330_vm0, %v2432_v16  ;;  %v2292_v42 = vadd.f32 %v10706_v1, %v2291_v20 }
 0x352   : > { %v2435_v36 = vmax.f32 %v2297_v23, 0.0 }
 0x353   : > { %v2434_v43 = vmax.f32 %v2292_v42, 0.0  ;;  %v9036_v24 = vpop.f32.mrb[6].mxu0  ;;  %v10718_v44 = vld [vmem:[#allocation2 + $0x21] sm:$0xff] }
 0x354   : > { %2467 = vst.msk [vmem:[#allocation2 + $0x51] sm:$0xff] %vm330_vm0, %v2435_v36  ;;  %v2307_v47 = vadd.f32 %v9036_v24, %v10706_v1  ;;  %2628 = vrot.lane.b32.xlu1 %v10718_v44, %s9448_s26  ;;  %v2301_v50 = vpop.f32.mrb[7].mxu0  ;;  %v10724_v33 = vld [vmem:[#allocation2 + $0x19] sm:$0xff] }
 0x355   : > { %v10726_v53 = vld [vmem:[#allocation2 + $0x20] sm:$0xff]  ;;  %2466 = vst.msk [vmem:[#allocation2 + $0x49] sm:$0xff] %vm330_vm0, %v2434_v43  ;;  %v2302_v56 = vadd.f32 %v10706_v1, %v2301_v50  ;;  %2626 = vrot.lane.b32.xlu0 %v10724_v33, %s9448_s26  ;;  %v10734_v63 = vld [vmem:[#allocation2 + $0x18] sm:$0xff] }
 0x356   : > { %2529 = vst.msk [vmem:[#allocation3 + $0x18] sm:$0xff] %vm330_vm0, %v10726_v53  ;;  %v2437_v10 = vmax.f32 %v2307_v47, 0.0  ;;  %2528 = vst.msk [vmem:[#allocation3 + $0x10] sm:$0xff] %vm330_vm0, %v10734_v63 }
 0x357   : > { %v2436_v28 = vmax.f32 %v2302_v56, 0.0  ;;  %v9039_v13 = vpop.f32.mrb[8].mxu0  ;;  %v10738_v14 = vld [vmem:[#allocation2 + $0x39] sm:$0xff] }
 0x358   : > { %2469 = vst.msk [vmem:[#allocation2 + $0x69] sm:$0xff] %vm330_vm0, %v2437_v10  ;;  %v2317_v26 = vadd.f32 %v9039_v13, %v10706_v1  ;;  %2632 = vrot.lane.b32.xlu1 %v10738_v14, %s9448_s26  ;;  %v2311_v17 = vpop.f32.mrb[9].mxu0  ;;  %v10744_v18 = vld [vmem:[#allocation2 + $0x31] sm:$0xff] }
 0x359   : > { %v10746_v21 = vld [vmem:[#allocation2 + $0x38] sm:$0xff]  ;;  %2468 = vst.msk [vmem:[#allocation2 + $0x61] sm:$0xff] %vm330_vm0, %v2436_v28  ;;  %v2312_v48 = vadd.f32 %v10706_v1, %v2311_v17  ;;  %2630 = vrot.lane.b32.xlu0 %v10744_v18, %s9448_s26  ;;  %v10754_v22 = vld [vmem:[#allocation2 + $0x30] sm:$0xff] }
 0x35a   : > { %2531 = vst.msk [vmem:[#allocation3 + $0x28] sm:$0xff] %vm330_vm0, %v10746_v21  ;;  %v2439_v31 = vmax.f32 %v2317_v26, 0.0  ;;  %2530 = vst.msk [vmem:[#allocation3 + $0x20] sm:$0xff] %vm330_vm0, %v10754_v22 }
 0x35b   : > { %v2438_v49 = vmax.f32 %v2312_v48, 0.0  ;;  %v9042_v27 = vpop.f32.mrb[10].mxu0  ;;  %v10758_v45 = vld [vmem:[#allocation2 + $0x51] sm:$0xff] }
 0x35c   : > { %2471 = vst.msk [vmem:[#allocation2 + $0x81] sm:$0xff] %vm330_vm0, %v2439_v31  ;;  %v2327_v29 = vadd.f32 %v9042_v27, %v10706_v1  ;;  %2636 = vrot.lane.b32.xlu1 %v10758_v45, %s9448_s26  ;;  %v2321_v25 = vpop.f32.mrb[11].mxu0  ;;  %v10764_v46 = vld [vmem:[#allocation2 + $0x49] sm:$0xff] }
 0x35d   : > { %v10766_v35 = vld [vmem:[#allocation2 + $0x50] sm:$0xff]  ;;  %2470 = vst.msk [vmem:[#allocation2 + $0x79] sm:$0xff] %vm330_vm0, %v2438_v49  ;;  %v2322_v30 = vadd.f32 %v10706_v1, %v2321_v25  ;;  %2634 = vrot.lane.b32.xlu0 %v10764_v46, %s9448_s26  ;;  %v10774_v34 = vld [vmem:[#allocation2 + $0x48] sm:$0xff] }
 0x35e   : > { %2533 = vst.msk [vmem:[#allocation3 + $0x38] sm:$0xff] %vm330_vm0, %v10766_v35  ;;  %v2441_v32 = vmax.f32 %v2327_v29, 0.0  ;;  %2532 = vst.msk [vmem:[#allocation3 + $0x30] sm:$0xff] %vm330_vm0, %v10774_v34 }
 0x35f   : > { %v2440_v38 = vmax.f32 %v2322_v30, 0.0  ;;  %v9045_v39 = vpop.f32.mrb[12].mxu0  ;;  %v10778_v37 = vld [vmem:[#allocation2 + $0x69] sm:$0xff] }
 0x360   : > { %2473 = vst.msk [vmem:[#allocation2 + $0x99] sm:$0xff] %vm330_vm0, %v2441_v32  ;;  %v2337_v51 = vadd.f32 %v9045_v39, %v10706_v1  ;;  %2640 = vrot.lane.b32.xlu1 %v10778_v37, %s9448_s26  ;;  %v2331_v40 = vpop.f32.mrb[13].mxu0  ;;  %v10784_v54 = vld [vmem:[#allocation2 + $0x61] sm:$0xff] }
 0x361   : > { %v10786_v52 = vld [vmem:[#allocation2 + $0x68] sm:$0xff]  ;;  %2472 = vst.msk [vmem:[#allocation2 + $0x91] sm:$0xff] %vm330_vm0, %v2440_v38  ;;  %v2332_v57 = vadd.f32 %v10706_v1, %v2331_v40  ;;  %2638 = vrot.lane.b32.xlu0 %v10784_v54, %s9448_s26  ;;  %v10794_v55 = vld [vmem:[#allocation2 + $0x60] sm:$0xff] }
 0x362   : > { %2535 = vst.msk [vmem:[#allocation3 + $0x48] sm:$0xff] %vm330_vm0, %v10786_v52  ;;  %v2443_v59 = vmax.f32 %v2337_v51, 0.0  ;;  %2534 = vst.msk [vmem:[#allocation3 + $0x40] sm:$0xff] %vm330_vm0, %v10794_v55 }
 0x363   : > { %v2442_v58 = vmax.f32 %v2332_v57, 0.0  ;;  %v9048_v61 = vpop.f32.mrb[14].mxu0  ;;  %v10798_v60 = vld [vmem:[#allocation2 + $0x81] sm:$0xff] }
 0x364   : > { %2475 = vst.msk [vmem:[#allocation2 + $0xb1] sm:$0xff] %vm330_vm0, %v2443_v59  ;;  %v2347_v0 = vadd.f32 %v9048_v61, %v10706_v1  ;;  %2644 = vrot.lane.b32.xlu1 %v10798_v60, %s9448_s26  ;;  %v2341_v62 = vpop.f32.mrb[15].mxu0  ;;  %v10804_v2 = vld [vmem:[#allocation2 + $0x79] sm:$0xff] }
 0x365   : > { %v10806_v4 = vld [vmem:[#allocation2 + $0x80] sm:$0xff]  ;;  %2474 = vst.msk [vmem:[#allocation2 + $0xa9] sm:$0xff] %vm330_vm0, %v2442_v58  ;;  %v2342_v3 = vadd.f32 %v10706_v1, %v2341_v62  ;;  %2642 = vrot.lane.b32.xlu0 %v10804_v2, %s9448_s26  ;;  %v10814_v6 = vld [vmem:[#allocation2 + $0x78] sm:$0xff] }
 0x366   : > { %2537 = vst.msk [vmem:[#allocation3 + $0x58] sm:$0xff] %vm330_vm0, %v10806_v4  ;;  %v2445_v5 = vmax.f32 %v2347_v0, 0.0  ;;  %2536 = vst.msk [vmem:[#allocation3 + $0x50] sm:$0xff] %vm330_vm0, %v10814_v6 }
 0x367   : > { %v2444_v8 = vmax.f32 %v2342_v3, 0.0  ;;  %v9051_v7 = vpop.f32.mrb[16].mxu0  ;;  %v10818_v11 = vld [vmem:[#allocation2 + $0x99] sm:$0xff] }
 0x368   : > { %2477 = vst.msk [vmem:[#allocation2 + $0xc9] sm:$0xff] %vm330_vm0, %v2445_v5  ;;  %v2357_v9 = vadd.f32 %v9051_v7, %v10706_v1  ;;  %2648 = vrot.lane.b32.xlu1 %v10818_v11, %s9448_s26  ;;  %v2351_v15 = vpop.f32.mrb[17].mxu0  ;;  %v10824_v12 = vld [vmem:[#allocation2 + $0x91] sm:$0xff] }
 0x369   : > { %v10826_v19 = vld [vmem:[#allocation2 + $0x98] sm:$0xff]  ;;  %2476 = vst.msk [vmem:[#allocation2 + $0xc1] sm:$0xff] %vm330_vm0, %v2444_v8  ;;  %v2352_v16 = vadd.f32 %v10706_v1, %v2351_v15  ;;  %2646 = vrot.lane.b32.xlu0 %v10824_v12, %s9448_s26  ;;  %v10834_v41 = vld [vmem:[#allocation2 + $0x90] sm:$0xff] }
 0x36a   : > { %2539 = vst.msk [vmem:[#allocation3 + $0x68] sm:$0xff] %vm330_vm0, %v10826_v19  ;;  %v2447_v23 = vmax.f32 %v2357_v9, 0.0  ;;  %2538 = vst.msk [vmem:[#allocation3 + $0x60] sm:$0xff] %vm330_vm0, %v10834_v41 }
 0x36b   : > { %v2446_v20 = vmax.f32 %v2352_v16, 0.0  ;;  %v9054_v42 = vpop.f32.mrb[18].mxu0  ;;  %v10838_v36 = vld [vmem:[#allocation2 + $0xb1] sm:$0xff] }
 0x36c   : > { %2479 = vst.msk [vmem:[#allocation2 + $0xe1] sm:$0xff] %vm330_vm0, %v2447_v23  ;;  %v2367_v43 = vadd.f32 %v9054_v42, %v10706_v1  ;;  %2652 = vrot.lane.b32.xlu1 %v10838_v36, %s9448_s26  ;;  %v2361_v24 = vpop.f32.mrb[19].mxu0  ;;  %v10844_v47 = vld [vmem:[#allocation2 + $0xa9] sm:$0xff] }
 0x36d   : > { %v10846_v50 = vld [vmem:[#allocation2 + $0xb0] sm:$0xff]  ;;  %2478 = vst.msk [vmem:[#allocation2 + $0xd9] sm:$0xff] %vm330_vm0, %v2446_v20  ;;  %v2362_v56 = vadd.f32 %v10706_v1, %v2361_v24  ;;  %2650 = vrot.lane.b32.xlu0 %v10844_v47, %s9448_s26  ;;  %v10854_v10 = vld [vmem:[#allocation2 + $0xa8] sm:$0xff] }
 0x36e   : > { %2541 = vst.msk [vmem:[#allocation3 + $0x78] sm:$0xff] %vm330_vm0, %v10846_v50  ;;  %v2449_v28 = vmax.f32 %v2367_v43, 0.0  ;;  %2540 = vst.msk [vmem:[#allocation3 + $0x70] sm:$0xff] %vm330_vm0, %v10854_v10 }
 0x36f   : > { %v2448_v13 = vmax.f32 %v2362_v56, 0.0  ;;  %v9057_v26 = vpop.f32.mrb[20].mxu0  ;;  %v10858_v17 = vld [vmem:[#allocation2 + $0xc9] sm:$0xff] }
 0x370   : > { %2481 = vst.msk [vmem:[#allocation2 + $0xf9] sm:$0xff] %vm330_vm0, %v2449_v28  ;;  %v2377_v48 = vadd.f32 %v9057_v26, %v10706_v1  ;;  %2656 = vrot.lane.b32.xlu1 %v10858_v17, %s9448_s26  ;;  %v2371_v31 = vpop.f32.mrb[21].mxu0  ;;  %v10864_v49 = vld [vmem:[#allocation2 + $0xc1] sm:$0xff] }
 0x371   : > { %v10866_v27 = vld [vmem:[#allocation2 + $0xc8] sm:$0xff]  ;;  %2480 = vst.msk [vmem:[#allocation2 + $0xf1] sm:$0xff] %vm330_vm0, %v2448_v13  ;;  %v2372_v29 = vadd.f32 %v10706_v1, %v2371_v31  ;;  %2654 = vrot.lane.b32.xlu0 %v10864_v49, %s9448_s26  ;;  %v10874_v25 = vld [vmem:[#allocation2 + $0xc0] sm:$0xff] }
 0x372   : > { %2543 = vst.msk [vmem:[#allocation3 + $0x88] sm:$0xff] %vm330_vm0, %v10866_v27  ;;  %v2451_v30 = vmax.f32 %v2377_v48, 0.0  ;;  %2542 = vst.msk [vmem:[#allocation3 + $0x80] sm:$0xff] %vm330_vm0, %v10874_v25 }
 0x373   : > { %v2450_v32 = vmax.f32 %v2372_v29, 0.0  ;;  %v9060_v38 = vpop.f32.mrb[22].mxu0  ;;  %v10878_v39 = vld [vmem:[#allocation2 + $0xe1] sm:$0xff] }
 0x374   : > { %2483 = vst.msk [vmem:[#allocation2 + $0x111] sm:$0xff] %vm330_vm0, %v2451_v30  ;;  %v2387_v51 = vadd.f32 %v9060_v38, %v10706_v1  ;;  %2660 = vrot.lane.b32.xlu1 %v10878_v39, %s9448_s26  ;;  %v2381_v40 = vpop.f32.mrb[23].mxu0  ;;  %v10884_v57 = vld [vmem:[#allocation2 + $0xd9] sm:$0xff] }
 0x375   : > { %v10886_v59 = vld [vmem:[#allocation2 + $0xe0] sm:$0xff]  ;;  %2482 = vst.msk [vmem:[#allocation2 + $0x109] sm:$0xff] %vm330_vm0, %v2450_v32  ;;  %v2382_v58 = vadd.f32 %v10706_v1, %v2381_v40  ;;  %2658 = vrot.lane.b32.xlu0 %v10884_v57, %s9448_s26  ;;  %v10894_v61 = vld [vmem:[#allocation2 + $0xd8] sm:$0xff] }
 0x376   : > { %2545 = vst.msk [vmem:[#allocation3 + $0x98] sm:$0xff] %vm330_vm0, %v10886_v59  ;;  %v2453_v0 = vmax.f32 %v2387_v51, 0.0  ;;  %2544 = vst.msk [vmem:[#allocation3 + $0x90] sm:$0xff] %vm330_vm0, %v10894_v61 }
 0x377   : > { %v2452_v62 = vmax.f32 %v2382_v58, 0.0  ;;  %v9063_v3 = vpop.f32.mrb[24].mxu0  ;;  %v10898_v5 = vld [vmem:[#allocation2 + $0xf9] sm:$0xff] }
 0x378   : > { %2485 = vst.msk [vmem:[#allocation2 + $0x129] sm:$0xff] %vm330_vm0, %v2453_v0  ;;  %v2397_v8 = vadd.f32 %v9063_v3, %v10706_v1  ;;  %2664 = vrot.lane.b32.xlu1 %v10898_v5, %s9448_s26  ;;  %v2391_v7 = vpop.f32.mrb[25].mxu0  ;;  %v10904_v9 = vld [vmem:[#allocation2 + $0xf1] sm:$0xff] }
 0x379   : > { %v10906_v15 = vld [vmem:[#allocation2 + $0xf8] sm:$0xff]  ;;  %2484 = vst.msk [vmem:[#allocation2 + $0x121] sm:$0xff] %vm330_vm0, %v2452_v62  ;;  %v2392_v16 = vadd.f32 %v10706_v1, %v2391_v7  ;;  %2662 = vrot.lane.b32.xlu0 %v10904_v9, %s9448_s26  ;;  %v10914_v23 = vld [vmem:[#allocation2 + $0xf0] sm:$0xff] }
 0x37a   : > { %2547 = vst.msk [vmem:[#allocation3 + $0xa8] sm:$0xff] %vm330_vm0, %v10906_v15  ;;  %v2455_v20 = vmax.f32 %v2397_v8, 0.0  ;;  %2546 = vst.msk [vmem:[#allocation3 + $0xa0] sm:$0xff] %vm330_vm0, %v10914_v23 }
 0x37b   : > { %v2454_v42 = vmax.f32 %v2392_v16, 0.0  ;;  %v9066_v43 = vpop.f32.mrb[26].mxu0  ;;  %v10918_v24 = vld [vmem:[#allocation2 + $0x111] sm:$0xff] }
 0x37c   : > { %2487 = vst.msk [vmem:[#allocation2 + $0x141] sm:$0xff] %vm330_vm0, %v2455_v20  ;;  %v2407_v56 = vadd.f32 %v9066_v43, %v10706_v1  ;;  %2668 = vrot.lane.b32.xlu1 %v10918_v24, %s9448_s26  ;;  %v2401_v28 = vpop.f32.mrb[27].mxu0  ;;  %v10924_v13 = vld [vmem:[#allocation2 + $0x109] sm:$0xff] }
 0x37d   : > { %v10926_v26 = vld [vmem:[#allocation2 + $0x110] sm:$0xff]  ;;  %2486 = vst.msk [vmem:[#allocation2 + $0x139] sm:$0xff] %vm330_vm0, %v2454_v42  ;;  %v2402_v48 = vadd.f32 %v10706_v1, %v2401_v28  ;;  %2666 = vrot.lane.b32.xlu0 %v10924_v13, %s9448_s26  ;;  %v10934_v31 = vld [vmem:[#allocation2 + $0x108] sm:$0xff] }
 0x37e   : > { %2549 = vst.msk [vmem:[#allocation3 + $0xb8] sm:$0xff] %vm330_vm0, %v10926_v26  ;;  %v2457_v29 = vmax.f32 %v2407_v56, 0.0  ;;  %2548 = vst.msk [vmem:[#allocation3 + $0xb0] sm:$0xff] %vm330_vm0, %v10934_v31 }
 0x37f   : > { %v2456_v30 = vmax.f32 %v2402_v48, 0.0  ;;  %v9069_v32 = vpop.f32.mrb[28].mxu0  ;;  %v10938_v38 = vld [vmem:[#allocation2 + $0x129] sm:$0xff] }
 0x380   : > { %2489 = vst.msk [vmem:[#allocation2 + $0x159] sm:$0xff] %vm330_vm0, %v2457_v29  ;;  %v2417_v51 = vadd.f32 %v9069_v32, %v10706_v1  ;;  %2672 = vrot.lane.b32.xlu1 %v10938_v38, %s9448_s26  ;;  %v2411_v40 = vpop.f32.mrb[29].mxu0  ;;  %v10944_v58 = vld [vmem:[#allocation2 + $0x121] sm:$0xff] }
 0x381   : > { %v10946_v0 = vld [vmem:[#allocation2 + $0x128] sm:$0xff]  ;;  %2488 = vst.msk [vmem:[#allocation2 + $0x151] sm:$0xff] %vm330_vm0, %v2456_v30  ;;  %v2412_v62 = vadd.f32 %v10706_v1, %v2411_v40  ;;  %2670 = vrot.lane.b32.xlu0 %v10944_v58, %s9448_s26  ;;  %v10954_v3 = vld [vmem:[#allocation2 + $0x120] sm:$0xff] }
 0x382   : > { %2551 = vst.msk [vmem:[#allocation3 + $0xc8] sm:$0xff] %vm330_vm0, %v10946_v0  ;;  %v2459_v8 = vmax.f32 %v2417_v51, 0.0  ;;  %2550 = vst.msk [vmem:[#allocation3 + $0xc0] sm:$0xff] %vm330_vm0, %v10954_v3 }
 0x383   : > { %v2458_v7 = vmax.f32 %v2412_v62, 0.0  ;;  %v10958_v16 = vld [vmem:[#allocation2 + $0x141] sm:$0xff]  ;;  %v9072_v20 = vpop.f32.mrb[30].mxu0 }
 0x384   : > { %2491 = vst.msk [vmem:[#allocation2 + $0x171] sm:$0xff] %vm330_vm0, %v2459_v8  ;;  %2676 = vrot.lane.b32.xlu1 %v10958_v16, %s9448_s26  ;;  %v10963_v42 = vld [vmem:[#allocation2 + $0x139] sm:$0xff]  ;;  %v2427_v56 = vadd.f32 %v9072_v20, %v10706_v1  ;;  %v2421_v28 = vpop.f32.mrb[31].mxu0 }
 0x385   : > { %v10965_v43 = vld [vmem:[#allocation2 + $0x140] sm:$0xff]  ;;  %2490 = vst.msk [vmem:[#allocation2 + $0x169] sm:$0xff] %vm330_vm0, %v2458_v7  ;;  %2674 = vrot.lane.b32.xlu0 %v10963_v42, %s9448_s26  ;;  %v10973_v48 = vld [vmem:[#allocation2 + $0x138] sm:$0xff]  ;;  %v2422_v29 = vadd.f32 %v10706_v1, %v2421_v28 }
 0x386   : > { %2553 = vst.msk [vmem:[#allocation3 + $0xd8] sm:$0xff] %vm330_vm0, %v10965_v43  ;;  %2552 = vst.msk [vmem:[#allocation3 + $0xd0] sm:$0xff] %vm330_vm0, %v10973_v48  ;;  %v2461_v30 = vmax.f32 %v2427_v56, 0.0  ;;  %v2751_v56 = vld [vmem:[#allocation2 + $0xa] sm:$0xff] }
 0x387   : > { %v10978_v32 = vld [vmem:[#allocation2 + $0x159] sm:$0xff]  ;;  %v2460_v51 = vmax.f32 %v2422_v29, 0.0  ;;  %v2750_v29 = vld [vmem:[#allocation2 + $0x2] sm:$0xff] }
 0x388   : > { %2680 = vrot.lane.b32.xlu1 %v10978_v32, %s9448_s26  ;;  %v10982_v40 = vld [vmem:[#allocation2 + $0x151] sm:$0xff]  ;;  %2493 = vst.msk [vmem:[#allocation2 + $0x189] sm:$0xff] %vm330_vm0, %v2461_v30  ;;  %v11014_v30 = vld [vmem:[#allocation2 + $0x22] sm:$0xff] }
 0x389   : > { %14059 = vst [vmem:[#allocation7_spill] sm:$0xff] %v10982_v40  ;;  %v10984_v62 = vld [vmem:[#allocation2 + $0x158] sm:$0xff]  ;;  %2678 = vrot.lane.b32.xlu0 %v10982_v40, %s9448_s26  ;;  %v10991_v1 = vld [vmem:[#allocation2 + $0x150] sm:$0xff]  ;;  %2492 = vst.msk [vmem:[#allocation2 + $0x181] sm:$0xff] %vm330_vm0, %v2460_v51 }
 0x38a   : > { %2555 = vst.msk [vmem:[#allocation3 + $0xe8] sm:$0xff] %vm330_vm0, %v10984_v62  ;;  %2554 = vst.msk [vmem:[#allocation3 + $0xe0] sm:$0xff] %vm330_vm0, %v10991_v1  ;;  %v11018_v51 = vld [vmem:[#allocation2 + $0x1a] sm:$0xff] }
 0x38b   : > { %v10996_v8 = vld [vmem:[#allocation2 + $0x171] sm:$0xff]  ;;  %14062 = vst [vmem:[#allocation10_spill] sm:$0xff] %v11014_v30  ;;  %14063 = vst [vmem:[#allocation11_spill] sm:$0xff] %v11018_v51 }
 0x38c   : > { %14060 = vst [vmem:[#allocation8_spill] sm:$0xff] %v10996_v8  ;;  %2684 = vrot.lane.b32.xlu1 %v10996_v8, %s9448_s26  ;;  %v11000_v7 = vld [vmem:[#allocation2 + $0x169] sm:$0xff]  ;;  %v11026_v8 = vld [vmem:[#allocation2 + $0x32] sm:$0xff] }
 0x38d   : > { %14061 = vst [vmem:[#allocation9_spill] sm:$0xff] %v11000_v7  ;;  %v11002_v20 = vld [vmem:[#allocation2 + $0x170] sm:$0xff]  ;;  %2682 = vrot.lane.b32.xlu0 %v11000_v7, %s9448_s26  ;;  %v11008_v28 = vld [vmem:[#allocation2 + $0x168] sm:$0xff]  ;;  %v11022_v7 = vld [vmem:[#allocation2 + $0x3a] sm:$0xff] }
 0x38e   : > { %2557 = vst.msk [vmem:[#allocation3 + $0xf8] sm:$0xff] %vm330_vm0, %v11002_v20  ;;  %2556 = vst.msk [vmem:[#allocation3 + $0xf0] sm:$0xff] %vm330_vm0, %v11008_v28  ;;  %v11129_v40 = vld [vmem:[#allocation2 + $0x172] sm:$0xff] }
 0x38f   : > { %14064 = vst [vmem:[#allocation12_spill] sm:$0xff] %v11022_v7  ;;  %14065 = vst [vmem:[#allocation13_spill] sm:$0xff] %v11026_v8 }
 0x390   : > { %2816 = vrot.lane.b32.xlu1 %v2751_v56, %s9449_s27  ;;  %v11030_v56 = vld [vmem:[#allocation2 + $0x52] sm:$0xff] }
 0x391   : > { %2814 = vrot.lane.b32.xlu0 %v2750_v29, %s9449_s27  ;;  %14066 = vst [vmem:[#allocation14_spill] sm:$0xff] %v11030_v56  ;;  %v11034_v29 = vld [vmem:[#allocation2 + $0x4a] sm:$0xff] }
 0x392   : > { %14067 = vst [vmem:[#allocation15_spill] sm:$0xff] %v11034_v29 }
 0x394   : > { %2820 = vrot.lane.b32.xlu1 %v11014_v30, %s9449_s27 }
 0x395   : > { %2818 = vrot.lane.b32.xlu0 %v11018_v51, %s9449_s27  ;;  %v11038_v51 = vld [vmem:[#allocation2 + $0x6a] sm:$0xff] }
 0x396   : > { %14068 = vst [vmem:[#allocation16_spill] sm:$0xff] %v11038_v51 }
 0x398   : > { %2824 = vrot.lane.b32.xlu1 %v11022_v7, %s9449_s27  ;;  %v11042_v7 = vld [vmem:[#allocation2 + $0x62] sm:$0xff] }
 0x399   : > { %2822 = vrot.lane.b32.xlu0 %v11026_v8, %s9449_s27  ;;  %14069 = vst [vmem:[#allocation17_spill] sm:$0xff] %v11042_v7  ;;  %v11046_v8 = vld [vmem:[#allocation2 + $0x82] sm:$0xff] }
 0x39a   : > { %14070 = vst [vmem:[#allocation18_spill] sm:$0xff] %v11046_v8 }
 0x39c   : > { %2828 = vrot.lane.b32.xlu1 %v11030_v56, %s9449_s27  ;;  %v11050_v56 = vld [vmem:[#allocation2 + $0x7a] sm:$0xff] }
 0x39d   : > { %2826 = vrot.lane.b32.xlu0 %v11034_v29, %s9449_s27  ;;  %14071 = vst [vmem:[#allocation19_spill] sm:$0xff] %v11050_v56  ;;  %v11054_v29 = vld [vmem:[#allocation2 + $0x9a] sm:$0xff] }
 0x39e   : > { %14072 = vst [vmem:[#allocation20_spill] sm:$0xff] %v11054_v29 }
 0x3a0   : > { %2832 = vrot.lane.b32.xlu1 %v11038_v51, %s9449_s27  ;;  %v11058_v51 = vld [vmem:[#allocation2 + $0x92] sm:$0xff] }
 0x3a1   : > { %2830 = vrot.lane.b32.xlu0 %v11042_v7, %s9449_s27  ;;  %14073 = vst [vmem:[#allocation21_spill] sm:$0xff] %v11058_v51  ;;  %v11062_v7 = vld [vmem:[#allocation2 + $0xb2] sm:$0xff] }
 0x3a2   : > { %14074 = vst [vmem:[#allocation22_spill] sm:$0xff] %v11062_v7 }
 0x3a4   : > { %2836 = vrot.lane.b32.xlu1 %v11046_v8, %s9449_s27  ;;  %v11066_v8 = vld [vmem:[#allocation2 + $0xaa] sm:$0xff] }
 0x3a5   : > { %2834 = vrot.lane.b32.xlu0 %v11050_v56, %s9449_s27  ;;  %14075 = vst [vmem:[#allocation23_spill] sm:$0xff] %v11066_v8  ;;  %v11070_v56 = vld [vmem:[#allocation2 + $0xca] sm:$0xff] }
 0x3a6   : > { %14076 = vst [vmem:[#allocation24_spill] sm:$0xff] %v11070_v56 }
 0x3a8   : > { %2840 = vrot.lane.b32.xlu1 %v11054_v29, %s9449_s27  ;;  %v11074_v29 = vld [vmem:[#allocation2 + $0xc2] sm:$0xff] }
 0x3a9   : > { %2838 = vrot.lane.b32.xlu0 %v11058_v51, %s9449_s27  ;;  %14077 = vst [vmem:[#allocation25_spill] sm:$0xff] %v11074_v29  ;;  %v11078_v51 = vld [vmem:[#allocation2 + $0xe2] sm:$0xff] }
 0x3aa   : > { %14078 = vst [vmem:[#allocation26_spill] sm:$0xff] %v11078_v51 }
 0x3ac   : > { %2844 = vrot.lane.b32.xlu1 %v11062_v7, %s9449_s27  ;;  %v11082_v7 = vld [vmem:[#allocation2 + $0xda] sm:$0xff] }
 0x3ad   : > { %2842 = vrot.lane.b32.xlu0 %v11066_v8, %s9449_s27  ;;  %14079 = vst [vmem:[#allocation27_spill] sm:$0xff] %v11082_v7  ;;  %v11086_v8 = vld [vmem:[#allocation2 + $0xfa] sm:$0xff] }
 0x3ae   : > { %14080 = vst [vmem:[#allocation28_spill] sm:$0xff] %v11086_v8 }
 0x3b0   : > { %2848 = vrot.lane.b32.xlu1 %v11070_v56, %s9449_s27  ;;  %v11090_v56 = vld [vmem:[#allocation2 + $0xf2] sm:$0xff] }
 0x3b1   : > { %2846 = vrot.lane.b32.xlu0 %v11074_v29, %s9449_s27  ;;  %14081 = vst [vmem:[#allocation29_spill] sm:$0xff] %v11090_v56  ;;  %v11094_v29 = vld [vmem:[#allocation2 + $0x112] sm:$0xff] }
 0x3b2   : > { %14082 = vst [vmem:[#allocation30_spill] sm:$0xff] %v11094_v29 }
 0x3b4   : > { %2852 = vrot.lane.b32.xlu1 %v11078_v51, %s9449_s27  ;;  %v11098_v51 = vld [vmem:[#allocation2 + $0x10a] sm:$0xff] }
 0x3b5   : > { %2850 = vrot.lane.b32.xlu0 %v11082_v7, %s9449_s27  ;;  %14083 = vst [vmem:[#allocation31_spill] sm:$0xff] %v11098_v51  ;;  %v11102_v7 = vld [vmem:[#allocation2 + $0x12a] sm:$0xff] }
 0x3b6   : > { %14084 = vst [vmem:[#allocation32_spill] sm:$0xff] %v11102_v7 }
 0x3b8   : > { %2856 = vrot.lane.b32.xlu1 %v11086_v8, %s9449_s27  ;;  %v11106_v8 = vld [vmem:[#allocation2 + $0x122] sm:$0xff] }
 0x3b9   : > { %2854 = vrot.lane.b32.xlu0 %v11090_v56, %s9449_s27  ;;  %14085 = vst [vmem:[#allocation33_spill] sm:$0xff] %v11106_v8  ;;  %v11110_v56 = vld [vmem:[#allocation2 + $0x142] sm:$0xff] }
 0x3ba   : > { %14086 = vst [vmem:[#allocation34_spill] sm:$0xff] %v11110_v56 }
 0x3bc   : > { %2860 = vrot.lane.b32.xlu1 %v11094_v29, %s9449_s27  ;;  %v11114_v29 = vld [vmem:[#allocation2 + $0x13a] sm:$0xff] }
 0x3bd   : > { %2858 = vrot.lane.b32.xlu0 %v11098_v51, %s9449_s27  ;;  %14087 = vst [vmem:[#allocation35_spill] sm:$0xff] %v11114_v29 }
 0x3c0   : > { %2864 = vrot.lane.b32.xlu1 %v11102_v7, %s9449_s27  ;;  %v11119_v7 = vld [vmem:[#allocation2 + $0x15a] sm:$0xff] }
 0x3c1   : > { %2862 = vrot.lane.b32.xlu0 %v11106_v8, %s9449_s27  ;;  %v11124_v8 = vld [vmem:[#allocation2 + $0x152] sm:$0xff] }
 0x3c2   : > { %14088 = vst [vmem:[#allocation36_spill] sm:$0xff] %v11124_v8 }
 0x3c4   : > { %2868 = vrot.lane.b32.xlu1 %v11110_v56, %s9449_s27 }
 0x3c5   : > { %2866 = vrot.lane.b32.xlu0 %v11114_v29, %s9449_s27 }
 0x3c6   : > { %v2629_v51 = vpop.permute.xlu1 %2628 }
 0x3c7   : > { %2721 = vst.msk [vmem:[#allocation3 + $0x18] sm:$0xff] %vm675_vm2, %v2629_v51  ;;  %v2627_v30 = vpop.permute.xlu0 %2626 }
 0x3c8   : > { %2720 = vst.msk [vmem:[#allocation3 + $0x10] sm:$0xff] %vm675_vm2, %v2627_v30  ;;  %2872 = vrot.lane.b32.xlu1 %v11119_v7, %s9449_s27  ;;  %v11134_v30 = vld [vmem:[#allocation2 + $0x16a] sm:$0xff] }
 0x3c9   : > { %2870 = vrot.lane.b32.xlu0 %v11124_v8, %s9449_s27 }
 0x3ca   : > { %v2633_v56 = vpop.permute.xlu1 %2632 }
 0x3cb   : > { %2723 = vst.msk [vmem:[#allocation3 + $0x28] sm:$0xff] %vm675_vm2, %v2633_v56  ;;  %v2631_v29 = vpop.permute.xlu0 %2630 }
 0x3cc   : > { %2722 = vst.msk [vmem:[#allocation3 + $0x20] sm:$0xff] %vm675_vm2, %v2631_v29  ;;  %2876 = vrot.lane.b32.xlu1 %v11129_v40, %s9449_s27 }
 0x3cd   : > { %2874 = vrot.lane.b32.xlu0 %v11134_v30, %s9449_s27 }
 0x3ce   : > { %v2637_v51 = vpop.permute.xlu1 %2636 }
 0x3cf   : > { %2725 = vst.msk [vmem:[#allocation3 + $0x38] sm:$0xff] %vm675_vm2, %v2637_v51  ;;  %v2635_v8 = vpop.permute.xlu0 %2634 }
 0x3d0   : > { %2724 = vst.msk [vmem:[#allocation3 + $0x30] sm:$0xff] %vm675_vm2, %v2635_v8  ;;  %3008 = vrot.lane.b32.xlu1 %v10726_v53, %s13995_s28 }
 0x3d1   : > { %3006 = vrot.lane.b32.xlu0 %v10734_v63, %s13995_s28 }
 0x3d2   : > { %v2641_v56 = vpop.permute.xlu1 %2640 }
 0x3d3   : > { %2727 = vst.msk [vmem:[#allocation3 + $0x48] sm:$0xff] %vm675_vm2, %v2641_v56  ;;  %v2639_v29 = vpop.permute.xlu0 %2638 }
 0x3d4   : > { %2726 = vst.msk [vmem:[#allocation3 + $0x40] sm:$0xff] %vm675_vm2, %v2639_v29  ;;  %3012 = vrot.lane.b32.xlu1 %v10746_v21, %s13995_s28 }
 0x3d5   : > { %3010 = vrot.lane.b32.xlu0 %v10754_v22, %s13995_s28 }
 0x3d6   : > { %v2645_v51 = vpop.permute.xlu1 %2644 }
 0x3d7   : > { %2729 = vst.msk [vmem:[#allocation3 + $0x58] sm:$0xff] %vm675_vm2, %v2645_v51  ;;  %v2643_v8 = vpop.permute.xlu0 %2642 }
 0x3d8   : > { %2728 = vst.msk [vmem:[#allocation3 + $0x50] sm:$0xff] %vm675_vm2, %v2643_v8  ;;  %3016 = vrot.lane.b32.xlu1 %v10766_v35, %s13995_s28 }
 0x3d9   : > { %3014 = vrot.lane.b32.xlu0 %v10774_v34, %s13995_s28 }
 0x3da   : > { %v2649_v53 = vpop.permute.xlu1 %2648 }
 0x3db   : > { %2731 = vst.msk [vmem:[#allocation3 + $0x68] sm:$0xff] %vm675_vm2, %v2649_v53  ;;  %v2647_v63 = vpop.permute.xlu0 %2646 }
 0x3dc   : > { %2730 = vst.msk [vmem:[#allocation3 + $0x60] sm:$0xff] %vm675_vm2, %v2647_v63  ;;  %3020 = vrot.lane.b32.xlu1 %v10786_v52, %s13995_s28 }
 0x3dd   : > { %3018 = vrot.lane.b32.xlu0 %v10794_v55, %s13995_s28 }
 0x3de   : > { %v2653_v56 = vpop.permute.xlu1 %2652 }
 0x3df   : > { %2733 = vst.msk [vmem:[#allocation3 + $0x78] sm:$0xff] %vm675_vm2, %v2653_v56  ;;  %v2651_v29 = vpop.permute.xlu0 %2650 }
 0x3e0   : > { %2732 = vst.msk [vmem:[#allocation3 + $0x70] sm:$0xff] %vm675_vm2, %v2651_v29  ;;  %3024 = vrot.lane.b32.xlu1 %v10806_v4, %s13995_s28 }
 0x3e1   : > { %3022 = vrot.lane.b32.xlu0 %v10814_v6, %s13995_s28 }
 0x3e2   : > { %v2657_v51 = vpop.permute.xlu1 %2656 }
 0x3e3   : > { %2735 = vst.msk [vmem:[#allocation3 + $0x88] sm:$0xff] %vm675_vm2, %v2657_v51  ;;  %v2655_v8 = vpop.permute.xlu0 %2654 }
 0x3e4   : > { %2734 = vst.msk [vmem:[#allocation3 + $0x80] sm:$0xff] %vm675_vm2, %v2655_v8  ;;  %3028 = vrot.lane.b32.xlu1 %v10826_v19, %s13995_s28 }
 0x3e5   : > { %3026 = vrot.lane.b32.xlu0 %v10834_v41, %s13995_s28 }
 0x3e6   : > { %v2661_v53 = vpop.permute.xlu1 %2660 }
 0x3e7   : > { %2737 = vst.msk [vmem:[#allocation3 + $0x98] sm:$0xff] %vm675_vm2, %v2661_v53  ;;  %v2659_v63 = vpop.permute.xlu0 %2658 }
 0x3e8   : > { %2736 = vst.msk [vmem:[#allocation3 + $0x90] sm:$0xff] %vm675_vm2, %v2659_v63  ;;  %3032 = vrot.lane.b32.xlu1 %v10846_v50, %s13995_s28 }
 0x3e9   : > { %3030 = vrot.lane.b32.xlu0 %v10854_v10, %s13995_s28 }
 0x3ea   : > { %v2665_v56 = vpop.permute.xlu1 %2664 }
 0x3eb   : > { %2739 = vst.msk [vmem:[#allocation3 + $0xa8] sm:$0xff] %vm675_vm2, %v2665_v56  ;;  %v2663_v29 = vpop.permute.xlu0 %2662 }
 0x3ec   : > { %2738 = vst.msk [vmem:[#allocation3 + $0xa0] sm:$0xff] %vm675_vm2, %v2663_v29  ;;  %3036 = vrot.lane.b32.xlu1 %v10866_v27, %s13995_s28 }
 0x3ed   : > { %3034 = vrot.lane.b32.xlu0 %v10874_v25, %s13995_s28 }
 0x3ee   : > { %v2669_v51 = vpop.permute.xlu1 %2668 }
 0x3ef   : > { %2741 = vst.msk [vmem:[#allocation3 + $0xb8] sm:$0xff] %vm675_vm2, %v2669_v51  ;;  %v2667_v8 = vpop.permute.xlu0 %2666 }
 0x3f0   : > { %2740 = vst.msk [vmem:[#allocation3 + $0xb0] sm:$0xff] %vm675_vm2, %v2667_v8  ;;  %3040 = vrot.lane.b32.xlu1 %v10886_v59, %s13995_s28 }
 0x3f1   : > { %3038 = vrot.lane.b32.xlu0 %v10894_v61, %s13995_s28 }
 0x3f2   : > { %v2673_v53 = vpop.permute.xlu1 %2672 }
 0x3f3   : > { %2743 = vst.msk [vmem:[#allocation3 + $0xc8] sm:$0xff] %vm675_vm2, %v2673_v53  ;;  %v2671_v63 = vpop.permute.xlu0 %2670 }
 0x3f4   : > { %2742 = vst.msk [vmem:[#allocation3 + $0xc0] sm:$0xff] %vm675_vm2, %v2671_v63  ;;  %3044 = vrot.lane.b32.xlu1 %v10906_v15, %s13995_s28 }
 0x3f5   : > { %3042 = vrot.lane.b32.xlu0 %v10914_v23, %s13995_s28 }
 0x3f6   : > { %v2677_v56 = vpop.permute.xlu1 %2676 }
 0x3f7   : > { %2745 = vst.msk [vmem:[#allocation3 + $0xd8] sm:$0xff] %vm675_vm2, %v2677_v56  ;;  %v2675_v29 = vpop.permute.xlu0 %2674 }
 0x3f8   : > { %2744 = vst.msk [vmem:[#allocation3 + $0xd0] sm:$0xff] %vm675_vm2, %v2675_v29  ;;  %3048 = vrot.lane.b32.xlu1 %v10926_v26, %s13995_s28 }
 0x3f9   : > { %3046 = vrot.lane.b32.xlu0 %v10934_v31, %s13995_s28 }
 0x3fa   : > { %v2681_v51 = vpop.permute.xlu1 %2680 }
 0x3fb   : > { %2747 = vst.msk [vmem:[#allocation3 + $0xe8] sm:$0xff] %vm675_vm2, %v2681_v51  ;;  %v2679_v8 = vpop.permute.xlu0 %2678 }
 0x3fc   : > { %2746 = vst.msk [vmem:[#allocation3 + $0xe0] sm:$0xff] %vm675_vm2, %v2679_v8  ;;  %3052 = vrot.lane.b32.xlu1 %v10946_v0, %s13995_s28 }
 0x3fd   : > { %3050 = vrot.lane.b32.xlu0 %v10954_v3, %s13995_s28 }
 0x3fe   : > { %v2685_v53 = vpop.permute.xlu1 %2684 }
 0x3ff   : > { %2749 = vst.msk [vmem:[#allocation3 + $0xf8] sm:$0xff] %vm675_vm2, %v2685_v53  ;;  %v2683_v63 = vpop.permute.xlu0 %2682  ;;  %v11228_v53 = vld [vmem:[#allocation2 + $0x188] sm:$0xff] }
 0x400   : > { %2748 = vst.msk [vmem:[#allocation3 + $0xf0] sm:$0xff] %vm675_vm2, %v2683_v63  ;;  %3056 = vrot.lane.b32.xlu1 %v10965_v43, %s13995_s28 }
 0x401   : > { %3054 = vrot.lane.b32.xlu0 %v10973_v48, %s13995_s28 }
 0x402   : > { %v2817_v56 = vpop.permute.xlu1 %2816 }
 0x403   : > { %2911 = vst.msk [vmem:[#allocation3 + $0x8] sm:$0xff] %vm868_vm3, %v2817_v56  ;;  %v2815_v29 = vpop.permute.xlu0 %2814  ;;  %v11230_v56 = vld [vmem:[#allocation2 + $0x180] sm:$0xff] }
 0x404   : > { %2910 = vst.msk [vmem:[#allocation3] sm:$0xff] %vm868_vm3, %v2815_v29  ;;  %3060 = vrot.lane.b32.xlu1 %v10984_v62, %s13995_s28 }
 0x405   : > { %3058 = vrot.lane.b32.xlu0 %v10991_v1, %s13995_s28 }
 0x406   : > { %v2821_v51 = vpop.permute.xlu1 %2820 }
 0x407   : > { %2913 = vst.msk [vmem:[#allocation3 + $0x18] sm:$0xff] %vm868_vm3, %v2821_v51  ;;  %v2819_v8 = vpop.permute.xlu0 %2818 }
 0x408   : > { %2912 = vst.msk [vmem:[#allocation3 + $0x10] sm:$0xff] %vm868_vm3, %v2819_v8  ;;  %3064 = vrot.lane.b32.xlu1 %v11002_v20, %s13995_s28 }
 0x409   : > { %3062 = vrot.lane.b32.xlu0 %v11008_v28, %s13995_s28 }
 0x40a   : > { %v2825_v63 = vpop.permute.xlu1 %2824 }
 0x40b   : > { %2915 = vst.msk [vmem:[#allocation3 + $0x28] sm:$0xff] %vm868_vm3, %v2825_v63  ;;  %v2823_v29 = vpop.permute.xlu0 %2822 }
 0x40c   : > { %2914 = vst.msk [vmem:[#allocation3 + $0x20] sm:$0xff] %vm868_vm3, %v2823_v29  ;;  %3068 = vrot.lane.b32.xlu1 %v11228_v53, %s13995_s28 }
 0x40d   : > { %3066 = vrot.lane.b32.xlu0 %v11230_v56, %s13995_s28 }
 0x40e   : > { %v2829_v51 = vpop.permute.xlu1 %2828 }
 0x40f   : > { %2917 = vst.msk [vmem:[#allocation3 + $0x38] sm:$0xff] %vm868_vm3, %v2829_v51  ;;  %v2827_v8 = vpop.permute.xlu0 %2826 }
 0x410   : > { %2916 = vst.msk [vmem:[#allocation3 + $0x30] sm:$0xff] %vm868_vm3, %v2827_v8  ;;  %3200 = vrot.lane.b32.xlu1 %v10718_v44, %s9451_s29 }
 0x411   : > { %3198 = vrot.lane.b32.xlu0 %v10724_v33, %s9451_s29 }
 0x412   : > { %v2833_v63 = vpop.permute.xlu1 %2832 }
 0x413   : > { %2919 = vst.msk [vmem:[#allocation3 + $0x48] sm:$0xff] %vm868_vm3, %v2833_v63  ;;  %v2831_v29 = vpop.permute.xlu0 %2830 }
 0x414   : > { %2918 = vst.msk [vmem:[#allocation3 + $0x40] sm:$0xff] %vm868_vm3, %v2831_v29  ;;  %3204 = vrot.lane.b32.xlu1 %v10738_v14, %s9451_s29 }
 0x415   : > { %3202 = vrot.lane.b32.xlu0 %v10744_v18, %s9451_s29 }
 0x416   : > { %v2837_v51 = vpop.permute.xlu1 %2836 }
 0x417   : > { %2921 = vst.msk [vmem:[#allocation3 + $0x58] sm:$0xff] %vm868_vm3, %v2837_v51  ;;  %v2835_v8 = vpop.permute.xlu0 %2834 }
 0x418   : > { %2920 = vst.msk [vmem:[#allocation3 + $0x50] sm:$0xff] %vm868_vm3, %v2835_v8  ;;  %3208 = vrot.lane.b32.xlu1 %v10758_v45, %s9451_s29  ;;  %v11334_v8 = vld [vmem:[#allocation2 + $0x181] sm:$0xff] }
 0x419   : > { %3206 = vrot.lane.b32.xlu0 %v10764_v46, %s9451_s29 }
 0x41a   : > { %v2841_v44 = vpop.permute.xlu1 %2840 }
 0x41b   : > { %2923 = vst.msk [vmem:[#allocation3 + $0x68] sm:$0xff] %vm868_vm3, %v2841_v44  ;;  %v2839_v33 = vpop.permute.xlu0 %2838 }
 0x41c   : > { %2922 = vst.msk [vmem:[#allocation3 + $0x60] sm:$0xff] %vm868_vm3, %v2839_v33  ;;  %3212 = vrot.lane.b32.xlu1 %v10778_v37, %s9451_s29 }
 0x41d   : > { %3210 = vrot.lane.b32.xlu0 %v10784_v54, %s9451_s29 }
 0x41e   : > { %v2845_v14 = vpop.permute.xlu1 %2844 }
 0x41f   : > { %2925 = vst.msk [vmem:[#allocation3 + $0x78] sm:$0xff] %vm868_vm3, %v2845_v14  ;;  %v2843_v18 = vpop.permute.xlu0 %2842  ;;  %v14092_v14 = vld [vmem:[#allocation10_spill] sm:$0xff] }
 0x420   : > { %2924 = vst.msk [vmem:[#allocation3 + $0x70] sm:$0xff] %vm868_vm3, %v2843_v18  ;;  %3216 = vrot.lane.b32.xlu1 %v10798_v60, %s9451_s29  ;;  %v14093_v18 = vld [vmem:[#allocation11_spill] sm:$0xff] }
 0x421   : > { %3214 = vrot.lane.b32.xlu0 %v10804_v2, %s9451_s29 }
 0x422   : > { %v2849_v45 = vpop.permute.xlu1 %2848 }
 0x423   : > { %2927 = vst.msk [vmem:[#allocation3 + $0x88] sm:$0xff] %vm868_vm3, %v2849_v45  ;;  %v2847_v46 = vpop.permute.xlu0 %2846 }
 0x424   : > { %2926 = vst.msk [vmem:[#allocation3 + $0x80] sm:$0xff] %vm868_vm3, %v2847_v46  ;;  %3220 = vrot.lane.b32.xlu1 %v10818_v11, %s9451_s29 }
 0x425   : > { %3218 = vrot.lane.b32.xlu0 %v10824_v12, %s9451_s29 }
 0x426   : > { %v2853_v37 = vpop.permute.xlu1 %2852 }
 0x427   : > { %2929 = vst.msk [vmem:[#allocation3 + $0x98] sm:$0xff] %vm868_vm3, %v2853_v37  ;;  %v2851_v54 = vpop.permute.xlu0 %2850  ;;  %v14094_v37 = vld [vmem:[#allocation12_spill] sm:$0xff] }
 0x428   : > { %2928 = vst.msk [vmem:[#allocation3 + $0x90] sm:$0xff] %vm868_vm3, %v2851_v54  ;;  %3224 = vrot.lane.b32.xlu1 %v10838_v36, %s9451_s29  ;;  %v14095_v54 = vld [vmem:[#allocation13_spill] sm:$0xff] }
 0x429   : > { %3222 = vrot.lane.b32.xlu0 %v10844_v47, %s9451_s29 }
 0x42a   : > { %v2857_v60 = vpop.permute.xlu1 %2856 }
 0x42b   : > { %2931 = vst.msk [vmem:[#allocation3 + $0xa8] sm:$0xff] %vm868_vm3, %v2857_v60  ;;  %v2855_v2 = vpop.permute.xlu0 %2854 }
 0x42c   : > { %2930 = vst.msk [vmem:[#allocation3 + $0xa0] sm:$0xff] %vm868_vm3, %v2855_v2  ;;  %3228 = vrot.lane.b32.xlu1 %v10858_v17, %s9451_s29 }
 0x42d   : > { %3226 = vrot.lane.b32.xlu0 %v10864_v49, %s9451_s29 }
 0x42e   : > { %v2861_v11 = vpop.permute.xlu1 %2860 }
 0x42f   : > { %2933 = vst.msk [vmem:[#allocation3 + $0xb8] sm:$0xff] %vm868_vm3, %v2861_v11  ;;  %v2859_v12 = vpop.permute.xlu0 %2858  ;;  %v14096_v11 = vld [vmem:[#allocation14_spill] sm:$0xff] }
 0x430   : > { %2932 = vst.msk [vmem:[#allocation3 + $0xb0] sm:$0xff] %vm868_vm3, %v2859_v12  ;;  %3232 = vrot.lane.b32.xlu1 %v10878_v39, %s9451_s29  ;;  %v14097_v12 = vld [vmem:[#allocation15_spill] sm:$0xff] }
 0x431   : > { %3230 = vrot.lane.b32.xlu0 %v10884_v57, %s9451_s29 }
 0x432   : > { %v2865_v36 = vpop.permute.xlu1 %2864 }
 0x433   : > { %2935 = vst.msk [vmem:[#allocation3 + $0xc8] sm:$0xff] %vm868_vm3, %v2865_v36  ;;  %v2863_v47 = vpop.permute.xlu0 %2862 }
 0x434   : > { %2934 = vst.msk [vmem:[#allocation3 + $0xc0] sm:$0xff] %vm868_vm3, %v2863_v47  ;;  %3236 = vrot.lane.b32.xlu1 %v10898_v5, %s9451_s29 }
 0x435   : > { %3234 = vrot.lane.b32.xlu0 %v10904_v9, %s9451_s29 }
 0x436   : > { %v2869_v17 = vpop.permute.xlu1 %2868 }
 0x437   : > { %2937 = vst.msk [vmem:[#allocation3 + $0xd8] sm:$0xff] %vm868_vm3, %v2869_v17  ;;  %v2867_v49 = vpop.permute.xlu0 %2866  ;;  %v14098_v17 = vld [vmem:[#allocation16_spill] sm:$0xff] }
 0x438   : > { %2936 = vst.msk [vmem:[#allocation3 + $0xd0] sm:$0xff] %vm868_vm3, %v2867_v49  ;;  %3240 = vrot.lane.b32.xlu1 %v10918_v24, %s9451_s29  ;;  %v14099_v49 = vld [vmem:[#allocation17_spill] sm:$0xff] }
 0x439   : > { %3238 = vrot.lane.b32.xlu0 %v10924_v13, %s9451_s29 }
 0x43a   : > { %v2873_v39 = vpop.permute.xlu1 %2872 }
 0x43b   : > { %2939 = vst.msk [vmem:[#allocation3 + $0xe8] sm:$0xff] %vm868_vm3, %v2873_v39  ;;  %v2871_v57 = vpop.permute.xlu0 %2870 }
 0x43c   : > { %2938 = vst.msk [vmem:[#allocation3 + $0xe0] sm:$0xff] %vm868_vm3, %v2871_v57  ;;  %3244 = vrot.lane.b32.xlu1 %v10938_v38, %s9451_s29  ;;  %v14089_v38 = vld [vmem:[#allocation7_spill] sm:$0xff] }
 0x43d   : > { %3242 = vrot.lane.b32.xlu0 %v10944_v58, %s9451_s29 }
 0x43e   : > { %v2877_v5 = vpop.permute.xlu1 %2876 }
 0x43f   : > { %2941 = vst.msk [vmem:[#allocation3 + $0xf8] sm:$0xff] %vm868_vm3, %v2877_v5  ;;  %v2875_v9 = vpop.permute.xlu0 %2874  ;;  %v14100_v5 = vld [vmem:[#allocation18_spill] sm:$0xff] }
 0x440   : > { %2940 = vst.msk [vmem:[#allocation3 + $0xf0] sm:$0xff] %vm868_vm3, %v2875_v9  ;;  %3248 = vrot.lane.b32.xlu1 %v10958_v16, %s9451_s29  ;;  %v14090_v16 = vld [vmem:[#allocation8_spill] sm:$0xff]  ;;  %v14101_v9 = vld [vmem:[#allocation19_spill] sm:$0xff] }
 0x441   : > { %3246 = vrot.lane.b32.xlu0 %v10963_v42, %s9451_s29  ;;  %v14091_v42 = vld [vmem:[#allocation9_spill] sm:$0xff] }
 0x442   : > { %v3009_v24 = vpop.permute.xlu1 %3008 }
 0x443   : > { %3103 = vst.msk [vmem:[#allocation3 + $0x8] sm:$0xff] %vm1061_vm4, %v3009_v24  ;;  %v3007_v13 = vpop.permute.xlu0 %3006 }
 0x444   : > { %3102 = vst.msk [vmem:[#allocation3] sm:$0xff] %vm1061_vm4, %v3007_v13  ;;  %3252 = vrot.lane.b32.xlu1 %v10978_v32, %s9451_s29  ;;  %v11329_v32 = vld [vmem:[#allocation2 + $0x189] sm:$0xff] }
 0x445   : > { %3250 = vrot.lane.b32.xlu0 %v14089_v38, %s9451_s29  ;;  %v14102_v38 = vld [vmem:[#allocation20_spill] sm:$0xff] }
 0x446   : > { %v3013_v58 = vpop.permute.xlu1 %3012 }
 0x447   : > { %3105 = vst.msk [vmem:[#allocation3 + $0x18] sm:$0xff] %vm1061_vm4, %v3013_v58  ;;  %v3011_v63 = vpop.permute.xlu0 %3010  ;;  %v14103_v58 = vld [vmem:[#allocation21_spill] sm:$0xff] }
 0x448   : > { %3104 = vst.msk [vmem:[#allocation3 + $0x10] sm:$0xff] %vm1061_vm4, %v3011_v63  ;;  %3256 = vrot.lane.b32.xlu1 %v14090_v16, %s9451_s29 }
 0x449   : > { %3254 = vrot.lane.b32.xlu0 %v14091_v42, %s9451_s29  ;;  %v14104_v42 = vld [vmem:[#allocation22_spill] sm:$0xff] }
 0x44a   : > { %v3017_v29 = vpop.permute.xlu1 %3016 }
 0x44b   : > { %3107 = vst.msk [vmem:[#allocation3 + $0x28] sm:$0xff] %vm1061_vm4, %v3017_v29  ;;  %v3015_v51 = vpop.permute.xlu0 %3014  ;;  %v14105_v29 = vld [vmem:[#allocation23_spill] sm:$0xff] }
 0x44c   : > { %3106 = vst.msk [vmem:[#allocation3 + $0x20] sm:$0xff] %vm1061_vm4, %v3015_v51  ;;  %3260 = vrot.lane.b32.xlu1 %v11329_v32, %s9451_s29 }
 0x44d   : > { %3258 = vrot.lane.b32.xlu0 %v11334_v8, %s9451_s29 }
 0x44e   : > { %v3021_v44 = vpop.permute.xlu1 %3020 }
 0x44f   : > { %3109 = vst.msk [vmem:[#allocation3 + $0x38] sm:$0xff] %vm1061_vm4, %v3021_v44  ;;  %v3019_v33 = vpop.permute.xlu0 %3018 }
 0x450   : > { %3108 = vst.msk [vmem:[#allocation3 + $0x30] sm:$0xff] %vm1061_vm4, %v3019_v33  ;;  %3392 = vrot.lane.b32.xlu1 %v14092_v14, %s9452_s14  ;;  %v14106_v33 = vld [vmem:[#allocation24_spill] sm:$0xff]  ;;  %v14107_v14 = vld [vmem:[#allocation25_spill] sm:$0xff] }
 0x451   : > { %3390 = vrot.lane.b32.xlu0 %v14093_v18, %s9452_s14 }
 0x452   : > { %v3025_v45 = vpop.permute.xlu1 %3024 }
 0x453   : > { %3111 = vst.msk [vmem:[#allocation3 + $0x48] sm:$0xff] %vm1061_vm4, %v3025_v45  ;;  %v3023_v46 = vpop.permute.xlu0 %3022 }
 0x454   : > { %3110 = vst.msk [vmem:[#allocation3 + $0x40] sm:$0xff] %vm1061_vm4, %v3023_v46  ;;  %3396 = vrot.lane.b32.xlu1 %v14094_v37, %s9452_s14  ;;  %v14108_v46 = vld [vmem:[#allocation26_spill] sm:$0xff]  ;;  %v14109_v37 = vld [vmem:[#allocation27_spill] sm:$0xff] }
 0x455   : > { %3394 = vrot.lane.b32.xlu0 %v14095_v54, %s9452_s14 }
 0x456   : > { %v3029_v60 = vpop.permute.xlu1 %3028 }
 0x457   : > { %3113 = vst.msk [vmem:[#allocation3 + $0x58] sm:$0xff] %vm1061_vm4, %v3029_v60  ;;  %v3027_v2 = vpop.permute.xlu0 %3026 }
 0x458   : > { %3112 = vst.msk [vmem:[#allocation3 + $0x50] sm:$0xff] %vm1061_vm4, %v3027_v2  ;;  %3400 = vrot.lane.b32.xlu1 %v14096_v11, %s9452_s14  ;;  %v14110_v2 = vld [vmem:[#allocation28_spill] sm:$0xff]  ;;  %v14111_v11 = vld [vmem:[#allocation29_spill] sm:$0xff] }
 0x459   : > { %3398 = vrot.lane.b32.xlu0 %v14097_v12, %s9452_s14 }
 0x45a   : > { %v3033_v36 = vpop.permute.xlu1 %3032 }
 0x45b   : > { %3115 = vst.msk [vmem:[#allocation3 + $0x68] sm:$0xff] %vm1061_vm4, %v3033_v36  ;;  %v3031_v47 = vpop.permute.xlu0 %3030 }
 0x45c   : > { %3114 = vst.msk [vmem:[#allocation3 + $0x60] sm:$0xff] %vm1061_vm4, %v3031_v47  ;;  %3404 = vrot.lane.b32.xlu1 %v14098_v17, %s9452_s14  ;;  %v14112_v47 = vld [vmem:[#allocation30_spill] sm:$0xff]  ;;  %v14113_v17 = vld [vmem:[#allocation31_spill] sm:$0xff] }
 0x45d   : > { %3402 = vrot.lane.b32.xlu0 %v14099_v49, %s9452_s14 }
 0x45e   : > { %v3037_v39 = vpop.permute.xlu1 %3036 }
 0x45f   : > { %3117 = vst.msk [vmem:[#allocation3 + $0x78] sm:$0xff] %vm1061_vm4, %v3037_v39  ;;  %v3035_v57 = vpop.permute.xlu0 %3034 }
 0x460   : > { %3116 = vst.msk [vmem:[#allocation3 + $0x70] sm:$0xff] %vm1061_vm4, %v3035_v57  ;;  %3408 = vrot.lane.b32.xlu1 %v14100_v5, %s9452_s14  ;;  %v14114_v57 = vld [vmem:[#allocation32_spill] sm:$0xff]  ;;  %v14115_v5 = vld [vmem:[#allocation33_spill] sm:$0xff] }
 0x461   : > { %3406 = vrot.lane.b32.xlu0 %v14101_v9, %s9452_s14 }
 0x462   : > { %v3041_v24 = vpop.permute.xlu1 %3040 }
 0x463   : > { %3119 = vst.msk [vmem:[#allocation3 + $0x88] sm:$0xff] %vm1061_vm4, %v3041_v24  ;;  %v3039_v13 = vpop.permute.xlu0 %3038 }
 0x464   : > { %3118 = vst.msk [vmem:[#allocation3 + $0x80] sm:$0xff] %vm1061_vm4, %v3039_v13  ;;  %3412 = vrot.lane.b32.xlu1 %v14102_v38, %s9452_s14  ;;  %v14116_v13 = vld [vmem:[#allocation34_spill] sm:$0xff]  ;;  %v14117_v38 = vld [vmem:[#allocation35_spill] sm:$0xff] }
 0x465   : > { %3410 = vrot.lane.b32.xlu0 %v14103_v58, %s9452_s14 }
 0x466   : > { %v3045_v63 = vpop.permute.xlu1 %3044 }
 0x467   : > { %3121 = vst.msk [vmem:[#allocation3 + $0x98] sm:$0xff] %vm1061_vm4, %v3045_v63  ;;  %v3043_v16 = vpop.permute.xlu0 %3042 }
 0x468   : > { %3120 = vst.msk [vmem:[#allocation3 + $0x90] sm:$0xff] %vm1061_vm4, %v3043_v16  ;;  %3416 = vrot.lane.b32.xlu1 %v14104_v42, %s9452_s14  ;;  %v14118_v16 = vld [vmem:[#allocation36_spill] sm:$0xff] }
 0x469   : > { %3414 = vrot.lane.b32.xlu0 %v14105_v29, %s9452_s14 }
 0x46a   : > { %v3049_v51 = vpop.permute.xlu1 %3048 }
 0x46b   : > { %3123 = vst.msk [vmem:[#allocation3 + $0xa8] sm:$0xff] %vm1061_vm4, %v3049_v51  ;;  %v3047_v44 = vpop.permute.xlu0 %3046 }
 0x46c   : > { %3122 = vst.msk [vmem:[#allocation3 + $0xa0] sm:$0xff] %vm1061_vm4, %v3047_v44  ;;  %3420 = vrot.lane.b32.xlu1 %v14106_v33, %s9452_s14  ;;  %v11434_v33 = vld [vmem:[#allocation2 + $0x182] sm:$0xff] }
 0x46d   : > { %3418 = vrot.lane.b32.xlu0 %v14107_v14, %s9452_s14 }
 0x46e   : > { %v3053_v18 = vpop.permute.xlu1 %3052 }
 0x46f   : > { %3125 = vst.msk [vmem:[#allocation3 + $0xb8] sm:$0xff] %vm1061_vm4, %v3053_v18  ;;  %v3051_v45 = vpop.permute.xlu0 %3050 }
 0x470   : > { %3124 = vst.msk [vmem:[#allocation3 + $0xb0] sm:$0xff] %vm1061_vm4, %v3051_v45  ;;  %3424 = vrot.lane.b32.xlu1 %v14108_v46, %s9452_s14 }
 0x471   : > { %3422 = vrot.lane.b32.xlu0 %v14109_v37, %s9452_s14  ;;  %v3548_v37 = vld [vmem:[#allocation2 + $0x198] sm:$0xff] }
 0x472   : > { %v3057_v54 = vpop.permute.xlu1 %3056 }
 0x473   : > { %3127 = vst.msk [vmem:[#allocation3 + $0xc8] sm:$0xff] %vm1061_vm4, %v3057_v54  ;;  %v3055_v60 = vpop.permute.xlu0 %3054 }
 0x474   : > { %3126 = vst.msk [vmem:[#allocation3 + $0xc0] sm:$0xff] %vm1061_vm4, %v3055_v60  ;;  %3428 = vrot.lane.b32.xlu1 %v14110_v2, %s9452_s14 }
 0x475   : > { %3426 = vrot.lane.b32.xlu0 %v14111_v11, %s9452_s14  ;;  %v3713_v11 = vld [vmem:[#allocation2 + $0x51] sm:$0xff] }
 0x476   : > { %v3061_v12 = vpop.permute.xlu1 %3060 }
 0x477   : > { %3129 = vst.msk [vmem:[#allocation3 + $0xd8] sm:$0xff] %vm1061_vm4, %v3061_v12  ;;  %v3059_v36 = vpop.permute.xlu0 %3058  ;;  %v3712_v12 = vld [vmem:[#allocation2 + $0x49] sm:$0xff] }
 0x478   : > { %3128 = vst.msk [vmem:[#allocation3 + $0xd0] sm:$0xff] %vm1061_vm4, %v3059_v36  ;;  %3432 = vrot.lane.b32.xlu1 %v14112_v47, %s9452_s14 }
 0x479   : > { %3430 = vrot.lane.b32.xlu0 %v14113_v17, %s9452_s14  ;;  %v3715_v17 = vld [vmem:[#allocation2 + $0x69] sm:$0xff] }
 0x47a   : > { %v3065_v49 = vpop.permute.xlu1 %3064 }
 0x47b   : > { %3131 = vst.msk [vmem:[#allocation3 + $0xe8] sm:$0xff] %vm1061_vm4, %v3065_v49  ;;  %v3063_v39 = vpop.permute.xlu0 %3062  ;;  %v3714_v49 = vld [vmem:[#allocation2 + $0x61] sm:$0xff] }
 0x47c   : > { %3130 = vst.msk [vmem:[#allocation3 + $0xe0] sm:$0xff] %vm1061_vm4, %v3063_v39  ;;  %3436 = vrot.lane.b32.xlu1 %v14114_v57, %s9452_s14 }
 0x47d   : > { %3434 = vrot.lane.b32.xlu0 %v14115_v5, %s9452_s14  ;;  %v3717_v5 = vld [vmem:[#allocation2 + $0x81] sm:$0xff] }
 0x47e   : > { %v3069_v9 = vpop.permute.xlu1 %3068 }
 0x47f   : > { %3133 = vst.msk [vmem:[#allocation3 + $0xf8] sm:$0xff] %vm1061_vm4, %v3069_v9  ;;  %v3067_v24 = vpop.permute.xlu0 %3066  ;;  %v3716_v9 = vld [vmem:[#allocation2 + $0x79] sm:$0xff] }
 0x480   : > { %3132 = vst.msk [vmem:[#allocation3 + $0xf0] sm:$0xff] %vm1061_vm4, %v3067_v24  ;;  %3440 = vrot.lane.b32.xlu1 %v14116_v13, %s9452_s14 }
 0x481   : > { %3438 = vrot.lane.b32.xlu0 %v14117_v38, %s9452_s14  ;;  %v3719_v38 = vld [vmem:[#allocation2 + $0x99] sm:$0xff] }
 0x482   : > { %v3201_v58 = vpop.permute.xlu1 %3200 }
 0x483   : > { %3295 = vst.msk [vmem:[#allocation3 + $0x8] sm:$0xff] %vm1254_vm5, %v3201_v58  ;;  %v3199_v63 = vpop.permute.xlu0 %3198  ;;  %v3718_v58 = vld [vmem:[#allocation2 + $0x91] sm:$0xff] }
 0x484   : > { %3294 = vst.msk [vmem:[#allocation3] sm:$0xff] %vm1254_vm5, %v3199_v63  ;;  %3444 = vrot.lane.b32.xlu1 %v11119_v7, %s9452_s14  ;;  %v11429_v7 = vld [vmem:[#allocation2 + $0x18a] sm:$0xff] }
 0x485   : > { %3442 = vrot.lane.b32.xlu0 %v14118_v16, %s9452_s14 }
 0x486   : > { %v3205_v42 = vpop.permute.xlu1 %3204 }
 0x487   : > { %3297 = vst.msk [vmem:[#allocation3 + $0x18] sm:$0xff] %vm1254_vm5, %v3205_v42  ;;  %v3203_v29 = vpop.permute.xlu0 %3202  ;;  %v3721_v42 = vld [vmem:[#allocation2 + $0xb1] sm:$0xff] }
 0x488   : > { %3296 = vst.msk [vmem:[#allocation3 + $0x10] sm:$0xff] %vm1254_vm5, %v3203_v29  ;;  %3448 = vrot.lane.b32.xlu1 %v11129_v40, %s9452_s14  ;;  %v3720_v29 = vld [vmem:[#allocation2 + $0xa9] sm:$0xff] }
 0x489   : > { %3446 = vrot.lane.b32.xlu0 %v11134_v30, %s9452_s14 }
 0x48a   : > { %v3209_v51 = vpop.permute.xlu1 %3208 }
 0x48b   : > { %3299 = vst.msk [vmem:[#allocation3 + $0x28] sm:$0xff] %vm1254_vm5, %v3209_v51  ;;  %v3207_v44 = vpop.permute.xlu0 %3206 }
 0x48c   : > { %3298 = vst.msk [vmem:[#allocation3 + $0x20] sm:$0xff] %vm1254_vm5, %v3207_v44  ;;  %3452 = vrot.lane.b32.xlu1 %v11429_v7, %s9452_s14 }
 0x48d   : > { %3450 = vrot.lane.b32.xlu0 %v11434_v33, %s9452_s14 }
 0x48e   : > { %v3213_v40 = vpop.permute.xlu1 %3212 }
 0x48f   : > { %3301 = vst.msk [vmem:[#allocation3 + $0x38] sm:$0xff] %vm1254_vm5, %v3213_v40  ;;  %v3211_v30 = vpop.permute.xlu0 %3210  ;;  %v3723_v40 = vld [vmem:[#allocation2 + $0xc9] sm:$0xff] }
 0x490   : > { %3300 = vst.msk [vmem:[#allocation3 + $0x30] sm:$0xff] %vm1254_vm5, %v3211_v30  ;;  %3584 = vrot.lane.b32.xlu1 %v10746_v21, %s9453_s16  ;;  %v3722_v30 = vld [vmem:[#allocation2 + $0xc1] sm:$0xff] }
 0x491   : > { %3582 = vrot.lane.b32.xlu0 %v10754_v22, %s9453_s16 }
 0x492   : > { %v3217_v14 = vpop.permute.xlu1 %3216 }
 0x493   : > { %3303 = vst.msk [vmem:[#allocation3 + $0x48] sm:$0xff] %vm1254_vm5, %v3217_v14  ;;  %v3215_v18 = vpop.permute.xlu0 %3214 }
 0x494   : > { %3302 = vst.msk [vmem:[#allocation3 + $0x40] sm:$0xff] %vm1254_vm5, %v3215_v18  ;;  %3588 = vrot.lane.b32.xlu1 %v10766_v35, %s9453_s16 }
 0x495   : > { %3586 = vrot.lane.b32.xlu0 %v10774_v34, %s9453_s16 }
 0x496   : > { %v3221_v45 = vpop.permute.xlu1 %3220 }
 0x497   : > { %3305 = vst.msk [vmem:[#allocation3 + $0x58] sm:$0xff] %vm1254_vm5, %v3221_v45  ;;  %v3219_v46 = vpop.permute.xlu0 %3218  ;;  %v3725_v45 = vld [vmem:[#allocation2 + $0xe1] sm:$0xff] }
 0x498   : > { %3304 = vst.msk [vmem:[#allocation3 + $0x50] sm:$0xff] %vm1254_vm5, %v3219_v46  ;;  %3592 = vrot.lane.b32.xlu1 %v10786_v52, %s9453_s16  ;;  %v3724_v46 = vld [vmem:[#allocation2 + $0xd9] sm:$0xff] }
 0x499   : > { %3590 = vrot.lane.b32.xlu0 %v10794_v55, %s9453_s16 }
 0x49a   : > { %v3225_v21 = vpop.permute.xlu1 %3224 }
 0x49b   : > { %3307 = vst.msk [vmem:[#allocation3 + $0x68] sm:$0xff] %vm1254_vm5, %v3225_v21  ;;  %v3223_v22 = vpop.permute.xlu0 %3222 }
 0x49c   : > { %3306 = vst.msk [vmem:[#allocation3 + $0x60] sm:$0xff] %vm1254_vm5, %v3223_v22  ;;  %3596 = vrot.lane.b32.xlu1 %v10806_v4, %s9453_s16 }
 0x49d   : > { %3594 = vrot.lane.b32.xlu0 %v10814_v6, %s9453_s16 }
 0x49e   : > { %v3229_v35 = vpop.permute.xlu1 %3228 }
 0x49f   : > { %3309 = vst.msk [vmem:[#allocation3 + $0x78] sm:$0xff] %vm1254_vm5, %v3229_v35  ;;  %v3227_v34 = vpop.permute.xlu0 %3226  ;;  %v3727_v35 = vld [vmem:[#allocation2 + $0xf9] sm:$0xff] }
 0x4a0   : > { %3308 = vst.msk [vmem:[#allocation3 + $0x70] sm:$0xff] %vm1254_vm5, %v3227_v34  ;;  %3600 = vrot.lane.b32.xlu1 %v10826_v19, %s9453_s16  ;;  %v3726_v34 = vld [vmem:[#allocation2 + $0xf1] sm:$0xff] }
 0x4a1   : > { %3598 = vrot.lane.b32.xlu0 %v10834_v41, %s9453_s16 }
 0x4a2   : > { %v3233_v52 = vpop.permute.xlu1 %3232 }
 0x4a3   : > { %3311 = vst.msk [vmem:[#allocation3 + $0x88] sm:$0xff] %vm1254_vm5, %v3233_v52  ;;  %v3231_v55 = vpop.permute.xlu0 %3230 }
 0x4a4   : > { %3310 = vst.msk [vmem:[#allocation3 + $0x80] sm:$0xff] %vm1254_vm5, %v3231_v55  ;;  %3604 = vrot.lane.b32.xlu1 %v10846_v50, %s9453_s16 }
 0x4a5   : > { %3602 = vrot.lane.b32.xlu0 %v10854_v10, %s9453_s16 }
 0x4a6   : > { %v3237_v4 = vpop.permute.xlu1 %3236 }
 0x4a7   : > { %3313 = vst.msk [vmem:[#allocation3 + $0x98] sm:$0xff] %vm1254_vm5, %v3237_v4  ;;  %v3235_v6 = vpop.permute.xlu0 %3234  ;;  %v3729_v4 = vld [vmem:[#allocation2 + $0x111] sm:$0xff] }
 0x4a8   : > { %3312 = vst.msk [vmem:[#allocation3 + $0x90] sm:$0xff] %vm1254_vm5, %v3235_v6  ;;  %3608 = vrot.lane.b32.xlu1 %v10866_v27, %s9453_s16  ;;  %v3728_v6 = vld [vmem:[#allocation2 + $0x109] sm:$0xff] }
 0x4a9   : > { %3606 = vrot.lane.b32.xlu0 %v10874_v25, %s9453_s16 }
 0x4aa   : > { %v3241_v19 = vpop.permute.xlu1 %3240 }
 0x4ab   : > { %3315 = vst.msk [vmem:[#allocation3 + $0xa8] sm:$0xff] %vm1254_vm5, %v3241_v19  ;;  %v3239_v41 = vpop.permute.xlu0 %3238 }
 0x4ac   : > { %3314 = vst.msk [vmem:[#allocation3 + $0xa0] sm:$0xff] %vm1254_vm5, %v3239_v41  ;;  %3612 = vrot.lane.b32.xlu1 %v10886_v59, %s9453_s16 }
 0x4ad   : > { %3610 = vrot.lane.b32.xlu0 %v10894_v61, %s9453_s16 }
 0x4ae   : > { %v3245_v50 = vpop.permute.xlu1 %3244 }
 0x4af   : > { %3317 = vst.msk [vmem:[#allocation3 + $0xb8] sm:$0xff] %vm1254_vm5, %v3245_v50  ;;  %v3243_v10 = vpop.permute.xlu0 %3242  ;;  %v3731_v50 = vld [vmem:[#allocation2 + $0x129] sm:$0xff] }
 0x4b0   : > { %3316 = vst.msk [vmem:[#allocation3 + $0xb0] sm:$0xff] %vm1254_vm5, %v3243_v10  ;;  %3616 = vrot.lane.b32.xlu1 %v10906_v15, %s9453_s16  ;;  %v3730_v10 = vld [vmem:[#allocation2 + $0x121] sm:$0xff] }
 0x4b1   : > { %3614 = vrot.lane.b32.xlu0 %v10914_v23, %s9453_s16 }
 0x4b2   : > { %v3249_v27 = vpop.permute.xlu1 %3248 }
 0x4b3   : > { %3319 = vst.msk [vmem:[#allocation3 + $0xc8] sm:$0xff] %vm1254_vm5, %v3249_v27  ;;  %v3247_v25 = vpop.permute.xlu0 %3246 }
 0x4b4   : > { %3318 = vst.msk [vmem:[#allocation3 + $0xc0] sm:$0xff] %vm1254_vm5, %v3247_v25  ;;  %3620 = vrot.lane.b32.xlu1 %v10926_v26, %s9453_s16  ;;  %v4126_v25 = vld [vmem:[%s13898_s3] sm:$0xff] }
 0x4b5   : > { %3618 = vrot.lane.b32.xlu0 %v10934_v31, %s9453_s16 }
 0x4b6   : > { %v3253_v59 = vpop.permute.xlu1 %3252 }
 0x4b7   : > { %3321 = vst.msk [vmem:[#allocation3 + $0xd8] sm:$0xff] %vm1254_vm5, %v3253_v59  ;;  %v3251_v61 = vpop.permute.xlu0 %3250  ;;  %v4127_v59 = vld [vmem:[%s13898_s3 + $0x8] sm:$0xff] }
 0x4b8   : > { %3320 = vst.msk [vmem:[#allocation3 + $0xd0] sm:$0xff] %vm1254_vm5, %v3251_v61  ;;  %3624 = vrot.lane.b32.xlu1 %v10946_v0, %s9453_s16 }
 0x4b9   : > { %3622 = vrot.lane.b32.xlu0 %v10954_v3, %s9453_s16 }
 0x4ba   : > { %v3257_v15 = vpop.permute.xlu1 %3256 }
 0x4bb   : > { %3323 = vst.msk [vmem:[#allocation3 + $0xe8] sm:$0xff] %vm1254_vm5, %v3257_v15  ;;  %v3255_v23 = vpop.permute.xlu0 %3254  ;;  %v3733_v15 = vld [vmem:[#allocation2 + $0x141] sm:$0xff] }
 0x4bc   : > { %3322 = vst.msk [vmem:[#allocation3 + $0xe0] sm:$0xff] %vm1254_vm5, %v3255_v23  ;;  %3628 = vrot.lane.b32.xlu1 %v10965_v43, %s9453_s16  ;;  %v9287_v23 = vpack.c.bf16 %v4127_v59, %v4126_v25 }
 0x4bd   : > { %3626 = vrot.lane.b32.xlu0 %v10973_v48, %s9453_s16 }
 0x4be   : > { %v3261_v26 = vpop.permute.xlu1 %3260  ;;  %9288 = vmatprep.subr.bf16.mxu1 %v9287_v23 }
 0x4bf   : > { %3325 = vst.msk [vmem:[#allocation3 + $0xf8] sm:$0xff] %vm1254_vm5, %v3261_v26  ;;  %v3259_v31 = vpop.permute.xlu0 %3258  ;;  %v3732_v26 = vld [vmem:[#allocation2 + $0x139] sm:$0xff]  ;;  %9290 = vmatpush3.bf16.msra.mxu1 %v9287_v23 }
 0x4c0   : > { %3324 = vst.msk [vmem:[#allocation3 + $0xf0] sm:$0xff] %vm1254_vm5, %v3259_v31  ;;  %3632 = vrot.lane.b32.xlu1 %v10984_v62, %s9453_s16  ;;  %v3549_v62 = vld [vmem:[#allocation2 + $0x1a0] sm:$0xff] }
 0x4c1   : > { %3630 = vrot.lane.b32.xlu0 %v10991_v1, %s9453_s16 }
 0x4c2   : > { %v3393_v0 = vpop.permute.xlu1 %3392 }
 0x4c3   : > { %3487 = vst.msk [vmem:[#allocation3 + $0x8] sm:$0xff] %vm1447_vm6, %v3393_v0  ;;  %v3391_v3 = vpop.permute.xlu0 %3390  ;;  %v4128_v0 = vld [vmem:[%s13898_s3 + $0x10] sm:$0xff] }
 0x4c4   : > { %3486 = vst.msk [vmem:[#allocation3] sm:$0xff] %vm1447_vm6, %v3391_v3  ;;  %3636 = vrot.lane.b32.xlu1 %v11002_v20, %s9453_s16  ;;  %v4129_v3 = vld [vmem:[%s13898_s3 + $0x18] sm:$0xff] }
 0x4c5   : > { %3634 = vrot.lane.b32.xlu0 %v11008_v28, %s9453_s16 }
 0x4c6   : > { %v3397_v43 = vpop.permute.xlu1 %3396 }
 0x4c7   : > { %3489 = vst.msk [vmem:[#allocation3 + $0x18] sm:$0xff] %vm1447_vm6, %v3397_v43  ;;  %v3395_v48 = vpop.permute.xlu0 %3394 }
 0x4c8   : > { %3488 = vst.msk [vmem:[#allocation3 + $0x10] sm:$0xff] %vm1447_vm6, %v3395_v48  ;;  %3640 = vrot.lane.b32.xlu1 %v11228_v53, %s9453_s16  ;;  %v3711_v53 = vld [vmem:[#allocation2 + $0x39] sm:$0xff] }
 0x4c9   : > { %3638 = vrot.lane.b32.xlu0 %v11230_v56, %s9453_s16  ;;  %v3710_v56 = vld [vmem:[#allocation2 + $0x31] sm:$0xff]  ;;  %v3735_v48 = vld [vmem:[#allocation2 + $0x159] sm:$0xff] }
 0x4ca   : > { %v3401_v1 = vpop.permute.xlu1 %3400 }
 0x4cb   : > { %3491 = vst.msk [vmem:[#allocation3 + $0x28] sm:$0xff] %vm1447_vm6, %v3401_v1  ;;  %v3399_v20 = vpop.permute.xlu0 %3398  ;;  %v3734_v1 = vld [vmem:[#allocation2 + $0x151] sm:$0xff] }
 0x4cc   : > { %3490 = vst.msk [vmem:[#allocation3 + $0x20] sm:$0xff] %vm1447_vm6, %v3399_v20  ;;  %3644 = vrot.lane.b32.xlu1 %v3549_v62, %s9453_s16  ;;  %v9291_v62 = vpack.c.bf16 %v4129_v3, %v4128_v0  ;;  %v4130_v20 = vld [vmem:[%s13898_s3 + $0x20] sm:$0xff]  ;;  %v3920_v0 = vld [vmem:[#allocation2 + $0x10a] sm:$0xff] }
 0x4cd   : > { %3642 = vrot.lane.b32.xlu0 %v3548_v37, %s9453_s16 }
 0x4ce   : > { %v3405_v28 = vpop.permute.xlu1 %3404  ;;  %9292 = vmatprep.subr.bf16.mxu1 %v9291_v62 }
 0x4cf   : > { %3493 = vst.msk [vmem:[#allocation3 + $0x38] sm:$0xff] %vm1447_vm6, %v3405_v28  ;;  %v3403_v54 = vpop.permute.xlu0 %3402  ;;  %9294 = vmatpush3.bf16.msra.mxu1 %v9291_v62  ;;  %v4131_v28 = vld [vmem:[%s13898_s3 + $0x28] sm:$0xff] }
 0x4d0   : > { %3492 = vst.msk [vmem:[#allocation3 + $0x30] sm:$0xff] %vm1447_vm6, %v3403_v54  ;;  %3776 = vrot.lane.b32.xlu1 %v3711_v53, %s9454_s17  ;;  %v3737_v53 = vld [vmem:[#allocation2 + $0x171] sm:$0xff]  ;;  %v3922_v62 = vld [vmem:[#allocation2 + $0x122] sm:$0xff] }
 0x4d1   : > { %3774 = vrot.lane.b32.xlu0 %v3710_v56, %s9454_s17  ;;  %v9295_v56 = vpack.c.bf16 %v4131_v28, %v4130_v20  ;;  %v3925_v20 = vld [vmem:[#allocation2 + $0x142] sm:$0xff]  ;;  %v3924_v28 = vld [vmem:[#allocation2 + $0x13a] sm:$0xff] }
 0x4d2   : > { %v3409_v60 = vpop.permute.xlu1 %3408 }
 0x4d3   : > { %3495 = vst.msk [vmem:[#allocation3 + $0x48] sm:$0xff] %vm1447_vm6, %v3409_v60  ;;  %v3407_v2 = vpop.permute.xlu0 %3406  ;;  %v3736_v60 = vld [vmem:[#allocation2 + $0x169] sm:$0xff]  ;;  %9296 = vmatprep.subr.bf16.mxu1 %v9295_v56 }
 0x4d4   : > { %3494 = vst.msk [vmem:[#allocation3 + $0x40] sm:$0xff] %vm1447_vm6, %v3407_v2  ;;  %3780 = vrot.lane.b32.xlu1 %v3713_v11, %s9454_s17  ;;  %9298 = vmatpush3.bf16.msra.mxu1 %v9295_v56  ;;  %v4132_v11 = vld [vmem:[%s13898_s3 + $0x30] sm:$0xff]  ;;  %v3927_v56 = vld [vmem:[#allocation2 + $0x15a] sm:$0xff] }
 0x4d5   : > { %3778 = vrot.lane.b32.xlu0 %v3712_v12, %s9454_s17  ;;  %v4133_v12 = vld [vmem:[%s13898_s3 + $0x38] sm:$0xff] }
 0x4d6   : > { %v3413_v36 = vpop.permute.xlu1 %3412 }
 0x4d7   : > { %3497 = vst.msk [vmem:[#allocation3 + $0x58] sm:$0xff] %vm1447_vm6, %v3413_v36  ;;  %v3411_v47 = vpop.permute.xlu0 %3410 }
 0x4d8   : > { %3496 = vst.msk [vmem:[#allocation3 + $0x50] sm:$0xff] %vm1447_vm6, %v3411_v47  ;;  %3784 = vrot.lane.b32.xlu1 %v3715_v17, %s9454_s17  ;;  %v9299_v47 = vpack.c.bf16 %v4133_v12, %v4132_v11  ;;  %v3741_v17 = vld [vmem:[#allocation2 + $0x1a1] sm:$0xff]  ;;  %v3929_v12 = vld [vmem:[#allocation2 + $0x172] sm:$0xff] }
 0x4d9   : > { %3782 = vrot.lane.b32.xlu0 %v3714_v49, %s9454_s17 }
 0x4da   : > { %v3417_v39 = vpop.permute.xlu1 %3416  ;;  %9300 = vmatprep.subr.bf16.mxu1 %v9299_v47 }
 0x4db   : > { %3499 = vst.msk [vmem:[#allocation3 + $0x68] sm:$0xff] %vm1447_vm6, %v3417_v39  ;;  %v3415_v57 = vpop.permute.xlu0 %3414  ;;  %v3740_v39 = vld [vmem:[#allocation2 + $0x199] sm:$0xff]  ;;  %9302 = vmatpush3.bf16.msra.mxu1 %v9299_v47 }
 0x4dc   : > { %3498 = vst.msk [vmem:[#allocation3 + $0x60] sm:$0xff] %vm1447_vm6, %v3415_v57  ;;  %3788 = vrot.lane.b32.xlu1 %v3717_v5, %s9454_s17  ;;  %v4134_v5 = vld [vmem:[%s13898_s3 + $0x40] sm:$0xff] }
 0x4dd   : > { %3786 = vrot.lane.b32.xlu0 %v3716_v9, %s9454_s17  ;;  %9089 = vmatprep.subr.mxu1 %v4134_v5  ;;  %v3903_v9 = vld [vmem:[#allocation2 + $0x3a] sm:$0xff] }
 0x4de   : > { %v3421_v24 = vpop.permute.xlu1 %3420 }
 0x4df   : > { %3501 = vst.msk [vmem:[#allocation3 + $0x78] sm:$0xff] %vm1447_vm6, %v3421_v24  ;;  %v3419_v13 = vpop.permute.xlu0 %3418  ;;  %9090 = vmatpush3.msra.mxu1 %v4134_v5  ;;  %v3902_v24 = vld [vmem:[#allocation2 + $0x32] sm:$0xff] }
 0x4e0   : > { %3500 = vst.msk [vmem:[#allocation3 + $0x70] sm:$0xff] %vm1447_vm6, %v3419_v13  ;;  %3792 = vrot.lane.b32.xlu1 %v3719_v38, %s9454_s17 }
 0x4e1   : > { %3790 = vrot.lane.b32.xlu0 %v3718_v58, %s9454_s17  ;;  %v3905_v58 = vld [vmem:[#allocation2 + $0x52] sm:$0xff] }
 0x4e2   : > { %v3425_v63 = vpop.permute.xlu1 %3424 }
 0x4e3   : > { %3503 = vst.msk [vmem:[#allocation3 + $0x88] sm:$0xff] %vm1447_vm6, %v3425_v63  ;;  %v3423_v16 = vpop.permute.xlu0 %3422  ;;  %v3904_v63 = vld [vmem:[#allocation2 + $0x4a] sm:$0xff] }
 0x4e4   : > { %3502 = vst.msk [vmem:[#allocation3 + $0x80] sm:$0xff] %vm1447_vm6, %v3423_v16  ;;  %3796 = vrot.lane.b32.xlu1 %v3721_v42, %s9454_s17 }
 0x4e5   : > { %3794 = vrot.lane.b32.xlu0 %v3720_v29, %s9454_s17  ;;  %v3907_v29 = vld [vmem:[#allocation2 + $0x6a] sm:$0xff] }
 0x4e6   : > { %v3429_v51 = vpop.permute.xlu1 %3428 }
 0x4e7   : > { %3505 = vst.msk [vmem:[#allocation3 + $0x98] sm:$0xff] %vm1447_vm6, %v3429_v51  ;;  %v3427_v44 = vpop.permute.xlu0 %3426  ;;  %v3906_v51 = vld [vmem:[#allocation2 + $0x62] sm:$0xff] }
 0x4e8   : > { %3504 = vst.msk [vmem:[#allocation3 + $0x90] sm:$0xff] %vm1447_vm6, %v3427_v44  ;;  %3800 = vrot.lane.b32.xlu1 %v3723_v40, %s9454_s17 }
 0x4e9   : > { %3798 = vrot.lane.b32.xlu0 %v3722_v30, %s9454_s17  ;;  %v3909_v30 = vld [vmem:[#allocation2 + $0x82] sm:$0xff] }
 0x4ea   : > { %v3433_v14 = vpop.permute.xlu1 %3432 }
 0x4eb   : > { %3507 = vst.msk [vmem:[#allocation3 + $0xa8] sm:$0xff] %vm1447_vm6, %v3433_v14  ;;  %v3431_v18 = vpop.permute.xlu0 %3430  ;;  %v3908_v14 = vld [vmem:[#allocation2 + $0x7a] sm:$0xff] }
 0x4ec   : > { %3506 = vst.msk [vmem:[#allocation3 + $0xa0] sm:$0xff] %vm1447_vm6, %v3431_v18  ;;  %3804 = vrot.lane.b32.xlu1 %v3725_v45, %s9454_s17 }
 0x4ed   : > { %3802 = vrot.lane.b32.xlu0 %v3724_v46, %s9454_s17  ;;  %v3911_v46 = vld [vmem:[#allocation2 + $0x9a] sm:$0xff] }
 0x4ee   : > { %v3437_v21 = vpop.permute.xlu1 %3436 }
 0x4ef   : > { %3509 = vst.msk [vmem:[#allocation3 + $0xb8] sm:$0xff] %vm1447_vm6, %v3437_v21  ;;  %v3435_v22 = vpop.permute.xlu0 %3434  ;;  %v3910_v21 = vld [vmem:[#allocation2 + $0x92] sm:$0xff] }
 0x4f0   : > { %3508 = vst.msk [vmem:[#allocation3 + $0xb0] sm:$0xff] %vm1447_vm6, %v3435_v22  ;;  %3808 = vrot.lane.b32.xlu1 %v3727_v35, %s9454_s17 }
 0x4f1   : > { %3806 = vrot.lane.b32.xlu0 %v3726_v34, %s9454_s17  ;;  %v3913_v34 = vld [vmem:[#allocation2 + $0xb2] sm:$0xff] }
 0x4f2   : > { %v3441_v52 = vpop.permute.xlu1 %3440 }
 0x4f3   : > { %3511 = vst.msk [vmem:[#allocation3 + $0xc8] sm:$0xff] %vm1447_vm6, %v3441_v52  ;;  %v3439_v55 = vpop.permute.xlu0 %3438  ;;  %v3912_v52 = vld [vmem:[#allocation2 + $0xaa] sm:$0xff] }
 0x4f4   : > { %3510 = vst.msk [vmem:[#allocation3 + $0xc0] sm:$0xff] %vm1447_vm6, %v3439_v55  ;;  %3812 = vrot.lane.b32.xlu1 %v3729_v4, %s9454_s17 }
 0x4f5   : > { %3810 = vrot.lane.b32.xlu0 %v3728_v6, %s9454_s17  ;;  %v3915_v6 = vld [vmem:[#allocation2 + $0xca] sm:$0xff] }
 0x4f6   : > { %v3445_v19 = vpop.permute.xlu1 %3444 }
 0x4f7   : > { %3513 = vst.msk [vmem:[#allocation3 + $0xd8] sm:$0xff] %vm1447_vm6, %v3445_v19  ;;  %v3443_v41 = vpop.permute.xlu0 %3442  ;;  %v3914_v19 = vld [vmem:[#allocation2 + $0xc2] sm:$0xff] }
 0x4f8   : > { %3512 = vst.msk [vmem:[#allocation3 + $0xd0] sm:$0xff] %vm1447_vm6, %v3443_v41  ;;  %3816 = vrot.lane.b32.xlu1 %v3731_v50, %s9454_s17 }
 0x4f9   : > { %3814 = vrot.lane.b32.xlu0 %v3730_v10, %s9454_s17  ;;  %v3917_v10 = vld [vmem:[#allocation2 + $0xe2] sm:$0xff] }
 0x4fa   : > { %v3449_v27 = vpop.permute.xlu1 %3448 }
 0x4fb   : > { %3515 = vst.msk [vmem:[#allocation3 + $0xe8] sm:$0xff] %vm1447_vm6, %v3449_v27  ;;  %v3447_v61 = vpop.permute.xlu0 %3446  ;;  %v3916_v27 = vld [vmem:[#allocation2 + $0xda] sm:$0xff] }
 0x4fc   : > { %3514 = vst.msk [vmem:[#allocation3 + $0xe0] sm:$0xff] %vm1447_vm6, %v3447_v61  ;;  %3820 = vrot.lane.b32.xlu1 %v3733_v15, %s9454_s17  ;;  %v3919_v61 = vld [vmem:[#allocation2 + $0xfa] sm:$0xff]  ;;  %v3918_v15 = vld [vmem:[#allocation2 + $0xf2] sm:$0xff] }
 0x4fd   : > { %3818 = vrot.lane.b32.xlu0 %v3732_v26, %s9454_s17 }
 0x4fe   : > { %v3453_v31 = vpop.permute.xlu1 %3452 }
 0x4ff   : > { %3517 = vst.msk [vmem:[#allocation3 + $0xf8] sm:$0xff] %vm1447_vm6, %v3453_v31  ;;  %v3451_v43 = vpop.permute.xlu0 %3450  ;;  %v3921_v31 = vld [vmem:[#allocation2 + $0x112] sm:$0xff] }
 0x500   : > { %3516 = vst.msk [vmem:[#allocation3 + $0xf0] sm:$0xff] %vm1447_vm6, %v3451_v43  ;;  %3824 = vrot.lane.b32.xlu1 %v3735_v48, %s9454_s17  ;;  %v3923_v48 = vld [vmem:[#allocation2 + $0x12a] sm:$0xff] }
 0x501   : > { %3822 = vrot.lane.b32.xlu0 %v3734_v1, %s9454_s17 }
 0x502   : > { %v3585_v37 = vpop.permute.xlu1 %3584 }
 0x503   : > { %3679 = vst.msk [vmem:[#allocation3 + $0x8] sm:$0xff] %vm1641_vm7, %v3585_v37  ;;  %v3583_v54 = vpop.permute.xlu0 %3582 }
 0x504   : > { %3678 = vst.msk [vmem:[#allocation3] sm:$0xff] %vm1641_vm7, %v3583_v54  ;;  %3828 = vrot.lane.b32.xlu1 %v3737_v53, %s9454_s17 }
 0x505   : > { %3826 = vrot.lane.b32.xlu0 %v3736_v60, %s9454_s17  ;;  %v3926_v60 = vld [vmem:[#allocation2 + $0x152] sm:$0xff] }
 0x506   : > { %v3589_v2 = vpop.permute.xlu1 %3588 }
 0x507   : > { %3681 = vst.msk [vmem:[#allocation3 + $0x18] sm:$0xff] %vm1641_vm7, %v3589_v2  ;;  %v3587_v36 = vpop.permute.xlu0 %3586 }
 0x508   : > { %3680 = vst.msk [vmem:[#allocation3 + $0x10] sm:$0xff] %vm1641_vm7, %v3587_v36  ;;  %3832 = vrot.lane.b32.xlu1 %v11329_v32, %s9454_s17  ;;  %v3928_v36 = vld [vmem:[#allocation2 + $0x16a] sm:$0xff] }
 0x509   : > { %3830 = vrot.lane.b32.xlu0 %v11334_v8, %s9454_s17 }
 0x50a   : > { %v3593_v49 = vpop.permute.xlu1 %3592 }
 0x50b   : > { %3683 = vst.msk [vmem:[#allocation3 + $0x28] sm:$0xff] %vm1641_vm7, %v3593_v49  ;;  %v3591_v57 = vpop.permute.xlu0 %3590  ;;  %v3933_v49 = vld [vmem:[#allocation2 + $0x1a2] sm:$0xff] }
 0x50c   : > { %3682 = vst.msk [vmem:[#allocation3 + $0x20] sm:$0xff] %vm1641_vm7, %v3591_v57  ;;  %3836 = vrot.lane.b32.xlu1 %v3741_v17, %s9454_s17  ;;  %v3932_v57 = vld [vmem:[#allocation2 + $0x19a] sm:$0xff] }
 0x50d   : > { %3834 = vrot.lane.b32.xlu0 %v3740_v39, %s9454_s17 }
 0x50e   : > { %v3597_v32 = vpop.permute.xlu1 %3596 }
 0x50f   : > { %3685 = vst.msk [vmem:[#allocation3 + $0x38] sm:$0xff] %vm1641_vm7, %v3597_v32  ;;  %v3595_v8 = vpop.permute.xlu0 %3594 }
 0x510   : > { %3684 = vst.msk [vmem:[#allocation3 + $0x30] sm:$0xff] %vm1641_vm7, %v3595_v8  ;;  %3968 = vrot.lane.b32.xlu1 %v3903_v9, %s9455_s24 }
 0x511   : > { %3966 = vrot.lane.b32.xlu0 %v3902_v24, %s9455_s24 }
 0x512   : > { %v3601_v13 = vpop.permute.xlu1 %3600 }
 0x513   : > { %3687 = vst.msk [vmem:[#allocation3 + $0x48] sm:$0xff] %vm1641_vm7, %v3601_v13  ;;  %v3599_v38 = vpop.permute.xlu0 %3598 }
 0x514   : > { %3686 = vst.msk [vmem:[#allocation3 + $0x40] sm:$0xff] %vm1641_vm7, %v3599_v38  ;;  %3972 = vrot.lane.b32.xlu1 %v3905_v58, %s9455_s24 }
 0x515   : > { %3970 = vrot.lane.b32.xlu0 %v3904_v63, %s9455_s24 }
 0x516   : > { %v3605_v16 = vpop.permute.xlu1 %3604 }
 0x517   : > { %3689 = vst.msk [vmem:[#allocation3 + $0x58] sm:$0xff] %vm1641_vm7, %v3605_v16  ;;  %v3603_v42 = vpop.permute.xlu0 %3602 }
 0x518   : > { %3688 = vst.msk [vmem:[#allocation3 + $0x50] sm:$0xff] %vm1641_vm7, %v3603_v42  ;;  %3976 = vrot.lane.b32.xlu1 %v3907_v29, %s9455_s24 }
 0x519   : > { %3974 = vrot.lane.b32.xlu0 %v3906_v51, %s9455_s24 }
 0x51a   : > { %v3609_v44 = vpop.permute.xlu1 %3608 }
 0x51b   : > { %3691 = vst.msk [vmem:[#allocation3 + $0x68] sm:$0xff] %vm1641_vm7, %v3609_v44  ;;  %v3607_v40 = vpop.permute.xlu0 %3606 }
 0x51c   : > { %3690 = vst.msk [vmem:[#allocation3 + $0x60] sm:$0xff] %vm1641_vm7, %v3607_v40  ;;  %3980 = vrot.lane.b32.xlu1 %v3909_v30, %s9455_s24 }
 0x51d   : > { %3978 = vrot.lane.b32.xlu0 %v3908_v14, %s9455_s24 }
 0x51e   : > { %v3613_v18 = vpop.permute.xlu1 %3612 }
 0x51f   : > { %3693 = vst.msk [vmem:[#allocation3 + $0x78] sm:$0xff] %vm1641_vm7, %v3613_v18  ;;  %v3611_v45 = vpop.permute.xlu0 %3610 }
 0x520   : > { %3692 = vst.msk [vmem:[#allocation3 + $0x70] sm:$0xff] %vm1641_vm7, %v3611_v45  ;;  %3984 = vrot.lane.b32.xlu1 %v3911_v46, %s9455_s24 }
 0x521   : > { %3982 = vrot.lane.b32.xlu0 %v3910_v21, %s9455_s24 }
 0x522   : > { %v3617_v22 = vpop.permute.xlu1 %3616 }
 0x523   : > { %3695 = vst.msk [vmem:[#allocation3 + $0x88] sm:$0xff] %vm1641_vm7, %v3617_v22  ;;  %v3615_v35 = vpop.permute.xlu0 %3614 }
 0x524   : > { %3694 = vst.msk [vmem:[#allocation3 + $0x80] sm:$0xff] %vm1641_vm7, %v3615_v35  ;;  %3988 = vrot.lane.b32.xlu1 %v3913_v34, %s9455_s24 }
 0x525   : > { %3986 = vrot.lane.b32.xlu0 %v3912_v52, %s9455_s24 }
 0x526   : > { %v3621_v55 = vpop.permute.xlu1 %3620 }
 0x527   : > { %3697 = vst.msk [vmem:[#allocation3 + $0x98] sm:$0xff] %vm1641_vm7, %v3621_v55  ;;  %v3619_v4 = vpop.permute.xlu0 %3618 }
 0x528   : > { %3696 = vst.msk [vmem:[#allocation3 + $0x90] sm:$0xff] %vm1641_vm7, %v3619_v4  ;;  %3992 = vrot.lane.b32.xlu1 %v3915_v6, %s9455_s24 }
 0x529   : > { %3990 = vrot.lane.b32.xlu0 %v3914_v19, %s9455_s24 }
 0x52a   : > { %v3625_v41 = vpop.permute.xlu1 %3624 }
 0x52b   : > { %3699 = vst.msk [vmem:[#allocation3 + $0xa8] sm:$0xff] %vm1641_vm7, %v3625_v41  ;;  %v3623_v50 = vpop.permute.xlu0 %3622 }
 0x52c   : > { %3698 = vst.msk [vmem:[#allocation3 + $0xa0] sm:$0xff] %vm1641_vm7, %v3623_v50  ;;  %3996 = vrot.lane.b32.xlu1 %v3917_v10, %s9455_s24 }
 0x52d   : > { %3994 = vrot.lane.b32.xlu0 %v3916_v27, %s9455_s24 }
 0x52e   : > { %v3629_v25 = vpop.permute.xlu1 %3628 }
 0x52f   : > { %3701 = vst.msk [vmem:[#allocation3 + $0xb8] sm:$0xff] %vm1641_vm7, %v3629_v25  ;;  %v3627_v59 = vpop.permute.xlu0 %3626 }
 0x530   : > { %3700 = vst.msk [vmem:[#allocation3 + $0xb0] sm:$0xff] %vm1641_vm7, %v3627_v59  ;;  %4000 = vrot.lane.b32.xlu1 %v3919_v61, %s9455_s24 }
 0x531   : > { %3998 = vrot.lane.b32.xlu0 %v3918_v15, %s9455_s24 }
 0x532   : > { %v3633_v23 = vpop.permute.xlu1 %3632 }
 0x533   : > { %3703 = vst.msk [vmem:[#allocation3 + $0xc8] sm:$0xff] %vm1641_vm7, %v3633_v23  ;;  %v3631_v26 = vpop.permute.xlu0 %3630 }
 0x534   : > { %3702 = vst.msk [vmem:[#allocation3 + $0xc0] sm:$0xff] %vm1641_vm7, %v3631_v26  ;;  %4004 = vrot.lane.b32.xlu1 %v3921_v31, %s9455_s24 }
 0x535   : > { %4002 = vrot.lane.b32.xlu0 %v3920_v0, %s9455_s24 }
 0x536   : > { %v3637_v3 = vpop.permute.xlu1 %3636 }
 0x537   : > { %3705 = vst.msk [vmem:[#allocation3 + $0xd8] sm:$0xff] %vm1641_vm7, %v3637_v3  ;;  %v3635_v43 = vpop.permute.xlu0 %3634 }
 0x538   : > { %3704 = vst.msk [vmem:[#allocation3 + $0xd0] sm:$0xff] %vm1641_vm7, %v3635_v43  ;;  %4008 = vrot.lane.b32.xlu1 %v3923_v48, %s9455_s24 }
 0x539   : > { %4006 = vrot.lane.b32.xlu0 %v3922_v62, %s9455_s24 }
 0x53a   : > { %v3641_v1 = vpop.permute.xlu1 %3640 }
 0x53b   : > { %3707 = vst.msk [vmem:[#allocation3 + $0xe8] sm:$0xff] %vm1641_vm7, %v3641_v1  ;;  %v3639_v37 = vpop.permute.xlu0 %3638 }
 0x53c   : > { %3706 = vst.msk [vmem:[#allocation3 + $0xe0] sm:$0xff] %vm1641_vm7, %v3639_v37  ;;  %4012 = vrot.lane.b32.xlu1 %v3925_v20, %s9455_s24 }
 0x53d   : > { %4010 = vrot.lane.b32.xlu0 %v3924_v28, %s9455_s24 }
 0x53e   : > { %v3645_v54 = vpop.permute.xlu1 %3644 }
 0x53f   : > { %3709 = vst.msk [vmem:[#allocation3 + $0xf8] sm:$0xff] %vm1641_vm7, %v3645_v54  ;;  %v3643_v53 = vpop.permute.xlu0 %3642 }
 0x540   : > { %3708 = vst.msk [vmem:[#allocation3 + $0xf0] sm:$0xff] %vm1641_vm7, %v3643_v53  ;;  %4016 = vrot.lane.b32.xlu1 %v3927_v56, %s9455_s24 }
 0x541   : > { %4014 = vrot.lane.b32.xlu0 %v3926_v60, %s9455_s24 }
 0x542   : > { %v3777_v2 = vpop.permute.xlu1 %3776 }
 0x543   : > { %3871 = vst.msk [vmem:[#allocation3 + $0x8] sm:$0xff] %vm1834_vm8, %v3777_v2  ;;  %v3775_v11 = vpop.permute.xlu0 %3774 }
 0x544   : > { %3870 = vst.msk [vmem:[#allocation3] sm:$0xff] %vm1834_vm8, %v3775_v11  ;;  %4020 = vrot.lane.b32.xlu1 %v3929_v12, %s9455_s24 }
 0x545   : > { %4018 = vrot.lane.b32.xlu0 %v3928_v36, %s9455_s24 }
 0x546   : > { %v3781_v47 = vpop.permute.xlu1 %3780 }
 0x547   : > { %3873 = vst.msk [vmem:[#allocation3 + $0x18] sm:$0xff] %vm1834_vm8, %v3781_v47  ;;  %v3779_v17 = vpop.permute.xlu0 %3778 }
 0x548   : > { %3872 = vst.msk [vmem:[#allocation3 + $0x10] sm:$0xff] %vm1834_vm8, %v3779_v17  ;;  %4024 = vrot.lane.b32.xlu1 %v11429_v7, %s9455_s24 }
 0x549   : > { %4022 = vrot.lane.b32.xlu0 %v11434_v33, %s9455_s24 }
 0x54a   : > { %v3785_v39 = vpop.permute.xlu1 %3784 }
 0x54b   : > { %3875 = vst.msk [vmem:[#allocation3 + $0x28] sm:$0xff] %vm1834_vm8, %v3785_v39  ;;  %v3783_v5 = vpop.permute.xlu0 %3782 }
 0x54c   : > { %3874 = vst.msk [vmem:[#allocation3 + $0x20] sm:$0xff] %vm1834_vm8, %v3783_v5  ;;  %4028 = vrot.lane.b32.xlu1 %v3933_v49, %s9455_s24 }
 0x54d   : > { %4026 = vrot.lane.b32.xlu0 %v3932_v57, %s9455_s24 }
 0x54e   : > { %v3789_v32 = vpop.permute.xlu1 %3788 }
 0x54f   : > { %3877 = vst.msk [vmem:[#allocation3 + $0x38] sm:$0xff] %vm1834_vm8, %v3789_v32  ;;  %v3787_v8 = vpop.permute.xlu0 %3786 }
 0x550   : > { %3876 = vst.msk [vmem:[#allocation3 + $0x30] sm:$0xff] %vm1834_vm8, %v3787_v8 }
 0x552   : > { %v3793_v7 = vpop.permute.xlu1 %3792 }
 0x553   : > { %3879 = vst.msk [vmem:[#allocation3 + $0x48] sm:$0xff] %vm1834_vm8, %v3793_v7  ;;  %v3791_v33 = vpop.permute.xlu0 %3790 }
 0x554   : > { %3878 = vst.msk [vmem:[#allocation3 + $0x40] sm:$0xff] %vm1834_vm8, %v3791_v33 }
 0x556   : > { %v3797_v9 = vpop.permute.xlu1 %3796 }
 0x557   : > { %3881 = vst.msk [vmem:[#allocation3 + $0x58] sm:$0xff] %vm1834_vm8, %v3797_v9  ;;  %v3795_v24 = vpop.permute.xlu0 %3794 }
 0x558   : > { %3880 = vst.msk [vmem:[#allocation3 + $0x50] sm:$0xff] %vm1834_vm8, %v3795_v24 }
 0x55a   : > { %v3801_v13 = vpop.permute.xlu1 %3800 }
 0x55b   : > { %3883 = vst.msk [vmem:[#allocation3 + $0x68] sm:$0xff] %vm1834_vm8, %v3801_v13  ;;  %v3799_v38 = vpop.permute.xlu0 %3798 }
 0x55c   : > { %3882 = vst.msk [vmem:[#allocation3 + $0x60] sm:$0xff] %vm1834_vm8, %v3799_v38 }
 0x55e   : > { %v3805_v58 = vpop.permute.xlu1 %3804 }
 0x55f   : > { %3885 = vst.msk [vmem:[#allocation3 + $0x78] sm:$0xff] %vm1834_vm8, %v3805_v58  ;;  %v3803_v63 = vpop.permute.xlu0 %3802 }
 0x560   : > { %3884 = vst.msk [vmem:[#allocation3 + $0x70] sm:$0xff] %vm1834_vm8, %v3803_v63 }
 0x562   : > { %v3809_v16 = vpop.permute.xlu1 %3808 }
 0x563   : > { %3887 = vst.msk [vmem:[#allocation3 + $0x88] sm:$0xff] %vm1834_vm8, %v3809_v16  ;;  %v3807_v42 = vpop.permute.xlu0 %3806 }
 0x564   : > { %3886 = vst.msk [vmem:[#allocation3 + $0x80] sm:$0xff] %vm1834_vm8, %v3807_v42 }
 0x566   : > { %v3813_v29 = vpop.permute.xlu1 %3812 }
 0x567   : > { %3889 = vst.msk [vmem:[#allocation3 + $0x98] sm:$0xff] %vm1834_vm8, %v3813_v29  ;;  %v3811_v51 = vpop.permute.xlu0 %3810 }
 0x568   : > { %3888 = vst.msk [vmem:[#allocation3 + $0x90] sm:$0xff] %vm1834_vm8, %v3811_v51 }
 0x56a   : > { %v3817_v44 = vpop.permute.xlu1 %3816 }
 0x56b   : > { %3891 = vst.msk [vmem:[#allocation3 + $0xa8] sm:$0xff] %vm1834_vm8, %v3817_v44  ;;  %v3815_v40 = vpop.permute.xlu0 %3814 }
 0x56c   : > { %3890 = vst.msk [vmem:[#allocation3 + $0xa0] sm:$0xff] %vm1834_vm8, %v3815_v40 }
 0x56e   : > { %v3821_v30 = vpop.permute.xlu1 %3820 }
 0x56f   : > { %3893 = vst.msk [vmem:[#allocation3 + $0xb8] sm:$0xff] %vm1834_vm8, %v3821_v30  ;;  %v3819_v14 = vpop.permute.xlu0 %3818 }
 0x570   : > { %3892 = vst.msk [vmem:[#allocation3 + $0xb0] sm:$0xff] %vm1834_vm8, %v3819_v14 }
 0x572   : > { %v3825_v18 = vpop.permute.xlu1 %3824 }
 0x573   : > { %3895 = vst.msk [vmem:[#allocation3 + $0xc8] sm:$0xff] %vm1834_vm8, %v3825_v18  ;;  %v3823_v45 = vpop.permute.xlu0 %3822 }
 0x574   : > { %3894 = vst.msk [vmem:[#allocation3 + $0xc0] sm:$0xff] %vm1834_vm8, %v3823_v45 }
 0x576   : > { %v3829_v46 = vpop.permute.xlu1 %3828 }
 0x577   : > { %3897 = vst.msk [vmem:[#allocation3 + $0xd8] sm:$0xff] %vm1834_vm8, %v3829_v46  ;;  %v3827_v21 = vpop.permute.xlu0 %3826 }
 0x578   : > { %3896 = vst.msk [vmem:[#allocation3 + $0xd0] sm:$0xff] %vm1834_vm8, %v3827_v21 }
 0x57a   : > { %v3833_v22 = vpop.permute.xlu1 %3832 }
 0x57b   : > { %3899 = vst.msk [vmem:[#allocation3 + $0xe8] sm:$0xff] %vm1834_vm8, %v3833_v22  ;;  %v3831_v35 = vpop.permute.xlu0 %3830 }
 0x57c   : > { %3898 = vst.msk [vmem:[#allocation3 + $0xe0] sm:$0xff] %vm1834_vm8, %v3831_v35 }
 0x57e   : > { %v3837_v34 = vpop.permute.xlu1 %3836 }
 0x57f   : > { %3901 = vst.msk [vmem:[#allocation3 + $0xf8] sm:$0xff] %vm1834_vm8, %v3837_v34  ;;  %v3835_v52 = vpop.permute.xlu0 %3834 }
 0x580   : > { %3900 = vst.msk [vmem:[#allocation3 + $0xf0] sm:$0xff] %vm1834_vm8, %v3835_v52 }
 0x582   : > { %v3969_v55 = vpop.permute.xlu1 %3968 }
 0x583   : > { %4063 = vst.msk [vmem:[#allocation3 + $0x8] sm:$0xff] %vm2027_vm9, %v3969_v55  ;;  %v3967_v4 = vpop.permute.xlu0 %3966  ;;  %v4592_v55 = vld [vmem:[#allocation2 + $0x9] sm:$0xff] }
 0x584   : > { %4062 = vst.msk [vmem:[#allocation3] sm:$0xff] %vm2027_vm9, %v3967_v4  ;;  %4657 = vrot.lane.b32.xlu1 %v4592_v55, %s9448_s26  ;;  %v4591_v4 = vld [vmem:[#allocation2 + $0x1] sm:$0xff] }
 0x585   : > { %4655 = vrot.lane.b32.xlu0 %v4591_v4, %s9448_s26 }
 0x586   : > { %v3973_v6 = vpop.permute.xlu1 %3972 }
 0x587   : > { %4065 = vst.msk [vmem:[#allocation3 + $0x18] sm:$0xff] %vm2027_vm9, %v3973_v6  ;;  %v3971_v19 = vpop.permute.xlu0 %3970  ;;  %v4528_v6 = vld [vmem:[#allocation2 + $0x8] sm:$0xff] }
 0x588   : > { %4064 = vst.msk [vmem:[#allocation3 + $0x10] sm:$0xff] %vm2027_vm9, %v3971_v19  ;;  %v4527_v19 = vld [vmem:[#allocation2] sm:$0xff] }
 0x58a   : > { %v3977_v41 = vpop.permute.xlu1 %3976  ;;  %v4095_v27 = vld [vmem:[#allocation3 + $0x8] sm:$0xff] }
 0x58b   : > { %4067 = vst.msk [vmem:[#allocation3 + $0x28] sm:$0xff] %vm2027_vm9, %v3977_v41  ;;  %v3975_v50 = vpop.permute.xlu0 %3974  ;;  %v4094_v10 = vld [vmem:[#allocation3] sm:$0xff] }
 0x58c   : > { %4066 = vst.msk [vmem:[#allocation3 + $0x20] sm:$0xff] %vm2027_vm9, %v3975_v50  ;;  %9091 = vmatprep.mubr.msk.f32.mxu1 %vm2108_vm10, %v4094_v10  ;;  %v11788_v50 = vld [vmem:[%s13899_s4] ss:$0 sm:$0xff] }
 0x58d   : > { %9092 = vmatmul.mubr.msk.f32.vlgmr.msra.gmra.mrb[0].mxu1 %vm2108_vm10, %v4095_v27  ;;  %4560 = vst.msk [vmem:[#allocation3 + $0x8] sm:$0xff] %vm330_vm0, %v4528_v6  ;;  %4559 = vst.msk [vmem:[#allocation3] sm:$0xff] %vm330_vm0, %v4527_v19 }
 0x58e   : > { %v3981_v25 = vpop.permute.xlu1 %3980  ;;  %v4097_v15 = vld [vmem:[#allocation3 + $0x18] sm:$0xff] }
 0x58f   : > { %4069 = vst.msk [vmem:[#allocation3 + $0x38] sm:$0xff] %vm2027_vm9, %v3981_v25  ;;  %v3979_v59 = vpop.permute.xlu0 %3978  ;;  %v4096_v61 = vld [vmem:[#allocation3 + $0x10] sm:$0xff] }
 0x590   : > { %4068 = vst.msk [vmem:[#allocation3 + $0x30] sm:$0xff] %vm2027_vm9, %v3979_v59  ;;  %9094 = vmatprep.mubr.msk.f32.mxu1 %vm2108_vm10, %v4096_v61 }
 0x591   : > { %9095 = vmatmul.mubr.msk.f32.gmra.mrb[2].mxu1 %vm2108_vm10, %v4097_v15 }
 0x592   : > { %v3985_v23 = vpop.permute.xlu1 %3984  ;;  %v4099_v0 = vld [vmem:[#allocation3 + $0x28] sm:$0xff] }
 0x593   : > { %4071 = vst.msk [vmem:[#allocation3 + $0x48] sm:$0xff] %vm2027_vm9, %v3985_v23  ;;  %v3983_v26 = vpop.permute.xlu0 %3982  ;;  %v4098_v31 = vld [vmem:[#allocation3 + $0x20] sm:$0xff] }
 0x594   : > { %4070 = vst.msk [vmem:[#allocation3 + $0x40] sm:$0xff] %vm2027_vm9, %v3983_v26  ;;  %9097 = vmatprep.mubr.msk.f32.mxu1 %vm2108_vm10, %v4098_v31 }
 0x595   : > { %9098 = vmatmul.mubr.msk.f32.gmra.mrb[4].mxu1 %vm2108_vm10, %v4099_v0 }
 0x596   : > { %v3989_v3 = vpop.permute.xlu1 %3988  ;;  %v4101_v62 = vld [vmem:[#allocation3 + $0x38] sm:$0xff] }
 0x597   : > { %4073 = vst.msk [vmem:[#allocation3 + $0x58] sm:$0xff] %vm2027_vm9, %v3989_v3  ;;  %v3987_v43 = vpop.permute.xlu0 %3986  ;;  %v4100_v48 = vld [vmem:[#allocation3 + $0x30] sm:$0xff] }
 0x598   : > { %4072 = vst.msk [vmem:[#allocation3 + $0x50] sm:$0xff] %vm2027_vm9, %v3987_v43  ;;  %9100 = vmatprep.mubr.msk.f32.mxu1 %vm2108_vm10, %v4100_v48 }
 0x599   : > { %9101 = vmatmul.mubr.msk.f32.gmra.mrb[6].mxu1 %vm2108_vm10, %v4101_v62 }
 0x59a   : > { %v3993_v1 = vpop.permute.xlu1 %3992  ;;  %v4103_v28 = vld [vmem:[#allocation3 + $0x48] sm:$0xff] }
 0x59b   : > { %4075 = vst.msk [vmem:[#allocation3 + $0x68] sm:$0xff] %vm2027_vm9, %v3993_v1  ;;  %v3991_v37 = vpop.permute.xlu0 %3990  ;;  %v4102_v20 = vld [vmem:[#allocation3 + $0x40] sm:$0xff] }
 0x59c   : > { %4074 = vst.msk [vmem:[#allocation3 + $0x60] sm:$0xff] %vm2027_vm9, %v3991_v37  ;;  %9103 = vmatprep.mubr.msk.f32.mxu1 %vm2108_vm10, %v4102_v20 }
 0x59d   : > { %9104 = vmatmul.mubr.msk.f32.gmra.mrb[8].mxu1 %vm2108_vm10, %v4103_v28 }
 0x59e   : > { %v3997_v54 = vpop.permute.xlu1 %3996  ;;  %v4105_v60 = vld [vmem:[#allocation3 + $0x58] sm:$0xff] }
 0x59f   : > { %4077 = vst.msk [vmem:[#allocation3 + $0x78] sm:$0xff] %vm2027_vm9, %v3997_v54  ;;  %v3995_v53 = vpop.permute.xlu0 %3994  ;;  %v4104_v56 = vld [vmem:[#allocation3 + $0x50] sm:$0xff] }
 0x5a0   : > { %4076 = vst.msk [vmem:[#allocation3 + $0x70] sm:$0xff] %vm2027_vm9, %v3995_v53  ;;  %9106 = vmatprep.mubr.msk.f32.mxu1 %vm2108_vm10, %v4104_v56 }
 0x5a1   : > { %9107 = vmatmul.mubr.msk.f32.gmra.mrb[10].mxu1 %vm2108_vm10, %v4105_v60 }
 0x5a2   : > { %v4001_v2 = vpop.permute.xlu1 %4000  ;;  %v4107_v36 = vld [vmem:[#allocation3 + $0x68] sm:$0xff] }
 0x5a3   : > { %4079 = vst.msk [vmem:[#allocation3 + $0x88] sm:$0xff] %vm2027_vm9, %v4001_v2  ;;  %v3999_v11 = vpop.permute.xlu0 %3998  ;;  %v4106_v12 = vld [vmem:[#allocation3 + $0x60] sm:$0xff] }
 0x5a4   : > { %4078 = vst.msk [vmem:[#allocation3 + $0x80] sm:$0xff] %vm2027_vm9, %v3999_v11  ;;  %9109 = vmatprep.mubr.msk.f32.mxu1 %vm2108_vm10, %v4106_v12 }
 0x5a5   : > { %9110 = vmatmul.mubr.msk.f32.gmra.mrb[12].mxu1 %vm2108_vm10, %v4107_v36 }
 0x5a6   : > { %v4005_v47 = vpop.permute.xlu1 %4004  ;;  %v4109_v39 = vld [vmem:[#allocation3 + $0x78] sm:$0xff] }
 0x5a7   : > { %4081 = vst.msk [vmem:[#allocation3 + $0x98] sm:$0xff] %vm2027_vm9, %v4005_v47  ;;  %v4003_v17 = vpop.permute.xlu0 %4002  ;;  %v4108_v49 = vld [vmem:[#allocation3 + $0x70] sm:$0xff] }
 0x5a8   : > { %4080 = vst.msk [vmem:[#allocation3 + $0x90] sm:$0xff] %vm2027_vm9, %v4003_v17  ;;  %9112 = vmatprep.mubr.msk.f32.mxu1 %vm2108_vm10, %v4108_v49 }
 0x5a9   : > { %9113 = vmatmul.mubr.msk.f32.gmra.mrb[14].mxu1 %vm2108_vm10, %v4109_v39 }
 0x5aa   : > { %v4009_v57 = vpop.permute.xlu1 %4008  ;;  %v4111_v8 = vld [vmem:[#allocation3 + $0x88] sm:$0xff] }
 0x5ab   : > { %4083 = vst.msk [vmem:[#allocation3 + $0xa8] sm:$0xff] %vm2027_vm9, %v4009_v57  ;;  %v4007_v5 = vpop.permute.xlu0 %4006  ;;  %v4110_v32 = vld [vmem:[#allocation3 + $0x80] sm:$0xff] }
 0x5ac   : > { %4082 = vst.msk [vmem:[#allocation3 + $0xa0] sm:$0xff] %vm2027_vm9, %v4007_v5  ;;  %9115 = vmatprep.mubr.msk.f32.mxu1 %vm2108_vm10, %v4110_v32 }
 0x5ad   : > { %9116 = vmatmul.mubr.msk.f32.gmra.mrb[16].mxu1 %vm2108_vm10, %v4111_v8 }
 0x5ae   : > { %v4013_v7 = vpop.permute.xlu1 %4012  ;;  %v4113_v24 = vld [vmem:[#allocation3 + $0x98] sm:$0xff] }
 0x5af   : > { %4085 = vst.msk [vmem:[#allocation3 + $0xb8] sm:$0xff] %vm2027_vm9, %v4013_v7  ;;  %v4011_v33 = vpop.permute.xlu0 %4010  ;;  %v4112_v9 = vld [vmem:[#allocation3 + $0x90] sm:$0xff] }
 0x5b0   : > { %4084 = vst.msk [vmem:[#allocation3 + $0xb0] sm:$0xff] %vm2027_vm9, %v4011_v33  ;;  %9118 = vmatprep.mubr.msk.f32.mxu1 %vm2108_vm10, %v4112_v9 }
 0x5b1   : > { %9119 = vmatmul.mubr.msk.f32.gmra.mrb[18].mxu1 %vm2108_vm10, %v4113_v24 }
 0x5b2   : > { %v4017_v13 = vpop.permute.xlu1 %4016  ;;  %v4115_v63 = vld [vmem:[#allocation3 + $0xa8] sm:$0xff] }
 0x5b3   : > { %4087 = vst.msk [vmem:[#allocation3 + $0xc8] sm:$0xff] %vm2027_vm9, %v4017_v13  ;;  %v4015_v38 = vpop.permute.xlu0 %4014  ;;  %v4114_v58 = vld [vmem:[#allocation3 + $0xa0] sm:$0xff] }
 0x5b4   : > { %4086 = vst.msk [vmem:[#allocation3 + $0xc0] sm:$0xff] %vm2027_vm9, %v4015_v38  ;;  %9121 = vmatprep.mubr.msk.f32.mxu1 %vm2108_vm10, %v4114_v58 }
 0x5b5   : > { %9122 = vmatmul.mubr.msk.f32.gmra.mrb[20].mxu1 %vm2108_vm10, %v4115_v63 }
 0x5b6   : > { %v4021_v16 = vpop.permute.xlu1 %4020  ;;  %v4117_v51 = vld [vmem:[#allocation3 + $0xb8] sm:$0xff] }
 0x5b7   : > { %4089 = vst.msk [vmem:[#allocation3 + $0xd8] sm:$0xff] %vm2027_vm9, %v4021_v16  ;;  %v4019_v42 = vpop.permute.xlu0 %4018  ;;  %v4116_v29 = vld [vmem:[#allocation3 + $0xb0] sm:$0xff] }
 0x5b8   : > { %4088 = vst.msk [vmem:[#allocation3 + $0xd0] sm:$0xff] %vm2027_vm9, %v4019_v42  ;;  %9124 = vmatprep.mubr.msk.f32.mxu1 %vm2108_vm10, %v4116_v29 }
 0x5b9   : > { %9125 = vmatmul.mubr.msk.f32.gmra.mrb[22].mxu1 %vm2108_vm10, %v4117_v51 }
 0x5ba   : > { %v4025_v44 = vpop.permute.xlu1 %4024  ;;  %v4119_v14 = vld [vmem:[#allocation3 + $0xc8] sm:$0xff] }
 0x5bb   : > { %4091 = vst.msk [vmem:[#allocation3 + $0xe8] sm:$0xff] %vm2027_vm9, %v4025_v44  ;;  %v4023_v40 = vpop.permute.xlu0 %4022  ;;  %v4118_v30 = vld [vmem:[#allocation3 + $0xc0] sm:$0xff] }
 0x5bc   : > { %4090 = vst.msk [vmem:[#allocation3 + $0xe0] sm:$0xff] %vm2027_vm9, %v4023_v40  ;;  %9127 = vmatprep.mubr.msk.f32.mxu1 %vm2108_vm10, %v4118_v30 }
 0x5bd   : > { %9128 = vmatmul.mubr.msk.f32.gmra.mrb[24].mxu1 %vm2108_vm10, %v4119_v14 }
 0x5be   : > { %v4029_v18 = vpop.permute.xlu1 %4028  ;;  %v4121_v21 = vld [vmem:[#allocation3 + $0xd8] sm:$0xff] }
 0x5bf   : > { %v4120_v45 = vld [vmem:[#allocation3 + $0xd0] sm:$0xff]  ;;  %v4027_v46 = vpop.permute.xlu0 %4026  ;;  %4093 = vst.msk [vmem:[#allocation3 + $0xf8] sm:$0xff] %vm2027_vm9, %v4029_v18 }
 0x5c0   : > { %9130 = vmatprep.mubr.msk.f32.mxu1 %vm2108_vm10, %v4120_v45  ;;  %4092 = vst.msk [vmem:[#allocation3 + $0xf0] sm:$0xff] %vm2027_vm9, %v4027_v46 }
 0x5c1   : > { %9131 = vmatmul.mubr.msk.f32.gmra.mrb[26].mxu1 %vm2108_vm10, %v4121_v21 }
 0x5c2   : > { %v4123_v35 = vld [vmem:[#allocation3 + $0xe8] sm:$0xff] }
 0x5c3   : > { %v4122_v22 = vld [vmem:[#allocation3 + $0xe0] sm:$0xff] }
 0x5c4   : > { %9133 = vmatprep.mubr.msk.f32.mxu1 %vm2108_vm10, %v4122_v22 }
 0x5c5   : > { %9134 = vmatmul.mubr.msk.f32.gmra.mrb[28].mxu1 %vm2108_vm10, %v4123_v35 }
 0x5c6   : > { %v4125_v34 = vld [vmem:[#allocation3 + $0xf8] sm:$0xff] }
 0x5c7   : > { %v4124_v52 = vld [vmem:[#allocation3 + $0xf0] sm:$0xff] }
 0x5c8   : > { %9136 = vmatprep.mubr.msk.f32.mxu1 %vm2108_vm10, %v4124_v52 }
 0x5c9   : > { %9137 = vmatmul.mubr.msk.f32.gmra.mrb[30].mxu1 %vm2108_vm10, %v4125_v34 }
 0x5f6   : > { %v4658_v41 = vpop.permute.xlu1 %4657 }
 0x5f7   : > { %4752 = vst.msk [vmem:[#allocation3 + $0x8] sm:$0xff] %vm675_vm2, %v4658_v41  ;;  %v4656_v10 = vpop.permute.xlu0 %4655 }
 0x5f8   : > { %4751 = vst.msk [vmem:[#allocation3] sm:$0xff] %vm675_vm2, %v4656_v10 }
 0x660   : > { %v9093_v27 = vpop.f32.mrb[0].mxu1 }
 0x661   : > { %v4310_v25 = vadd.f32 %v9093_v27, %v11788_v50  ;;  %v4304_v59 = vpop.f32.mrb[1].mxu1 }
 0x662   : > { %v4305_v61 = vadd.f32 %v11788_v50, %v4304_v59 }
 0x663   : > { %v4464_v15 = vmax.f32 %v4310_v25, 0.0 }
 0x664   : > { %v4463_v23 = vmax.f32 %v4305_v61, 0.0  ;;  %v9096_v26 = vpop.f32.mrb[2].mxu1 }
 0x665   : > { %4496 = vst.msk [vmem:[#allocation2 + $0x21] sm:$0xff] %vm330_vm0, %v4464_v15  ;;  %v4320_v31 = vadd.f32 %v9096_v26, %v11788_v50  ;;  %v4314_v0 = vpop.f32.mrb[3].mxu1 }
 0x666   : > { %4495 = vst.msk [vmem:[#allocation2 + $0x19] sm:$0xff] %vm330_vm0, %v4463_v23  ;;  %v4315_v3 = vadd.f32 %v11788_v50, %v4314_v0 }
 0x667   : > { %v4466_v43 = vmax.f32 %v4320_v31, 0.0 }
 0x668   : > { %v4465_v48 = vmax.f32 %v4315_v3, 0.0  ;;  %v9099_v62 = vpop.f32.mrb[4].mxu1 }
 0x669   : > { %4498 = vst.msk [vmem:[#allocation2 + $0x39] sm:$0xff] %vm330_vm0, %v4466_v43  ;;  %v4330_v1 = vadd.f32 %v9099_v62, %v11788_v50  ;;  %v4324_v37 = vpop.f32.mrb[5].mxu1 }
 0x66a   : > { %4497 = vst.msk [vmem:[#allocation2 + $0x31] sm:$0xff] %vm330_vm0, %v4465_v48  ;;  %v4325_v20 = vadd.f32 %v11788_v50, %v4324_v37 }
 0x66b   : > { %v4468_v28 = vmax.f32 %v4330_v1, 0.0 }
 0x66c   : > { %v4467_v54 = vmax.f32 %v4325_v20, 0.0  ;;  %v9102_v53 = vpop.f32.mrb[6].mxu1  ;;  %v11802_v56 = vld [vmem:[#allocation2 + $0x21] sm:$0xff] }
 0x66d   : > { %4500 = vst.msk [vmem:[#allocation2 + $0x51] sm:$0xff] %vm330_vm0, %v4468_v28  ;;  %v4340_v60 = vadd.f32 %v9102_v53, %v11788_v50  ;;  %4661 = vrot.lane.b32.xlu1 %v11802_v56, %s9448_s26  ;;  %v4334_v2 = vpop.f32.mrb[7].mxu1  ;;  %v11808_v11 = vld [vmem:[#allocation2 + $0x19] sm:$0xff] }
 0x66e   : > { %v11810_v12 = vld [vmem:[#allocation2 + $0x20] sm:$0xff]  ;;  %4499 = vst.msk [vmem:[#allocation2 + $0x49] sm:$0xff] %vm330_vm0, %v4467_v54  ;;  %v4335_v36 = vadd.f32 %v11788_v50, %v4334_v2  ;;  %4659 = vrot.lane.b32.xlu0 %v11808_v11, %s9448_s26  ;;  %v11818_v47 = vld [vmem:[#allocation2 + $0x18] sm:$0xff] }
 0x66f   : > { %4562 = vst.msk [vmem:[#allocation3 + $0x18] sm:$0xff] %vm330_vm0, %v11810_v12  ;;  %v4470_v17 = vmax.f32 %v4340_v60, 0.0  ;;  %4561 = vst.msk [vmem:[#allocation3 + $0x10] sm:$0xff] %vm330_vm0, %v11818_v47 }
 0x670   : > { %v4469_v49 = vmax.f32 %v4335_v36, 0.0  ;;  %v9105_v39 = vpop.f32.mrb[8].mxu1  ;;  %v11822_v57 = vld [vmem:[#allocation2 + $0x39] sm:$0xff] }
 0x671   : > { %4502 = vst.msk [vmem:[#allocation2 + $0x69] sm:$0xff] %vm330_vm0, %v4470_v17  ;;  %v4350_v5 = vadd.f32 %v9105_v39, %v11788_v50  ;;  %4665 = vrot.lane.b32.xlu1 %v11822_v57, %s9448_s26  ;;  %v4344_v32 = vpop.f32.mrb[9].mxu1  ;;  %v11828_v8 = vld [vmem:[#allocation2 + $0x31] sm:$0xff] }
 0x672   : > { %v11830_v7 = vld [vmem:[#allocation2 + $0x38] sm:$0xff]  ;;  %4501 = vst.msk [vmem:[#allocation2 + $0x61] sm:$0xff] %vm330_vm0, %v4469_v49  ;;  %v4345_v33 = vadd.f32 %v11788_v50, %v4344_v32  ;;  %4663 = vrot.lane.b32.xlu0 %v11828_v8, %s9448_s26  ;;  %v11838_v9 = vld [vmem:[#allocation2 + $0x30] sm:$0xff] }
 0x673   : > { %4564 = vst.msk [vmem:[#allocation3 + $0x28] sm:$0xff] %vm330_vm0, %v11830_v7  ;;  %v4472_v24 = vmax.f32 %v4350_v5, 0.0  ;;  %4563 = vst.msk [vmem:[#allocation3 + $0x20] sm:$0xff] %vm330_vm0, %v11838_v9 }
 0x674   : > { %v4471_v13 = vmax.f32 %v4345_v33, 0.0  ;;  %v9108_v38 = vpop.f32.mrb[10].mxu1  ;;  %v11842_v58 = vld [vmem:[#allocation2 + $0x51] sm:$0xff] }
 0x675   : > { %4504 = vst.msk [vmem:[#allocation2 + $0x81] sm:$0xff] %vm330_vm0, %v4472_v24  ;;  %v4360_v63 = vadd.f32 %v9108_v38, %v11788_v50  ;;  %4669 = vrot.lane.b32.xlu1 %v11842_v58, %s9448_s26  ;;  %v4354_v16 = vpop.f32.mrb[11].mxu1  ;;  %v11848_v42 = vld [vmem:[#allocation2 + $0x49] sm:$0xff] }
 0x676   : > { %v11850_v29 = vld [vmem:[#allocation2 + $0x50] sm:$0xff]  ;;  %4503 = vst.msk [vmem:[#allocation2 + $0x79] sm:$0xff] %vm330_vm0, %v4471_v13  ;;  %v4355_v51 = vadd.f32 %v11788_v50, %v4354_v16  ;;  %4667 = vrot.lane.b32.xlu0 %v11848_v42, %s9448_s26  ;;  %v11858_v44 = vld [vmem:[#allocation2 + $0x48] sm:$0xff] }
 0x677   : > { %4566 = vst.msk [vmem:[#allocation3 + $0x38] sm:$0xff] %vm330_vm0, %v11850_v29  ;;  %v4474_v40 = vmax.f32 %v4360_v63, 0.0  ;;  %4565 = vst.msk [vmem:[#allocation3 + $0x30] sm:$0xff] %vm330_vm0, %v11858_v44 }
 0x678   : > { %v4473_v30 = vmax.f32 %v4355_v51, 0.0  ;;  %v9111_v14 = vpop.f32.mrb[12].mxu1  ;;  %v11862_v18 = vld [vmem:[#allocation2 + $0x69] sm:$0xff] }
 0x679   : > { %4506 = vst.msk [vmem:[#allocation2 + $0x99] sm:$0xff] %vm330_vm0, %v4474_v40  ;;  %v4370_v45 = vadd.f32 %v9111_v14, %v11788_v50  ;;  %4673 = vrot.lane.b32.xlu1 %v11862_v18, %s9448_s26  ;;  %v4364_v46 = vpop.f32.mrb[13].mxu1  ;;  %v11868_v21 = vld [vmem:[#allocation2 + $0x61] sm:$0xff] }
 0x67a   : > { %v11870_v22 = vld [vmem:[#allocation2 + $0x68] sm:$0xff]  ;;  %4505 = vst.msk [vmem:[#allocation2 + $0x91] sm:$0xff] %vm330_vm0, %v4473_v30  ;;  %v4365_v35 = vadd.f32 %v11788_v50, %v4364_v46  ;;  %4671 = vrot.lane.b32.xlu0 %v11868_v21, %s9448_s26  ;;  %v11878_v34 = vld [vmem:[#allocation2 + $0x60] sm:$0xff] }
 0x67b   : > { %4568 = vst.msk [vmem:[#allocation3 + $0x48] sm:$0xff] %vm330_vm0, %v11870_v22  ;;  %v4476_v52 = vmax.f32 %v4370_v45, 0.0  ;;  %4567 = vst.msk [vmem:[#allocation3 + $0x40] sm:$0xff] %vm330_vm0, %v11878_v34 }
 0x67c   : > { %v4475_v55 = vmax.f32 %v4365_v35, 0.0  ;;  %v9114_v4 = vpop.f32.mrb[14].mxu1  ;;  %v11882_v6 = vld [vmem:[#allocation2 + $0x81] sm:$0xff] }
 0x67d   : > { %4508 = vst.msk [vmem:[#allocation2 + $0xb1] sm:$0xff] %vm330_vm0, %v4476_v52  ;;  %v4380_v19 = vadd.f32 %v9114_v4, %v11788_v50  ;;  %4677 = vrot.lane.b32.xlu1 %v11882_v6, %s9448_s26  ;;  %v4374_v41 = vpop.f32.mrb[15].mxu1  ;;  %v11888_v10 = vld [vmem:[#allocation2 + $0x79] sm:$0xff] }
 0x67e   : > { %v11890_v27 = vld [vmem:[#allocation2 + $0x80] sm:$0xff]  ;;  %4507 = vst.msk [vmem:[#allocation2 + $0xa9] sm:$0xff] %vm330_vm0, %v4475_v55  ;;  %v4375_v25 = vadd.f32 %v11788_v50, %v4374_v41  ;;  %4675 = vrot.lane.b32.xlu0 %v11888_v10, %s9448_s26  ;;  %v11898_v59 = vld [vmem:[#allocation2 + $0x78] sm:$0xff] }
 0x67f   : > { %4570 = vst.msk [vmem:[#allocation3 + $0x58] sm:$0xff] %vm330_vm0, %v11890_v27  ;;  %v4478_v61 = vmax.f32 %v4380_v19, 0.0  ;;  %4569 = vst.msk [vmem:[#allocation3 + $0x50] sm:$0xff] %vm330_vm0, %v11898_v59 }
 0x680   : > { %v4477_v15 = vmax.f32 %v4375_v25, 0.0  ;;  %v9117_v23 = vpop.f32.mrb[16].mxu1  ;;  %v11902_v26 = vld [vmem:[#allocation2 + $0x99] sm:$0xff] }
 0x681   : > { %4510 = vst.msk [vmem:[#allocation2 + $0xc9] sm:$0xff] %vm330_vm0, %v4478_v61  ;;  %v4390_v31 = vadd.f32 %v9117_v23, %v11788_v50  ;;  %4681 = vrot.lane.b32.xlu1 %v11902_v26, %s9448_s26  ;;  %v4384_v0 = vpop.f32.mrb[17].mxu1  ;;  %v11908_v3 = vld [vmem:[#allocation2 + $0x91] sm:$0xff] }
 0x682   : > { %v11910_v43 = vld [vmem:[#allocation2 + $0x98] sm:$0xff]  ;;  %4509 = vst.msk [vmem:[#allocation2 + $0xc1] sm:$0xff] %vm330_vm0, %v4477_v15  ;;  %v4385_v48 = vadd.f32 %v11788_v50, %v4384_v0  ;;  %4679 = vrot.lane.b32.xlu0 %v11908_v3, %s9448_s26  ;;  %v11918_v62 = vld [vmem:[#allocation2 + $0x90] sm:$0xff] }
 0x683   : > { %4572 = vst.msk [vmem:[#allocation3 + $0x68] sm:$0xff] %vm330_vm0, %v11910_v43  ;;  %v4480_v1 = vmax.f32 %v4390_v31, 0.0  ;;  %4571 = vst.msk [vmem:[#allocation3 + $0x60] sm:$0xff] %vm330_vm0, %v11918_v62 }
 0x684   : > { %v4479_v37 = vmax.f32 %v4385_v48, 0.0  ;;  %v9120_v20 = vpop.f32.mrb[18].mxu1  ;;  %v11922_v28 = vld [vmem:[#allocation2 + $0xb1] sm:$0xff] }
 0x685   : > { %4512 = vst.msk [vmem:[#allocation2 + $0xe1] sm:$0xff] %vm330_vm0, %v4480_v1  ;;  %v4400_v54 = vadd.f32 %v9120_v20, %v11788_v50  ;;  %4685 = vrot.lane.b32.xlu1 %v11922_v28, %s9448_s26  ;;  %v4394_v53 = vpop.f32.mrb[19].mxu1  ;;  %v11928_v60 = vld [vmem:[#allocation2 + $0xa9] sm:$0xff] }
 0x686   : > { %v11930_v2 = vld [vmem:[#allocation2 + $0xb0] sm:$0xff]  ;;  %4511 = vst.msk [vmem:[#allocation2 + $0xd9] sm:$0xff] %vm330_vm0, %v4479_v37  ;;  %v4395_v36 = vadd.f32 %v11788_v50, %v4394_v53  ;;  %4683 = vrot.lane.b32.xlu0 %v11928_v60, %s9448_s26  ;;  %v11938_v17 = vld [vmem:[#allocation2 + $0xa8] sm:$0xff] }
 0x687   : > { %4574 = vst.msk [vmem:[#allocation3 + $0x78] sm:$0xff] %vm330_vm0, %v11930_v2  ;;  %v4482_v49 = vmax.f32 %v4400_v54, 0.0  ;;  %4573 = vst.msk [vmem:[#allocation3 + $0x70] sm:$0xff] %vm330_vm0, %v11938_v17 }
 0x688   : > { %v4481_v39 = vmax.f32 %v4395_v36, 0.0  ;;  %v9123_v5 = vpop.f32.mrb[20].mxu1  ;;  %v11942_v32 = vld [vmem:[#allocation2 + $0xc9] sm:$0xff] }
 0x689   : > { %4514 = vst.msk [vmem:[#allocation2 + $0xf9] sm:$0xff] %vm330_vm0, %v4482_v49  ;;  %v4410_v33 = vadd.f32 %v9123_v5, %v11788_v50  ;;  %4689 = vrot.lane.b32.xlu1 %v11942_v32, %s9448_s26  ;;  %v4404_v24 = vpop.f32.mrb[21].mxu1  ;;  %v11948_v13 = vld [vmem:[#allocation2 + $0xc1] sm:$0xff] }
 0x68a   : > { %v11950_v38 = vld [vmem:[#allocation2 + $0xc8] sm:$0xff]  ;;  %4513 = vst.msk [vmem:[#allocation2 + $0xf1] sm:$0xff] %vm330_vm0, %v4481_v39  ;;  %v4405_v63 = vadd.f32 %v11788_v50, %v4404_v24  ;;  %4687 = vrot.lane.b32.xlu0 %v11948_v13, %s9448_s26  ;;  %v11958_v16 = vld [vmem:[#allocation2 + $0xc0] sm:$0xff] }
 0x68b   : > { %4576 = vst.msk [vmem:[#allocation3 + $0x88] sm:$0xff] %vm330_vm0, %v11950_v38  ;;  %v4484_v51 = vmax.f32 %v4410_v33, 0.0  ;;  %4575 = vst.msk [vmem:[#allocation3 + $0x80] sm:$0xff] %vm330_vm0, %v11958_v16 }
 0x68c   : > { %v4483_v40 = vmax.f32 %v4405_v63, 0.0  ;;  %v9126_v30 = vpop.f32.mrb[22].mxu1  ;;  %v11962_v14 = vld [vmem:[#allocation2 + $0xe1] sm:$0xff] }
 0x68d   : > { %4516 = vst.msk [vmem:[#allocation2 + $0x111] sm:$0xff] %vm330_vm0, %v4484_v51  ;;  %v4420_v45 = vadd.f32 %v9126_v30, %v11788_v50  ;;  %4693 = vrot.lane.b32.xlu1 %v11962_v14, %s9448_s26  ;;  %v4414_v46 = vpop.f32.mrb[23].mxu1  ;;  %v11968_v35 = vld [vmem:[#allocation2 + $0xd9] sm:$0xff] }
 0x68e   : > { %v11970_v52 = vld [vmem:[#allocation2 + $0xe0] sm:$0xff]  ;;  %4515 = vst.msk [vmem:[#allocation2 + $0x109] sm:$0xff] %vm330_vm0, %v4483_v40  ;;  %v4415_v55 = vadd.f32 %v11788_v50, %v4414_v46  ;;  %4691 = vrot.lane.b32.xlu0 %v11968_v35, %s9448_s26  ;;  %v11978_v4 = vld [vmem:[#allocation2 + $0xd8] sm:$0xff] }
 0x68f   : > { %4578 = vst.msk [vmem:[#allocation3 + $0x98] sm:$0xff] %vm330_vm0, %v11970_v52  ;;  %v4486_v19 = vmax.f32 %v4420_v45, 0.0  ;;  %4577 = vst.msk [vmem:[#allocation3 + $0x90] sm:$0xff] %vm330_vm0, %v11978_v4 }
 0x690   : > { %v4485_v41 = vmax.f32 %v4415_v55, 0.0  ;;  %v9129_v25 = vpop.f32.mrb[24].mxu1  ;;  %v11982_v61 = vld [vmem:[#allocation2 + $0xf9] sm:$0xff] }
 0x691   : > { %4518 = vst.msk [vmem:[#allocation2 + $0x129] sm:$0xff] %vm330_vm0, %v4486_v19  ;;  %v4430_v15 = vadd.f32 %v9129_v25, %v11788_v50  ;;  %4697 = vrot.lane.b32.xlu1 %v11982_v61, %s9448_s26  ;;  %v4424_v23 = vpop.f32.mrb[25].mxu1  ;;  %v11988_v31 = vld [vmem:[#allocation2 + $0xf1] sm:$0xff] }
 0x692   : > { %v11990_v0 = vld [vmem:[#allocation2 + $0xf8] sm:$0xff]  ;;  %4517 = vst.msk [vmem:[#allocation2 + $0x121] sm:$0xff] %vm330_vm0, %v4485_v41  ;;  %v4425_v48 = vadd.f32 %v11788_v50, %v4424_v23  ;;  %4695 = vrot.lane.b32.xlu0 %v11988_v31, %s9448_s26  ;;  %v11998_v1 = vld [vmem:[#allocation2 + $0xf0] sm:$0xff] }
 0x693   : > { %4580 = vst.msk [vmem:[#allocation3 + $0xa8] sm:$0xff] %vm330_vm0, %v11990_v0  ;;  %v4488_v37 = vmax.f32 %v4430_v15, 0.0  ;;  %4579 = vst.msk [vmem:[#allocation3 + $0xa0] sm:$0xff] %vm330_vm0, %v11998_v1 }
 0x694   : > { %v4487_v20 = vmax.f32 %v4425_v48, 0.0  ;;  %v9132_v54 = vpop.f32.mrb[26].mxu1  ;;  %v12002_v53 = vld [vmem:[#allocation2 + $0x111] sm:$0xff] }
 0x695   : > { %4520 = vst.msk [vmem:[#allocation2 + $0x141] sm:$0xff] %vm330_vm0, %v4488_v37  ;;  %v4440_v36 = vadd.f32 %v9132_v54, %v11788_v50  ;;  %4701 = vrot.lane.b32.xlu1 %v12002_v53, %s9448_s26  ;;  %v4434_v49 = vpop.f32.mrb[27].mxu1  ;;  %v12008_v39 = vld [vmem:[#allocation2 + $0x109] sm:$0xff] }
 0x696   : > { %v12010_v5 = vld [vmem:[#allocation2 + $0x110] sm:$0xff]  ;;  %4519 = vst.msk [vmem:[#allocation2 + $0x139] sm:$0xff] %vm330_vm0, %v4487_v20  ;;  %v4435_v33 = vadd.f32 %v11788_v50, %v4434_v49  ;;  %4699 = vrot.lane.b32.xlu0 %v12008_v39, %s9448_s26  ;;  %v12018_v24 = vld [vmem:[#allocation2 + $0x108] sm:$0xff] }
 0x697   : > { %4582 = vst.msk [vmem:[#allocation3 + $0xb8] sm:$0xff] %vm330_vm0, %v12010_v5  ;;  %v4490_v63 = vmax.f32 %v4440_v36, 0.0  ;;  %4581 = vst.msk [vmem:[#allocation3 + $0xb0] sm:$0xff] %vm330_vm0, %v12018_v24 }
 0x698   : > { %v4489_v51 = vmax.f32 %v4435_v33, 0.0  ;;  %v9135_v40 = vpop.f32.mrb[28].mxu1  ;;  %v12022_v30 = vld [vmem:[#allocation2 + $0x129] sm:$0xff] }
 0x699   : > { %4522 = vst.msk [vmem:[#allocation2 + $0x159] sm:$0xff] %vm330_vm0, %v4490_v63  ;;  %v4450_v45 = vadd.f32 %v9135_v40, %v11788_v50  ;;  %4705 = vrot.lane.b32.xlu1 %v12022_v30, %s9448_s26  ;;  %v4444_v46 = vpop.f32.mrb[29].mxu1  ;;  %v12028_v55 = vld [vmem:[#allocation2 + $0x121] sm:$0xff] }
 0x69a   : > { %v12030_v19 = vld [vmem:[#allocation2 + $0x128] sm:$0xff]  ;;  %4521 = vst.msk [vmem:[#allocation2 + $0x151] sm:$0xff] %vm330_vm0, %v4489_v51  ;;  %v4445_v41 = vadd.f32 %v11788_v50, %v4444_v46  ;;  %4703 = vrot.lane.b32.xlu0 %v12028_v55, %s9448_s26  ;;  %v12038_v25 = vld [vmem:[#allocation2 + $0x120] sm:$0xff] }
 0x69b   : > { %4584 = vst.msk [vmem:[#allocation3 + $0xc8] sm:$0xff] %vm330_vm0, %v12030_v19  ;;  %v4492_v15 = vmax.f32 %v4450_v45, 0.0  ;;  %4583 = vst.msk [vmem:[#allocation3 + $0xc0] sm:$0xff] %vm330_vm0, %v12038_v25 }
 0x69c   : > { %v4491_v23 = vmax.f32 %v4445_v41, 0.0  ;;  %v12042_v48 = vld [vmem:[#allocation2 + $0x141] sm:$0xff]  ;;  %v9138_v37 = vpop.f32.mrb[30].mxu1 }
 0x69d   : > { %4524 = vst.msk [vmem:[#allocation2 + $0x171] sm:$0xff] %vm330_vm0, %v4492_v15  ;;  %4709 = vrot.lane.b32.xlu1 %v12042_v48, %s9448_s26  ;;  %v12047_v20 = vld [vmem:[#allocation2 + $0x139] sm:$0xff]  ;;  %v4460_v36 = vadd.f32 %v9138_v37, %v11788_v50  ;;  %v4454_v49 = vpop.f32.mrb[31].mxu1 }
 0x69e   : > { %v12049_v54 = vld [vmem:[#allocation2 + $0x140] sm:$0xff]  ;;  %4523 = vst.msk [vmem:[#allocation2 + $0x169] sm:$0xff] %vm330_vm0, %v4491_v23  ;;  %4707 = vrot.lane.b32.xlu0 %v12047_v20, %s9448_s26  ;;  %v12057_v33 = vld [vmem:[#allocation2 + $0x138] sm:$0xff]  ;;  %v4455_v63 = vadd.f32 %v11788_v50, %v4454_v49 }
 0x69f   : > { %4586 = vst.msk [vmem:[#allocation3 + $0xd8] sm:$0xff] %vm330_vm0, %v12049_v54  ;;  %4585 = vst.msk [vmem:[#allocation3 + $0xd0] sm:$0xff] %vm330_vm0, %v12057_v33  ;;  %v4494_v51 = vmax.f32 %v4460_v36, 0.0  ;;  %v4784_v36 = vld [vmem:[#allocation2 + $0xa] sm:$0xff] }
 0x6a0   : > { %v12062_v40 = vld [vmem:[#allocation2 + $0x159] sm:$0xff]  ;;  %v4493_v45 = vmax.f32 %v4455_v63, 0.0  ;;  %v4783_v63 = vld [vmem:[#allocation2 + $0x2] sm:$0xff] }
 0x6a1   : > { %4713 = vrot.lane.b32.xlu1 %v12062_v40, %s9448_s26  ;;  %v12066_v46 = vld [vmem:[#allocation2 + $0x151] sm:$0xff]  ;;  %4526 = vst.msk [vmem:[#allocation2 + $0x189] sm:$0xff] %vm330_vm0, %v4494_v51  ;;  %v12098_v51 = vld [vmem:[#allocation2 + $0x22] sm:$0xff] }
 0x6a2   : > { %14119 = vst [vmem:[#allocation7_spill] sm:$0xff] %v12066_v46  ;;  %v12068_v41 = vld [vmem:[#allocation2 + $0x158] sm:$0xff]  ;;  %4711 = vrot.lane.b32.xlu0 %v12066_v46, %s9448_s26  ;;  %v12075_v50 = vld [vmem:[#allocation2 + $0x150] sm:$0xff]  ;;  %4525 = vst.msk [vmem:[#allocation2 + $0x181] sm:$0xff] %vm330_vm0, %v4493_v45 }
 0x6a3   : > { %4588 = vst.msk [vmem:[#allocation3 + $0xe8] sm:$0xff] %vm330_vm0, %v12068_v41  ;;  %4587 = vst.msk [vmem:[#allocation3 + $0xe0] sm:$0xff] %vm330_vm0, %v12075_v50  ;;  %v12102_v45 = vld [vmem:[#allocation2 + $0x1a] sm:$0xff] }
 0x6a4   : > { %v12080_v15 = vld [vmem:[#allocation2 + $0x171] sm:$0xff]  ;;  %14122 = vst [vmem:[#allocation10_spill] sm:$0xff] %v12098_v51  ;;  %14123 = vst [vmem:[#allocation11_spill] sm:$0xff] %v12102_v45 }
 0x6a5   : > { %14120 = vst [vmem:[#allocation8_spill] sm:$0xff] %v12080_v15  ;;  %4717 = vrot.lane.b32.xlu1 %v12080_v15, %s9448_s26  ;;  %v12084_v23 = vld [vmem:[#allocation2 + $0x169] sm:$0xff]  ;;  %v12110_v15 = vld [vmem:[#allocation2 + $0x32] sm:$0xff] }
 0x6a6   : > { %14121 = vst [vmem:[#allocation9_spill] sm:$0xff] %v12084_v23  ;;  %v12086_v37 = vld [vmem:[#allocation2 + $0x170] sm:$0xff]  ;;  %4715 = vrot.lane.b32.xlu0 %v12084_v23, %s9448_s26  ;;  %v12092_v49 = vld [vmem:[#allocation2 + $0x168] sm:$0xff]  ;;  %v12106_v23 = vld [vmem:[#allocation2 + $0x3a] sm:$0xff] }
 0x6a7   : > { %4590 = vst.msk [vmem:[#allocation3 + $0xf8] sm:$0xff] %vm330_vm0, %v12086_v37  ;;  %4589 = vst.msk [vmem:[#allocation3 + $0xf0] sm:$0xff] %vm330_vm0, %v12092_v49  ;;  %v12213_v46 = vld [vmem:[#allocation2 + $0x172] sm:$0xff] }
 0x6a8   : > { %14124 = vst [vmem:[#allocation12_spill] sm:$0xff] %v12106_v23  ;;  %14125 = vst [vmem:[#allocation13_spill] sm:$0xff] %v12110_v15 }
 0x6a9   : > { %4849 = vrot.lane.b32.xlu1 %v4784_v36, %s9449_s27  ;;  %v12114_v36 = vld [vmem:[#allocation2 + $0x52] sm:$0xff] }
 0x6aa   : > { %4847 = vrot.lane.b32.xlu0 %v4783_v63, %s9449_s27  ;;  %14126 = vst [vmem:[#allocation14_spill] sm:$0xff] %v12114_v36  ;;  %v12118_v63 = vld [vmem:[#allocation2 + $0x4a] sm:$0xff] }
 0x6ab   : > { %14127 = vst [vmem:[#allocation15_spill] sm:$0xff] %v12118_v63 }
 0x6ad   : > { %4853 = vrot.lane.b32.xlu1 %v12098_v51, %s9449_s27 }
 0x6ae   : > { %4851 = vrot.lane.b32.xlu0 %v12102_v45, %s9449_s27  ;;  %v12122_v45 = vld [vmem:[#allocation2 + $0x6a] sm:$0xff] }
 0x6af   : > { %14128 = vst [vmem:[#allocation16_spill] sm:$0xff] %v12122_v45 }
 0x6b1   : > { %4857 = vrot.lane.b32.xlu1 %v12106_v23, %s9449_s27  ;;  %v12126_v23 = vld [vmem:[#allocation2 + $0x62] sm:$0xff] }
 0x6b2   : > { %4855 = vrot.lane.b32.xlu0 %v12110_v15, %s9449_s27  ;;  %14129 = vst [vmem:[#allocation17_spill] sm:$0xff] %v12126_v23  ;;  %v12130_v15 = vld [vmem:[#allocation2 + $0x82] sm:$0xff] }
 0x6b3   : > { %14130 = vst [vmem:[#allocation18_spill] sm:$0xff] %v12130_v15 }
 0x6b5   : > { %4861 = vrot.lane.b32.xlu1 %v12114_v36, %s9449_s27  ;;  %v12134_v36 = vld [vmem:[#allocation2 + $0x7a] sm:$0xff] }
 0x6b6   : > { %4859 = vrot.lane.b32.xlu0 %v12118_v63, %s9449_s27  ;;  %14131 = vst [vmem:[#allocation19_spill] sm:$0xff] %v12134_v36  ;;  %v12138_v63 = vld [vmem:[#allocation2 + $0x9a] sm:$0xff] }
 0x6b7   : > { %14132 = vst [vmem:[#allocation20_spill] sm:$0xff] %v12138_v63 }
 0x6b9   : > { %4865 = vrot.lane.b32.xlu1 %v12122_v45, %s9449_s27  ;;  %v12142_v45 = vld [vmem:[#allocation2 + $0x92] sm:$0xff] }
 0x6ba   : > { %4863 = vrot.lane.b32.xlu0 %v12126_v23, %s9449_s27  ;;  %14133 = vst [vmem:[#allocation21_spill] sm:$0xff] %v12142_v45  ;;  %v12146_v23 = vld [vmem:[#allocation2 + $0xb2] sm:$0xff] }
 0x6bb   : > { %14134 = vst [vmem:[#allocation22_spill] sm:$0xff] %v12146_v23 }
 0x6bd   : > { %4869 = vrot.lane.b32.xlu1 %v12130_v15, %s9449_s27  ;;  %v12150_v15 = vld [vmem:[#allocation2 + $0xaa] sm:$0xff] }
 0x6be   : > { %4867 = vrot.lane.b32.xlu0 %v12134_v36, %s9449_s27  ;;  %14135 = vst [vmem:[#allocation23_spill] sm:$0xff] %v12150_v15  ;;  %v12154_v36 = vld [vmem:[#allocation2 + $0xca] sm:$0xff] }
 0x6bf   : > { %14136 = vst [vmem:[#allocation24_spill] sm:$0xff] %v12154_v36 }
 0x6c1   : > { %4873 = vrot.lane.b32.xlu1 %v12138_v63, %s9449_s27  ;;  %v12158_v63 = vld [vmem:[#allocation2 + $0xc2] sm:$0xff] }
 0x6c2   : > { %4871 = vrot.lane.b32.xlu0 %v12142_v45, %s9449_s27  ;;  %14137 = vst [vmem:[#allocation25_spill] sm:$0xff] %v12158_v63  ;;  %v12162_v45 = vld [vmem:[#allocation2 + $0xe2] sm:$0xff] }
 0x6c3   : > { %14138 = vst [vmem:[#allocation26_spill] sm:$0xff] %v12162_v45 }
 0x6c5   : > { %4877 = vrot.lane.b32.xlu1 %v12146_v23, %s9449_s27  ;;  %v12166_v23 = vld [vmem:[#allocation2 + $0xda] sm:$0xff] }
 0x6c6   : > { %4875 = vrot.lane.b32.xlu0 %v12150_v15, %s9449_s27  ;;  %14139 = vst [vmem:[#allocation27_spill] sm:$0xff] %v12166_v23  ;;  %v12170_v15 = vld [vmem:[#allocation2 + $0xfa] sm:$0xff] }
 0x6c7   : > { %14140 = vst [vmem:[#allocation28_spill] sm:$0xff] %v12170_v15 }
 0x6c9   : > { %4881 = vrot.lane.b32.xlu1 %v12154_v36, %s9449_s27  ;;  %v12174_v36 = vld [vmem:[#allocation2 + $0xf2] sm:$0xff] }
 0x6ca   : > { %4879 = vrot.lane.b32.xlu0 %v12158_v63, %s9449_s27  ;;  %14141 = vst [vmem:[#allocation29_spill] sm:$0xff] %v12174_v36  ;;  %v12178_v63 = vld [vmem:[#allocation2 + $0x112] sm:$0xff] }
 0x6cb   : > { %14142 = vst [vmem:[#allocation30_spill] sm:$0xff] %v12178_v63 }
 0x6cd   : > { %4885 = vrot.lane.b32.xlu1 %v12162_v45, %s9449_s27  ;;  %v12182_v45 = vld [vmem:[#allocation2 + $0x10a] sm:$0xff] }
 0x6ce   : > { %4883 = vrot.lane.b32.xlu0 %v12166_v23, %s9449_s27  ;;  %14143 = vst [vmem:[#allocation31_spill] sm:$0xff] %v12182_v45  ;;  %v12186_v23 = vld [vmem:[#allocation2 + $0x12a] sm:$0xff] }
 0x6cf   : > { %14144 = vst [vmem:[#allocation32_spill] sm:$0xff] %v12186_v23 }
 0x6d1   : > { %4889 = vrot.lane.b32.xlu1 %v12170_v15, %s9449_s27  ;;  %v12190_v15 = vld [vmem:[#allocation2 + $0x122] sm:$0xff] }
 0x6d2   : > { %4887 = vrot.lane.b32.xlu0 %v12174_v36, %s9449_s27  ;;  %14145 = vst [vmem:[#allocation33_spill] sm:$0xff] %v12190_v15  ;;  %v12194_v36 = vld [vmem:[#allocation2 + $0x142] sm:$0xff] }
 0x6d3   : > { %14146 = vst [vmem:[#allocation34_spill] sm:$0xff] %v12194_v36 }
 0x6d5   : > { %4893 = vrot.lane.b32.xlu1 %v12178_v63, %s9449_s27  ;;  %v12198_v63 = vld [vmem:[#allocation2 + $0x13a] sm:$0xff] }
 0x6d6   : > { %4891 = vrot.lane.b32.xlu0 %v12182_v45, %s9449_s27  ;;  %14147 = vst [vmem:[#allocation35_spill] sm:$0xff] %v12198_v63 }
 0x6d9   : > { %4897 = vrot.lane.b32.xlu1 %v12186_v23, %s9449_s27  ;;  %v12203_v23 = vld [vmem:[#allocation2 + $0x15a] sm:$0xff] }
 0x6da   : > { %4895 = vrot.lane.b32.xlu0 %v12190_v15, %s9449_s27  ;;  %v12208_v15 = vld [vmem:[#allocation2 + $0x152] sm:$0xff] }
 0x6db   : > { %14148 = vst [vmem:[#allocation36_spill] sm:$0xff] %v12208_v15 }
 0x6dd   : > { %4901 = vrot.lane.b32.xlu1 %v12194_v36, %s9449_s27 }
 0x6de   : > { %4899 = vrot.lane.b32.xlu0 %v12198_v63, %s9449_s27 }
 0x6df   : > { %v4662_v45 = vpop.permute.xlu1 %4661 }
 0x6e0   : > { %4754 = vst.msk [vmem:[#allocation3 + $0x18] sm:$0xff] %vm675_vm2, %v4662_v45  ;;  %v4660_v51 = vpop.permute.xlu0 %4659 }
 0x6e1   : > { %4753 = vst.msk [vmem:[#allocation3 + $0x10] sm:$0xff] %vm675_vm2, %v4660_v51  ;;  %4905 = vrot.lane.b32.xlu1 %v12203_v23, %s9449_s27  ;;  %v12218_v51 = vld [vmem:[#allocation2 + $0x16a] sm:$0xff] }
 0x6e2   : > { %4903 = vrot.lane.b32.xlu0 %v12208_v15, %s9449_s27 }
 0x6e3   : > { %v4666_v36 = vpop.permute.xlu1 %4665 }
 0x6e4   : > { %4756 = vst.msk [vmem:[#allocation3 + $0x28] sm:$0xff] %vm675_vm2, %v4666_v36  ;;  %v4664_v63 = vpop.permute.xlu0 %4663 }
 0x6e5   : > { %4755 = vst.msk [vmem:[#allocation3 + $0x20] sm:$0xff] %vm675_vm2, %v4664_v63  ;;  %4909 = vrot.lane.b32.xlu1 %v12213_v46, %s9449_s27 }
 0x6e6   : > { %4907 = vrot.lane.b32.xlu0 %v12218_v51, %s9449_s27 }
 0x6e7   : > { %v4670_v45 = vpop.permute.xlu1 %4669 }
 0x6e8   : > { %4758 = vst.msk [vmem:[#allocation3 + $0x38] sm:$0xff] %vm675_vm2, %v4670_v45  ;;  %v4668_v15 = vpop.permute.xlu0 %4667 }
 0x6e9   : > { %4757 = vst.msk [vmem:[#allocation3 + $0x30] sm:$0xff] %vm675_vm2, %v4668_v15  ;;  %5041 = vrot.lane.b32.xlu1 %v11810_v12, %s13995_s28 }
 0x6ea   : > { %5039 = vrot.lane.b32.xlu0 %v11818_v47, %s13995_s28 }
 0x6eb   : > { %v4674_v36 = vpop.permute.xlu1 %4673 }
 0x6ec   : > { %4760 = vst.msk [vmem:[#allocation3 + $0x48] sm:$0xff] %vm675_vm2, %v4674_v36  ;;  %v4672_v63 = vpop.permute.xlu0 %4671 }
 0x6ed   : > { %4759 = vst.msk [vmem:[#allocation3 + $0x40] sm:$0xff] %vm675_vm2, %v4672_v63  ;;  %5045 = vrot.lane.b32.xlu1 %v11830_v7, %s13995_s28 }
 0x6ee   : > { %5043 = vrot.lane.b32.xlu0 %v11838_v9, %s13995_s28 }
 0x6ef   : > { %v4678_v45 = vpop.permute.xlu1 %4677 }
 0x6f0   : > { %4762 = vst.msk [vmem:[#allocation3 + $0x58] sm:$0xff] %vm675_vm2, %v4678_v45  ;;  %v4676_v15 = vpop.permute.xlu0 %4675 }
 0x6f1   : > { %4761 = vst.msk [vmem:[#allocation3 + $0x50] sm:$0xff] %vm675_vm2, %v4676_v15  ;;  %5049 = vrot.lane.b32.xlu1 %v11850_v29, %s13995_s28 }
 0x6f2   : > { %5047 = vrot.lane.b32.xlu0 %v11858_v44, %s13995_s28 }
 0x6f3   : > { %v4682_v12 = vpop.permute.xlu1 %4681 }
 0x6f4   : > { %4764 = vst.msk [vmem:[#allocation3 + $0x68] sm:$0xff] %vm675_vm2, %v4682_v12  ;;  %v4680_v47 = vpop.permute.xlu0 %4679 }
 0x6f5   : > { %4763 = vst.msk [vmem:[#allocation3 + $0x60] sm:$0xff] %vm675_vm2, %v4680_v47  ;;  %5053 = vrot.lane.b32.xlu1 %v11870_v22, %s13995_s28 }
 0x6f6   : > { %5051 = vrot.lane.b32.xlu0 %v11878_v34, %s13995_s28 }
 0x6f7   : > { %v4686_v36 = vpop.permute.xlu1 %4685 }
 0x6f8   : > { %4766 = vst.msk [vmem:[#allocation3 + $0x78] sm:$0xff] %vm675_vm2, %v4686_v36  ;;  %v4684_v63 = vpop.permute.xlu0 %4683 }
 0x6f9   : > { %4765 = vst.msk [vmem:[#allocation3 + $0x70] sm:$0xff] %vm675_vm2, %v4684_v63  ;;  %5057 = vrot.lane.b32.xlu1 %v11890_v27, %s13995_s28 }
 0x6fa   : > { %5055 = vrot.lane.b32.xlu0 %v11898_v59, %s13995_s28 }
 0x6fb   : > { %v4690_v45 = vpop.permute.xlu1 %4689 }
 0x6fc   : > { %4768 = vst.msk [vmem:[#allocation3 + $0x88] sm:$0xff] %vm675_vm2, %v4690_v45  ;;  %v4688_v15 = vpop.permute.xlu0 %4687 }
 0x6fd   : > { %4767 = vst.msk [vmem:[#allocation3 + $0x80] sm:$0xff] %vm675_vm2, %v4688_v15  ;;  %5061 = vrot.lane.b32.xlu1 %v11910_v43, %s13995_s28 }
 0x6fe   : > { %5059 = vrot.lane.b32.xlu0 %v11918_v62, %s13995_s28 }
 0x6ff   : > { %v4694_v12 = vpop.permute.xlu1 %4693 }
 0x700   : > { %4770 = vst.msk [vmem:[#allocation3 + $0x98] sm:$0xff] %vm675_vm2, %v4694_v12  ;;  %v4692_v47 = vpop.permute.xlu0 %4691 }
 0x701   : > { %4769 = vst.msk [vmem:[#allocation3 + $0x90] sm:$0xff] %vm675_vm2, %v4692_v47  ;;  %5065 = vrot.lane.b32.xlu1 %v11930_v2, %s13995_s28 }
 0x702   : > { %5063 = vrot.lane.b32.xlu0 %v11938_v17, %s13995_s28 }
 0x703   : > { %v4698_v36 = vpop.permute.xlu1 %4697 }
 0x704   : > { %4772 = vst.msk [vmem:[#allocation3 + $0xa8] sm:$0xff] %vm675_vm2, %v4698_v36  ;;  %v4696_v63 = vpop.permute.xlu0 %4695 }
 0x705   : > { %4771 = vst.msk [vmem:[#allocation3 + $0xa0] sm:$0xff] %vm675_vm2, %v4696_v63  ;;  %5069 = vrot.lane.b32.xlu1 %v11950_v38, %s13995_s28 }
 0x706   : > { %5067 = vrot.lane.b32.xlu0 %v11958_v16, %s13995_s28 }
 0x707   : > { %v4702_v45 = vpop.permute.xlu1 %4701 }
 0x708   : > { %4774 = vst.msk [vmem:[#allocation3 + $0xb8] sm:$0xff] %vm675_vm2, %v4702_v45  ;;  %v4700_v15 = vpop.permute.xlu0 %4699 }
 0x709   : > { %4773 = vst.msk [vmem:[#allocation3 + $0xb0] sm:$0xff] %vm675_vm2, %v4700_v15  ;;  %5073 = vrot.lane.b32.xlu1 %v11970_v52, %s13995_s28 }
 0x70a   : > { %5071 = vrot.lane.b32.xlu0 %v11978_v4, %s13995_s28 }
 0x70b   : > { %v4706_v12 = vpop.permute.xlu1 %4705 }
 0x70c   : > { %4776 = vst.msk [vmem:[#allocation3 + $0xc8] sm:$0xff] %vm675_vm2, %v4706_v12  ;;  %v4704_v47 = vpop.permute.xlu0 %4703 }
 0x70d   : > { %4775 = vst.msk [vmem:[#allocation3 + $0xc0] sm:$0xff] %vm675_vm2, %v4704_v47  ;;  %5077 = vrot.lane.b32.xlu1 %v11990_v0, %s13995_s28 }
 0x70e   : > { %5075 = vrot.lane.b32.xlu0 %v11998_v1, %s13995_s28 }
 0x70f   : > { %v4710_v36 = vpop.permute.xlu1 %4709 }
 0x710   : > { %4778 = vst.msk [vmem:[#allocation3 + $0xd8] sm:$0xff] %vm675_vm2, %v4710_v36  ;;  %v4708_v63 = vpop.permute.xlu0 %4707 }
 0x711   : > { %4777 = vst.msk [vmem:[#allocation3 + $0xd0] sm:$0xff] %vm675_vm2, %v4708_v63  ;;  %5081 = vrot.lane.b32.xlu1 %v12010_v5, %s13995_s28 }
 0x712   : > { %5079 = vrot.lane.b32.xlu0 %v12018_v24, %s13995_s28 }
 0x713   : > { %v4714_v45 = vpop.permute.xlu1 %4713 }
 0x714   : > { %4780 = vst.msk [vmem:[#allocation3 + $0xe8] sm:$0xff] %vm675_vm2, %v4714_v45  ;;  %v4712_v15 = vpop.permute.xlu0 %4711 }
 0x715   : > { %4779 = vst.msk [vmem:[#allocation3 + $0xe0] sm:$0xff] %vm675_vm2, %v4712_v15  ;;  %5085 = vrot.lane.b32.xlu1 %v12030_v19, %s13995_s28  ;;  %v5005_v15 = vld [vmem:[#allocation2 + $0x180] sm:$0xff] }
 0x716   : > { %5083 = vrot.lane.b32.xlu0 %v12038_v25, %s13995_s28 }
 0x717   : > { %v4718_v12 = vpop.permute.xlu1 %4717 }
 0x718   : > { %4782 = vst.msk [vmem:[#allocation3 + $0xf8] sm:$0xff] %vm675_vm2, %v4718_v12  ;;  %v4716_v47 = vpop.permute.xlu0 %4715 }
 0x719   : > { %4781 = vst.msk [vmem:[#allocation3 + $0xf0] sm:$0xff] %vm675_vm2, %v4716_v47  ;;  %5089 = vrot.lane.b32.xlu1 %v12049_v54, %s13995_s28  ;;  %v5006_v54 = vld [vmem:[#allocation2 + $0x188] sm:$0xff] }
 0x71a   : > { %5087 = vrot.lane.b32.xlu0 %v12057_v33, %s13995_s28 }
 0x71b   : > { %v4850_v36 = vpop.permute.xlu1 %4849 }
 0x71c   : > { %4944 = vst.msk [vmem:[#allocation3 + $0x8] sm:$0xff] %vm868_vm3, %v4850_v36  ;;  %v4848_v63 = vpop.permute.xlu0 %4847 }
 0x71d   : > { %4943 = vst.msk [vmem:[#allocation3] sm:$0xff] %vm868_vm3, %v4848_v63  ;;  %5093 = vrot.lane.b32.xlu1 %v12068_v41, %s13995_s28 }
 0x71e   : > { %5091 = vrot.lane.b32.xlu0 %v12075_v50, %s13995_s28 }
 0x71f   : > { %v4854_v19 = vpop.permute.xlu1 %4853 }
 0x720   : > { %4946 = vst.msk [vmem:[#allocation3 + $0x18] sm:$0xff] %vm868_vm3, %v4854_v19  ;;  %v4852_v45 = vpop.permute.xlu0 %4851 }
 0x721   : > { %4945 = vst.msk [vmem:[#allocation3 + $0x10] sm:$0xff] %vm868_vm3, %v4852_v45  ;;  %5097 = vrot.lane.b32.xlu1 %v12086_v37, %s13995_s28 }
 0x722   : > { %5095 = vrot.lane.b32.xlu0 %v12092_v49, %s13995_s28 }
 0x723   : > { %v4858_v33 = vpop.permute.xlu1 %4857 }
 0x724   : > { %4948 = vst.msk [vmem:[#allocation3 + $0x28] sm:$0xff] %vm868_vm3, %v4858_v33  ;;  %v4856_v41 = vpop.permute.xlu0 %4855 }
 0x725   : > { %4947 = vst.msk [vmem:[#allocation3 + $0x20] sm:$0xff] %vm868_vm3, %v4856_v41  ;;  %5101 = vrot.lane.b32.xlu1 %v5006_v54, %s13995_s28  ;;  %v12412_v54 = vld [vmem:[#allocation2 + $0x181] sm:$0xff]  ;;  %v14152_v41 = vld [vmem:[#allocation10_spill] sm:$0xff] }
 0x726   : > { %5099 = vrot.lane.b32.xlu0 %v5005_v15, %s13995_s28 }
 0x727   : > { %v4862_v50 = vpop.permute.xlu1 %4861 }
 0x728   : > { %4950 = vst.msk [vmem:[#allocation3 + $0x38] sm:$0xff] %vm868_vm3, %v4862_v50  ;;  %v4860_v12 = vpop.permute.xlu0 %4859  ;;  %v14153_v50 = vld [vmem:[#allocation11_spill] sm:$0xff] }
 0x729   : > { %4949 = vst.msk [vmem:[#allocation3 + $0x30] sm:$0xff] %vm868_vm3, %v4860_v12  ;;  %5233 = vrot.lane.b32.xlu1 %v11802_v56, %s9451_s29 }
 0x72a   : > { %5231 = vrot.lane.b32.xlu0 %v11808_v11, %s9451_s29 }
 0x72b   : > { %v4866_v37 = vpop.permute.xlu1 %4865 }
 0x72c   : > { %4952 = vst.msk [vmem:[#allocation3 + $0x48] sm:$0xff] %vm868_vm3, %v4866_v37  ;;  %v4864_v49 = vpop.permute.xlu0 %4863 }
 0x72d   : > { %4951 = vst.msk [vmem:[#allocation3 + $0x40] sm:$0xff] %vm868_vm3, %v4864_v49  ;;  %5237 = vrot.lane.b32.xlu1 %v11822_v57, %s9451_s29  ;;  %v14154_v49 = vld [vmem:[#allocation12_spill] sm:$0xff] }
 0x72e   : > { %5235 = vrot.lane.b32.xlu0 %v11828_v8, %s9451_s29 }
 0x72f   : > { %v4870_v47 = vpop.permute.xlu1 %4869 }
 0x730   : > { %4954 = vst.msk [vmem:[#allocation3 + $0x58] sm:$0xff] %vm868_vm3, %v4870_v47  ;;  %v4868_v36 = vpop.permute.xlu0 %4867  ;;  %v14155_v47 = vld [vmem:[#allocation13_spill] sm:$0xff] }
 0x731   : > { %4953 = vst.msk [vmem:[#allocation3 + $0x50] sm:$0xff] %vm868_vm3, %v4868_v36  ;;  %5241 = vrot.lane.b32.xlu1 %v11842_v58, %s9451_s29 }
 0x732   : > { %5239 = vrot.lane.b32.xlu0 %v11848_v42, %s9451_s29 }
 0x733   : > { %v4874_v56 = vpop.permute.xlu1 %4873 }
 0x734   : > { %4956 = vst.msk [vmem:[#allocation3 + $0x68] sm:$0xff] %vm868_vm3, %v4874_v56  ;;  %v4872_v11 = vpop.permute.xlu0 %4871 }
 0x735   : > { %4955 = vst.msk [vmem:[#allocation3 + $0x60] sm:$0xff] %vm868_vm3, %v4872_v11  ;;  %5245 = vrot.lane.b32.xlu1 %v11862_v18, %s9451_s29  ;;  %v14156_v11 = vld [vmem:[#allocation14_spill] sm:$0xff] }
 0x736   : > { %5243 = vrot.lane.b32.xlu0 %v11868_v21, %s9451_s29 }
 0x737   : > { %v4878_v57 = vpop.permute.xlu1 %4877 }
 0x738   : > { %4958 = vst.msk [vmem:[#allocation3 + $0x78] sm:$0xff] %vm868_vm3, %v4878_v57  ;;  %v4876_v8 = vpop.permute.xlu0 %4875  ;;  %v14157_v57 = vld [vmem:[#allocation15_spill] sm:$0xff] }
 0x739   : > { %4957 = vst.msk [vmem:[#allocation3 + $0x70] sm:$0xff] %vm868_vm3, %v4876_v8  ;;  %5249 = vrot.lane.b32.xlu1 %v11882_v6, %s9451_s29 }
 0x73a   : > { %5247 = vrot.lane.b32.xlu0 %v11888_v10, %s9451_s29 }
 0x73b   : > { %v4882_v58 = vpop.permute.xlu1 %4881 }
 0x73c   : > { %4960 = vst.msk [vmem:[#allocation3 + $0x88] sm:$0xff] %vm868_vm3, %v4882_v58  ;;  %v4880_v42 = vpop.permute.xlu0 %4879 }
 0x73d   : > { %4959 = vst.msk [vmem:[#allocation3 + $0x80] sm:$0xff] %vm868_vm3, %v4880_v42  ;;  %5253 = vrot.lane.b32.xlu1 %v11902_v26, %s9451_s29  ;;  %v14158_v42 = vld [vmem:[#allocation16_spill] sm:$0xff] }
 0x73e   : > { %5251 = vrot.lane.b32.xlu0 %v11908_v3, %s9451_s29 }
 0x73f   : > { %v4886_v18 = vpop.permute.xlu1 %4885 }
 0x740   : > { %4962 = vst.msk [vmem:[#allocation3 + $0x98] sm:$0xff] %vm868_vm3, %v4886_v18  ;;  %v4884_v21 = vpop.permute.xlu0 %4883  ;;  %v14159_v18 = vld [vmem:[#allocation17_spill] sm:$0xff] }
 0x741   : > { %4961 = vst.msk [vmem:[#allocation3 + $0x90] sm:$0xff] %vm868_vm3, %v4884_v21  ;;  %5257 = vrot.lane.b32.xlu1 %v11922_v28, %s9451_s29 }
 0x742   : > { %5255 = vrot.lane.b32.xlu0 %v11928_v60, %s9451_s29 }
 0x743   : > { %v4890_v6 = vpop.permute.xlu1 %4889 }
 0x744   : > { %4964 = vst.msk [vmem:[#allocation3 + $0xa8] sm:$0xff] %vm868_vm3, %v4890_v6  ;;  %v4888_v10 = vpop.permute.xlu0 %4887 }
 0x745   : > { %4963 = vst.msk [vmem:[#allocation3 + $0xa0] sm:$0xff] %vm868_vm3, %v4888_v10  ;;  %5261 = vrot.lane.b32.xlu1 %v11942_v32, %s9451_s29  ;;  %v14160_v10 = vld [vmem:[#allocation18_spill] sm:$0xff] }
 0x746   : > { %5259 = vrot.lane.b32.xlu0 %v11948_v13, %s9451_s29 }
 0x747   : > { %v4894_v26 = vpop.permute.xlu1 %4893 }
 0x748   : > { %4966 = vst.msk [vmem:[#allocation3 + $0xb8] sm:$0xff] %vm868_vm3, %v4894_v26  ;;  %v4892_v3 = vpop.permute.xlu0 %4891  ;;  %v14161_v26 = vld [vmem:[#allocation19_spill] sm:$0xff] }
 0x749   : > { %4965 = vst.msk [vmem:[#allocation3 + $0xb0] sm:$0xff] %vm868_vm3, %v4892_v3  ;;  %5265 = vrot.lane.b32.xlu1 %v11962_v14, %s9451_s29 }
 0x74a   : > { %5263 = vrot.lane.b32.xlu0 %v11968_v35, %s9451_s29 }
 0x74b   : > { %v4898_v28 = vpop.permute.xlu1 %4897 }
 0x74c   : > { %4968 = vst.msk [vmem:[#allocation3 + $0xc8] sm:$0xff] %vm868_vm3, %v4898_v28  ;;  %v4896_v60 = vpop.permute.xlu0 %4895 }
 0x74d   : > { %4967 = vst.msk [vmem:[#allocation3 + $0xc0] sm:$0xff] %vm868_vm3, %v4896_v60  ;;  %5269 = vrot.lane.b32.xlu1 %v11982_v61, %s9451_s29  ;;  %v14162_v60 = vld [vmem:[#allocation20_spill] sm:$0xff] }
 0x74e   : > { %5267 = vrot.lane.b32.xlu0 %v11988_v31, %s9451_s29 }
 0x74f   : > { %v4902_v32 = vpop.permute.xlu1 %4901 }
 0x750   : > { %4970 = vst.msk [vmem:[#allocation3 + $0xd8] sm:$0xff] %vm868_vm3, %v4902_v32  ;;  %v4900_v13 = vpop.permute.xlu0 %4899  ;;  %v14163_v32 = vld [vmem:[#allocation21_spill] sm:$0xff] }
 0x751   : > { %4969 = vst.msk [vmem:[#allocation3 + $0xd0] sm:$0xff] %vm868_vm3, %v4900_v13  ;;  %5273 = vrot.lane.b32.xlu1 %v12002_v53, %s9451_s29 }
 0x752   : > { %5271 = vrot.lane.b32.xlu0 %v12008_v39, %s9451_s29 }
 0x753   : > { %v4906_v14 = vpop.permute.xlu1 %4905 }
 0x754   : > { %4972 = vst.msk [vmem:[#allocation3 + $0xe8] sm:$0xff] %vm868_vm3, %v4906_v14  ;;  %v4904_v35 = vpop.permute.xlu0 %4903 }
 0x755   : > { %4971 = vst.msk [vmem:[#allocation3 + $0xe0] sm:$0xff] %vm868_vm3, %v4904_v35  ;;  %5277 = vrot.lane.b32.xlu1 %v12022_v30, %s9451_s29  ;;  %v14149_v30 = vld [vmem:[#allocation7_spill] sm:$0xff]  ;;  %v14164_v35 = vld [vmem:[#allocation22_spill] sm:$0xff] }
 0x756   : > { %5275 = vrot.lane.b32.xlu0 %v12028_v55, %s9451_s29 }
 0x757   : > { %v4910_v61 = vpop.permute.xlu1 %4909 }
 0x758   : > { %4974 = vst.msk [vmem:[#allocation3 + $0xf8] sm:$0xff] %vm868_vm3, %v4910_v61  ;;  %v4908_v31 = vpop.permute.xlu0 %4907  ;;  %v14165_v61 = vld [vmem:[#allocation23_spill] sm:$0xff] }
 0x759   : > { %4973 = vst.msk [vmem:[#allocation3 + $0xf0] sm:$0xff] %vm868_vm3, %v4908_v31  ;;  %5281 = vrot.lane.b32.xlu1 %v12042_v48, %s9451_s29  ;;  %v14150_v48 = vld [vmem:[#allocation8_spill] sm:$0xff] }
 0x75a   : > { %5279 = vrot.lane.b32.xlu0 %v12047_v20, %s9451_s29  ;;  %v14151_v20 = vld [vmem:[#allocation9_spill] sm:$0xff] }
 0x75b   : > { %v5042_v53 = vpop.permute.xlu1 %5041 }
 0x75c   : > { %5136 = vst.msk [vmem:[#allocation3 + $0x8] sm:$0xff] %vm1061_vm4, %v5042_v53  ;;  %v5040_v39 = vpop.permute.xlu0 %5039 }
 0x75d   : > { %5135 = vst.msk [vmem:[#allocation3] sm:$0xff] %vm1061_vm4, %v5040_v39  ;;  %5285 = vrot.lane.b32.xlu1 %v12062_v40, %s9451_s29  ;;  %v12407_v40 = vld [vmem:[#allocation2 + $0x189] sm:$0xff]  ;;  %v14166_v39 = vld [vmem:[#allocation24_spill] sm:$0xff] }
 0x75e   : > { %5283 = vrot.lane.b32.xlu0 %v14149_v30, %s9451_s29  ;;  %v14167_v30 = vld [vmem:[#allocation25_spill] sm:$0xff] }
 0x75f   : > { %v5046_v55 = vpop.permute.xlu1 %5045 }
 0x760   : > { %5138 = vst.msk [vmem:[#allocation3 + $0x18] sm:$0xff] %vm1061_vm4, %v5046_v55  ;;  %v5044_v63 = vpop.permute.xlu0 %5043 }
 0x761   : > { %5137 = vst.msk [vmem:[#allocation3 + $0x10] sm:$0xff] %vm1061_vm4, %v5044_v63  ;;  %5289 = vrot.lane.b32.xlu1 %v14150_v48, %s9451_s29  ;;  %v14168_v48 = vld [vmem:[#allocation26_spill] sm:$0xff] }
 0x762   : > { %5287 = vrot.lane.b32.xlu0 %v14151_v20, %s9451_s29  ;;  %v14169_v20 = vld [vmem:[#allocation27_spill] sm:$0xff] }
 0x763   : > { %v5050_v19 = vpop.permute.xlu1 %5049 }
 0x764   : > { %5140 = vst.msk [vmem:[#allocation3 + $0x28] sm:$0xff] %vm1061_vm4, %v5050_v19  ;;  %v5048_v45 = vpop.permute.xlu0 %5047 }
 0x765   : > { %5139 = vst.msk [vmem:[#allocation3 + $0x20] sm:$0xff] %vm1061_vm4, %v5048_v45  ;;  %5293 = vrot.lane.b32.xlu1 %v12407_v40, %s9451_s29 }
 0x766   : > { %5291 = vrot.lane.b32.xlu0 %v12412_v54, %s9451_s29 }
 0x767   : > { %v5054_v33 = vpop.permute.xlu1 %5053 }
 0x768   : > { %5142 = vst.msk [vmem:[#allocation3 + $0x38] sm:$0xff] %vm1061_vm4, %v5054_v33  ;;  %v5052_v15 = vpop.permute.xlu0 %5051  ;;  %v14170_v33 = vld [vmem:[#allocation28_spill] sm:$0xff] }
 0x769   : > { %5141 = vst.msk [vmem:[#allocation3 + $0x30] sm:$0xff] %vm1061_vm4, %v5052_v15  ;;  %5425 = vrot.lane.b32.xlu1 %v14152_v41, %s9452_s14  ;;  %v14171_v15 = vld [vmem:[#allocation29_spill] sm:$0xff] }
 0x76a   : > { %5423 = vrot.lane.b32.xlu0 %v14153_v50, %s9452_s14 }
 0x76b   : > { %v5058_v12 = vpop.permute.xlu1 %5057 }
 0x76c   : > { %5144 = vst.msk [vmem:[#allocation3 + $0x48] sm:$0xff] %vm1061_vm4, %v5058_v12  ;;  %v5056_v37 = vpop.permute.xlu0 %5055  ;;  %v14172_v12 = vld [vmem:[#allocation30_spill] sm:$0xff] }
 0x76d   : > { %5143 = vst.msk [vmem:[#allocation3 + $0x40] sm:$0xff] %vm1061_vm4, %v5056_v37  ;;  %5429 = vrot.lane.b32.xlu1 %v14154_v49, %s9452_s14  ;;  %v14173_v37 = vld [vmem:[#allocation31_spill] sm:$0xff] }
 0x76e   : > { %5427 = vrot.lane.b32.xlu0 %v14155_v47, %s9452_s14 }
 0x76f   : > { %v5062_v36 = vpop.permute.xlu1 %5061 }
 0x770   : > { %5146 = vst.msk [vmem:[#allocation3 + $0x58] sm:$0xff] %vm1061_vm4, %v5062_v36  ;;  %v5060_v56 = vpop.permute.xlu0 %5059  ;;  %v14174_v36 = vld [vmem:[#allocation32_spill] sm:$0xff] }
 0x771   : > { %5145 = vst.msk [vmem:[#allocation3 + $0x50] sm:$0xff] %vm1061_vm4, %v5060_v56  ;;  %5433 = vrot.lane.b32.xlu1 %v14156_v11, %s9452_s14  ;;  %v14175_v56 = vld [vmem:[#allocation33_spill] sm:$0xff] }
 0x772   : > { %5431 = vrot.lane.b32.xlu0 %v14157_v57, %s9452_s14 }
 0x773   : > { %v5066_v8 = vpop.permute.xlu1 %5065 }
 0x774   : > { %5148 = vst.msk [vmem:[#allocation3 + $0x68] sm:$0xff] %vm1061_vm4, %v5066_v8  ;;  %v5064_v58 = vpop.permute.xlu0 %5063  ;;  %v14176_v8 = vld [vmem:[#allocation34_spill] sm:$0xff] }
 0x775   : > { %5147 = vst.msk [vmem:[#allocation3 + $0x60] sm:$0xff] %vm1061_vm4, %v5064_v58  ;;  %5437 = vrot.lane.b32.xlu1 %v14158_v42, %s9452_s14  ;;  %v14177_v58 = vld [vmem:[#allocation35_spill] sm:$0xff] }
 0x776   : > { %5435 = vrot.lane.b32.xlu0 %v14159_v18, %s9452_s14 }
 0x777   : > { %v5070_v21 = vpop.permute.xlu1 %5069 }
 0x778   : > { %5150 = vst.msk [vmem:[#allocation3 + $0x78] sm:$0xff] %vm1061_vm4, %v5070_v21  ;;  %v5068_v6 = vpop.permute.xlu0 %5067  ;;  %v14178_v21 = vld [vmem:[#allocation36_spill] sm:$0xff] }
 0x779   : > { %5149 = vst.msk [vmem:[#allocation3 + $0x70] sm:$0xff] %vm1061_vm4, %v5068_v6  ;;  %5441 = vrot.lane.b32.xlu1 %v14160_v10, %s9452_s14 }
 0x77a   : > { %5439 = vrot.lane.b32.xlu0 %v14161_v26, %s9452_s14 }
 0x77b   : > { %v5074_v3 = vpop.permute.xlu1 %5073 }
 0x77c   : > { %5152 = vst.msk [vmem:[#allocation3 + $0x88] sm:$0xff] %vm1061_vm4, %v5074_v3  ;;  %v5072_v28 = vpop.permute.xlu0 %5071 }
 0x77d   : > { %5151 = vst.msk [vmem:[#allocation3 + $0x80] sm:$0xff] %vm1061_vm4, %v5072_v28  ;;  %5445 = vrot.lane.b32.xlu1 %v14162_v60, %s9452_s14  ;;  %v12512_v28 = vld [vmem:[#allocation2 + $0x182] sm:$0xff] }
 0x77e   : > { %5443 = vrot.lane.b32.xlu0 %v14163_v32, %s9452_s14 }
 0x77f   : > { %v5078_v13 = vpop.permute.xlu1 %5077 }
 0x780   : > { %5154 = vst.msk [vmem:[#allocation3 + $0x98] sm:$0xff] %vm1061_vm4, %v5078_v13  ;;  %v5076_v14 = vpop.permute.xlu0 %5075 }
 0x781   : > { %5153 = vst.msk [vmem:[#allocation3 + $0x90] sm:$0xff] %vm1061_vm4, %v5076_v14  ;;  %5449 = vrot.lane.b32.xlu1 %v14164_v35, %s9452_s14 }
 0x782   : > { %5447 = vrot.lane.b32.xlu0 %v14165_v61, %s9452_s14 }
 0x783   : > { %v5082_v31 = vpop.permute.xlu1 %5081 }
 0x784   : > { %5156 = vst.msk [vmem:[#allocation3 + $0xa8] sm:$0xff] %vm1061_vm4, %v5082_v31  ;;  %v5080_v53 = vpop.permute.xlu0 %5079 }
 0x785   : > { %5155 = vst.msk [vmem:[#allocation3 + $0xa0] sm:$0xff] %vm1061_vm4, %v5080_v53  ;;  %5453 = vrot.lane.b32.xlu1 %v14166_v39, %s9452_s14 }
 0x786   : > { %5451 = vrot.lane.b32.xlu0 %v14167_v30, %s9452_s14 }
 0x787   : > { %v5086_v55 = vpop.permute.xlu1 %5085 }
 0x788   : > { %5158 = vst.msk [vmem:[#allocation3 + $0xb8] sm:$0xff] %vm1061_vm4, %v5086_v55  ;;  %v5084_v63 = vpop.permute.xlu0 %5083 }
 0x789   : > { %5157 = vst.msk [vmem:[#allocation3 + $0xb0] sm:$0xff] %vm1061_vm4, %v5084_v63  ;;  %5457 = vrot.lane.b32.xlu1 %v14168_v48, %s9452_s14 }
 0x78a   : > { %5455 = vrot.lane.b32.xlu0 %v14169_v20, %s9452_s14 }
 0x78b   : > { %v5090_v19 = vpop.permute.xlu1 %5089 }
 0x78c   : > { %5160 = vst.msk [vmem:[#allocation3 + $0xc8] sm:$0xff] %vm1061_vm4, %v5090_v19  ;;  %v5088_v45 = vpop.permute.xlu0 %5087  ;;  %v5743_v19 = vld [vmem:[#allocation2 + $0x31] sm:$0xff] }
 0x78d   : > { %5159 = vst.msk [vmem:[#allocation3 + $0xc0] sm:$0xff] %vm1061_vm4, %v5088_v45  ;;  %5461 = vrot.lane.b32.xlu1 %v14170_v33, %s9452_s14  ;;  %v5935_v33 = vld [vmem:[#allocation2 + $0x32] sm:$0xff] }
 0x78e   : > { %5459 = vrot.lane.b32.xlu0 %v14171_v15, %s9452_s14  ;;  %v5744_v15 = vld [vmem:[#allocation2 + $0x39] sm:$0xff] }
 0x78f   : > { %v5094_v41 = vpop.permute.xlu1 %5093 }
 0x790   : > { %5162 = vst.msk [vmem:[#allocation3 + $0xd8] sm:$0xff] %vm1061_vm4, %v5094_v41  ;;  %v5092_v50 = vpop.permute.xlu0 %5091 }
 0x791   : > { %5161 = vst.msk [vmem:[#allocation3 + $0xd0] sm:$0xff] %vm1061_vm4, %v5092_v50  ;;  %5465 = vrot.lane.b32.xlu1 %v14172_v12, %s9452_s14  ;;  %v5745_v50 = vld [vmem:[#allocation2 + $0x49] sm:$0xff]  ;;  %v5936_v12 = vld [vmem:[#allocation2 + $0x3a] sm:$0xff] }
 0x792   : > { %5463 = vrot.lane.b32.xlu0 %v14173_v37, %s9452_s14 }
 0x793   : > { %v5098_v49 = vpop.permute.xlu1 %5097 }
 0x794   : > { %5164 = vst.msk [vmem:[#allocation3 + $0xe8] sm:$0xff] %vm1061_vm4, %v5098_v49  ;;  %v5096_v47 = vpop.permute.xlu0 %5095 }
 0x795   : > { %5163 = vst.msk [vmem:[#allocation3 + $0xe0] sm:$0xff] %vm1061_vm4, %v5096_v47  ;;  %5469 = vrot.lane.b32.xlu1 %v14174_v36, %s9452_s14  ;;  %v5937_v47 = vld [vmem:[#allocation2 + $0x4a] sm:$0xff] }
 0x796   : > { %5467 = vrot.lane.b32.xlu0 %v14175_v56, %s9452_s14  ;;  %v5746_v36 = vld [vmem:[#allocation2 + $0x51] sm:$0xff] }
 0x797   : > { %v5102_v11 = vpop.permute.xlu1 %5101 }
 0x798   : > { %5166 = vst.msk [vmem:[#allocation3 + $0xf8] sm:$0xff] %vm1061_vm4, %v5102_v11  ;;  %v5100_v57 = vpop.permute.xlu0 %5099 }
 0x799   : > { %5165 = vst.msk [vmem:[#allocation3 + $0xf0] sm:$0xff] %vm1061_vm4, %v5100_v57  ;;  %5473 = vrot.lane.b32.xlu1 %v14176_v8, %s9452_s14  ;;  %v5747_v57 = vld [vmem:[#allocation2 + $0x61] sm:$0xff]  ;;  %v5938_v8 = vld [vmem:[#allocation2 + $0x52] sm:$0xff] }
 0x79a   : > { %5471 = vrot.lane.b32.xlu0 %v14177_v58, %s9452_s14 }
 0x79b   : > { %v5234_v42 = vpop.permute.xlu1 %5233 }
 0x79c   : > { %5328 = vst.msk [vmem:[#allocation3 + $0x8] sm:$0xff] %vm1254_vm5, %v5234_v42  ;;  %v5232_v18 = vpop.permute.xlu0 %5231 }
 0x79d   : > { %5327 = vst.msk [vmem:[#allocation3] sm:$0xff] %vm1254_vm5, %v5232_v18  ;;  %5477 = vrot.lane.b32.xlu1 %v12203_v23, %s9452_s14  ;;  %v12507_v23 = vld [vmem:[#allocation2 + $0x18a] sm:$0xff]  ;;  %v5939_v18 = vld [vmem:[#allocation2 + $0x62] sm:$0xff] }
 0x79e   : > { %5475 = vrot.lane.b32.xlu0 %v14178_v21, %s9452_s14  ;;  %v5748_v21 = vld [vmem:[#allocation2 + $0x69] sm:$0xff] }
 0x79f   : > { %v5238_v6 = vpop.permute.xlu1 %5237 }
 0x7a0   : > { %5330 = vst.msk [vmem:[#allocation3 + $0x18] sm:$0xff] %vm1254_vm5, %v5238_v6  ;;  %v5236_v10 = vpop.permute.xlu0 %5235 }
 0x7a1   : > { %5329 = vst.msk [vmem:[#allocation3 + $0x10] sm:$0xff] %vm1254_vm5, %v5236_v10  ;;  %5481 = vrot.lane.b32.xlu1 %v12213_v46, %s9452_s14 }
 0x7a2   : > { %5479 = vrot.lane.b32.xlu0 %v12218_v51, %s9452_s14 }
 0x7a3   : > { %v5242_v26 = vpop.permute.xlu1 %5241 }
 0x7a4   : > { %5332 = vst.msk [vmem:[#allocation3 + $0x28] sm:$0xff] %vm1254_vm5, %v5242_v26  ;;  %v5240_v3 = vpop.permute.xlu0 %5239  ;;  %v5749_v26 = vld [vmem:[#allocation2 + $0x79] sm:$0xff] }
 0x7a5   : > { %5331 = vst.msk [vmem:[#allocation3 + $0x20] sm:$0xff] %vm1254_vm5, %v5240_v3  ;;  %5485 = vrot.lane.b32.xlu1 %v12507_v23, %s9452_s14  ;;  %v5940_v3 = vld [vmem:[#allocation2 + $0x6a] sm:$0xff] }
 0x7a6   : > { %5483 = vrot.lane.b32.xlu0 %v12512_v28, %s9452_s14 }
 0x7a7   : > { %v5246_v46 = vpop.permute.xlu1 %5245 }
 0x7a8   : > { %5334 = vst.msk [vmem:[#allocation3 + $0x38] sm:$0xff] %vm1254_vm5, %v5246_v46  ;;  %v5244_v51 = vpop.permute.xlu0 %5243 }
 0x7a9   : > { %5333 = vst.msk [vmem:[#allocation3 + $0x30] sm:$0xff] %vm1254_vm5, %v5244_v51  ;;  %5617 = vrot.lane.b32.xlu1 %v11830_v7, %s9453_s16 }
 0x7aa   : > { %5615 = vrot.lane.b32.xlu0 %v11838_v9, %s9453_s16 }
 0x7ab   : > { %v5250_v60 = vpop.permute.xlu1 %5249 }
 0x7ac   : > { %5336 = vst.msk [vmem:[#allocation3 + $0x48] sm:$0xff] %vm1254_vm5, %v5250_v60  ;;  %v5248_v32 = vpop.permute.xlu0 %5247  ;;  %v5941_v60 = vld [vmem:[#allocation2 + $0x7a] sm:$0xff] }
 0x7ad   : > { %5335 = vst.msk [vmem:[#allocation3 + $0x40] sm:$0xff] %vm1254_vm5, %v5248_v32  ;;  %5621 = vrot.lane.b32.xlu1 %v11850_v29, %s9453_s16  ;;  %v5750_v32 = vld [vmem:[#allocation2 + $0x81] sm:$0xff] }
 0x7ae   : > { %5619 = vrot.lane.b32.xlu0 %v11858_v44, %s9453_s16 }
 0x7af   : > { %v5254_v13 = vpop.permute.xlu1 %5253 }
 0x7b0   : > { %5338 = vst.msk [vmem:[#allocation3 + $0x58] sm:$0xff] %vm1254_vm5, %v5254_v13  ;;  %v5252_v14 = vpop.permute.xlu0 %5251 }
 0x7b1   : > { %5337 = vst.msk [vmem:[#allocation3 + $0x50] sm:$0xff] %vm1254_vm5, %v5252_v14  ;;  %5625 = vrot.lane.b32.xlu1 %v11870_v22, %s9453_s16 }
 0x7b2   : > { %5623 = vrot.lane.b32.xlu0 %v11878_v34, %s9453_s16 }
 0x7b3   : > { %v5258_v7 = vpop.permute.xlu1 %5257 }
 0x7b4   : > { %5340 = vst.msk [vmem:[#allocation3 + $0x68] sm:$0xff] %vm1254_vm5, %v5258_v7  ;;  %v5256_v9 = vpop.permute.xlu0 %5255  ;;  %v5751_v7 = vld [vmem:[#allocation2 + $0x91] sm:$0xff] }
 0x7b5   : > { %5339 = vst.msk [vmem:[#allocation3 + $0x60] sm:$0xff] %vm1254_vm5, %v5256_v9  ;;  %5629 = vrot.lane.b32.xlu1 %v11890_v27, %s9453_s16  ;;  %v5942_v9 = vld [vmem:[#allocation2 + $0x82] sm:$0xff] }
 0x7b6   : > { %5627 = vrot.lane.b32.xlu0 %v11898_v59, %s9453_s16 }
 0x7b7   : > { %v5262_v29 = vpop.permute.xlu1 %5261 }
 0x7b8   : > { %5342 = vst.msk [vmem:[#allocation3 + $0x78] sm:$0xff] %vm1254_vm5, %v5262_v29  ;;  %v5260_v44 = vpop.permute.xlu0 %5259 }
 0x7b9   : > { %5341 = vst.msk [vmem:[#allocation3 + $0x70] sm:$0xff] %vm1254_vm5, %v5260_v44  ;;  %5633 = vrot.lane.b32.xlu1 %v11910_v43, %s9453_s16  ;;  %v6159_v43 = vld [vmem:[%s13900_s5] sm:$0xff] }
 0x7ba   : > { %5631 = vrot.lane.b32.xlu0 %v11918_v62, %s9453_s16  ;;  %v6160_v62 = vld [vmem:[%s13900_s5 + $0x8] sm:$0xff] }
 0x7bb   : > { %v5266_v22 = vpop.permute.xlu1 %5265 }
 0x7bc   : > { %5344 = vst.msk [vmem:[#allocation3 + $0x88] sm:$0xff] %vm1254_vm5, %v5266_v22  ;;  %v5264_v34 = vpop.permute.xlu0 %5263  ;;  %v5943_v22 = vld [vmem:[#allocation2 + $0x92] sm:$0xff] }
 0x7bd   : > { %5343 = vst.msk [vmem:[#allocation3 + $0x80] sm:$0xff] %vm1254_vm5, %v5264_v34  ;;  %5637 = vrot.lane.b32.xlu1 %v11930_v2, %s9453_s16  ;;  %v5752_v34 = vld [vmem:[#allocation2 + $0x99] sm:$0xff] }
 0x7be   : > { %5635 = vrot.lane.b32.xlu0 %v11938_v17, %s9453_s16  ;;  %v9303_v17 = vpack.c.bf16 %v6160_v62, %v6159_v43  ;;  %v5753_v43 = vld [vmem:[#allocation2 + $0xa9] sm:$0xff]  ;;  %v5944_v62 = vld [vmem:[#allocation2 + $0x9a] sm:$0xff] }
 0x7bf   : > { %v5270_v27 = vpop.permute.xlu1 %5269 }
 0x7c0   : > { %5346 = vst.msk [vmem:[#allocation3 + $0x98] sm:$0xff] %vm1254_vm5, %v5270_v27  ;;  %v5268_v59 = vpop.permute.xlu0 %5267  ;;  %9304 = vmatprep.subr.bf16.mxu0 %v9303_v17 }
 0x7c1   : > { %5345 = vst.msk [vmem:[#allocation3 + $0x90] sm:$0xff] %vm1254_vm5, %v5268_v59  ;;  %5641 = vrot.lane.b32.xlu1 %v11950_v38, %s9453_s16  ;;  %9306 = vmatpush3.bf16.msra.mxu0 %v9303_v17  ;;  %v6161_v38 = vld [vmem:[%s13900_s5 + $0x10] sm:$0xff] }
 0x7c2   : > { %5639 = vrot.lane.b32.xlu0 %v11958_v16, %s9453_s16  ;;  %v6162_v16 = vld [vmem:[%s13900_s5 + $0x18] sm:$0xff] }
 0x7c3   : > { %v5274_v2 = vpop.permute.xlu1 %5273  ;;  %v9307_v31 = vpack.c.bf16 %v6162_v16, %v6161_v38  ;;  %v5754_v38 = vld [vmem:[#allocation2 + $0xb1] sm:$0xff] }
 0x7c4   : > { %5348 = vst.msk [vmem:[#allocation3 + $0xa8] sm:$0xff] %vm1254_vm5, %v5274_v2  ;;  %v5272_v35 = vpop.permute.xlu0 %5271 }
 0x7c5   : > { %5347 = vst.msk [vmem:[#allocation3 + $0xa0] sm:$0xff] %vm1254_vm5, %v5272_v35  ;;  %5645 = vrot.lane.b32.xlu1 %v11970_v52, %s9453_s16  ;;  %9308 = vmatprep.subr.bf16.mxu0 %v9307_v31  ;;  %v6163_v52 = vld [vmem:[%s13900_s5 + $0x20] sm:$0xff]  ;;  %v5945_v35 = vld [vmem:[#allocation2 + $0xaa] sm:$0xff] }
 0x7c6   : > { %5643 = vrot.lane.b32.xlu0 %v11978_v4, %s9453_s16  ;;  %9310 = vmatpush3.bf16.msra.mxu0 %v9307_v31  ;;  %v6164_v4 = vld [vmem:[%s13900_s5 + $0x28] sm:$0xff] }
 0x7c7   : > { %v5278_v61 = vpop.permute.xlu1 %5277  ;;  %v9311_v30 = vpack.c.bf16 %v6164_v4, %v6163_v52  ;;  %v5755_v31 = vld [vmem:[#allocation2 + $0xc1] sm:$0xff] }
 0x7c8   : > { %5350 = vst.msk [vmem:[#allocation3 + $0xb8] sm:$0xff] %vm1254_vm5, %v5278_v61  ;;  %v5276_v53 = vpop.permute.xlu0 %5275 }
 0x7c9   : > { %5349 = vst.msk [vmem:[#allocation3 + $0xb0] sm:$0xff] %vm1254_vm5, %v5276_v53  ;;  %5649 = vrot.lane.b32.xlu1 %v11990_v0, %s9453_s16  ;;  %9312 = vmatprep.subr.bf16.mxu0 %v9311_v30  ;;  %v6165_v0 = vld [vmem:[%s13900_s5 + $0x30] sm:$0xff] }
 0x7ca   : > { %5647 = vrot.lane.b32.xlu0 %v11998_v1, %s9453_s16  ;;  %9314 = vmatpush3.bf16.msra.mxu0 %v9311_v30  ;;  %v6166_v1 = vld [vmem:[%s13900_s5 + $0x38] sm:$0xff]  ;;  %v5756_v30 = vld [vmem:[#allocation2 + $0xc9] sm:$0xff] }
 0x7cb   : > { %v5282_v39 = vpop.permute.xlu1 %5281  ;;  %v9315_v48 = vpack.c.bf16 %v6166_v1, %v6165_v0  ;;  %v5946_v53 = vld [vmem:[#allocation2 + $0xb2] sm:$0xff] }
 0x7cc   : > { %5352 = vst.msk [vmem:[#allocation3 + $0xc8] sm:$0xff] %vm1254_vm5, %v5282_v39  ;;  %v5280_v55 = vpop.permute.xlu0 %5279  ;;  %v5947_v39 = vld [vmem:[#allocation2 + $0xc2] sm:$0xff]  ;;  %v5757_v1 = vld [vmem:[#allocation2 + $0xd9] sm:$0xff] }
 0x7cd   : > { %5351 = vst.msk [vmem:[#allocation3 + $0xc0] sm:$0xff] %vm1254_vm5, %v5280_v55  ;;  %5653 = vrot.lane.b32.xlu1 %v12010_v5, %s9453_s16  ;;  %9316 = vmatprep.subr.bf16.mxu0 %v9315_v48  ;;  %v6167_v5 = vld [vmem:[%s13900_s5 + $0x40] sm:$0xff] }
 0x7ce   : > { %5651 = vrot.lane.b32.xlu0 %v12018_v24, %s9453_s16  ;;  %9318 = vmatpush3.bf16.msra.mxu0 %v9315_v48 }
 0x7cf   : > { %v5286_v63 = vpop.permute.xlu1 %5285  ;;  %9155 = vmatprep.subr.mxu0 %v6167_v5 }
 0x7d0   : > { %5354 = vst.msk [vmem:[#allocation3 + $0xd8] sm:$0xff] %vm1254_vm5, %v5286_v63  ;;  %v5284_v20 = vpop.permute.xlu0 %5283  ;;  %v5948_v63 = vld [vmem:[#allocation2 + $0xca] sm:$0xff] }
 0x7d1   : > { %5353 = vst.msk [vmem:[#allocation3 + $0xd0] sm:$0xff] %vm1254_vm5, %v5284_v20  ;;  %5807 = vrot.lane.b32.xlu1 %v5743_v19, %s9454_s17  ;;  %v5949_v19 = vld [vmem:[#allocation2 + $0xda] sm:$0xff] }
 0x7d2   : > { %5655 = vrot.lane.b32.xlu0 %v12038_v25, %s9453_s16  ;;  %9156 = vmatpush3.msra.mxu0 %v6167_v5  ;;  %v5758_v5 = vld [vmem:[#allocation2 + $0xe1] sm:$0xff] }
 0x7d3   : > { %v5290_v24 = vpop.permute.xlu1 %5289 }
 0x7d4   : > { %5356 = vst.msk [vmem:[#allocation3 + $0xe8] sm:$0xff] %vm1254_vm5, %v5290_v24  ;;  %v5288_v45 = vpop.permute.xlu0 %5287 }
 0x7d5   : > { %5355 = vst.msk [vmem:[#allocation3 + $0xe0] sm:$0xff] %vm1254_vm5, %v5288_v45  ;;  %5999 = vrot.lane.b32.xlu1 %v5935_v33, %s9455_s24  ;;  %v5759_v33 = vld [vmem:[#allocation2 + $0xf1] sm:$0xff] }
 0x7d6   : > { %5809 = vrot.lane.b32.xlu0 %v5744_v15, %s9454_s17  ;;  %v5950_v15 = vld [vmem:[#allocation2 + $0xe2] sm:$0xff] }
 0x7d7   : > { %v5294_v25 = vpop.permute.xlu1 %5293 }
 0x7d8   : > { %5358 = vst.msk [vmem:[#allocation3 + $0xf8] sm:$0xff] %vm1254_vm5, %v5294_v25  ;;  %v5292_v41 = vpop.permute.xlu0 %5291 }
 0x7d9   : > { %5357 = vst.msk [vmem:[#allocation3 + $0xf0] sm:$0xff] %vm1254_vm5, %v5292_v41  ;;  %5811 = vrot.lane.b32.xlu1 %v5745_v50, %s9454_s17  ;;  %v5951_v50 = vld [vmem:[#allocation2 + $0xf2] sm:$0xff] }
 0x7da   : > { %6001 = vrot.lane.b32.xlu0 %v5936_v12, %s9455_s24  ;;  %v5760_v12 = vld [vmem:[#allocation2 + $0xf9] sm:$0xff] }
 0x7db   : > { %v5426_v37 = vpop.permute.xlu1 %5425 }
 0x7dc   : > { %5520 = vst.msk [vmem:[#allocation3 + $0x8] sm:$0xff] %vm1447_vm6, %v5426_v37  ;;  %v5424_v49 = vpop.permute.xlu0 %5423 }
 0x7dd   : > { %5519 = vst.msk [vmem:[#allocation3] sm:$0xff] %vm1447_vm6, %v5424_v49  ;;  %6003 = vrot.lane.b32.xlu1 %v5937_v47, %s9455_s24  ;;  %v5761_v47 = vld [vmem:[#allocation2 + $0x109] sm:$0xff] }
 0x7de   : > { %5813 = vrot.lane.b32.xlu0 %v5746_v36, %s9454_s17  ;;  %v5952_v36 = vld [vmem:[#allocation2 + $0xfa] sm:$0xff] }
 0x7df   : > { %v5430_v56 = vpop.permute.xlu1 %5429 }
 0x7e0   : > { %5522 = vst.msk [vmem:[#allocation3 + $0x18] sm:$0xff] %vm1447_vm6, %v5430_v56  ;;  %v5428_v11 = vpop.permute.xlu0 %5427 }
 0x7e1   : > { %5521 = vst.msk [vmem:[#allocation3 + $0x10] sm:$0xff] %vm1447_vm6, %v5428_v11  ;;  %5815 = vrot.lane.b32.xlu1 %v5747_v57, %s9454_s17  ;;  %v5953_v57 = vld [vmem:[#allocation2 + $0x10a] sm:$0xff] }
 0x7e2   : > { %6005 = vrot.lane.b32.xlu0 %v5938_v8, %s9455_s24  ;;  %v5762_v8 = vld [vmem:[#allocation2 + $0x111] sm:$0xff] }
 0x7e3   : > { %v5434_v58 = vpop.permute.xlu1 %5433 }
 0x7e4   : > { %5524 = vst.msk [vmem:[#allocation3 + $0x28] sm:$0xff] %vm1447_vm6, %v5434_v58  ;;  %v5432_v42 = vpop.permute.xlu0 %5431 }
 0x7e5   : > { %5523 = vst.msk [vmem:[#allocation3 + $0x20] sm:$0xff] %vm1447_vm6, %v5432_v42  ;;  %6007 = vrot.lane.b32.xlu1 %v5939_v18, %s9455_s24  ;;  %v5572_v18 = vld [vmem:[#allocation2 + $0x128] sm:$0xff] }
 0x7e6   : > { %5817 = vrot.lane.b32.xlu0 %v5748_v21, %s9454_s17  ;;  %v5954_v21 = vld [vmem:[#allocation2 + $0x112] sm:$0xff] }
 0x7e7   : > { %v5438_v6 = vpop.permute.xlu1 %5437 }
 0x7e8   : > { %5526 = vst.msk [vmem:[#allocation3 + $0x38] sm:$0xff] %vm1447_vm6, %v5438_v6  ;;  %v5436_v10 = vpop.permute.xlu0 %5435 }
 0x7e9   : > { %5525 = vst.msk [vmem:[#allocation3 + $0x30] sm:$0xff] %vm1447_vm6, %v5436_v10  ;;  %5819 = vrot.lane.b32.xlu1 %v5749_v26, %s9454_s17  ;;  %v5764_v26 = vld [vmem:[#allocation2 + $0x129] sm:$0xff] }
 0x7ea   : > { %6009 = vrot.lane.b32.xlu0 %v5940_v3, %s9455_s24  ;;  %v5763_v3 = vld [vmem:[#allocation2 + $0x121] sm:$0xff] }
 0x7eb   : > { %v5442_v46 = vpop.permute.xlu1 %5441 }
 0x7ec   : > { %5528 = vst.msk [vmem:[#allocation3 + $0x48] sm:$0xff] %vm1447_vm6, %v5442_v46  ;;  %v5440_v51 = vpop.permute.xlu0 %5439 }
 0x7ed   : > { %5527 = vst.msk [vmem:[#allocation3 + $0x40] sm:$0xff] %vm1447_vm6, %v5440_v51  ;;  %6011 = vrot.lane.b32.xlu1 %v5941_v60, %s9455_s24  ;;  %v5956_v60 = vld [vmem:[#allocation2 + $0x12a] sm:$0xff] }
 0x7ee   : > { %5821 = vrot.lane.b32.xlu0 %v5750_v32, %s9454_s17  ;;  %v5955_v32 = vld [vmem:[#allocation2 + $0x122] sm:$0xff] }
 0x7ef   : > { %v5446_v13 = vpop.permute.xlu1 %5445 }
 0x7f0   : > { %5530 = vst.msk [vmem:[#allocation3 + $0x58] sm:$0xff] %vm1447_vm6, %v5446_v13  ;;  %v5444_v14 = vpop.permute.xlu0 %5443 }
 0x7f1   : > { %5529 = vst.msk [vmem:[#allocation3 + $0x50] sm:$0xff] %vm1447_vm6, %v5444_v14  ;;  %5823 = vrot.lane.b32.xlu1 %v5751_v7, %s9454_s17  ;;  %v5574_v7 = vld [vmem:[#allocation2 + $0x140] sm:$0xff] }
 0x7f2   : > { %6013 = vrot.lane.b32.xlu0 %v5942_v9, %s9455_s24  ;;  %v5573_v9 = vld [vmem:[#allocation2 + $0x138] sm:$0xff] }
 0x7f3   : > { %v5450_v29 = vpop.permute.xlu1 %5449 }
 0x7f4   : > { %5532 = vst.msk [vmem:[#allocation3 + $0x68] sm:$0xff] %vm1447_vm6, %v5450_v29  ;;  %v5448_v44 = vpop.permute.xlu0 %5447 }
 0x7f5   : > { %5531 = vst.msk [vmem:[#allocation3 + $0x60] sm:$0xff] %vm1447_vm6, %v5448_v44  ;;  %6015 = vrot.lane.b32.xlu1 %v5943_v22, %s9455_s24  ;;  %v5766_v22 = vld [vmem:[#allocation2 + $0x141] sm:$0xff] }
 0x7f6   : > { %5825 = vrot.lane.b32.xlu0 %v5752_v34, %s9454_s17  ;;  %v5765_v34 = vld [vmem:[#allocation2 + $0x139] sm:$0xff] }
 0x7f7   : > { %v5454_v27 = vpop.permute.xlu1 %5453 }
 0x7f8   : > { %5534 = vst.msk [vmem:[#allocation3 + $0x78] sm:$0xff] %vm1447_vm6, %v5454_v27  ;;  %v5452_v59 = vpop.permute.xlu0 %5451 }
 0x7f9   : > { %5533 = vst.msk [vmem:[#allocation3 + $0x70] sm:$0xff] %vm1447_vm6, %v5452_v59  ;;  %5827 = vrot.lane.b32.xlu1 %v5753_v43, %s9454_s17  ;;  %v5958_v43 = vld [vmem:[#allocation2 + $0x142] sm:$0xff] }
 0x7fa   : > { %6017 = vrot.lane.b32.xlu0 %v5944_v62, %s9455_s24  ;;  %v5957_v62 = vld [vmem:[#allocation2 + $0x13a] sm:$0xff] }
 0x7fb   : > { %v5458_v2 = vpop.permute.xlu1 %5457 }
 0x7fc   : > { %5536 = vst.msk [vmem:[#allocation3 + $0x88] sm:$0xff] %vm1447_vm6, %v5458_v2  ;;  %v5456_v17 = vpop.permute.xlu0 %5455 }
 0x7fd   : > { %5535 = vst.msk [vmem:[#allocation3 + $0x80] sm:$0xff] %vm1447_vm6, %v5456_v17  ;;  %6019 = vrot.lane.b32.xlu1 %v5945_v35, %s9455_s24  ;;  %v5576_v35 = vld [vmem:[#allocation2 + $0x158] sm:$0xff] }
 0x7fe   : > { %5829 = vrot.lane.b32.xlu0 %v5754_v38, %s9454_s17  ;;  %v5575_v38 = vld [vmem:[#allocation2 + $0x150] sm:$0xff] }
 0x7ff   : > { %v5462_v16 = vpop.permute.xlu1 %5461 }
 0x800   : > { %5538 = vst.msk [vmem:[#allocation3 + $0x98] sm:$0xff] %vm1447_vm6, %v5462_v16  ;;  %v5460_v61 = vpop.permute.xlu0 %5459 }
 0x801   : > { %5537 = vst.msk [vmem:[#allocation3 + $0x90] sm:$0xff] %vm1447_vm6, %v5460_v61  ;;  %5831 = vrot.lane.b32.xlu1 %v5755_v31, %s9454_s17  ;;  %v5768_v31 = vld [vmem:[#allocation2 + $0x159] sm:$0xff] }
 0x802   : > { %6021 = vrot.lane.b32.xlu0 %v5946_v53, %s9455_s24  ;;  %v5767_v53 = vld [vmem:[#allocation2 + $0x151] sm:$0xff] }
 0x803   : > { %v5466_v52 = vpop.permute.xlu1 %5465 }
 0x804   : > { %5540 = vst.msk [vmem:[#allocation3 + $0xa8] sm:$0xff] %vm1447_vm6, %v5466_v52  ;;  %v5464_v4 = vpop.permute.xlu0 %5463 }
 0x805   : > { %5539 = vst.msk [vmem:[#allocation3 + $0xa0] sm:$0xff] %vm1447_vm6, %v5464_v4  ;;  %6023 = vrot.lane.b32.xlu1 %v5947_v39, %s9455_s24  ;;  %v5960_v39 = vld [vmem:[#allocation2 + $0x15a] sm:$0xff] }
 0x806   : > { %5833 = vrot.lane.b32.xlu0 %v5756_v30, %s9454_s17  ;;  %v5959_v30 = vld [vmem:[#allocation2 + $0x152] sm:$0xff] }
 0x807   : > { %v5470_v55 = vpop.permute.xlu1 %5469 }
 0x808   : > { %5542 = vst.msk [vmem:[#allocation3 + $0xb8] sm:$0xff] %vm1447_vm6, %v5470_v55  ;;  %v5468_v0 = vpop.permute.xlu0 %5467 }
 0x809   : > { %5541 = vst.msk [vmem:[#allocation3 + $0xb0] sm:$0xff] %vm1447_vm6, %v5468_v0  ;;  %5835 = vrot.lane.b32.xlu1 %v5757_v1, %s9454_s17  ;;  %v5578_v1 = vld [vmem:[#allocation2 + $0x170] sm:$0xff] }
 0x80a   : > { %6025 = vrot.lane.b32.xlu0 %v5948_v63, %s9455_s24  ;;  %v5577_v63 = vld [vmem:[#allocation2 + $0x168] sm:$0xff] }
 0x80b   : > { %v5474_v48 = vpop.permute.xlu1 %5473 }
 0x80c   : > { %5544 = vst.msk [vmem:[#allocation3 + $0xc8] sm:$0xff] %vm1447_vm6, %v5474_v48  ;;  %v5472_v20 = vpop.permute.xlu0 %5471 }
 0x80d   : > { %5543 = vst.msk [vmem:[#allocation3 + $0xc0] sm:$0xff] %vm1447_vm6, %v5472_v20  ;;  %6027 = vrot.lane.b32.xlu1 %v5949_v19, %s9455_s24  ;;  %v5770_v19 = vld [vmem:[#allocation2 + $0x171] sm:$0xff] }
 0x80e   : > { %5837 = vrot.lane.b32.xlu0 %v5758_v5, %s9454_s17  ;;  %v5769_v5 = vld [vmem:[#allocation2 + $0x169] sm:$0xff] }
 0x80f   : > { %v5478_v24 = vpop.permute.xlu1 %5477 }
 0x810   : > { %5546 = vst.msk [vmem:[#allocation3 + $0xd8] sm:$0xff] %vm1447_vm6, %v5478_v24  ;;  %v5476_v45 = vpop.permute.xlu0 %5475 }
 0x811   : > { %5545 = vst.msk [vmem:[#allocation3 + $0xd0] sm:$0xff] %vm1447_vm6, %v5476_v45  ;;  %5839 = vrot.lane.b32.xlu1 %v5759_v33, %s9454_s17  ;;  %v5962_v33 = vld [vmem:[#allocation2 + $0x172] sm:$0xff] }
 0x812   : > { %6029 = vrot.lane.b32.xlu0 %v5950_v15, %s9455_s24  ;;  %v5961_v15 = vld [vmem:[#allocation2 + $0x16a] sm:$0xff] }
 0x813   : > { %v5482_v25 = vpop.permute.xlu1 %5481 }
 0x814   : > { %5548 = vst.msk [vmem:[#allocation3 + $0xe8] sm:$0xff] %vm1447_vm6, %v5482_v25  ;;  %v5480_v41 = vpop.permute.xlu0 %5479 }
 0x815   : > { %5547 = vst.msk [vmem:[#allocation3 + $0xe0] sm:$0xff] %vm1447_vm6, %v5480_v41  ;;  %6031 = vrot.lane.b32.xlu1 %v5951_v50, %s9455_s24 }
 0x816   : > { %5841 = vrot.lane.b32.xlu0 %v5760_v12, %s9454_s17  ;;  %v5580_v12 = vld [vmem:[#allocation2 + $0x188] sm:$0xff] }
 0x817   : > { %v5486_v37 = vpop.permute.xlu1 %5485 }
 0x818   : > { %5550 = vst.msk [vmem:[#allocation3 + $0xf8] sm:$0xff] %vm1447_vm6, %v5486_v37  ;;  %v5484_v49 = vpop.permute.xlu0 %5483  ;;  %v5579_v37 = vld [vmem:[#allocation2 + $0x180] sm:$0xff] }
 0x819   : > { %5549 = vst.msk [vmem:[#allocation3 + $0xf0] sm:$0xff] %vm1447_vm6, %v5484_v49  ;;  %5843 = vrot.lane.b32.xlu1 %v5761_v47, %s9454_s17 }
 0x81a   : > { %6033 = vrot.lane.b32.xlu0 %v5952_v36, %s9455_s24 }
 0x81b   : > { %v5618_v56 = vpop.permute.xlu1 %5617 }
 0x81c   : > { %5712 = vst.msk [vmem:[#allocation3 + $0x8] sm:$0xff] %vm1641_vm7, %v5618_v56  ;;  %v5616_v11 = vpop.permute.xlu0 %5615 }
 0x81d   : > { %5711 = vst.msk [vmem:[#allocation3] sm:$0xff] %vm1641_vm7, %v5616_v11  ;;  %6035 = vrot.lane.b32.xlu1 %v5953_v57, %s9455_s24 }
 0x81e   : > { %5845 = vrot.lane.b32.xlu0 %v5762_v8, %s9454_s17 }
 0x81f   : > { %v5622_v58 = vpop.permute.xlu1 %5621 }
 0x820   : > { %5714 = vst.msk [vmem:[#allocation3 + $0x18] sm:$0xff] %vm1641_vm7, %v5622_v58  ;;  %v5620_v42 = vpop.permute.xlu0 %5619  ;;  %v5581_v58 = vld [vmem:[#allocation2 + $0x198] sm:$0xff] }
 0x821   : > { %5713 = vst.msk [vmem:[#allocation3 + $0x10] sm:$0xff] %vm1641_vm7, %v5620_v42  ;;  %5657 = vrot.lane.b32.xlu1 %v5572_v18, %s9453_s16 }
 0x822   : > { %6037 = vrot.lane.b32.xlu0 %v5954_v21, %s9455_s24 }
 0x823   : > { %v5626_v6 = vpop.permute.xlu1 %5625 }
 0x824   : > { %5716 = vst.msk [vmem:[#allocation3 + $0x28] sm:$0xff] %vm1641_vm7, %v5626_v6  ;;  %v5624_v10 = vpop.permute.xlu0 %5623 }
 0x825   : > { %5715 = vst.msk [vmem:[#allocation3 + $0x20] sm:$0xff] %vm1641_vm7, %v5624_v10  ;;  %5849 = vrot.lane.b32.xlu1 %v5764_v26, %s9454_s17 }
 0x826   : > { %5847 = vrot.lane.b32.xlu0 %v5763_v3, %s9454_s17 }
 0x827   : > { %v5630_v46 = vpop.permute.xlu1 %5629 }
 0x828   : > { %5718 = vst.msk [vmem:[#allocation3 + $0x38] sm:$0xff] %vm1641_vm7, %v5630_v46  ;;  %v5628_v51 = vpop.permute.xlu0 %5627 }
 0x829   : > { %5717 = vst.msk [vmem:[#allocation3 + $0x30] sm:$0xff] %vm1641_vm7, %v5628_v51  ;;  %6041 = vrot.lane.b32.xlu1 %v5956_v60, %s9455_s24 }
 0x82a   : > { %6039 = vrot.lane.b32.xlu0 %v5955_v32, %s9455_s24 }
 0x82b   : > { %v5634_v13 = vpop.permute.xlu1 %5633 }
 0x82c   : > { %5720 = vst.msk [vmem:[#allocation3 + $0x48] sm:$0xff] %vm1641_vm7, %v5634_v13  ;;  %v5632_v14 = vpop.permute.xlu0 %5631 }
 0x82d   : > { %5719 = vst.msk [vmem:[#allocation3 + $0x40] sm:$0xff] %vm1641_vm7, %v5632_v14  ;;  %5661 = vrot.lane.b32.xlu1 %v5574_v7, %s9453_s16 }
 0x82e   : > { %5659 = vrot.lane.b32.xlu0 %v5573_v9, %s9453_s16 }
 0x82f   : > { %v5638_v29 = vpop.permute.xlu1 %5637 }
 0x830   : > { %5722 = vst.msk [vmem:[#allocation3 + $0x58] sm:$0xff] %vm1641_vm7, %v5638_v29  ;;  %v5636_v44 = vpop.permute.xlu0 %5635 }
 0x831   : > { %5721 = vst.msk [vmem:[#allocation3 + $0x50] sm:$0xff] %vm1641_vm7, %v5636_v44  ;;  %5853 = vrot.lane.b32.xlu1 %v5766_v22, %s9454_s17 }
 0x832   : > { %5851 = vrot.lane.b32.xlu0 %v5765_v34, %s9454_s17 }
 0x833   : > { %v5642_v27 = vpop.permute.xlu1 %5641 }
 0x834   : > { %5724 = vst.msk [vmem:[#allocation3 + $0x68] sm:$0xff] %vm1641_vm7, %v5642_v27  ;;  %v5640_v59 = vpop.permute.xlu0 %5639 }
 0x835   : > { %5723 = vst.msk [vmem:[#allocation3 + $0x60] sm:$0xff] %vm1641_vm7, %v5640_v59  ;;  %6045 = vrot.lane.b32.xlu1 %v5958_v43, %s9455_s24 }
 0x836   : > { %6043 = vrot.lane.b32.xlu0 %v5957_v62, %s9455_s24 }
 0x837   : > { %v5646_v2 = vpop.permute.xlu1 %5645 }
 0x838   : > { %5726 = vst.msk [vmem:[#allocation3 + $0x78] sm:$0xff] %vm1641_vm7, %v5646_v2  ;;  %v5644_v17 = vpop.permute.xlu0 %5643 }
 0x839   : > { %5725 = vst.msk [vmem:[#allocation3 + $0x70] sm:$0xff] %vm1641_vm7, %v5644_v17  ;;  %5665 = vrot.lane.b32.xlu1 %v5576_v35, %s9453_s16 }
 0x83a   : > { %5663 = vrot.lane.b32.xlu0 %v5575_v38, %s9453_s16 }
 0x83b   : > { %v5650_v16 = vpop.permute.xlu1 %5649 }
 0x83c   : > { %5728 = vst.msk [vmem:[#allocation3 + $0x88] sm:$0xff] %vm1641_vm7, %v5650_v16  ;;  %v5648_v61 = vpop.permute.xlu0 %5647 }
 0x83d   : > { %5727 = vst.msk [vmem:[#allocation3 + $0x80] sm:$0xff] %vm1641_vm7, %v5648_v61  ;;  %5857 = vrot.lane.b32.xlu1 %v5768_v31, %s9454_s17 }
 0x83e   : > { %5855 = vrot.lane.b32.xlu0 %v5767_v53, %s9454_s17 }
 0x83f   : > { %v5654_v52 = vpop.permute.xlu1 %5653 }
 0x840   : > { %5730 = vst.msk [vmem:[#allocation3 + $0x98] sm:$0xff] %vm1641_vm7, %v5654_v52  ;;  %v5652_v4 = vpop.permute.xlu0 %5651 }
 0x841   : > { %5729 = vst.msk [vmem:[#allocation3 + $0x90] sm:$0xff] %vm1641_vm7, %v5652_v4  ;;  %6049 = vrot.lane.b32.xlu1 %v5960_v39, %s9455_s24 }
 0x842   : > { %6047 = vrot.lane.b32.xlu0 %v5959_v30, %s9455_s24 }
 0x843   : > { %v5808_v55 = vpop.permute.xlu1 %5807 }
 0x844   : > { %5903 = vst.msk [vmem:[#allocation3] sm:$0xff] %vm1834_vm8, %v5808_v55  ;;  %v5656_v0 = vpop.permute.xlu0 %5655 }
 0x845   : > { %5731 = vst.msk [vmem:[#allocation3 + $0xa0] sm:$0xff] %vm1641_vm7, %v5656_v0  ;;  %5669 = vrot.lane.b32.xlu1 %v5578_v1, %s9453_s16 }
 0x846   : > { %5667 = vrot.lane.b32.xlu0 %v5577_v63, %s9453_s16 }
 0x847   : > { %v6000_v48 = vpop.permute.xlu1 %5999 }
 0x848   : > { %6095 = vst.msk [vmem:[#allocation3] sm:$0xff] %vm2027_vm9, %v6000_v48  ;;  %v5810_v20 = vpop.permute.xlu0 %5809 }
 0x849   : > { %5904 = vst.msk [vmem:[#allocation3 + $0x8] sm:$0xff] %vm1834_vm8, %v5810_v20  ;;  %5861 = vrot.lane.b32.xlu1 %v5770_v19, %s9454_s17 }
 0x84a   : > { %5859 = vrot.lane.b32.xlu0 %v5769_v5, %s9454_s17 }
 0x84b   : > { %v5812_v24 = vpop.permute.xlu1 %5811 }
 0x84c   : > { %5905 = vst.msk [vmem:[#allocation3 + $0x10] sm:$0xff] %vm1834_vm8, %v5812_v24  ;;  %v6002_v45 = vpop.permute.xlu0 %6001 }
 0x84d   : > { %6096 = vst.msk [vmem:[#allocation3 + $0x8] sm:$0xff] %vm2027_vm9, %v6002_v45  ;;  %6053 = vrot.lane.b32.xlu1 %v5962_v33, %s9455_s24 }
 0x84e   : > { %6051 = vrot.lane.b32.xlu0 %v5961_v15, %s9455_s24 }
 0x84f   : > { %v6004_v25 = vpop.permute.xlu1 %6003  ;;  %v6127_v41 = vld [vmem:[#allocation3] sm:$0xff] }
 0x850   : > { %6097 = vst.msk [vmem:[#allocation3 + $0x10] sm:$0xff] %vm2027_vm9, %v6004_v25  ;;  %9157 = vmatprep.mubr.msk.f32.mxu0 %vm2108_vm10, %v6127_v41  ;;  %v5814_v50 = vpop.permute.xlu0 %5813 }
 0x851   : > { %5906 = vst.msk [vmem:[#allocation3 + $0x18] sm:$0xff] %vm1834_vm8, %v5814_v50  ;;  %5673 = vrot.lane.b32.xlu1 %v5580_v12, %s9453_s16 }
 0x852   : > { %5671 = vrot.lane.b32.xlu0 %v5579_v37, %s9453_s16 }
 0x853   : > { %v5816_v49 = vpop.permute.xlu1 %5815 }
 0x854   : > { %5907 = vst.msk [vmem:[#allocation3 + $0x20] sm:$0xff] %vm1834_vm8, %v5816_v49  ;;  %v6006_v47 = vpop.permute.xlu0 %6005  ;;  %v6128_v36 = vld [vmem:[#allocation3 + $0x8] sm:$0xff] }
 0x855   : > { %6098 = vst.msk [vmem:[#allocation3 + $0x18] sm:$0xff] %vm2027_vm9, %v6006_v47  ;;  %5865 = vrot.lane.b32.xlu1 %v12407_v40, %s9454_s17  ;;  %9158 = vmatmul.mubr.msk.f32.vlgmr.msra.gmra.mrb[32].mxu0 %vm2108_vm10, %v6128_v36  ;;  %v5582_v40 = vld [vmem:[#allocation2 + $0x1a0] sm:$0xff] }
 0x856   : > { %5863 = vrot.lane.b32.xlu0 %v12412_v54, %s9454_s17 }
 0x857   : > { %v6008_v56 = vpop.permute.xlu1 %6007  ;;  %v6129_v11 = vld [vmem:[#allocation3 + $0x10] sm:$0xff] }
 0x858   : > { %6099 = vst.msk [vmem:[#allocation3 + $0x20] sm:$0xff] %vm2027_vm9, %v6008_v56  ;;  %9160 = vmatprep.mubr.msk.f32.mxu0 %vm2108_vm10, %v6129_v11  ;;  %v5818_v57 = vpop.permute.xlu0 %5817  ;;  %v5774_v11 = vld [vmem:[#allocation2 + $0x1a1] sm:$0xff] }
 0x859   : > { %5908 = vst.msk [vmem:[#allocation3 + $0x28] sm:$0xff] %vm1834_vm8, %v5818_v57  ;;  %6057 = vrot.lane.b32.xlu1 %v12507_v23, %s9455_s24 }
 0x85a   : > { %6055 = vrot.lane.b32.xlu0 %v12512_v28, %s9455_s24 }
 0x85b   : > { %v5820_v8 = vpop.permute.xlu1 %5819 }
 0x85c   : > { %5909 = vst.msk [vmem:[#allocation3 + $0x30] sm:$0xff] %vm1834_vm8, %v5820_v8  ;;  %v6010_v54 = vpop.permute.xlu0 %6009  ;;  %v6130_v42 = vld [vmem:[#allocation3 + $0x18] sm:$0xff] }
 0x85d   : > { %6100 = vst.msk [vmem:[#allocation3 + $0x28] sm:$0xff] %vm2027_vm9, %v6010_v54  ;;  %9161 = vmatmul.mubr.msk.f32.gmra.mrb[34].mxu0 %vm2108_vm10, %v6130_v42  ;;  %5677 = vrot.lane.b32.xlu1 %v5582_v40, %s9453_s16  ;;  %v5773_v40 = vld [vmem:[#allocation2 + $0x199] sm:$0xff]  ;;  %v5966_v8 = vld [vmem:[#allocation2 + $0x1a2] sm:$0xff] }
 0x85e   : > { %5675 = vrot.lane.b32.xlu0 %v5581_v58, %s9453_s16  ;;  %v5965_v58 = vld [vmem:[#allocation2 + $0x19a] sm:$0xff] }
 0x85f   : > { %v6012_v18 = vpop.permute.xlu1 %6011  ;;  %v6131_v23 = vld [vmem:[#allocation3 + $0x20] sm:$0xff] }
 0x860   : > { %6101 = vst.msk [vmem:[#allocation3 + $0x30] sm:$0xff] %vm2027_vm9, %v6012_v18  ;;  %9163 = vmatprep.mubr.msk.f32.mxu0 %vm2108_vm10, %v6131_v23  ;;  %v5822_v28 = vpop.permute.xlu0 %5821 }
 0x861   : > { %5910 = vst.msk [vmem:[#allocation3 + $0x38] sm:$0xff] %vm1834_vm8, %v5822_v28  ;;  %5869 = vrot.lane.b32.xlu1 %v5774_v11, %s9454_s17 }
 0x862   : > { %5867 = vrot.lane.b32.xlu0 %v5773_v40, %s9454_s17 }
 0x863   : > { %v5824_v21 = vpop.permute.xlu1 %5823 }
 0x864   : > { %5911 = vst.msk [vmem:[#allocation3 + $0x40] sm:$0xff] %vm1834_vm8, %v5824_v21  ;;  %v6014_v6 = vpop.permute.xlu0 %6013  ;;  %v6132_v10 = vld [vmem:[#allocation3 + $0x28] sm:$0xff]  ;;  %v6625_v21 = vld [vmem:[#allocation2 + $0x9] sm:$0xff] }
 0x865   : > { %6102 = vst.msk [vmem:[#allocation3 + $0x38] sm:$0xff] %vm2027_vm9, %v6014_v6  ;;  %9164 = vmatmul.mubr.msk.f32.gmra.mrb[36].mxu0 %vm2108_vm10, %v6132_v10  ;;  %6061 = vrot.lane.b32.xlu1 %v5966_v8, %s9455_s24  ;;  %v6624_v10 = vld [vmem:[#allocation2 + $0x1] sm:$0xff] }
 0x866   : > { %6059 = vrot.lane.b32.xlu0 %v5965_v58, %s9455_s24 }
 0x867   : > { %v6016_v26 = vpop.permute.xlu1 %6015  ;;  %v6133_v3 = vld [vmem:[#allocation3 + $0x30] sm:$0xff] }
 0x868   : > { %6103 = vst.msk [vmem:[#allocation3 + $0x40] sm:$0xff] %vm2027_vm9, %v6016_v26  ;;  %v5826_v46 = vpop.permute.xlu0 %5825  ;;  %9166 = vmatprep.mubr.msk.f32.mxu0 %vm2108_vm10, %v6133_v3 }
 0x869   : > { %5912 = vst.msk [vmem:[#allocation3 + $0x48] sm:$0xff] %vm1834_vm8, %v5826_v46  ;;  %6690 = vrot.lane.b32.xlu1 %v6625_v21, %s9448_s26 }
 0x86a   : > { %6688 = vrot.lane.b32.xlu0 %v6624_v10, %s9448_s26 }
 0x86b   : > { %v5828_v51 = vpop.permute.xlu1 %5827 }
 0x86c   : > { %5913 = vst.msk [vmem:[#allocation3 + $0x50] sm:$0xff] %vm1834_vm8, %v5828_v51  ;;  %v6018_v60 = vpop.permute.xlu0 %6017  ;;  %v6134_v32 = vld [vmem:[#allocation3 + $0x38] sm:$0xff] }
 0x86d   : > { %6104 = vst.msk [vmem:[#allocation3 + $0x48] sm:$0xff] %vm2027_vm9, %v6018_v60  ;;  %9167 = vmatmul.mubr.msk.f32.gmra.mrb[38].mxu0 %vm2108_vm10, %v6134_v32 }
 0x86f   : > { %v6020_v13 = vpop.permute.xlu1 %6019  ;;  %v6135_v14 = vld [vmem:[#allocation3 + $0x40] sm:$0xff] }
 0x870   : > { %6105 = vst.msk [vmem:[#allocation3 + $0x50] sm:$0xff] %vm2027_vm9, %v6020_v13  ;;  %v5830_v7 = vpop.permute.xlu0 %5829  ;;  %9169 = vmatprep.mubr.msk.f32.mxu0 %vm2108_vm10, %v6135_v14 }
 0x871   : > { %5914 = vst.msk [vmem:[#allocation3 + $0x58] sm:$0xff] %vm1834_vm8, %v5830_v7 }
 0x873   : > { %v5832_v9 = vpop.permute.xlu1 %5831 }
 0x874   : > { %5915 = vst.msk [vmem:[#allocation3 + $0x60] sm:$0xff] %vm1834_vm8, %v5832_v9  ;;  %v6022_v29 = vpop.permute.xlu0 %6021  ;;  %v6136_v44 = vld [vmem:[#allocation3 + $0x48] sm:$0xff] }
 0x875   : > { %6106 = vst.msk [vmem:[#allocation3 + $0x58] sm:$0xff] %vm2027_vm9, %v6022_v29  ;;  %9170 = vmatmul.mubr.msk.f32.gmra.mrb[40].mxu0 %vm2108_vm10, %v6136_v44 }
 0x877   : > { %v6024_v22 = vpop.permute.xlu1 %6023  ;;  %v6137_v34 = vld [vmem:[#allocation3 + $0x50] sm:$0xff] }
 0x878   : > { %6107 = vst.msk [vmem:[#allocation3 + $0x60] sm:$0xff] %vm2027_vm9, %v6024_v22  ;;  %v5834_v27 = vpop.permute.xlu0 %5833  ;;  %9172 = vmatprep.mubr.msk.f32.mxu0 %vm2108_vm10, %v6137_v34 }
 0x879   : > { %5916 = vst.msk [vmem:[#allocation3 + $0x68] sm:$0xff] %vm1834_vm8, %v5834_v27 }
 0x87b   : > { %v5836_v59 = vpop.permute.xlu1 %5835 }
 0x87c   : > { %5917 = vst.msk [vmem:[#allocation3 + $0x70] sm:$0xff] %vm1834_vm8, %v5836_v59  ;;  %v6026_v43 = vpop.permute.xlu0 %6025  ;;  %v6138_v62 = vld [vmem:[#allocation3 + $0x58] sm:$0xff] }
 0x87d   : > { %6108 = vst.msk [vmem:[#allocation3 + $0x68] sm:$0xff] %vm2027_vm9, %v6026_v43  ;;  %9173 = vmatmul.mubr.msk.f32.gmra.mrb[42].mxu0 %vm2108_vm10, %v6138_v62 }
 0x87f   : > { %v6028_v2 = vpop.permute.xlu1 %6027  ;;  %v6139_v17 = vld [vmem:[#allocation3 + $0x60] sm:$0xff] }
 0x880   : > { %6109 = vst.msk [vmem:[#allocation3 + $0x70] sm:$0xff] %vm2027_vm9, %v6028_v2  ;;  %v5838_v35 = vpop.permute.xlu0 %5837  ;;  %9175 = vmatprep.mubr.msk.f32.mxu0 %vm2108_vm10, %v6139_v17 }
 0x881   : > { %5918 = vst.msk [vmem:[#allocation3 + $0x78] sm:$0xff] %vm1834_vm8, %v5838_v35 }
 0x883   : > { %v5840_v38 = vpop.permute.xlu1 %5839 }
 0x884   : > { %5919 = vst.msk [vmem:[#allocation3 + $0x80] sm:$0xff] %vm1834_vm8, %v5840_v38  ;;  %v6030_v16 = vpop.permute.xlu0 %6029  ;;  %v6140_v61 = vld [vmem:[#allocation3 + $0x68] sm:$0xff] }
 0x885   : > { %6110 = vst.msk [vmem:[#allocation3 + $0x78] sm:$0xff] %vm2027_vm9, %v6030_v16  ;;  %9176 = vmatmul.mubr.msk.f32.gmra.mrb[44].mxu0 %vm2108_vm10, %v6140_v61 }
 0x887   : > { %v6032_v31 = vpop.permute.xlu1 %6031  ;;  %v6141_v53 = vld [vmem:[#allocation3 + $0x70] sm:$0xff] }
 0x888   : > { %6111 = vst.msk [vmem:[#allocation3 + $0x80] sm:$0xff] %vm2027_vm9, %v6032_v31  ;;  %v5842_v52 = vpop.permute.xlu0 %5841  ;;  %9178 = vmatprep.mubr.msk.f32.mxu0 %vm2108_vm10, %v6141_v53  ;;  %v6561_v31 = vld [vmem:[#allocation2 + $0x8] sm:$0xff]  ;;  %v6560_v53 = vld [vmem:[#allocation2] sm:$0xff] }
 0x889   : > { %5920 = vst.msk [vmem:[#allocation3 + $0x88] sm:$0xff] %vm1834_vm8, %v5842_v52  ;;  %v12855_v52 = vld [vmem:[%s13901_s6] ss:$0 sm:$0xff] }
 0x88a   : > { %6593 = vst.msk [vmem:[#allocation3 + $0x8] sm:$0xff] %vm330_vm0, %v6561_v31  ;;  %6592 = vst.msk [vmem:[#allocation3] sm:$0xff] %vm330_vm0, %v6560_v53 }
 0x88b   : > { %v5844_v4 = vpop.permute.xlu1 %5843 }
 0x88c   : > { %5921 = vst.msk [vmem:[#allocation3 + $0x90] sm:$0xff] %vm1834_vm8, %v5844_v4  ;;  %v6034_v39 = vpop.permute.xlu0 %6033  ;;  %v6142_v30 = vld [vmem:[#allocation3 + $0x78] sm:$0xff] }
 0x88d   : > { %6112 = vst.msk [vmem:[#allocation3 + $0x88] sm:$0xff] %vm2027_vm9, %v6034_v39  ;;  %9179 = vmatmul.mubr.msk.f32.gmra.mrb[46].mxu0 %vm2108_vm10, %v6142_v30 }
 0x88f   : > { %v6036_v55 = vpop.permute.xlu1 %6035  ;;  %v6143_v0 = vld [vmem:[#allocation3 + $0x80] sm:$0xff] }
 0x890   : > { %6113 = vst.msk [vmem:[#allocation3 + $0x90] sm:$0xff] %vm2027_vm9, %v6036_v55  ;;  %v5846_v1 = vpop.permute.xlu0 %5845  ;;  %9181 = vmatprep.mubr.msk.f32.mxu0 %vm2108_vm10, %v6143_v0 }
 0x891   : > { %5922 = vst.msk [vmem:[#allocation3 + $0x98] sm:$0xff] %vm1834_vm8, %v5846_v1 }
 0x893   : > { %v5658_v63 = vpop.permute.xlu1 %5657 }
 0x894   : > { %5732 = vst.msk [vmem:[#allocation3 + $0xa8] sm:$0xff] %vm1641_vm7, %v5658_v63  ;;  %v6038_v48 = vpop.permute.xlu0 %6037  ;;  %v6144_v20 = vld [vmem:[#allocation3 + $0x88] sm:$0xff] }
 0x895   : > { %6114 = vst.msk [vmem:[#allocation3 + $0x98] sm:$0xff] %vm2027_vm9, %v6038_v48  ;;  %9182 = vmatmul.mubr.msk.f32.gmra.mrb[48].mxu0 %vm2108_vm10, %v6144_v20 }
 0x897   : > { %v5850_v19 = vpop.permute.xlu1 %5849  ;;  %v6145_v5 = vld [vmem:[#allocation3 + $0x90] sm:$0xff] }
 0x898   : > { %5924 = vst.msk [vmem:[#allocation3 + $0xa8] sm:$0xff] %vm1834_vm8, %v5850_v19  ;;  %v5848_v24 = vpop.permute.xlu0 %5847  ;;  %9184 = vmatprep.mubr.msk.f32.mxu0 %vm2108_vm10, %v6145_v5 }
 0x899   : > { %5923 = vst.msk [vmem:[#allocation3 + $0xa0] sm:$0xff] %vm1834_vm8, %v5848_v24 }
 0x89b   : > { %v6042_v45 = vpop.permute.xlu1 %6041 }
 0x89c   : > { %6116 = vst.msk [vmem:[#allocation3 + $0xa8] sm:$0xff] %vm2027_vm9, %v6042_v45  ;;  %v6040_v33 = vpop.permute.xlu0 %6039  ;;  %v6146_v15 = vld [vmem:[#allocation3 + $0x98] sm:$0xff] }
 0x89d   : > { %6115 = vst.msk [vmem:[#allocation3 + $0xa0] sm:$0xff] %vm2027_vm9, %v6040_v33  ;;  %9185 = vmatmul.mubr.msk.f32.gmra.mrb[50].mxu0 %vm2108_vm10, %v6146_v15 }
 0x89f   : > { %v5662_v25 = vpop.permute.xlu1 %5661 }
 0x8a0   : > { %5734 = vst.msk [vmem:[#allocation3 + $0xb8] sm:$0xff] %vm1641_vm7, %v5662_v25  ;;  %v5660_v41 = vpop.permute.xlu0 %5659 }
 0x8a1   : > { %5733 = vst.msk [vmem:[#allocation3 + $0xb0] sm:$0xff] %vm1641_vm7, %v5660_v41 }
 0x8a3   : > { %v5854_v50 = vpop.permute.xlu1 %5853  ;;  %v6148_v49 = vld [vmem:[#allocation3 + $0xa8] sm:$0xff] }
 0x8a4   : > { %5926 = vst.msk [vmem:[#allocation3 + $0xb8] sm:$0xff] %vm1834_vm8, %v5854_v50  ;;  %v5852_v12 = vpop.permute.xlu0 %5851  ;;  %v6147_v37 = vld [vmem:[#allocation3 + $0xa0] sm:$0xff] }
 0x8a5   : > { %5925 = vst.msk [vmem:[#allocation3 + $0xb0] sm:$0xff] %vm1834_vm8, %v5852_v12  ;;  %9187 = vmatprep.mubr.msk.f32.mxu0 %vm2108_vm10, %v6147_v37 }
 0x8a6   : > { %9188 = vmatmul.mubr.msk.f32.gmra.mrb[52].mxu0 %vm2108_vm10, %v6148_v49 }
 0x8a7   : > { %v6046_v47 = vpop.permute.xlu1 %6045 }
 0x8a8   : > { %6118 = vst.msk [vmem:[#allocation3 + $0xb8] sm:$0xff] %vm2027_vm9, %v6046_v47  ;;  %v6044_v36 = vpop.permute.xlu0 %6043 }
 0x8a9   : > { %6117 = vst.msk [vmem:[#allocation3 + $0xb0] sm:$0xff] %vm2027_vm9, %v6044_v36 }
 0x8ab   : > { %v5666_v56 = vpop.permute.xlu1 %5665 }
 0x8ac   : > { %5736 = vst.msk [vmem:[#allocation3 + $0xc8] sm:$0xff] %vm1641_vm7, %v5666_v56  ;;  %v5664_v57 = vpop.permute.xlu0 %5663 }
 0x8ad   : > { %5735 = vst.msk [vmem:[#allocation3 + $0xc0] sm:$0xff] %vm1641_vm7, %v5664_v57 }
 0x8af   : > { %v5858_v54 = vpop.permute.xlu1 %5857  ;;  %v6150_v23 = vld [vmem:[#allocation3 + $0xb8] sm:$0xff] }
 0x8b0   : > { %5928 = vst.msk [vmem:[#allocation3 + $0xc8] sm:$0xff] %vm1834_vm8, %v5858_v54  ;;  %v5856_v42 = vpop.permute.xlu0 %5855  ;;  %v6149_v18 = vld [vmem:[#allocation3 + $0xb0] sm:$0xff] }
 0x8b1   : > { %5927 = vst.msk [vmem:[#allocation3 + $0xc0] sm:$0xff] %vm1834_vm8, %v5856_v42  ;;  %9190 = vmatprep.mubr.msk.f32.mxu0 %vm2108_vm10, %v6149_v18 }
 0x8b2   : > { %9191 = vmatmul.mubr.msk.f32.gmra.mrb[54].mxu0 %vm2108_vm10, %v6150_v23 }
 0x8b3   : > { %v6050_v28 = vpop.permute.xlu1 %6049 }
 0x8b4   : > { %6120 = vst.msk [vmem:[#allocation3 + $0xc8] sm:$0xff] %vm2027_vm9, %v6050_v28  ;;  %v6048_v6 = vpop.permute.xlu0 %6047 }
 0x8b5   : > { %6119 = vst.msk [vmem:[#allocation3 + $0xc0] sm:$0xff] %vm2027_vm9, %v6048_v6 }
 0x8b7   : > { %v5670_v26 = vpop.permute.xlu1 %5669 }
 0x8b8   : > { %5738 = vst.msk [vmem:[#allocation3 + $0xd8] sm:$0xff] %vm1641_vm7, %v5670_v26  ;;  %v5668_v3 = vpop.permute.xlu0 %5667 }
 0x8b9   : > { %5737 = vst.msk [vmem:[#allocation3 + $0xd0] sm:$0xff] %vm1641_vm7, %v5668_v3 }
 0x8bb   : > { %v5862_v46 = vpop.permute.xlu1 %5861  ;;  %v6152_v32 = vld [vmem:[#allocation3 + $0xc8] sm:$0xff] }
 0x8bc   : > { %5930 = vst.msk [vmem:[#allocation3 + $0xd8] sm:$0xff] %vm1834_vm8, %v5862_v46  ;;  %v5860_v51 = vpop.permute.xlu0 %5859  ;;  %v6151_v60 = vld [vmem:[#allocation3 + $0xc0] sm:$0xff] }
 0x8bd   : > { %5929 = vst.msk [vmem:[#allocation3 + $0xd0] sm:$0xff] %vm1834_vm8, %v5860_v51  ;;  %9193 = vmatprep.mubr.msk.f32.mxu0 %vm2108_vm10, %v6151_v60 }
 0x8be   : > { %9194 = vmatmul.mubr.msk.f32.gmra.mrb[56].mxu0 %vm2108_vm10, %v6152_v32 }
 0x8bf   : > { %v6054_v13 = vpop.permute.xlu1 %6053 }
 0x8c0   : > { %6122 = vst.msk [vmem:[#allocation3 + $0xd8] sm:$0xff] %vm2027_vm9, %v6054_v13  ;;  %v6052_v14 = vpop.permute.xlu0 %6051 }
 0x8c1   : > { %6121 = vst.msk [vmem:[#allocation3 + $0xd0] sm:$0xff] %vm2027_vm9, %v6052_v14 }
 0x8c3   : > { %v5674_v7 = vpop.permute.xlu1 %5673 }
 0x8c4   : > { %5740 = vst.msk [vmem:[#allocation3 + $0xe8] sm:$0xff] %vm1641_vm7, %v5674_v7  ;;  %v5672_v9 = vpop.permute.xlu0 %5671 }
 0x8c5   : > { %5739 = vst.msk [vmem:[#allocation3 + $0xe0] sm:$0xff] %vm1641_vm7, %v5672_v9 }
 0x8c7   : > { %v5866_v29 = vpop.permute.xlu1 %5865  ;;  %v6154_v34 = vld [vmem:[#allocation3 + $0xd8] sm:$0xff] }
 0x8c8   : > { %5932 = vst.msk [vmem:[#allocation3 + $0xe8] sm:$0xff] %vm1834_vm8, %v5866_v29  ;;  %v5864_v44 = vpop.permute.xlu0 %5863  ;;  %v6153_v22 = vld [vmem:[#allocation3 + $0xd0] sm:$0xff] }
 0x8c9   : > { %5931 = vst.msk [vmem:[#allocation3 + $0xe0] sm:$0xff] %vm1834_vm8, %v5864_v44  ;;  %9196 = vmatprep.mubr.msk.f32.mxu0 %vm2108_vm10, %v6153_v22 }
 0x8ca   : > { %9197 = vmatmul.mubr.msk.f32.gmra.mrb[58].mxu0 %vm2108_vm10, %v6154_v34 }
 0x8cb   : > { %v6058_v27 = vpop.permute.xlu1 %6057 }
 0x8cc   : > { %6124 = vst.msk [vmem:[#allocation3 + $0xe8] sm:$0xff] %vm2027_vm9, %v6058_v27  ;;  %v6056_v59 = vpop.permute.xlu0 %6055 }
 0x8cd   : > { %6123 = vst.msk [vmem:[#allocation3 + $0xe0] sm:$0xff] %vm2027_vm9, %v6056_v59 }
 0x8cf   : > { %v5678_v2 = vpop.permute.xlu1 %5677 }
 0x8d0   : > { %v5676_v17 = vpop.permute.xlu0 %5675  ;;  %5742 = vst.msk [vmem:[#allocation3 + $0xf8] sm:$0xff] %vm1641_vm7, %v5678_v2 }
 0x8d1   : > { %5741 = vst.msk [vmem:[#allocation3 + $0xf0] sm:$0xff] %vm1641_vm7, %v5676_v17 }
 0x8d3   : > { %v6156_v62 = vld [vmem:[#allocation3 + $0xe8] sm:$0xff]  ;;  %v5870_v35 = vpop.permute.xlu1 %5869 }
 0x8d4   : > { %v6155_v43 = vld [vmem:[#allocation3 + $0xe0] sm:$0xff]  ;;  %5934 = vst.msk [vmem:[#allocation3 + $0xf8] sm:$0xff] %vm1834_vm8, %v5870_v35  ;;  %v5868_v38 = vpop.permute.xlu0 %5867 }
 0x8d5   : > { %9199 = vmatprep.mubr.msk.f32.mxu0 %vm2108_vm10, %v6155_v43  ;;  %5933 = vst.msk [vmem:[#allocation3 + $0xf0] sm:$0xff] %vm1834_vm8, %v5868_v38 }
 0x8d6   : > { %9200 = vmatmul.mubr.msk.f32.gmra.mrb[60].mxu0 %vm2108_vm10, %v6156_v62 }
 0x8d7   : > { %v6062_v16 = vpop.permute.xlu1 %6061 }
 0x8d8   : > { %6126 = vst.msk [vmem:[#allocation3 + $0xf8] sm:$0xff] %vm2027_vm9, %v6062_v16  ;;  %v6060_v61 = vpop.permute.xlu0 %6059 }
 0x8d9   : > { %6125 = vst.msk [vmem:[#allocation3 + $0xf0] sm:$0xff] %vm2027_vm9, %v6060_v61 }
 0x8db   : > { %v6691_v4 = vpop.permute.xlu1 %6690 }
 0x8dc   : > { %6785 = vst.msk [vmem:[#allocation3 + $0x8] sm:$0xff] %vm675_vm2, %v6691_v4  ;;  %v6689_v39 = vpop.permute.xlu0 %6688 }
 0x8dd   : > { %6784 = vst.msk [vmem:[#allocation3] sm:$0xff] %vm675_vm2, %v6689_v39 }
 0x8df   : > { %v6158_v56 = vld [vmem:[#allocation3 + $0xf8] sm:$0xff] }
 0x8e0   : > { %v6157_v47 = vld [vmem:[#allocation3 + $0xf0] sm:$0xff] }
 0x8e1   : > { %9202 = vmatprep.mubr.msk.f32.mxu0 %vm2108_vm10, %v6157_v47 }
 0x8e2   : > { %9203 = vmatmul.mubr.msk.f32.gmra.mrb[62].mxu0 %vm2108_vm10, %v6158_v56 }
 0x928   : > { %v9159_v30 = vpop.f32.mrb[32].mxu0 }
 0x929   : > { %v6343_v55 = vadd.f32 %v9159_v30, %v12855_v52  ;;  %v6337_v0 = vpop.f32.mrb[33].mxu0 }
 0x92a   : > { %v6338_v1 = vadd.f32 %v12855_v52, %v6337_v0 }
 0x92b   : > { %v6497_v63 = vmax.f32 %v6343_v55, 0.0 }
 0x92c   : > { %v6496_v48 = vmax.f32 %v6338_v1, 0.0 }
 0x92d   : > { %6529 = vst.msk [vmem:[#allocation2 + $0x21] sm:$0xff] %vm330_vm0, %v6497_v63 }
 0x92e   : > { %6528 = vst.msk [vmem:[#allocation2 + $0x19] sm:$0xff] %vm330_vm0, %v6496_v48 }
 0x930   : > { %v9162_v20 = vpop.f32.mrb[34].mxu0 }
 0x931   : > { %v6353_v19 = vadd.f32 %v9162_v20, %v12855_v52  ;;  %v6347_v5 = vpop.f32.mrb[35].mxu0 }
 0x932   : > { %v6348_v24 = vadd.f32 %v12855_v52, %v6347_v5 }
 0x933   : > { %v6499_v45 = vmax.f32 %v6353_v19, 0.0 }
 0x934   : > { %v6498_v33 = vmax.f32 %v6348_v24, 0.0  ;;  %v12865_v15 = vld [vmem:[#allocation2 + $0x21] sm:$0xff] }
 0x935   : > { %6531 = vst.msk [vmem:[#allocation2 + $0x39] sm:$0xff] %vm330_vm0, %v6499_v45  ;;  %6694 = vrot.lane.b32.xlu1 %v12865_v15, %s9448_s26  ;;  %v12870_v25 = vld [vmem:[#allocation2 + $0x19] sm:$0xff] }
 0x936   : > { %v12872_v41 = vld [vmem:[#allocation2 + $0x20] sm:$0xff]  ;;  %v12874_v50 = vld [vmem:[#allocation2 + $0x18] sm:$0xff]  ;;  %6530 = vst.msk [vmem:[#allocation2 + $0x31] sm:$0xff] %vm330_vm0, %v6498_v33  ;;  %6692 = vrot.lane.b32.xlu0 %v12870_v25, %s9448_s26 }
 0x937   : > { %6595 = vst.msk [vmem:[#allocation3 + $0x18] sm:$0xff] %vm330_vm0, %v12872_v41  ;;  %6594 = vst.msk [vmem:[#allocation3 + $0x10] sm:$0xff] %vm330_vm0, %v12874_v50 }
 0x938   : > { %v9165_v12 = vpop.f32.mrb[36].mxu0 }
 0x939   : > { %v6363_v37 = vadd.f32 %v9165_v12, %v12855_v52  ;;  %v6357_v49 = vpop.f32.mrb[37].mxu0 }
 0x93a   : > { %v6358_v36 = vadd.f32 %v12855_v52, %v6357_v49 }
 0x93b   : > { %v6501_v11 = vmax.f32 %v6363_v37, 0.0 }
 0x93c   : > { %v6500_v57 = vmax.f32 %v6358_v36, 0.0  ;;  %v12887_v40 = vld [vmem:[#allocation2 + $0x39] sm:$0xff] }
 0x93d   : > { %6533 = vst.msk [vmem:[#allocation2 + $0x51] sm:$0xff] %vm330_vm0, %v6501_v11  ;;  %6698 = vrot.lane.b32.xlu1 %v12887_v40, %s9448_s26  ;;  %v12892_v8 = vld [vmem:[#allocation2 + $0x31] sm:$0xff] }
 0x93e   : > { %v12894_v58 = vld [vmem:[#allocation2 + $0x38] sm:$0xff]  ;;  %v12896_v54 = vld [vmem:[#allocation2 + $0x30] sm:$0xff]  ;;  %6532 = vst.msk [vmem:[#allocation2 + $0x49] sm:$0xff] %vm330_vm0, %v6500_v57  ;;  %6696 = vrot.lane.b32.xlu0 %v12892_v8, %s9448_s26 }
 0x93f   : > { %6597 = vst.msk [vmem:[#allocation3 + $0x28] sm:$0xff] %vm330_vm0, %v12894_v58  ;;  %6596 = vst.msk [vmem:[#allocation3 + $0x20] sm:$0xff] %vm330_vm0, %v12896_v54 }
 0x940   : > { %v9168_v42 = vpop.f32.mrb[38].mxu0 }
 0x941   : > { %v6373_v18 = vadd.f32 %v9168_v42, %v12855_v52  ;;  %v6367_v23 = vpop.f32.mrb[39].mxu0 }
 0x942   : > { %v6368_v28 = vadd.f32 %v12855_v52, %v6367_v23 }
 0x943   : > { %v6503_v21 = vmax.f32 %v6373_v18, 0.0 }
 0x944   : > { %v6502_v6 = vmax.f32 %v6368_v28, 0.0  ;;  %v12907_v10 = vld [vmem:[#allocation2 + $0x51] sm:$0xff] }
 0x945   : > { %6535 = vst.msk [vmem:[#allocation2 + $0x69] sm:$0xff] %vm330_vm0, %v6503_v21  ;;  %6702 = vrot.lane.b32.xlu1 %v12907_v10, %s9448_s26  ;;  %v12912_v26 = vld [vmem:[#allocation2 + $0x49] sm:$0xff] }
 0x946   : > { %v12914_v3 = vld [vmem:[#allocation2 + $0x50] sm:$0xff]  ;;  %v12916_v46 = vld [vmem:[#allocation2 + $0x48] sm:$0xff]  ;;  %6534 = vst.msk [vmem:[#allocation2 + $0x61] sm:$0xff] %vm330_vm0, %v6502_v6  ;;  %6700 = vrot.lane.b32.xlu0 %v12912_v26, %s9448_s26 }
 0x947   : > { %6599 = vst.msk [vmem:[#allocation3 + $0x38] sm:$0xff] %vm330_vm0, %v12914_v3  ;;  %6598 = vst.msk [vmem:[#allocation3 + $0x30] sm:$0xff] %vm330_vm0, %v12916_v46 }
 0x948   : > { %v9171_v51 = vpop.f32.mrb[40].mxu0 }
 0x949   : > { %v6383_v60 = vadd.f32 %v9171_v51, %v12855_v52  ;;  %v6377_v32 = vpop.f32.mrb[41].mxu0 }
 0x94a   : > { %v6378_v13 = vadd.f32 %v12855_v52, %v6377_v32 }
 0x94b   : > { %v6505_v14 = vmax.f32 %v6383_v60, 0.0 }
 0x94c   : > { %v6504_v7 = vmax.f32 %v6378_v13, 0.0  ;;  %v12927_v9 = vld [vmem:[#allocation2 + $0x69] sm:$0xff] }
 0x94d   : > { %6537 = vst.msk [vmem:[#allocation2 + $0x81] sm:$0xff] %vm330_vm0, %v6505_v14  ;;  %6706 = vrot.lane.b32.xlu1 %v12927_v9, %s9448_s26  ;;  %v12932_v29 = vld [vmem:[#allocation2 + $0x61] sm:$0xff] }
 0x94e   : > { %v12934_v44 = vld [vmem:[#allocation2 + $0x68] sm:$0xff]  ;;  %v12936_v22 = vld [vmem:[#allocation2 + $0x60] sm:$0xff]  ;;  %6536 = vst.msk [vmem:[#allocation2 + $0x79] sm:$0xff] %vm330_vm0, %v6504_v7  ;;  %6704 = vrot.lane.b32.xlu0 %v12932_v29, %s9448_s26 }
 0x94f   : > { %6601 = vst.msk [vmem:[#allocation3 + $0x48] sm:$0xff] %vm330_vm0, %v12934_v44  ;;  %6600 = vst.msk [vmem:[#allocation3 + $0x40] sm:$0xff] %vm330_vm0, %v12936_v22 }
 0x950   : > { %v9174_v34 = vpop.f32.mrb[42].mxu0 }
 0x951   : > { %v6393_v27 = vadd.f32 %v9174_v34, %v12855_v52  ;;  %v6387_v59 = vpop.f32.mrb[43].mxu0 }
 0x952   : > { %v6388_v43 = vadd.f32 %v12855_v52, %v6387_v59 }
 0x953   : > { %v6507_v62 = vmax.f32 %v6393_v27, 0.0 }
 0x954   : > { %v6506_v2 = vmax.f32 %v6388_v43, 0.0  ;;  %v12947_v17 = vld [vmem:[#allocation2 + $0x81] sm:$0xff] }
 0x955   : > { %6539 = vst.msk [vmem:[#allocation2 + $0x99] sm:$0xff] %vm330_vm0, %v6507_v62  ;;  %6710 = vrot.lane.b32.xlu1 %v12947_v17, %s9448_s26  ;;  %v12952_v35 = vld [vmem:[#allocation2 + $0x79] sm:$0xff] }
 0x956   : > { %v12954_v38 = vld [vmem:[#allocation2 + $0x80] sm:$0xff]  ;;  %v12956_v16 = vld [vmem:[#allocation2 + $0x78] sm:$0xff]  ;;  %6538 = vst.msk [vmem:[#allocation2 + $0x91] sm:$0xff] %vm330_vm0, %v6506_v2  ;;  %6708 = vrot.lane.b32.xlu0 %v12952_v35, %s9448_s26 }
 0x957   : > { %6603 = vst.msk [vmem:[#allocation3 + $0x58] sm:$0xff] %vm330_vm0, %v12954_v38  ;;  %6602 = vst.msk [vmem:[#allocation3 + $0x50] sm:$0xff] %vm330_vm0, %v12956_v16 }
 0x958   : > { %v9177_v61 = vpop.f32.mrb[44].mxu0 }
 0x959   : > { %v6403_v31 = vadd.f32 %v9177_v61, %v12855_v52  ;;  %v6397_v53 = vpop.f32.mrb[45].mxu0 }
 0x95a   : > { %v6398_v4 = vadd.f32 %v12855_v52, %v6397_v53 }
 0x95b   : > { %v6509_v39 = vmax.f32 %v6403_v31, 0.0 }
 0x95c   : > { %v6508_v30 = vmax.f32 %v6398_v4, 0.0  ;;  %v12967_v55 = vld [vmem:[#allocation2 + $0x99] sm:$0xff] }
 0x95d   : > { %6541 = vst.msk [vmem:[#allocation2 + $0xb1] sm:$0xff] %vm330_vm0, %v6509_v39  ;;  %6714 = vrot.lane.b32.xlu1 %v12967_v55, %s9448_s26  ;;  %v12972_v0 = vld [vmem:[#allocation2 + $0x91] sm:$0xff] }
 0x95e   : > { %v12974_v1 = vld [vmem:[#allocation2 + $0x98] sm:$0xff]  ;;  %v12976_v63 = vld [vmem:[#allocation2 + $0x90] sm:$0xff]  ;;  %6540 = vst.msk [vmem:[#allocation2 + $0xa9] sm:$0xff] %vm330_vm0, %v6508_v30  ;;  %6712 = vrot.lane.b32.xlu0 %v12972_v0, %s9448_s26 }
 0x95f   : > { %6605 = vst.msk [vmem:[#allocation3 + $0x68] sm:$0xff] %vm330_vm0, %v12974_v1  ;;  %6604 = vst.msk [vmem:[#allocation3 + $0x60] sm:$0xff] %vm330_vm0, %v12976_v63 }
 0x960   : > { %v9180_v48 = vpop.f32.mrb[46].mxu0 }
 0x961   : > { %v6413_v20 = vadd.f32 %v9180_v48, %v12855_v52  ;;  %v6407_v19 = vpop.f32.mrb[47].mxu0 }
 0x962   : > { %v6408_v5 = vadd.f32 %v12855_v52, %v6407_v19 }
 0x963   : > { %v6511_v24 = vmax.f32 %v6413_v20, 0.0 }
 0x964   : > { %v6510_v45 = vmax.f32 %v6408_v5, 0.0  ;;  %v6639_v33 = vld [vmem:[#allocation2 + $0xb1] sm:$0xff] }
 0x965   : > { %6543 = vst.msk [vmem:[#allocation2 + $0xc9] sm:$0xff] %vm330_vm0, %v6511_v24  ;;  %6718 = vrot.lane.b32.xlu1 %v6639_v33, %s9448_s26  ;;  %v6638_v12 = vld [vmem:[#allocation2 + $0xa9] sm:$0xff] }
 0x966   : > { %v12989_v37 = vld [vmem:[#allocation2 + $0xb0] sm:$0xff]  ;;  %6542 = vst.msk [vmem:[#allocation2 + $0xc1] sm:$0xff] %vm330_vm0, %v6510_v45  ;;  %6716 = vrot.lane.b32.xlu0 %v6638_v12, %s9448_s26  ;;  %v12995_v49 = vld [vmem:[#allocation2 + $0xa8] sm:$0xff] }
 0x967   : > { %6607 = vst.msk [vmem:[#allocation3 + $0x78] sm:$0xff] %vm330_vm0, %v12989_v37  ;;  %6606 = vst.msk [vmem:[#allocation3 + $0x70] sm:$0xff] %vm330_vm0, %v12995_v49 }
 0x968   : > { %v9183_v47 = vpop.f32.mrb[48].mxu0 }
 0x969   : > { %v6423_v36 = vadd.f32 %v9183_v47, %v12855_v52  ;;  %v6417_v56 = vpop.f32.mrb[49].mxu0 }
 0x96a   : > { %v6418_v11 = vadd.f32 %v12855_v52, %v6417_v56 }
 0x96b   : > { %v6513_v57 = vmax.f32 %v6423_v36, 0.0 }
 0x96c   : > { %v6512_v42 = vmax.f32 %v6418_v11, 0.0  ;;  %v6641_v18 = vld [vmem:[#allocation2 + $0xc9] sm:$0xff] }
 0x96d   : > { %6545 = vst.msk [vmem:[#allocation2 + $0xe1] sm:$0xff] %vm330_vm0, %v6513_v57  ;;  %6722 = vrot.lane.b32.xlu1 %v6641_v18, %s9448_s26  ;;  %v6640_v23 = vld [vmem:[#allocation2 + $0xc1] sm:$0xff] }
 0x96e   : > { %v13003_v28 = vld [vmem:[#allocation2 + $0xc8] sm:$0xff]  ;;  %6544 = vst.msk [vmem:[#allocation2 + $0xd9] sm:$0xff] %vm330_vm0, %v6512_v42  ;;  %6720 = vrot.lane.b32.xlu0 %v6640_v23, %s9448_s26  ;;  %v13009_v21 = vld [vmem:[#allocation2 + $0xc0] sm:$0xff] }
 0x96f   : > { %6609 = vst.msk [vmem:[#allocation3 + $0x88] sm:$0xff] %vm330_vm0, %v13003_v28  ;;  %6608 = vst.msk [vmem:[#allocation3 + $0x80] sm:$0xff] %vm330_vm0, %v13009_v21 }
 0x970   : > { %v9186_v6 = vpop.f32.mrb[50].mxu0 }
 0x971   : > { %v6433_v51 = vadd.f32 %v9186_v6, %v12855_v52  ;;  %v6427_v60 = vpop.f32.mrb[51].mxu0 }
 0x972   : > { %v6428_v32 = vadd.f32 %v12855_v52, %v6427_v60 }
 0x973   : > { %v6515_v13 = vmax.f32 %v6433_v51, 0.0 }
 0x974   : > { %v6514_v14 = vmax.f32 %v6428_v32, 0.0  ;;  %v6643_v7 = vld [vmem:[#allocation2 + $0xe1] sm:$0xff] }
 0x975   : > { %6547 = vst.msk [vmem:[#allocation2 + $0xf9] sm:$0xff] %vm330_vm0, %v6515_v13  ;;  %6726 = vrot.lane.b32.xlu1 %v6643_v7, %s9448_s26  ;;  %v6642_v34 = vld [vmem:[#allocation2 + $0xd9] sm:$0xff] }
 0x976   : > { %v13017_v27 = vld [vmem:[#allocation2 + $0xe0] sm:$0xff]  ;;  %6546 = vst.msk [vmem:[#allocation2 + $0xf1] sm:$0xff] %vm330_vm0, %v6514_v14  ;;  %6724 = vrot.lane.b32.xlu0 %v6642_v34, %s9448_s26  ;;  %v13023_v59 = vld [vmem:[#allocation2 + $0xd8] sm:$0xff] }
 0x977   : > { %6611 = vst.msk [vmem:[#allocation3 + $0x98] sm:$0xff] %vm330_vm0, %v13017_v27  ;;  %6610 = vst.msk [vmem:[#allocation3 + $0x90] sm:$0xff] %vm330_vm0, %v13023_v59 }
 0x979   : > { %v9189_v43 = vpop.f32.mrb[52].mxu0 }
 0x97a   : > { %v6443_v62 = vadd.f32 %v9189_v43, %v12855_v52  ;;  %v6437_v2 = vpop.f32.mrb[53].mxu0 }
 0x97b   : > { %v6438_v61 = vadd.f32 %v12855_v52, %v6437_v2 }
 0x97c   : > { %v6517_v31 = vmax.f32 %v6443_v62, 0.0  ;;  %v6645_v53 = vld [vmem:[#allocation2 + $0xf9] sm:$0xff] }
 0x97d   : > { %v6516_v4 = vmax.f32 %v6438_v61, 0.0  ;;  %6730 = vrot.lane.b32.xlu1 %v6645_v53, %s9448_s26  ;;  %v6644_v39 = vld [vmem:[#allocation2 + $0xf1] sm:$0xff] }
 0x97e   : > { %v13030_v30 = vld [vmem:[#allocation2 + $0xf8] sm:$0xff]  ;;  %6549 = vst.msk [vmem:[#allocation2 + $0x111] sm:$0xff] %vm330_vm0, %v6517_v31  ;;  %6728 = vrot.lane.b32.xlu0 %v6644_v39, %s9448_s26  ;;  %v13036_v48 = vld [vmem:[#allocation2 + $0xf0] sm:$0xff] }
 0x97f   : > { %6613 = vst.msk [vmem:[#allocation3 + $0xa8] sm:$0xff] %vm330_vm0, %v13030_v30  ;;  %6548 = vst.msk [vmem:[#allocation2 + $0x109] sm:$0xff] %vm330_vm0, %v6516_v4 }
 0x980   : > { %6612 = vst.msk [vmem:[#allocation3 + $0xa0] sm:$0xff] %vm330_vm0, %v13036_v48 }
 0x985   : > { %v9192_v20 = vpop.f32.mrb[54].mxu0  ;;  %v6647_v19 = vld [vmem:[#allocation2 + $0x111] sm:$0xff] }
 0x986   : > { %v6453_v5 = vadd.f32 %v9192_v20, %v12855_v52  ;;  %6734 = vrot.lane.b32.xlu1 %v6647_v19, %s9448_s26  ;;  %v6447_v24 = vpop.f32.mrb[55].mxu0  ;;  %v6646_v45 = vld [vmem:[#allocation2 + $0x109] sm:$0xff] }
 0x987   : > { %v13043_v33 = vld [vmem:[#allocation2 + $0x110] sm:$0xff]  ;;  %v6448_v12 = vadd.f32 %v12855_v52, %v6447_v24  ;;  %6732 = vrot.lane.b32.xlu0 %v6646_v45, %s9448_s26  ;;  %v13049_v47 = vld [vmem:[#allocation2 + $0x108] sm:$0xff] }
 0x988   : > { %6615 = vst.msk [vmem:[#allocation3 + $0xb8] sm:$0xff] %vm330_vm0, %v13043_v33  ;;  %v6519_v36 = vmax.f32 %v6453_v5, 0.0  ;;  %6614 = vst.msk [vmem:[#allocation3 + $0xb0] sm:$0xff] %vm330_vm0, %v13049_v47 }
 0x989   : > { %v6518_v56 = vmax.f32 %v6448_v12, 0.0 }
 0x98a   : > { %6551 = vst.msk [vmem:[#allocation2 + $0x129] sm:$0xff] %vm330_vm0, %v6519_v36 }
 0x98b   : > { %6550 = vst.msk [vmem:[#allocation2 + $0x121] sm:$0xff] %vm330_vm0, %v6518_v56 }
 0x991   : > { %v9195_v11 = vpop.f32.mrb[56].mxu0  ;;  %v6649_v57 = vld [vmem:[#allocation2 + $0x129] sm:$0xff] }
 0x992   : > { %v6463_v42 = vadd.f32 %v9195_v11, %v12855_v52  ;;  %6738 = vrot.lane.b32.xlu1 %v6649_v57, %s9448_s26  ;;  %v6457_v18 = vpop.f32.mrb[57].mxu0  ;;  %v6648_v23 = vld [vmem:[#allocation2 + $0x121] sm:$0xff] }
 0x993   : > { %v6585_v6 = vld [vmem:[#allocation2 + $0x128] sm:$0xff]  ;;  %v6458_v51 = vadd.f32 %v12855_v52, %v6457_v18  ;;  %6736 = vrot.lane.b32.xlu0 %v6648_v23, %s9448_s26  ;;  %v6584_v60 = vld [vmem:[#allocation2 + $0x120] sm:$0xff] }
 0x994   : > { %6617 = vst.msk [vmem:[#allocation3 + $0xc8] sm:$0xff] %vm330_vm0, %v6585_v6  ;;  %v6521_v32 = vmax.f32 %v6463_v42, 0.0  ;;  %6616 = vst.msk [vmem:[#allocation3 + $0xc0] sm:$0xff] %vm330_vm0, %v6584_v60 }
 0x995   : > { %v6520_v13 = vmax.f32 %v6458_v51, 0.0 }
 0x996   : > { %6553 = vst.msk [vmem:[#allocation2 + $0x141] sm:$0xff] %vm330_vm0, %v6521_v32 }
 0x997   : > { %6552 = vst.msk [vmem:[#allocation2 + $0x139] sm:$0xff] %vm330_vm0, %v6520_v13  ;;  %v6817_v13 = vld [vmem:[#allocation2 + $0xa] sm:$0xff] }
 0x99d   : > { %v9198_v14 = vpop.f32.mrb[58].mxu0  ;;  %v6651_v7 = vld [vmem:[#allocation2 + $0x141] sm:$0xff] }
 0x99e   : > { %v6473_v34 = vadd.f32 %v9198_v14, %v12855_v52  ;;  %6742 = vrot.lane.b32.xlu1 %v6651_v7, %s9448_s26  ;;  %v6467_v43 = vpop.f32.mrb[59].mxu0  ;;  %v6650_v62 = vld [vmem:[#allocation2 + $0x139] sm:$0xff] }
 0x99f   : > { %v6587_v2 = vld [vmem:[#allocation2 + $0x140] sm:$0xff]  ;;  %v6468_v61 = vadd.f32 %v12855_v52, %v6467_v43  ;;  %6740 = vrot.lane.b32.xlu0 %v6650_v62, %s9448_s26  ;;  %v6586_v31 = vld [vmem:[#allocation2 + $0x138] sm:$0xff] }
 0x9a0   : > { %6619 = vst.msk [vmem:[#allocation3 + $0xd8] sm:$0xff] %vm330_vm0, %v6587_v2  ;;  %v6523_v53 = vmax.f32 %v6473_v34, 0.0  ;;  %6618 = vst.msk [vmem:[#allocation3 + $0xd0] sm:$0xff] %vm330_vm0, %v6586_v31  ;;  %v6816_v34 = vld [vmem:[#allocation2 + $0x2] sm:$0xff]  ;;  %v13095_v62 = vld [vmem:[#allocation2 + $0x1a] sm:$0xff] }
 0x9a1   : > { %v6522_v4 = vmax.f32 %v6468_v61, 0.0  ;;  %v13091_v43 = vld [vmem:[#allocation2 + $0x22] sm:$0xff]  ;;  %v13101_v31 = vld [vmem:[#allocation2 + $0x3a] sm:$0xff] }
 0x9a2   : > { %6555 = vst.msk [vmem:[#allocation2 + $0x159] sm:$0xff] %vm330_vm0, %v6523_v53  ;;  %v13105_v53 = vld [vmem:[#allocation2 + $0x32] sm:$0xff] }
 0x9a3   : > { %6554 = vst.msk [vmem:[#allocation2 + $0x151] sm:$0xff] %vm330_vm0, %v6522_v4  ;;  %v13109_v4 = vld [vmem:[#allocation2 + $0x52] sm:$0xff] }
 0x9a7   : > { %v6695_v39 = vpop.permute.xlu1 %6694 }
 0x9a8   : > { %6787 = vst.msk [vmem:[#allocation3 + $0x18] sm:$0xff] %vm675_vm2, %v6695_v39  ;;  %v6693_v20 = vpop.permute.xlu0 %6692  ;;  %v13113_v39 = vld [vmem:[#allocation2 + $0x4a] sm:$0xff] }
 0x9a9   : > { %6786 = vst.msk [vmem:[#allocation3 + $0x10] sm:$0xff] %vm675_vm2, %v6693_v20  ;;  %v9201_v19 = vpop.f32.mrb[60].mxu0  ;;  %v6653_v5 = vld [vmem:[#allocation2 + $0x159] sm:$0xff] }
 0x9aa   : > { %v6483_v24 = vadd.f32 %v9201_v19, %v12855_v52  ;;  %6746 = vrot.lane.b32.xlu1 %v6653_v5, %s9448_s26  ;;  %v6477_v45 = vpop.f32.mrb[61].mxu0  ;;  %v6652_v12 = vld [vmem:[#allocation2 + $0x151] sm:$0xff] }
 0x9ab   : > { %v6589_v36 = vld [vmem:[#allocation2 + $0x158] sm:$0xff]  ;;  %v6478_v56 = vadd.f32 %v12855_v52, %v6477_v45  ;;  %6744 = vrot.lane.b32.xlu0 %v6652_v12, %s9448_s26  ;;  %v6588_v11 = vld [vmem:[#allocation2 + $0x150] sm:$0xff]  ;;  %v13127_v45 = vld [vmem:[#allocation2 + $0x82] sm:$0xff] }
 0x9ac   : > { %6621 = vst.msk [vmem:[#allocation3 + $0xe8] sm:$0xff] %vm330_vm0, %v6589_v36  ;;  %v6525_v57 = vmax.f32 %v6483_v24, 0.0  ;;  %6620 = vst.msk [vmem:[#allocation3 + $0xe0] sm:$0xff] %vm330_vm0, %v6588_v11  ;;  %v13119_v5 = vld [vmem:[#allocation2 + $0x6a] sm:$0xff]  ;;  %v13123_v24 = vld [vmem:[#allocation2 + $0x62] sm:$0xff] }
 0x9ad   : > { %v6524_v42 = vmax.f32 %v6478_v56, 0.0  ;;  %v13131_v12 = vld [vmem:[#allocation2 + $0x7a] sm:$0xff] }
 0x9ae   : > { %6557 = vst.msk [vmem:[#allocation2 + $0x171] sm:$0xff] %vm330_vm0, %v6525_v57  ;;  %v13137_v11 = vld [vmem:[#allocation2 + $0x9a] sm:$0xff]  ;;  %v13141_v57 = vld [vmem:[#allocation2 + $0x92] sm:$0xff] }
 0x9af   : > { %6556 = vst.msk [vmem:[#allocation2 + $0x169] sm:$0xff] %vm330_vm0, %v6524_v42  ;;  %v6699_v18 = vpop.permute.xlu1 %6698  ;;  %v13145_v42 = vld [vmem:[#allocation2 + $0xb2] sm:$0xff] }
 0x9b0   : > { %6789 = vst.msk [vmem:[#allocation3 + $0x28] sm:$0xff] %vm675_vm2, %v6699_v18  ;;  %v6697_v23 = vpop.permute.xlu0 %6696  ;;  %v13149_v18 = vld [vmem:[#allocation2 + $0xaa] sm:$0xff] }
 0x9b1   : > { %6788 = vst.msk [vmem:[#allocation3 + $0x20] sm:$0xff] %vm675_vm2, %v6697_v23 }
 0x9b5   : > { %v6655_v6 = vld [vmem:[#allocation2 + $0x171] sm:$0xff] }
 0x9b6   : > { %6750 = vrot.lane.b32.xlu1 %v6655_v6, %s9448_s26  ;;  %v6654_v51 = vld [vmem:[#allocation2 + $0x169] sm:$0xff] }
 0x9b7   : > { %v6591_v60 = vld [vmem:[#allocation2 + $0x170] sm:$0xff]  ;;  %v6703_v32 = vpop.permute.xlu1 %6702  ;;  %6748 = vrot.lane.b32.xlu0 %v6654_v51, %s9448_s26  ;;  %v6590_v14 = vld [vmem:[#allocation2 + $0x168] sm:$0xff] }
 0x9b8   : > { %6623 = vst.msk [vmem:[#allocation3 + $0xf8] sm:$0xff] %vm330_vm0, %v6591_v60  ;;  %v6701_v7 = vpop.permute.xlu0 %6700  ;;  %6622 = vst.msk [vmem:[#allocation3 + $0xf0] sm:$0xff] %vm330_vm0, %v6590_v14  ;;  %v13155_v51 = vld [vmem:[#allocation2 + $0xca] sm:$0xff]  ;;  %v13159_v60 = vld [vmem:[#allocation2 + $0xc2] sm:$0xff] }
 0x9b9   : > { %6791 = vst.msk [vmem:[#allocation3 + $0x38] sm:$0xff] %vm675_vm2, %v6703_v32  ;;  %6790 = vst.msk [vmem:[#allocation3 + $0x30] sm:$0xff] %vm675_vm2, %v6701_v7  ;;  %v13163_v32 = vld [vmem:[#allocation2 + $0xe2] sm:$0xff] }
 0x9ba   : > { %6882 = vrot.lane.b32.xlu1 %v6817_v13, %s9449_s27  ;;  %v13167_v13 = vld [vmem:[#allocation2 + $0xda] sm:$0xff] }
 0x9bb   : > { %6880 = vrot.lane.b32.xlu0 %v6816_v34, %s9449_s27  ;;  %v6837_v34 = vld [vmem:[#allocation2 + $0xfa] sm:$0xff] }
 0x9be   : > { %6886 = vrot.lane.b32.xlu1 %v13091_v43, %s9449_s27 }
 0x9bf   : > { %v6707_v2 = vpop.permute.xlu1 %6706  ;;  %6884 = vrot.lane.b32.xlu0 %v13095_v62, %s9449_s27 }
 0x9c0   : > { %6793 = vst.msk [vmem:[#allocation3 + $0x48] sm:$0xff] %vm675_vm2, %v6707_v2  ;;  %v6705_v61 = vpop.permute.xlu0 %6704  ;;  %v13174_v2 = vld [vmem:[#allocation2 + $0xf2] sm:$0xff] }
 0x9c1   : > { %6792 = vst.msk [vmem:[#allocation3 + $0x40] sm:$0xff] %vm675_vm2, %v6705_v61  ;;  %v6839_v61 = vld [vmem:[#allocation2 + $0x112] sm:$0xff] }
 0x9c2   : > { %6890 = vrot.lane.b32.xlu1 %v13101_v31, %s9449_s27 }
 0x9c3   : > { %6888 = vrot.lane.b32.xlu0 %v13105_v53, %s9449_s27 }
 0x9c6   : > { %6894 = vrot.lane.b32.xlu1 %v13109_v4, %s9449_s27 }
 0x9c7   : > { %v6711_v20 = vpop.permute.xlu1 %6710  ;;  %6892 = vrot.lane.b32.xlu0 %v13113_v39, %s9449_s27 }
 0x9c8   : > { %6795 = vst.msk [vmem:[#allocation3 + $0x58] sm:$0xff] %vm675_vm2, %v6711_v20  ;;  %v6709_v19 = vpop.permute.xlu0 %6708  ;;  %v6838_v20 = vld [vmem:[#allocation2 + $0x10a] sm:$0xff] }
 0x9c9   : > { %6794 = vst.msk [vmem:[#allocation3 + $0x50] sm:$0xff] %vm675_vm2, %v6709_v19 }
 0x9ca   : > { %6898 = vrot.lane.b32.xlu1 %v13119_v5, %s9449_s27 }
 0x9cb   : > { %6896 = vrot.lane.b32.xlu0 %v13123_v24, %s9449_s27 }
 0x9ce   : > { %6902 = vrot.lane.b32.xlu1 %v13127_v45, %s9449_s27 }
 0x9cf   : > { %v6715_v36 = vpop.permute.xlu1 %6714  ;;  %6900 = vrot.lane.b32.xlu0 %v13131_v12, %s9449_s27 }
 0x9d0   : > { %6797 = vst.msk [vmem:[#allocation3 + $0x68] sm:$0xff] %vm675_vm2, %v6715_v36  ;;  %v6713_v56 = vpop.permute.xlu0 %6712 }
 0x9d1   : > { %6796 = vst.msk [vmem:[#allocation3 + $0x60] sm:$0xff] %vm675_vm2, %v6713_v56  ;;  %v6841_v56 = vld [vmem:[#allocation2 + $0x12a] sm:$0xff] }
 0x9d2   : > { %6906 = vrot.lane.b32.xlu1 %v13137_v11, %s9449_s27 }
 0x9d3   : > { %6904 = vrot.lane.b32.xlu0 %v13141_v57, %s9449_s27 }
 0x9d6   : > { %6910 = vrot.lane.b32.xlu1 %v13145_v42, %s9449_s27 }
 0x9d7   : > { %v6719_v23 = vpop.permute.xlu1 %6718  ;;  %6908 = vrot.lane.b32.xlu0 %v13149_v18, %s9449_s27 }
 0x9d8   : > { %6799 = vst.msk [vmem:[#allocation3 + $0x78] sm:$0xff] %vm675_vm2, %v6719_v23  ;;  %v6717_v6 = vpop.permute.xlu0 %6716  ;;  %v6840_v23 = vld [vmem:[#allocation2 + $0x122] sm:$0xff] }
 0x9d9   : > { %6798 = vst.msk [vmem:[#allocation3 + $0x70] sm:$0xff] %vm675_vm2, %v6717_v6  ;;  %v6843_v6 = vld [vmem:[#allocation2 + $0x142] sm:$0xff] }
 0x9da   : > { %6914 = vrot.lane.b32.xlu1 %v13155_v51, %s9449_s27 }
 0x9db   : > { %6912 = vrot.lane.b32.xlu0 %v13159_v60, %s9449_s27 }
 0x9de   : > { %6918 = vrot.lane.b32.xlu1 %v13163_v32, %s9449_s27 }
 0x9df   : > { %v6723_v14 = vpop.permute.xlu1 %6722  ;;  %6916 = vrot.lane.b32.xlu0 %v13167_v13, %s9449_s27 }
 0x9e0   : > { %6801 = vst.msk [vmem:[#allocation3 + $0x88] sm:$0xff] %vm675_vm2, %v6723_v14  ;;  %v6721_v7 = vpop.permute.xlu0 %6720  ;;  %v6842_v14 = vld [vmem:[#allocation2 + $0x13a] sm:$0xff] }
 0x9e1   : > { %6800 = vst.msk [vmem:[#allocation3 + $0x80] sm:$0xff] %vm675_vm2, %v6721_v7 }
 0x9e2   : > { %6922 = vrot.lane.b32.xlu1 %v6837_v34, %s9449_s27 }
 0x9e3   : > { %6920 = vrot.lane.b32.xlu0 %v13174_v2, %s9449_s27 }
 0x9e6   : > { %6926 = vrot.lane.b32.xlu1 %v6839_v61, %s9449_s27  ;;  %v6845_v61 = vld [vmem:[#allocation2 + $0x15a] sm:$0xff] }
 0x9e7   : > { %v6727_v19 = vpop.permute.xlu1 %6726  ;;  %6924 = vrot.lane.b32.xlu0 %v6838_v20, %s9449_s27  ;;  %v6844_v20 = vld [vmem:[#allocation2 + $0x152] sm:$0xff] }
 0x9e8   : > { %6803 = vst.msk [vmem:[#allocation3 + $0x98] sm:$0xff] %vm675_vm2, %v6727_v19  ;;  %v6725_v36 = vpop.permute.xlu0 %6724  ;;  %v6847_v19 = vld [vmem:[#allocation2 + $0x172] sm:$0xff] }
 0x9e9   : > { %6802 = vst.msk [vmem:[#allocation3 + $0x90] sm:$0xff] %vm675_vm2, %v6725_v36  ;;  %v6846_v36 = vld [vmem:[#allocation2 + $0x16a] sm:$0xff] }
 0x9ea   : > { %6930 = vrot.lane.b32.xlu1 %v6841_v56, %s9449_s27 }
 0x9eb   : > { %6928 = vrot.lane.b32.xlu0 %v6840_v23, %s9449_s27 }
 0x9ee   : > { %6934 = vrot.lane.b32.xlu1 %v6843_v6, %s9449_s27 }
 0x9ef   : > { %v6731_v7 = vpop.permute.xlu1 %6730  ;;  %6932 = vrot.lane.b32.xlu0 %v6842_v14, %s9449_s27 }
 0x9f0   : > { %6805 = vst.msk [vmem:[#allocation3 + $0xa8] sm:$0xff] %vm675_vm2, %v6731_v7  ;;  %v6729_v34 = vpop.permute.xlu0 %6728 }
 0x9f1   : > { %6804 = vst.msk [vmem:[#allocation3 + $0xa0] sm:$0xff] %vm675_vm2, %v6729_v34 }
 0x9f2   : > { %6938 = vrot.lane.b32.xlu1 %v6845_v61, %s9449_s27 }
 0x9f3   : > { %6936 = vrot.lane.b32.xlu0 %v6844_v20, %s9449_s27 }
 0x9f6   : > { %6942 = vrot.lane.b32.xlu1 %v6847_v19, %s9449_s27 }
 0x9f7   : > { %6940 = vrot.lane.b32.xlu0 %v6846_v36, %s9449_s27 }
 0x9f8   : > { %v6735_v56 = vpop.permute.xlu1 %6734 }
 0x9f9   : > { %6807 = vst.msk [vmem:[#allocation3 + $0xb8] sm:$0xff] %vm675_vm2, %v6735_v56  ;;  %v6733_v23 = vpop.permute.xlu0 %6732 }
 0x9fa   : > { %6806 = vst.msk [vmem:[#allocation3 + $0xb0] sm:$0xff] %vm675_vm2, %v6733_v23  ;;  %7074 = vrot.lane.b32.xlu1 %v12872_v41, %s13995_s28  ;;  %v8192_v41 = vld [vmem:[%s13902_s7] sm:$0xff] }
 0x9fb   : > { %7072 = vrot.lane.b32.xlu0 %v12874_v50, %s13995_s28  ;;  %v8193_v50 = vld [vmem:[%s13902_s7 + $0x8] sm:$0xff] }
 0x9fc   : > { %v9319_v7 = vpack.c.bf16 %v8193_v50, %v8192_v41 }
 0x9fe   : > { %7078 = vrot.lane.b32.xlu1 %v12894_v58, %s13995_s28  ;;  %9320 = vmatprep.subr.bf16.mxu1 %v9319_v7 }
 0x9ff   : > { %7076 = vrot.lane.b32.xlu0 %v12896_v54, %s13995_s28  ;;  %9322 = vmatpush3.bf16.msra.mxu1 %v9319_v7 }
 0xa02   : > { %7082 = vrot.lane.b32.xlu1 %v12914_v3, %s13995_s28 }
 0xa03   : > { %7080 = vrot.lane.b32.xlu0 %v12916_v46, %s13995_s28 }
 0xa04   : > { %v6739_v6 = vpop.permute.xlu1 %6738 }
 0xa05   : > { %6809 = vst.msk [vmem:[#allocation3 + $0xc8] sm:$0xff] %vm675_vm2, %v6739_v6  ;;  %v6737_v14 = vpop.permute.xlu0 %6736 }
 0xa06   : > { %6808 = vst.msk [vmem:[#allocation3 + $0xc0] sm:$0xff] %vm675_vm2, %v6737_v14  ;;  %7086 = vrot.lane.b32.xlu1 %v12934_v44, %s13995_s28 }
 0xa07   : > { %7084 = vrot.lane.b32.xlu0 %v12936_v22, %s13995_s28 }
 0xa0a   : > { %7266 = vrot.lane.b32.xlu1 %v12865_v15, %s9451_s29  ;;  %v8194_v15 = vld [vmem:[%s13902_s7 + $0x10] sm:$0xff] }
 0xa0b   : > { %7264 = vrot.lane.b32.xlu0 %v12870_v25, %s9451_s29  ;;  %v8195_v25 = vld [vmem:[%s13902_s7 + $0x18] sm:$0xff] }
 0xa0c   : > { %v9323_v61 = vpack.c.bf16 %v8195_v25, %v8194_v15  ;;  %v9204_v15 = vpop.f32.mrb[62].mxu0 }
 0xa0d   : > { %v6487_v25 = vpop.f32.mrb[63].mxu0 }
 0xa0e   : > { %7458 = vrot.lane.b32.xlu1 %v13091_v43, %s9452_s14  ;;  %9324 = vmatprep.subr.bf16.mxu1 %v9323_v61  ;;  %v8196_v43 = vld [vmem:[%s13902_s7 + $0x20] sm:$0xff] }
 0xa0f   : > { %7456 = vrot.lane.b32.xlu0 %v13095_v62, %s9452_s14  ;;  %9326 = vmatpush3.bf16.msra.mxu1 %v9323_v61  ;;  %v8197_v62 = vld [vmem:[%s13902_s7 + $0x28] sm:$0xff] }
 0xa10   : > { %v6743_v34 = vpop.permute.xlu1 %6742  ;;  %v9327_v19 = vpack.c.bf16 %v8197_v62, %v8196_v43 }
 0xa11   : > { %6811 = vst.msk [vmem:[#allocation3 + $0xd8] sm:$0xff] %vm675_vm2, %v6743_v34  ;;  %v6741_v20 = vpop.permute.xlu0 %6740  ;;  %v6488_v34 = vadd.f32 %v12855_v52, %v6487_v25 }
 0xa12   : > { %6810 = vst.msk [vmem:[#allocation3 + $0xd0] sm:$0xff] %vm675_vm2, %v6741_v20  ;;  %7650 = vrot.lane.b32.xlu1 %v12894_v58, %s9453_s16  ;;  %9328 = vmatprep.subr.bf16.mxu1 %v9327_v19  ;;  %v8198_v58 = vld [vmem:[%s13902_s7 + $0x30] sm:$0xff] }
 0xa13   : > { %7648 = vrot.lane.b32.xlu0 %v12896_v54, %s9453_s16  ;;  %9330 = vmatpush3.bf16.msra.mxu1 %v9327_v19  ;;  %v8199_v54 = vld [vmem:[%s13902_s7 + $0x38] sm:$0xff]  ;;  %v6526_v62 = vmax.f32 %v6488_v34, 0.0 }
 0xa14   : > { %v9331_v36 = vpack.c.bf16 %v8199_v54, %v8198_v58 }
 0xa15   : > { %6558 = vst.msk [vmem:[#allocation2 + $0x181] sm:$0xff] %vm330_vm0, %v6526_v62 }
 0xa16   : > { %7268 = vrot.lane.b32.xlu1 %v12892_v8, %s9451_s29  ;;  %9332 = vmatprep.subr.bf16.mxu1 %v9331_v36 }
 0xa17   : > { %7840 = vrot.lane.b32.xlu0 %v12892_v8, %s9454_s17  ;;  %9334 = vmatpush3.bf16.msra.mxu1 %v9331_v36  ;;  %v8200_v8 = vld [vmem:[%s13902_s7 + $0x40] sm:$0xff] }
 0xa18   : > { %9221 = vmatprep.subr.mxu1 %v8200_v8 }
 0xa1a   : > { %8032 = vrot.lane.b32.xlu1 %v13105_v53, %s9455_s24 }
 0xa1b   : > { %7842 = vrot.lane.b32.xlu0 %v12887_v40, %s9454_s17  ;;  %9222 = vmatpush3.msra.mxu1 %v8200_v8 }
 0xa1c   : > { %v6747_v56 = vpop.permute.xlu1 %6746 }
 0xa1d   : > { %6813 = vst.msk [vmem:[#allocation3 + $0xe8] sm:$0xff] %vm675_vm2, %v6747_v56  ;;  %v6745_v23 = vpop.permute.xlu0 %6744 }
 0xa1e   : > { %6812 = vst.msk [vmem:[#allocation3 + $0xe0] sm:$0xff] %vm675_vm2, %v6745_v23  ;;  %7460 = vrot.lane.b32.xlu1 %v13105_v53, %s9452_s14 }
 0xa1f   : > { %7270 = vrot.lane.b32.xlu0 %v12887_v40, %s9451_s29 }
 0xa22   : > { %7462 = vrot.lane.b32.xlu1 %v13101_v31, %s9452_s14 }
 0xa23   : > { %8034 = vrot.lane.b32.xlu0 %v13101_v31, %s9455_s24 }
 0xa26   : > { %7654 = vrot.lane.b32.xlu1 %v12914_v3, %s9453_s16 }
 0xa27   : > { %7652 = vrot.lane.b32.xlu0 %v12916_v46, %s9453_s16 }
 0xa28   : > { %v6751_v6 = vpop.permute.xlu1 %6750 }
 0xa29   : > { %6815 = vst.msk [vmem:[#allocation3 + $0xf8] sm:$0xff] %vm675_vm2, %v6751_v6  ;;  %v6749_v53 = vpop.permute.xlu0 %6748 }
 0xa2a   : > { %6814 = vst.msk [vmem:[#allocation3 + $0xf0] sm:$0xff] %vm675_vm2, %v6749_v53  ;;  %7272 = vrot.lane.b32.xlu1 %v12912_v26, %s9451_s29 }
 0xa2b   : > { %7844 = vrot.lane.b32.xlu0 %v12912_v26, %s9454_s17 }
 0xa2c   : > { %v6883_v40 = vpop.permute.xlu1 %6882 }
 0xa2d   : > { %6977 = vst.msk [vmem:[#allocation3 + $0x8] sm:$0xff] %vm868_vm3, %v6883_v40  ;;  %v6881_v31 = vpop.permute.xlu0 %6880 }
 0xa2e   : > { %6976 = vst.msk [vmem:[#allocation3] sm:$0xff] %vm868_vm3, %v6881_v31  ;;  %8036 = vrot.lane.b32.xlu1 %v13113_v39, %s9455_s24 }
 0xa2f   : > { %7846 = vrot.lane.b32.xlu0 %v12907_v10, %s9454_s17 }
 0xa30   : > { %v6887_v3 = vpop.permute.xlu1 %6886 }
 0xa31   : > { %6979 = vst.msk [vmem:[#allocation3 + $0x18] sm:$0xff] %vm868_vm3, %v6887_v3  ;;  %v6885_v46 = vpop.permute.xlu0 %6884 }
 0xa32   : > { %6978 = vst.msk [vmem:[#allocation3 + $0x10] sm:$0xff] %vm868_vm3, %v6885_v46  ;;  %7464 = vrot.lane.b32.xlu1 %v13113_v39, %s9452_s14 }
 0xa33   : > { %7274 = vrot.lane.b32.xlu0 %v12907_v10, %s9451_s29 }
 0xa34   : > { %v6891_v26 = vpop.permute.xlu1 %6890 }
 0xa35   : > { %6981 = vst.msk [vmem:[#allocation3 + $0x28] sm:$0xff] %vm868_vm3, %v6891_v26  ;;  %v6889_v14 = vpop.permute.xlu0 %6888 }
 0xa36   : > { %6980 = vst.msk [vmem:[#allocation3 + $0x20] sm:$0xff] %vm868_vm3, %v6889_v14  ;;  %7466 = vrot.lane.b32.xlu1 %v13109_v4, %s9452_s14  ;;  %v7786_v14 = vld [vmem:[#allocation2 + $0xa9] sm:$0xff] }
 0xa37   : > { %8038 = vrot.lane.b32.xlu0 %v13109_v4, %s9455_s24 }
 0xa38   : > { %v6895_v41 = vpop.permute.xlu1 %6894 }
 0xa39   : > { %6983 = vst.msk [vmem:[#allocation3 + $0x38] sm:$0xff] %vm868_vm3, %v6895_v41  ;;  %v6893_v50 = vpop.permute.xlu0 %6892 }
 0xa3a   : > { %6982 = vst.msk [vmem:[#allocation3 + $0x30] sm:$0xff] %vm868_vm3, %v6893_v50  ;;  %7658 = vrot.lane.b32.xlu1 %v12934_v44, %s9453_s16 }
 0xa3b   : > { %7656 = vrot.lane.b32.xlu0 %v12936_v22, %s9453_s16 }
 0xa3c   : > { %v6899_v10 = vpop.permute.xlu1 %6898 }
 0xa3d   : > { %6985 = vst.msk [vmem:[#allocation3 + $0x48] sm:$0xff] %vm868_vm3, %v6899_v10  ;;  %v6897_v39 = vpop.permute.xlu0 %6896  ;;  %v7787_v10 = vld [vmem:[#allocation2 + $0xb1] sm:$0xff] }
 0xa3e   : > { %6984 = vst.msk [vmem:[#allocation3 + $0x40] sm:$0xff] %vm868_vm3, %v6897_v39  ;;  %7276 = vrot.lane.b32.xlu1 %v12932_v29, %s9451_s29 }
 0xa3f   : > { %7848 = vrot.lane.b32.xlu0 %v12932_v29, %s9454_s17  ;;  %v6493_v29 = vadd.f32 %v9204_v15, %v12855_v52 }
 0xa40   : > { %v6903_v4 = vpop.permute.xlu1 %6902 }
 0xa41   : > { %6987 = vst.msk [vmem:[#allocation3 + $0x58] sm:$0xff] %vm868_vm3, %v6903_v4  ;;  %v6901_v7 = vpop.permute.xlu0 %6900  ;;  %v6527_v20 = vmax.f32 %v6493_v29, 0.0 }
 0xa42   : > { %6986 = vst.msk [vmem:[#allocation3 + $0x50] sm:$0xff] %vm868_vm3, %v6901_v7  ;;  %8040 = vrot.lane.b32.xlu1 %v13123_v24, %s9455_s24 }
 0xa43   : > { %7850 = vrot.lane.b32.xlu0 %v12927_v9, %s9454_s17  ;;  %6559 = vst.msk [vmem:[#allocation2 + $0x189] sm:$0xff] %vm330_vm0, %v6527_v20 }
 0xa44   : > { %v6907_v44 = vpop.permute.xlu1 %6906 }
 0xa45   : > { %6989 = vst.msk [vmem:[#allocation3 + $0x68] sm:$0xff] %vm868_vm3, %v6907_v44  ;;  %v6905_v22 = vpop.permute.xlu0 %6904 }
 0xa46   : > { %6988 = vst.msk [vmem:[#allocation3 + $0x60] sm:$0xff] %vm868_vm3, %v6905_v22  ;;  %7468 = vrot.lane.b32.xlu1 %v13123_v24, %s9452_s14 }
 0xa47   : > { %7278 = vrot.lane.b32.xlu0 %v12927_v9, %s9451_s29 }
 0xa48   : > { %v6911_v61 = vpop.permute.xlu1 %6910 }
 0xa49   : > { %6991 = vst.msk [vmem:[#allocation3 + $0x78] sm:$0xff] %vm868_vm3, %v6911_v61  ;;  %v6909_v43 = vpop.permute.xlu0 %6908 }
 0xa4a   : > { %6990 = vst.msk [vmem:[#allocation3 + $0x70] sm:$0xff] %vm868_vm3, %v6909_v43  ;;  %7470 = vrot.lane.b32.xlu1 %v13119_v5, %s9452_s14  ;;  %v7789_v43 = vld [vmem:[#allocation2 + $0xc9] sm:$0xff] }
 0xa4b   : > { %8042 = vrot.lane.b32.xlu0 %v13119_v5, %s9455_s24 }
 0xa4c   : > { %v6915_v9 = vpop.permute.xlu1 %6914 }
 0xa4d   : > { %6993 = vst.msk [vmem:[#allocation3 + $0x88] sm:$0xff] %vm868_vm3, %v6915_v9  ;;  %v6913_v52 = vpop.permute.xlu0 %6912 }
 0xa4e   : > { %6992 = vst.msk [vmem:[#allocation3 + $0x80] sm:$0xff] %vm868_vm3, %v6913_v52  ;;  %7088 = vrot.lane.b32.xlu1 %v12956_v16, %s14179_s23 }
 0xa4f   : > { %7660 = vrot.lane.b32.xlu0 %v12956_v16, %s9453_s16 }
 0xa50   : > { %v6919_v24 = vpop.permute.xlu1 %6918 }
 0xa51   : > { %6995 = vst.msk [vmem:[#allocation3 + $0x98] sm:$0xff] %vm868_vm3, %v6919_v24  ;;  %v6917_v19 = vpop.permute.xlu0 %6916 }
 0xa52   : > { %6994 = vst.msk [vmem:[#allocation3 + $0x90] sm:$0xff] %vm868_vm3, %v6917_v19  ;;  %7852 = vrot.lane.b32.xlu1 %v12952_v35, %s9454_s17 }
 0xa53   : > { %7662 = vrot.lane.b32.xlu0 %v12954_v38, %s9453_s16 }
 0xa54   : > { %v6923_v5 = vpop.permute.xlu1 %6922 }
 0xa55   : > { %6997 = vst.msk [vmem:[#allocation3 + $0xa8] sm:$0xff] %vm868_vm3, %v6923_v5  ;;  %v6921_v58 = vpop.permute.xlu0 %6920 }
 0xa56   : > { %6996 = vst.msk [vmem:[#allocation3 + $0xa0] sm:$0xff] %vm868_vm3, %v6921_v58  ;;  %7280 = vrot.lane.b32.xlu1 %v12952_v35, %s9451_s29 }
 0xa57   : > { %7090 = vrot.lane.b32.xlu0 %v12954_v38, %s14179_s23 }
 0xa58   : > { %v6927_v16 = vpop.permute.xlu1 %6926 }
 0xa59   : > { %6999 = vst.msk [vmem:[#allocation3 + $0xb8] sm:$0xff] %vm868_vm3, %v6927_v16  ;;  %v6925_v54 = vpop.permute.xlu0 %6924  ;;  %v7790_v16 = vld [vmem:[#allocation2 + $0xd9] sm:$0xff] }
 0xa5a   : > { %6998 = vst.msk [vmem:[#allocation3 + $0xb0] sm:$0xff] %vm868_vm3, %v6925_v54  ;;  %8044 = vrot.lane.b32.xlu1 %v13131_v12, %s9455_s24 }
 0xa5b   : > { %7854 = vrot.lane.b32.xlu0 %v12947_v17, %s9454_s17 }
 0xa5c   : > { %v6931_v36 = vpop.permute.xlu1 %6930 }
 0xa5d   : > { %7001 = vst.msk [vmem:[#allocation3 + $0xc8] sm:$0xff] %vm868_vm3, %v6931_v36  ;;  %v6929_v8 = vpop.permute.xlu0 %6928 }
 0xa5e   : > { %7000 = vst.msk [vmem:[#allocation3 + $0xc0] sm:$0xff] %vm868_vm3, %v6929_v8  ;;  %7472 = vrot.lane.b32.xlu1 %v13131_v12, %s9452_s14 }
 0xa5f   : > { %7282 = vrot.lane.b32.xlu0 %v12947_v17, %s9451_s29 }
 0xa60   : > { %v6935_v35 = vpop.permute.xlu1 %6934 }
 0xa61   : > { %7003 = vst.msk [vmem:[#allocation3 + $0xd8] sm:$0xff] %vm868_vm3, %v6935_v35  ;;  %v6933_v38 = vpop.permute.xlu0 %6932  ;;  %v7791_v35 = vld [vmem:[#allocation2 + $0xe1] sm:$0xff] }
 0xa62   : > { %7002 = vst.msk [vmem:[#allocation3 + $0xd0] sm:$0xff] %vm868_vm3, %v6933_v38  ;;  %7474 = vrot.lane.b32.xlu1 %v13127_v45, %s9452_s14 }
 0xa63   : > { %8046 = vrot.lane.b32.xlu0 %v13127_v45, %s9455_s24 }
 0xa64   : > { %v6939_v56 = vpop.permute.xlu1 %6938 }
 0xa65   : > { %7005 = vst.msk [vmem:[#allocation3 + $0xe8] sm:$0xff] %vm868_vm3, %v6939_v56  ;;  %v6937_v23 = vpop.permute.xlu0 %6936 }
 0xa66   : > { %7004 = vst.msk [vmem:[#allocation3 + $0xe0] sm:$0xff] %vm868_vm3, %v6937_v23  ;;  %7092 = vrot.lane.b32.xlu1 %v12976_v63, %s14179_s23 }
 0xa67   : > { %7664 = vrot.lane.b32.xlu0 %v12976_v63, %s9453_s16 }
 0xa68   : > { %v6943_v17 = vpop.permute.xlu1 %6942 }
 0xa69   : > { %7007 = vst.msk [vmem:[#allocation3 + $0xf8] sm:$0xff] %vm868_vm3, %v6943_v17  ;;  %v6941_v12 = vpop.permute.xlu0 %6940 }
 0xa6a   : > { %7006 = vst.msk [vmem:[#allocation3 + $0xf0] sm:$0xff] %vm868_vm3, %v6941_v12  ;;  %7856 = vrot.lane.b32.xlu1 %v12972_v0, %s9454_s17 }
 0xa6b   : > { %7666 = vrot.lane.b32.xlu0 %v12974_v1, %s9453_s16 }
 0xa6c   : > { %v7075_v45 = vpop.permute.xlu1 %7074 }
 0xa6d   : > { %7169 = vst.msk [vmem:[#allocation3 + $0x8] sm:$0xff] %vm1061_vm4, %v7075_v45  ;;  %v7073_v6 = vpop.permute.xlu0 %7072 }
 0xa6e   : > { %7168 = vst.msk [vmem:[#allocation3] sm:$0xff] %vm1061_vm4, %v7073_v6  ;;  %7284 = vrot.lane.b32.xlu1 %v12972_v0, %s9451_s29  ;;  %v7211_v0 = vld [vmem:[#allocation2 + $0x99] sm:$0xff] }
 0xa6f   : > { %7094 = vrot.lane.b32.xlu0 %v12974_v1, %s14179_s23 }
 0xa70   : > { %v7079_v63 = vpop.permute.xlu1 %7078 }
 0xa71   : > { %7171 = vst.msk [vmem:[#allocation3 + $0x18] sm:$0xff] %vm1061_vm4, %v7079_v63  ;;  %v7077_v53 = vpop.permute.xlu0 %7076 }
 0xa72   : > { %7170 = vst.msk [vmem:[#allocation3 + $0x10] sm:$0xff] %vm1061_vm4, %v7077_v53  ;;  %8048 = vrot.lane.b32.xlu1 %v13141_v57, %s9455_s24 }
 0xa73   : > { %7858 = vrot.lane.b32.xlu0 %v12967_v55, %s9454_s17 }
 0xa74   : > { %v7083_v40 = vpop.permute.xlu1 %7082 }
 0xa75   : > { %7173 = vst.msk [vmem:[#allocation3 + $0x28] sm:$0xff] %vm1061_vm4, %v7083_v40  ;;  %v7081_v31 = vpop.permute.xlu0 %7080 }
 0xa76   : > { %7172 = vst.msk [vmem:[#allocation3 + $0x20] sm:$0xff] %vm1061_vm4, %v7081_v31  ;;  %7476 = vrot.lane.b32.xlu1 %v13141_v57, %s9452_s14 }
 0xa77   : > { %7286 = vrot.lane.b32.xlu0 %v7211_v0, %s9451_s29  ;;  %v7793_v0 = vld [vmem:[#allocation2 + $0xf9] sm:$0xff] }
 0xa78   : > { %v7087_v1 = vpop.permute.xlu1 %7086 }
 0xa79   : > { %7175 = vst.msk [vmem:[#allocation3 + $0x38] sm:$0xff] %vm1061_vm4, %v7087_v1  ;;  %v7085_v3 = vpop.permute.xlu0 %7084 }
 0xa7a   : > { %7174 = vst.msk [vmem:[#allocation3 + $0x30] sm:$0xff] %vm1061_vm4, %v7085_v3  ;;  %7478 = vrot.lane.b32.xlu1 %v13137_v11, %s9452_s14 }
 0xa7b   : > { %8050 = vrot.lane.b32.xlu0 %v13137_v11, %s9455_s24 }
 0xa7c   : > { %v7267_v55 = vpop.permute.xlu1 %7266 }
 0xa7d   : > { %7361 = vst.msk [vmem:[#allocation3 + $0x8] sm:$0xff] %vm1254_vm5, %v7267_v55  ;;  %v7265_v46 = vpop.permute.xlu0 %7264 }
 0xa7e   : > { %7360 = vst.msk [vmem:[#allocation3] sm:$0xff] %vm1254_vm5, %v7265_v46  ;;  %7096 = vrot.lane.b32.xlu1 %v12995_v49, %s14179_s23 }
 0xa7f   : > { %7668 = vrot.lane.b32.xlu0 %v12995_v49, %s9453_s16 }
 0xa80   : > { %v7459_v57 = vpop.permute.xlu1 %7458 }
 0xa81   : > { %7553 = vst.msk [vmem:[#allocation3 + $0x8] sm:$0xff] %vm1447_vm6, %v7459_v57  ;;  %v7457_v26 = vpop.permute.xlu0 %7456  ;;  %v7411_v57 = vld [vmem:[#allocation2 + $0xfa] sm:$0xff] }
 0xa82   : > { %7552 = vst.msk [vmem:[#allocation3] sm:$0xff] %vm1447_vm6, %v7457_v26  ;;  %7860 = vrot.lane.b32.xlu1 %v7786_v14, %s9454_s17 }
 0xa83   : > { %7670 = vrot.lane.b32.xlu0 %v12989_v37, %s9453_s16 }
 0xa84   : > { %v7651_v11 = vpop.permute.xlu1 %7650 }
 0xa85   : > { %7745 = vst.msk [vmem:[#allocation3 + $0x8] sm:$0xff] %vm1641_vm7, %v7651_v11  ;;  %v7649_v41 = vpop.permute.xlu0 %7648 }
 0xa86   : > { %7744 = vst.msk [vmem:[#allocation3] sm:$0xff] %vm1641_vm7, %v7649_v41  ;;  %7288 = vrot.lane.b32.xlu1 %v7786_v14, %s9451_s29 }
 0xa87   : > { %7098 = vrot.lane.b32.xlu0 %v12989_v37, %s14179_s23 }
 0xa88   : > { %v7269_v49 = vpop.permute.xlu1 %7268 }
 0xa89   : > { %7362 = vst.msk [vmem:[#allocation3 + $0x10] sm:$0xff] %vm1254_vm5, %v7269_v49  ;;  %v7841_v50 = vpop.permute.xlu0 %7840 }
 0xa8a   : > { %7936 = vst.msk [vmem:[#allocation3] sm:$0xff] %vm1834_vm8, %v7841_v50  ;;  %8052 = vrot.lane.b32.xlu1 %v13149_v18, %s9455_s24  ;;  %v7794_v50 = vld [vmem:[#allocation2 + $0x109] sm:$0xff] }
 0xa8b   : > { %7862 = vrot.lane.b32.xlu0 %v7787_v10, %s9454_s17 }
 0xa8c   : > { %v8033_v39 = vpop.permute.xlu1 %8032 }
 0xa8d   : > { %8128 = vst.msk [vmem:[#allocation3] sm:$0xff] %vm2027_vm9, %v8033_v39  ;;  %v7843_v4 = vpop.permute.xlu0 %7842 }
 0xa8e   : > { %7937 = vst.msk [vmem:[#allocation3 + $0x8] sm:$0xff] %vm1834_vm8, %v7843_v4  ;;  %7480 = vrot.lane.b32.xlu1 %v13149_v18, %s9452_s14 }
 0xa8f   : > { %7290 = vrot.lane.b32.xlu0 %v7787_v10, %s9451_s29 }
 0xa90   : > { %v7461_v37 = vpop.permute.xlu1 %7460 }
 0xa91   : > { %7554 = vst.msk [vmem:[#allocation3 + $0x10] sm:$0xff] %vm1447_vm6, %v7461_v37  ;;  %v7271_v7 = vpop.permute.xlu0 %7270  ;;  %v7986_v37 = vld [vmem:[#allocation2 + $0x10a] sm:$0xff] }
 0xa92   : > { %7363 = vst.msk [vmem:[#allocation3 + $0x18] sm:$0xff] %vm1254_vm5, %v7271_v7  ;;  %7482 = vrot.lane.b32.xlu1 %v13145_v42, %s9452_s14  ;;  %v7795_v7 = vld [vmem:[#allocation2 + $0x111] sm:$0xff] }
 0xa93   : > { %8054 = vrot.lane.b32.xlu0 %v13145_v42, %s9455_s24  ;;  %v7788_v42 = vld [vmem:[#allocation2 + $0xc1] sm:$0xff] }
 0xa94   : > { %v7463_v44 = vpop.permute.xlu1 %7462  ;;  %v8160_v22 = vld [vmem:[#allocation3] sm:$0xff] }
 0xa95   : > { %7555 = vst.msk [vmem:[#allocation3 + $0x18] sm:$0xff] %vm1447_vm6, %v7463_v44  ;;  %9223 = vmatprep.mubr.msk.f32.mxu1 %vm2108_vm10, %v8160_v22  ;;  %v8035_v18 = vpop.permute.xlu0 %8034 }
 0xa96   : > { %8129 = vst.msk [vmem:[#allocation3 + $0x8] sm:$0xff] %vm2027_vm9, %v8035_v18  ;;  %7100 = vrot.lane.b32.xlu1 %v13009_v21, %s14179_s23 }
 0xa97   : > { %7672 = vrot.lane.b32.xlu0 %v13009_v21, %s9453_s16 }
 0xa98   : > { %v7655_v15 = vpop.permute.xlu1 %7654 }
 0xa99   : > { %7747 = vst.msk [vmem:[#allocation3 + $0x18] sm:$0xff] %vm1641_vm7, %v7655_v15  ;;  %v7653_v29 = vpop.permute.xlu0 %7652 }
 0xa9a   : > { %7746 = vst.msk [vmem:[#allocation3 + $0x10] sm:$0xff] %vm1641_vm7, %v7653_v29  ;;  %7864 = vrot.lane.b32.xlu1 %v7788_v42, %s9454_s17  ;;  %v7413_v29 = vld [vmem:[#allocation2 + $0x112] sm:$0xff] }
 0xa9b   : > { %7674 = vrot.lane.b32.xlu0 %v13003_v28, %s9453_s16 }
 0xa9c   : > { %v7273_v25 = vpop.permute.xlu1 %7272 }
 0xa9d   : > { %7364 = vst.msk [vmem:[#allocation3 + $0x20] sm:$0xff] %vm1254_vm5, %v7273_v25  ;;  %v7845_v34 = vpop.permute.xlu0 %7844  ;;  %v8161_v61 = vld [vmem:[#allocation3 + $0x8] sm:$0xff] }
 0xa9e   : > { %7938 = vst.msk [vmem:[#allocation3 + $0x10] sm:$0xff] %vm1834_vm8, %v7845_v34  ;;  %7292 = vrot.lane.b32.xlu1 %v7788_v42, %s9451_s29  ;;  %9224 = vmatmul.mubr.msk.f32.vlgmr.msra.gmra.mrb[32].mxu1 %vm2108_vm10, %v8161_v61  ;;  %v7030_v34 = vld [vmem:[#allocation2 + $0x120] sm:$0xff] }
 0xa9f   : > { %7102 = vrot.lane.b32.xlu0 %v13003_v28, %s14179_s23 }
 0xaa0   : > { %v8037_v21 = vpop.permute.xlu1 %8036 }
 0xaa1   : > { %8130 = vst.msk [vmem:[#allocation3 + $0x10] sm:$0xff] %vm2027_vm9, %v8037_v21  ;;  %v7847_v20 = vpop.permute.xlu0 %7846 }
 0xaa2   : > { %7939 = vst.msk [vmem:[#allocation3 + $0x18] sm:$0xff] %vm1834_vm8, %v7847_v20  ;;  %8056 = vrot.lane.b32.xlu1 %v13159_v60, %s9455_s24 }
 0xaa3   : > { %7866 = vrot.lane.b32.xlu0 %v7789_v43, %s9454_s17 }
 0xaa4   : > { %v7465_v62 = vpop.permute.xlu1 %7464 }
 0xaa5   : > { %7556 = vst.msk [vmem:[#allocation3 + $0x20] sm:$0xff] %vm1447_vm6, %v7465_v62  ;;  %v7275_v9 = vpop.permute.xlu0 %7274  ;;  %v7605_v62 = vld [vmem:[#allocation2 + $0x128] sm:$0xff] }
 0xaa6   : > { %7365 = vst.msk [vmem:[#allocation3 + $0x28] sm:$0xff] %vm1254_vm5, %v7275_v9  ;;  %7484 = vrot.lane.b32.xlu1 %v13159_v60, %s9452_s14 }
 0xaa7   : > { %7294 = vrot.lane.b32.xlu0 %v7789_v43, %s9451_s29  ;;  %v7796_v43 = vld [vmem:[#allocation2 + $0x121] sm:$0xff] }
 0xaa8   : > { %v7467_v28 = vpop.permute.xlu1 %7466  ;;  %v8162_v52 = vld [vmem:[#allocation3 + $0x10] sm:$0xff] }
 0xaa9   : > { %7557 = vst.msk [vmem:[#allocation3 + $0x28] sm:$0xff] %vm1447_vm6, %v7467_v28  ;;  %9226 = vmatprep.mubr.msk.f32.mxu1 %vm2108_vm10, %v8162_v52  ;;  %v8039_v24 = vpop.permute.xlu0 %8038 }
 0xaaa   : > { %8131 = vst.msk [vmem:[#allocation3 + $0x18] sm:$0xff] %vm2027_vm9, %v8039_v24  ;;  %7486 = vrot.lane.b32.xlu1 %v13155_v51, %s9452_s14 }
 0xaab   : > { %8058 = vrot.lane.b32.xlu0 %v13155_v51, %s9455_s24 }
 0xaac   : > { %v7659_v19 = vpop.permute.xlu1 %7658 }
 0xaad   : > { %7749 = vst.msk [vmem:[#allocation3 + $0x28] sm:$0xff] %vm1641_vm7, %v7659_v19  ;;  %v7657_v60 = vpop.permute.xlu0 %7656  ;;  %v7988_v19 = vld [vmem:[#allocation2 + $0x122] sm:$0xff] }
 0xaae   : > { %7748 = vst.msk [vmem:[#allocation3 + $0x20] sm:$0xff] %vm1641_vm7, %v7657_v60  ;;  %7104 = vrot.lane.b32.xlu1 %v13023_v59, %s14179_s23  ;;  %v7797_v60 = vld [vmem:[#allocation2 + $0x129] sm:$0xff] }
 0xaaf   : > { %7676 = vrot.lane.b32.xlu0 %v13023_v59, %s9453_s16 }
 0xab0   : > { %v7277_v5 = vpop.permute.xlu1 %7276 }
 0xab1   : > { %7366 = vst.msk [vmem:[#allocation3 + $0x30] sm:$0xff] %vm1254_vm5, %v7277_v5  ;;  %v7849_v58 = vpop.permute.xlu0 %7848  ;;  %v8163_v54 = vld [vmem:[#allocation3 + $0x18] sm:$0xff] }
 0xab2   : > { %7940 = vst.msk [vmem:[#allocation3 + $0x20] sm:$0xff] %vm1834_vm8, %v7849_v58  ;;  %7868 = vrot.lane.b32.xlu1 %v7790_v16, %s9454_s17  ;;  %9227 = vmatmul.mubr.msk.f32.gmra.mrb[34].mxu1 %vm2108_vm10, %v8163_v54 }
 0xab3   : > { %7678 = vrot.lane.b32.xlu0 %v13017_v27, %s9453_s16 }
 0xab4   : > { %v8041_v51 = vpop.permute.xlu1 %8040 }
 0xab5   : > { %8132 = vst.msk [vmem:[#allocation3 + $0x20] sm:$0xff] %vm2027_vm9, %v8041_v51  ;;  %v7851_v36 = vpop.permute.xlu0 %7850 }
 0xab6   : > { %7941 = vst.msk [vmem:[#allocation3 + $0x28] sm:$0xff] %vm1834_vm8, %v7851_v36  ;;  %7296 = vrot.lane.b32.xlu1 %v7790_v16, %s9451_s29  ;;  %v7415_v36 = vld [vmem:[#allocation2 + $0x12a] sm:$0xff] }
 0xab7   : > { %7106 = vrot.lane.b32.xlu0 %v13017_v27, %s14179_s23 }
 0xab8   : > { %v7469_v59 = vpop.permute.xlu1 %7468 }
 0xab9   : > { %7558 = vst.msk [vmem:[#allocation3 + $0x30] sm:$0xff] %vm1447_vm6, %v7469_v59  ;;  %v7279_v8 = vpop.permute.xlu0 %7278 }
 0xaba   : > { %7367 = vst.msk [vmem:[#allocation3 + $0x38] sm:$0xff] %vm1254_vm5, %v7279_v8  ;;  %8060 = vrot.lane.b32.xlu1 %v13167_v13, %s9455_s24 }
 0xabb   : > { %7870 = vrot.lane.b32.xlu0 %v7791_v35, %s9454_s17 }
 0xabc   : > { %v7471_v38 = vpop.permute.xlu1 %7470  ;;  %v8164_v56 = vld [vmem:[#allocation3 + $0x20] sm:$0xff] }
 0xabd   : > { %7559 = vst.msk [vmem:[#allocation3 + $0x38] sm:$0xff] %vm1447_vm6, %v7471_v38  ;;  %9229 = vmatprep.mubr.msk.f32.mxu1 %vm2108_vm10, %v8164_v56  ;;  %v8043_v23 = vpop.permute.xlu0 %8042 }
 0xabe   : > { %8133 = vst.msk [vmem:[#allocation3 + $0x28] sm:$0xff] %vm2027_vm9, %v8043_v23  ;;  %7488 = vrot.lane.b32.xlu1 %v13167_v13, %s9452_s14 }
 0xabf   : > { %7298 = vrot.lane.b32.xlu0 %v7791_v35, %s9451_s29  ;;  %v7032_v35 = vld [vmem:[#allocation2 + $0x138] sm:$0xff] }
 0xac0   : > { %v7089_v27 = vpop.permute.xlu1 %7088 }
 0xac1   : > { %7176 = vst.msk [vmem:[#allocation3 + $0x40] sm:$0xff] %vm1061_vm4, %v7089_v27  ;;  %v7661_v17 = vpop.permute.xlu0 %7660  ;;  %v7798_v27 = vld [vmem:[#allocation2 + $0x139] sm:$0xff] }
 0xac2   : > { %7750 = vst.msk [vmem:[#allocation3 + $0x30] sm:$0xff] %vm1641_vm7, %v7661_v17  ;;  %7490 = vrot.lane.b32.xlu1 %v13163_v32, %s9452_s14  ;;  %v7607_v17 = vld [vmem:[#allocation2 + $0x140] sm:$0xff] }
 0xac3   : > { %8062 = vrot.lane.b32.xlu0 %v13163_v32, %s9455_s24  ;;  %v7792_v32 = vld [vmem:[#allocation2 + $0xf1] sm:$0xff] }
 0xac4   : > { %v7853_v12 = vpop.permute.xlu1 %7852 }
 0xac5   : > { %7942 = vst.msk [vmem:[#allocation3 + $0x30] sm:$0xff] %vm1834_vm8, %v7853_v12  ;;  %v7663_v45 = vpop.permute.xlu0 %7662  ;;  %v8165_v6 = vld [vmem:[#allocation3 + $0x28] sm:$0xff] }
 0xac6   : > { %7751 = vst.msk [vmem:[#allocation3 + $0x38] sm:$0xff] %vm1641_vm7, %v7663_v45  ;;  %7108 = vrot.lane.b32.xlu1 %v13036_v48, %s14179_s23  ;;  %9230 = vmatmul.mubr.msk.f32.gmra.mrb[36].mxu1 %vm2108_vm10, %v8165_v6 }
 0xac7   : > { %7680 = vrot.lane.b32.xlu0 %v13036_v48, %s9453_s16 }
 0xac8   : > { %v7281_v13 = vpop.permute.xlu1 %7280 }
 0xac9   : > { %7368 = vst.msk [vmem:[#allocation3 + $0x40] sm:$0xff] %vm1254_vm5, %v7281_v13  ;;  %v7091_v63 = vpop.permute.xlu0 %7090 }
 0xaca   : > { %7177 = vst.msk [vmem:[#allocation3 + $0x48] sm:$0xff] %vm1061_vm4, %v7091_v63  ;;  %7872 = vrot.lane.b32.xlu1 %v7792_v32, %s9454_s17  ;;  %v7990_v63 = vld [vmem:[#allocation2 + $0x13a] sm:$0xff] }
 0xacb   : > { %7682 = vrot.lane.b32.xlu0 %v13030_v30, %s9453_s16 }
 0xacc   : > { %v8045_v53 = vpop.permute.xlu1 %8044 }
 0xacd   : > { %8134 = vst.msk [vmem:[#allocation3 + $0x30] sm:$0xff] %vm2027_vm9, %v8045_v53  ;;  %v7855_v40 = vpop.permute.xlu0 %7854 }
 0xace   : > { %7943 = vst.msk [vmem:[#allocation3 + $0x38] sm:$0xff] %vm1834_vm8, %v7855_v40  ;;  %7300 = vrot.lane.b32.xlu1 %v7792_v32, %s9451_s29  ;;  %v7799_v32 = vld [vmem:[#allocation2 + $0x141] sm:$0xff] }
 0xacf   : > { %7110 = vrot.lane.b32.xlu0 %v13030_v30, %s14179_s23  ;;  %v7410_v30 = vld [vmem:[#allocation2 + $0xf2] sm:$0xff] }
 0xad0   : > { %v7473_v48 = vpop.permute.xlu1 %7472 }
 0xad1   : > { %7560 = vst.msk [vmem:[#allocation3 + $0x40] sm:$0xff] %vm1447_vm6, %v7473_v48  ;;  %v7283_v31 = vpop.permute.xlu0 %7282 }
 0xad2   : > { %7369 = vst.msk [vmem:[#allocation3 + $0x48] sm:$0xff] %vm1254_vm5, %v7283_v31  ;;  %8064 = vrot.lane.b32.xlu1 %v13174_v2, %s9455_s24 }
 0xad3   : > { %7874 = vrot.lane.b32.xlu0 %v7793_v0, %s9454_s17 }
 0xad4   : > { %v7475_v1 = vpop.permute.xlu1 %7474  ;;  %v8166_v3 = vld [vmem:[#allocation3 + $0x30] sm:$0xff] }
 0xad5   : > { %7561 = vst.msk [vmem:[#allocation3 + $0x48] sm:$0xff] %vm1447_vm6, %v7475_v1  ;;  %9232 = vmatprep.mubr.msk.f32.mxu1 %vm2108_vm10, %v8166_v3  ;;  %v8047_v55 = vpop.permute.xlu0 %8046  ;;  %v7417_v1 = vld [vmem:[#allocation2 + $0x142] sm:$0xff] }
 0xad6   : > { %8135 = vst.msk [vmem:[#allocation3 + $0x38] sm:$0xff] %vm2027_vm9, %v8047_v55  ;;  %7492 = vrot.lane.b32.xlu1 %v7410_v30, %s9452_s14  ;;  %v7034_v30 = vld [vmem:[#allocation2 + $0x150] sm:$0xff] }
 0xad7   : > { %7302 = vrot.lane.b32.xlu0 %v7793_v0, %s9451_s29 }
 0xad8   : > { %v7093_v46 = vpop.permute.xlu1 %7092 }
 0xad9   : > { %7178 = vst.msk [vmem:[#allocation3 + $0x50] sm:$0xff] %vm1061_vm4, %v7093_v46  ;;  %v7665_v2 = vpop.permute.xlu0 %7664 }
 0xada   : > { %7752 = vst.msk [vmem:[#allocation3 + $0x40] sm:$0xff] %vm1641_vm7, %v7665_v2  ;;  %7494 = vrot.lane.b32.xlu1 %v7411_v57, %s9452_s14 }
 0xadb   : > { %8066 = vrot.lane.b32.xlu0 %v7411_v57, %s9455_s24 }
 0xadc   : > { %v7857_v26 = vpop.permute.xlu1 %7856 }
 0xadd   : > { %7944 = vst.msk [vmem:[#allocation3 + $0x40] sm:$0xff] %vm1834_vm8, %v7857_v26  ;;  %v7667_v14 = vpop.permute.xlu0 %7666  ;;  %v8167_v11 = vld [vmem:[#allocation3 + $0x38] sm:$0xff]  ;;  %v7800_v26 = vld [vmem:[#allocation2 + $0x151] sm:$0xff] }
 0xade   : > { %7753 = vst.msk [vmem:[#allocation3 + $0x48] sm:$0xff] %vm1641_vm7, %v7667_v14  ;;  %7112 = vrot.lane.b32.xlu1 %v13049_v47, %s14179_s23  ;;  %9233 = vmatmul.mubr.msk.f32.gmra.mrb[38].mxu1 %vm2108_vm10, %v8167_v11  ;;  %v7609_v14 = vld [vmem:[#allocation2 + $0x158] sm:$0xff] }
 0xadf   : > { %7684 = vrot.lane.b32.xlu0 %v13049_v47, %s9453_s16 }
 0xae0   : > { %v7285_v41 = vpop.permute.xlu1 %7284 }
 0xae1   : > { %7370 = vst.msk [vmem:[#allocation3 + $0x50] sm:$0xff] %vm1254_vm5, %v7285_v41  ;;  %v7095_v49 = vpop.permute.xlu0 %7094 }
 0xae2   : > { %7179 = vst.msk [vmem:[#allocation3 + $0x58] sm:$0xff] %vm1061_vm4, %v7095_v49  ;;  %7876 = vrot.lane.b32.xlu1 %v7794_v50, %s9454_s17 }
 0xae3   : > { %7686 = vrot.lane.b32.xlu0 %v13043_v33, %s9453_s16 }
 0xae4   : > { %v8049_v10 = vpop.permute.xlu1 %8048 }
 0xae5   : > { %8136 = vst.msk [vmem:[#allocation3 + $0x40] sm:$0xff] %vm2027_vm9, %v8049_v10  ;;  %v7859_v39 = vpop.permute.xlu0 %7858  ;;  %v7992_v10 = vld [vmem:[#allocation2 + $0x152] sm:$0xff] }
 0xae6   : > { %7945 = vst.msk [vmem:[#allocation3 + $0x48] sm:$0xff] %vm1834_vm8, %v7859_v39  ;;  %7304 = vrot.lane.b32.xlu1 %v7794_v50, %s9451_s29  ;;  %v7801_v39 = vld [vmem:[#allocation2 + $0x159] sm:$0xff] }
 0xae7   : > { %7114 = vrot.lane.b32.xlu0 %v13043_v33, %s14179_s23 }
 0xae8   : > { %v7477_v47 = vpop.permute.xlu1 %7476 }
 0xae9   : > { %7562 = vst.msk [vmem:[#allocation3 + $0x50] sm:$0xff] %vm1447_vm6, %v7477_v47  ;;  %v7287_v4 = vpop.permute.xlu0 %7286 }
 0xaea   : > { %7371 = vst.msk [vmem:[#allocation3 + $0x58] sm:$0xff] %vm1254_vm5, %v7287_v4  ;;  %8068 = vrot.lane.b32.xlu1 %v7986_v37, %s9455_s24 }
 0xaeb   : > { %7878 = vrot.lane.b32.xlu0 %v7795_v7, %s9454_s17 }
 0xaec   : > { %v7479_v44 = vpop.permute.xlu1 %7478  ;;  %v8168_v22 = vld [vmem:[#allocation3 + $0x40] sm:$0xff] }
 0xaed   : > { %7563 = vst.msk [vmem:[#allocation3 + $0x58] sm:$0xff] %vm1447_vm6, %v7479_v44  ;;  %v8051_v18 = vpop.permute.xlu0 %8050  ;;  %9235 = vmatprep.mubr.msk.f32.mxu1 %vm2108_vm10, %v8168_v22  ;;  %v7419_v22 = vld [vmem:[#allocation2 + $0x15a] sm:$0xff] }
 0xaee   : > { %8137 = vst.msk [vmem:[#allocation3 + $0x48] sm:$0xff] %vm2027_vm9, %v8051_v18  ;;  %7496 = vrot.lane.b32.xlu1 %v7986_v37, %s9452_s14 }
 0xaef   : > { %7306 = vrot.lane.b32.xlu0 %v7795_v7, %s9451_s29 }
 0xaf0   : > { %v7097_v33 = vpop.permute.xlu1 %7096 }
 0xaf1   : > { %7180 = vst.msk [vmem:[#allocation3 + $0x60] sm:$0xff] %vm1061_vm4, %v7097_v33  ;;  %v7669_v15 = vpop.permute.xlu0 %7668 }
 0xaf2   : > { %7754 = vst.msk [vmem:[#allocation3 + $0x50] sm:$0xff] %vm1641_vm7, %v7669_v15  ;;  %7498 = vrot.lane.b32.xlu1 %v7413_v29, %s9452_s14  ;;  %v7036_v15 = vld [vmem:[#allocation2 + $0x168] sm:$0xff] }
 0xaf3   : > { %8070 = vrot.lane.b32.xlu0 %v7413_v29, %s9455_s24 }
 0xaf4   : > { %v7861_v42 = vpop.permute.xlu1 %7860 }
 0xaf5   : > { %7946 = vst.msk [vmem:[#allocation3 + $0x50] sm:$0xff] %vm1834_vm8, %v7861_v42  ;;  %v7671_v25 = vpop.permute.xlu0 %7670  ;;  %v8169_v61 = vld [vmem:[#allocation3 + $0x48] sm:$0xff] }
 0xaf6   : > { %7755 = vst.msk [vmem:[#allocation3 + $0x58] sm:$0xff] %vm1641_vm7, %v7671_v25  ;;  %7116 = vrot.lane.b32.xlu1 %v7030_v34, %s14179_s23  ;;  %9236 = vmatmul.mubr.msk.f32.gmra.mrb[40].mxu1 %vm2108_vm10, %v8169_v61  ;;  %v7611_v61 = vld [vmem:[#allocation2 + $0x170] sm:$0xff] }
 0xaf7   : > { %7688 = vrot.lane.b32.xlu0 %v7030_v34, %s9453_s16  ;;  %v7802_v34 = vld [vmem:[#allocation2 + $0x169] sm:$0xff] }
 0xaf8   : > { %v7289_v21 = vpop.permute.xlu1 %7288 }
 0xaf9   : > { %7372 = vst.msk [vmem:[#allocation3 + $0x60] sm:$0xff] %vm1254_vm5, %v7289_v21  ;;  %v7099_v20 = vpop.permute.xlu0 %7098 }
 0xafa   : > { %7181 = vst.msk [vmem:[#allocation3 + $0x68] sm:$0xff] %vm1061_vm4, %v7099_v20  ;;  %7880 = vrot.lane.b32.xlu1 %v7796_v43, %s9454_s17 }
 0xafb   : > { %7690 = vrot.lane.b32.xlu0 %v7605_v62, %s9453_s16 }
 0xafc   : > { %v8053_v9 = vpop.permute.xlu1 %8052 }
 0xafd   : > { %8138 = vst.msk [vmem:[#allocation3 + $0x50] sm:$0xff] %vm2027_vm9, %v8053_v9  ;;  %v7863_v28 = vpop.permute.xlu0 %7862  ;;  %v7994_v9 = vld [vmem:[#allocation2 + $0x16a] sm:$0xff] }
 0xafe   : > { %7947 = vst.msk [vmem:[#allocation3 + $0x58] sm:$0xff] %vm1834_vm8, %v7863_v28  ;;  %7308 = vrot.lane.b32.xlu1 %v7796_v43, %s9451_s29  ;;  %v7803_v28 = vld [vmem:[#allocation2 + $0x171] sm:$0xff] }
 0xaff   : > { %7118 = vrot.lane.b32.xlu0 %v7605_v62, %s14179_s23 }
 0xb00   : > { %v7481_v52 = vpop.permute.xlu1 %7480 }
 0xb01   : > { %7564 = vst.msk [vmem:[#allocation3 + $0x60] sm:$0xff] %vm1447_vm6, %v7481_v52  ;;  %v7291_v24 = vpop.permute.xlu0 %7290 }
 0xb02   : > { %7373 = vst.msk [vmem:[#allocation3 + $0x68] sm:$0xff] %vm1254_vm5, %v7291_v24  ;;  %8072 = vrot.lane.b32.xlu1 %v7988_v19, %s9455_s24 }
 0xb03   : > { %7882 = vrot.lane.b32.xlu0 %v7797_v60, %s9454_s17 }
 0xb04   : > { %v7483_v5 = vpop.permute.xlu1 %7482  ;;  %v8170_v58 = vld [vmem:[#allocation3 + $0x50] sm:$0xff] }
 0xb05   : > { %7565 = vst.msk [vmem:[#allocation3 + $0x68] sm:$0xff] %vm1447_vm6, %v7483_v5  ;;  %v8055_v16 = vpop.permute.xlu0 %8054  ;;  %9238 = vmatprep.mubr.msk.f32.mxu1 %vm2108_vm10, %v8170_v58  ;;  %v7421_v58 = vld [vmem:[#allocation2 + $0x172] sm:$0xff] }
 0xb06   : > { %8139 = vst.msk [vmem:[#allocation3 + $0x58] sm:$0xff] %vm2027_vm9, %v8055_v16  ;;  %7500 = vrot.lane.b32.xlu1 %v7988_v19, %s9452_s14 }
 0xb07   : > { %7310 = vrot.lane.b32.xlu0 %v7797_v60, %s9451_s29 }
 0xb08   : > { %v7101_v54 = vpop.permute.xlu1 %7100 }
 0xb09   : > { %7182 = vst.msk [vmem:[#allocation3 + $0x70] sm:$0xff] %vm1061_vm4, %v7101_v54  ;;  %v7673_v51 = vpop.permute.xlu0 %7672 }
 0xb0a   : > { %7756 = vst.msk [vmem:[#allocation3 + $0x60] sm:$0xff] %vm1641_vm7, %v7673_v51  ;;  %7502 = vrot.lane.b32.xlu1 %v7415_v36, %s9452_s14  ;;  %v7038_v51 = vld [vmem:[#allocation2 + $0x180] sm:$0xff] }
 0xb0b   : > { %8074 = vrot.lane.b32.xlu0 %v7415_v36, %s9455_s24 }
 0xb0c   : > { %v7865_v59 = vpop.permute.xlu1 %7864 }
 0xb0d   : > { %7948 = vst.msk [vmem:[#allocation3 + $0x60] sm:$0xff] %vm1834_vm8, %v7865_v59  ;;  %v7675_v8 = vpop.permute.xlu0 %7674  ;;  %v8171_v38 = vld [vmem:[#allocation3 + $0x58] sm:$0xff] }
 0xb0e   : > { %7757 = vst.msk [vmem:[#allocation3 + $0x68] sm:$0xff] %vm1641_vm7, %v7675_v8  ;;  %7120 = vrot.lane.b32.xlu1 %v7032_v35, %s14179_s23  ;;  %9239 = vmatmul.mubr.msk.f32.gmra.mrb[42].mxu1 %vm2108_vm10, %v8171_v38  ;;  %v7613_v38 = vld [vmem:[#allocation2 + $0x188] sm:$0xff] }
 0xb0f   : > { %7692 = vrot.lane.b32.xlu0 %v7032_v35, %s9453_s16  ;;  %v7804_v35 = vld [vmem:[#allocation2 + $0x181] sm:$0xff] }
 0xb10   : > { %v7293_v56 = vpop.permute.xlu1 %7292 }
 0xb11   : > { %7374 = vst.msk [vmem:[#allocation3 + $0x70] sm:$0xff] %vm1254_vm5, %v7293_v56  ;;  %v7103_v23 = vpop.permute.xlu0 %7102 }
 0xb12   : > { %7183 = vst.msk [vmem:[#allocation3 + $0x78] sm:$0xff] %vm1061_vm4, %v7103_v23  ;;  %7884 = vrot.lane.b32.xlu1 %v7798_v27, %s9454_s17 }
 0xb13   : > { %7694 = vrot.lane.b32.xlu0 %v7607_v17, %s9453_s16 }
 0xb14   : > { %v8057_v12 = vpop.permute.xlu1 %8056 }
 0xb15   : > { %8140 = vst.msk [vmem:[#allocation3 + $0x60] sm:$0xff] %vm2027_vm9, %v8057_v12  ;;  %v7867_v45 = vpop.permute.xlu0 %7866  ;;  %v7996_v12 = vld [vmem:[#allocation2 + $0x182] sm:$0xff] }
 0xb16   : > { %7949 = vst.msk [vmem:[#allocation3 + $0x68] sm:$0xff] %vm1834_vm8, %v7867_v45  ;;  %7312 = vrot.lane.b32.xlu1 %v7798_v27, %s9451_s29  ;;  %v7805_v45 = vld [vmem:[#allocation2 + $0x189] sm:$0xff] }
 0xb17   : > { %7122 = vrot.lane.b32.xlu0 %v7607_v17, %s14179_s23 }
 0xb18   : > { %v7485_v6 = vpop.permute.xlu1 %7484 }
 0xb19   : > { %7566 = vst.msk [vmem:[#allocation3 + $0x70] sm:$0xff] %vm1447_vm6, %v7485_v6  ;;  %v7295_v13 = vpop.permute.xlu0 %7294 }
 0xb1a   : > { %7375 = vst.msk [vmem:[#allocation3 + $0x78] sm:$0xff] %vm1254_vm5, %v7295_v13  ;;  %8076 = vrot.lane.b32.xlu1 %v7990_v63, %s9455_s24 }
 0xb1b   : > { %7886 = vrot.lane.b32.xlu0 %v7799_v32, %s9454_s17 }
 0xb1c   : > { %v7487_v53 = vpop.permute.xlu1 %7486  ;;  %v8172_v40 = vld [vmem:[#allocation3 + $0x60] sm:$0xff] }
 0xb1d   : > { %7567 = vst.msk [vmem:[#allocation3 + $0x78] sm:$0xff] %vm1447_vm6, %v7487_v53  ;;  %v8059_v48 = vpop.permute.xlu0 %8058  ;;  %9241 = vmatprep.mubr.msk.f32.mxu1 %vm2108_vm10, %v8172_v40  ;;  %v7423_v40 = vld [vmem:[#allocation2 + $0x18a] sm:$0xff] }
 0xb1e   : > { %8141 = vst.msk [vmem:[#allocation3 + $0x68] sm:$0xff] %vm2027_vm9, %v8059_v48  ;;  %7504 = vrot.lane.b32.xlu1 %v7990_v63, %s9452_s14  ;;  %v7615_v48 = vld [vmem:[#allocation2 + $0x1a0] sm:$0xff] }
 0xb1f   : > { %7314 = vrot.lane.b32.xlu0 %v7799_v32, %s9451_s29 }
 0xb20   : > { %v7105_v31 = vpop.permute.xlu1 %7104 }
 0xb21   : > { %7184 = vst.msk [vmem:[#allocation3 + $0x80] sm:$0xff] %vm1061_vm4, %v7105_v31  ;;  %v7677_v0 = vpop.permute.xlu0 %7676 }
 0xb22   : > { %7758 = vst.msk [vmem:[#allocation3 + $0x70] sm:$0xff] %vm1641_vm7, %v7677_v0  ;;  %7506 = vrot.lane.b32.xlu1 %v7417_v1, %s9452_s14  ;;  %v7614_v0 = vld [vmem:[#allocation2 + $0x198] sm:$0xff] }
 0xb23   : > { %8078 = vrot.lane.b32.xlu0 %v7417_v1, %s9455_s24 }
 0xb24   : > { %v7869_v3 = vpop.permute.xlu1 %7868 }
 0xb25   : > { %7950 = vst.msk [vmem:[#allocation3 + $0x70] sm:$0xff] %vm1834_vm8, %v7869_v3  ;;  %v7679_v55 = vpop.permute.xlu0 %7678  ;;  %v8173_v46 = vld [vmem:[#allocation3 + $0x68] sm:$0xff] }
 0xb26   : > { %7759 = vst.msk [vmem:[#allocation3 + $0x78] sm:$0xff] %vm1641_vm7, %v7679_v55  ;;  %7124 = vrot.lane.b32.xlu1 %v7034_v30, %s14179_s23  ;;  %9242 = vmatmul.mubr.msk.f32.gmra.mrb[44].mxu1 %vm2108_vm10, %v8173_v46  ;;  %v13704_v55 = vld [vmem:[%s13903_s8] ss:$0 sm:$0xff] }
 0xb27   : > { %7696 = vrot.lane.b32.xlu0 %v7034_v30, %s9453_s16  ;;  %v7807_v30 = vld [vmem:[#allocation2 + $0x1a1] sm:$0xff] }
 0xb28   : > { %v7297_v2 = vpop.permute.xlu1 %7296 }
 0xb29   : > { %7376 = vst.msk [vmem:[#allocation3 + $0x80] sm:$0xff] %vm1254_vm5, %v7297_v2  ;;  %v7107_v57 = vpop.permute.xlu0 %7106  ;;  %v7806_v2 = vld [vmem:[#allocation2 + $0x199] sm:$0xff] }
 0xb2a   : > { %7185 = vst.msk [vmem:[#allocation3 + $0x88] sm:$0xff] %vm1061_vm4, %v7107_v57  ;;  %7888 = vrot.lane.b32.xlu1 %v7800_v26, %s9454_s17 }
 0xb2b   : > { %7698 = vrot.lane.b32.xlu0 %v7609_v14, %s9453_s16 }
 0xb2c   : > { %v8061_v11 = vpop.permute.xlu1 %8060 }
 0xb2d   : > { %8142 = vst.msk [vmem:[#allocation3 + $0x70] sm:$0xff] %vm2027_vm9, %v8061_v11  ;;  %v7871_v41 = vpop.permute.xlu0 %7870 }
 0xb2e   : > { %7951 = vst.msk [vmem:[#allocation3 + $0x78] sm:$0xff] %vm1834_vm8, %v7871_v41  ;;  %7316 = vrot.lane.b32.xlu1 %v7800_v26, %s9451_s29 }
 0xb2f   : > { %7126 = vrot.lane.b32.xlu0 %v7609_v14, %s14179_s23 }
 0xb30   : > { %v7489_v49 = vpop.permute.xlu1 %7488 }
 0xb31   : > { %7568 = vst.msk [vmem:[#allocation3 + $0x80] sm:$0xff] %vm1447_vm6, %v7489_v49  ;;  %v7299_v50 = vpop.permute.xlu0 %7298  ;;  %v7999_v49 = vld [vmem:[#allocation2 + $0x1a2] sm:$0xff] }
 0xb32   : > { %7377 = vst.msk [vmem:[#allocation3 + $0x88] sm:$0xff] %vm1254_vm5, %v7299_v50  ;;  %8080 = vrot.lane.b32.xlu1 %v7992_v10, %s9455_s24 }
 0xb33   : > { %7890 = vrot.lane.b32.xlu0 %v7801_v39, %s9454_s17 }
 0xb34   : > { %v7491_v47 = vpop.permute.xlu1 %7490  ;;  %v8174_v4 = vld [vmem:[#allocation3 + $0x70] sm:$0xff] }
 0xb35   : > { %7569 = vst.msk [vmem:[#allocation3 + $0x88] sm:$0xff] %vm1447_vm6, %v7491_v47  ;;  %v8063_v37 = vpop.permute.xlu0 %8062  ;;  %9244 = vmatprep.mubr.msk.f32.mxu1 %vm2108_vm10, %v8174_v4 }
 0xb36   : > { %8143 = vst.msk [vmem:[#allocation3 + $0x78] sm:$0xff] %vm2027_vm9, %v8063_v37  ;;  %7508 = vrot.lane.b32.xlu1 %v7992_v10, %s9452_s14 }
 0xb37   : > { %7318 = vrot.lane.b32.xlu0 %v7801_v39, %s9451_s29  ;;  %v7998_v39 = vld [vmem:[#allocation2 + $0x19a] sm:$0xff] }
 0xb38   : > { %v7109_v7 = vpop.permute.xlu1 %7108 }
 0xb39   : > { %7186 = vst.msk [vmem:[#allocation3 + $0x90] sm:$0xff] %vm1061_vm4, %v7109_v7  ;;  %v7681_v44 = vpop.permute.xlu0 %7680 }
 0xb3a   : > { %7760 = vst.msk [vmem:[#allocation3 + $0x80] sm:$0xff] %vm1641_vm7, %v7681_v44  ;;  %7510 = vrot.lane.b32.xlu1 %v7419_v22, %s9452_s14 }
 0xb3b   : > { %8082 = vrot.lane.b32.xlu0 %v7419_v22, %s9455_s24 }
 0xb3c   : > { %v7873_v18 = vpop.permute.xlu1 %7872 }
 0xb3d   : > { %7952 = vst.msk [vmem:[#allocation3 + $0x80] sm:$0xff] %vm1834_vm8, %v7873_v18  ;;  %v7683_v33 = vpop.permute.xlu0 %7682  ;;  %v8175_v29 = vld [vmem:[#allocation3 + $0x78] sm:$0xff] }
 0xb3e   : > { %7761 = vst.msk [vmem:[#allocation3 + $0x88] sm:$0xff] %vm1641_vm7, %v7683_v33  ;;  %7128 = vrot.lane.b32.xlu1 %v7036_v15, %s14179_s23  ;;  %9245 = vmatmul.mubr.msk.f32.gmra.mrb[46].mxu1 %vm2108_vm10, %v8175_v29 }
 0xb3f   : > { %7700 = vrot.lane.b32.xlu0 %v7036_v15, %s9453_s16 }
 0xb40   : > { %v7301_v42 = vpop.permute.xlu1 %7300 }
 0xb41   : > { %7378 = vst.msk [vmem:[#allocation3 + $0x90] sm:$0xff] %vm1254_vm5, %v7301_v42  ;;  %v7111_v25 = vpop.permute.xlu0 %7110 }
 0xb42   : > { %7187 = vst.msk [vmem:[#allocation3 + $0x98] sm:$0xff] %vm1061_vm4, %v7111_v25  ;;  %7892 = vrot.lane.b32.xlu1 %v7802_v34, %s9454_s17 }
 0xb43   : > { %7702 = vrot.lane.b32.xlu0 %v7611_v61, %s9453_s16 }
 0xb44   : > { %v8065_v21 = vpop.permute.xlu1 %8064 }
 0xb45   : > { %8144 = vst.msk [vmem:[#allocation3 + $0x80] sm:$0xff] %vm2027_vm9, %v8065_v21  ;;  %v7875_v20 = vpop.permute.xlu0 %7874 }
 0xb46   : > { %7953 = vst.msk [vmem:[#allocation3 + $0x88] sm:$0xff] %vm1834_vm8, %v7875_v20  ;;  %7320 = vrot.lane.b32.xlu1 %v7802_v34, %s9451_s29 }
 0xb47   : > { %7130 = vrot.lane.b32.xlu0 %v7611_v61, %s14179_s23 }
 0xb48   : > { %v7493_v43 = vpop.permute.xlu1 %7492 }
 0xb49   : > { %7570 = vst.msk [vmem:[#allocation3 + $0x90] sm:$0xff] %vm1447_vm6, %v7493_v43  ;;  %v7303_v62 = vpop.permute.xlu0 %7302 }
 0xb4a   : > { %7379 = vst.msk [vmem:[#allocation3 + $0x98] sm:$0xff] %vm1254_vm5, %v7303_v62  ;;  %8084 = vrot.lane.b32.xlu1 %v7994_v9, %s9455_s24 }
 0xb4b   : > { %7894 = vrot.lane.b32.xlu0 %v7803_v28, %s9454_s17 }
 0xb4c   : > { %v7495_v52 = vpop.permute.xlu1 %7494  ;;  %v8176_v24 = vld [vmem:[#allocation3 + $0x80] sm:$0xff] }
 0xb4d   : > { %7571 = vst.msk [vmem:[#allocation3 + $0x98] sm:$0xff] %vm1447_vm6, %v7495_v52  ;;  %v8067_v19 = vpop.permute.xlu0 %8066  ;;  %9247 = vmatprep.mubr.msk.f32.mxu1 %vm2108_vm10, %v8176_v24 }
 0xb4e   : > { %8145 = vst.msk [vmem:[#allocation3 + $0x88] sm:$0xff] %vm2027_vm9, %v8067_v19  ;;  %7512 = vrot.lane.b32.xlu1 %v7994_v9, %s9452_s14 }
 0xb4f   : > { %7322 = vrot.lane.b32.xlu0 %v7803_v28, %s9451_s29 }
 0xb50   : > { %v7113_v60 = vpop.permute.xlu1 %7112 }
 0xb51   : > { %7188 = vst.msk [vmem:[#allocation3 + $0xa0] sm:$0xff] %vm1061_vm4, %v7113_v60  ;;  %v7685_v5 = vpop.permute.xlu0 %7684 }
 0xb52   : > { %7762 = vst.msk [vmem:[#allocation3 + $0x90] sm:$0xff] %vm1641_vm7, %v7685_v5  ;;  %7514 = vrot.lane.b32.xlu1 %v7421_v58, %s9452_s14 }
 0xb53   : > { %8086 = vrot.lane.b32.xlu0 %v7421_v58, %s9455_s24 }
 0xb54   : > { %v7877_v16 = vpop.permute.xlu1 %7876 }
 0xb55   : > { %7954 = vst.msk [vmem:[#allocation3 + $0x90] sm:$0xff] %vm1834_vm8, %v7877_v16  ;;  %v7687_v54 = vpop.permute.xlu0 %7686  ;;  %v8177_v36 = vld [vmem:[#allocation3 + $0x88] sm:$0xff] }
 0xb56   : > { %7763 = vst.msk [vmem:[#allocation3 + $0x98] sm:$0xff] %vm1641_vm7, %v7687_v54  ;;  %7132 = vrot.lane.b32.xlu1 %v7038_v51, %s14179_s23  ;;  %9248 = vmatmul.mubr.msk.f32.gmra.mrb[48].mxu1 %vm2108_vm10, %v8177_v36 }
 0xb57   : > { %7704 = vrot.lane.b32.xlu0 %v7038_v51, %s9453_s16 }
 0xb58   : > { %v7305_v59 = vpop.permute.xlu1 %7304 }
 0xb59   : > { %7380 = vst.msk [vmem:[#allocation3 + $0xa0] sm:$0xff] %vm1254_vm5, %v7305_v59  ;;  %v7115_v8 = vpop.permute.xlu0 %7114 }
 0xb5a   : > { %7189 = vst.msk [vmem:[#allocation3 + $0xa8] sm:$0xff] %vm1061_vm4, %v7115_v8  ;;  %7896 = vrot.lane.b32.xlu1 %v7804_v35, %s9454_s17 }
 0xb5b   : > { %7706 = vrot.lane.b32.xlu0 %v7613_v38, %s9453_s16 }
 0xb5c   : > { %v8069_v56 = vpop.permute.xlu1 %8068 }
 0xb5d   : > { %8146 = vst.msk [vmem:[#allocation3 + $0x90] sm:$0xff] %vm2027_vm9, %v8069_v56  ;;  %v7879_v23 = vpop.permute.xlu0 %7878 }
 0xb5e   : > { %7955 = vst.msk [vmem:[#allocation3 + $0x98] sm:$0xff] %vm1834_vm8, %v7879_v23  ;;  %7324 = vrot.lane.b32.xlu1 %v7804_v35, %s9451_s29 }
 0xb5f   : > { %7134 = vrot.lane.b32.xlu0 %v7613_v38, %s14179_s23 }
 0xb60   : > { %v7497_v27 = vpop.permute.xlu1 %7496 }
 0xb61   : > { %7572 = vst.msk [vmem:[#allocation3 + $0xa0] sm:$0xff] %vm1447_vm6, %v7497_v27  ;;  %v7307_v17 = vpop.permute.xlu0 %7306 }
 0xb62   : > { %7381 = vst.msk [vmem:[#allocation3 + $0xa8] sm:$0xff] %vm1254_vm5, %v7307_v17  ;;  %8088 = vrot.lane.b32.xlu1 %v7996_v12, %s9455_s24 }
 0xb63   : > { %7898 = vrot.lane.b32.xlu0 %v7805_v45, %s9454_s17 }
 0xb64   : > { %v7499_v6 = vpop.permute.xlu1 %7498  ;;  %v8178_v13 = vld [vmem:[#allocation3 + $0x90] sm:$0xff] }
 0xb65   : > { %7573 = vst.msk [vmem:[#allocation3 + $0xa8] sm:$0xff] %vm1447_vm6, %v7499_v6  ;;  %v8071_v63 = vpop.permute.xlu0 %8070  ;;  %9250 = vmatprep.mubr.msk.f32.mxu1 %vm2108_vm10, %v8178_v13 }
 0xb66   : > { %8147 = vst.msk [vmem:[#allocation3 + $0x98] sm:$0xff] %vm2027_vm9, %v8071_v63  ;;  %7516 = vrot.lane.b32.xlu1 %v7996_v12, %s9452_s14 }
 0xb67   : > { %7326 = vrot.lane.b32.xlu0 %v7805_v45, %s9451_s29 }
 0xb68   : > { %v7117_v32 = vpop.permute.xlu1 %7116 }
 0xb69   : > { %7190 = vst.msk [vmem:[#allocation3 + $0xb0] sm:$0xff] %vm1061_vm4, %v7117_v32  ;;  %v7689_v53 = vpop.permute.xlu0 %7688 }
 0xb6a   : > { %7764 = vst.msk [vmem:[#allocation3 + $0xa0] sm:$0xff] %vm1641_vm7, %v7689_v53  ;;  %7518 = vrot.lane.b32.xlu1 %v7423_v40, %s9452_s14  ;;  %s323_s14 = sand.u32 1, %s9437_s10  }
 0xb6b   : > { %8090 = vrot.lane.b32.xlu0 %v7423_v40, %s9455_s24  ;;  %s8634_s22 = scalar_lea.sflag [#allocation5], %s323_s14 }
 0xb6c   : > { %v7881_v31 = vpop.permute.xlu1 %7880 }
 0xb6d   : > { %7956 = vst.msk [vmem:[#allocation3 + $0xa0] sm:$0xff] %vm1834_vm8, %v7881_v31  ;;  %v7691_v1 = vpop.permute.xlu0 %7690  ;;  %v8179_v3 = vld [vmem:[#allocation3 + $0x98] sm:$0xff] }
 0xb6e   : > { %7765 = vst.msk [vmem:[#allocation3 + $0xa8] sm:$0xff] %vm1641_vm7, %v7691_v1  ;;  %9251 = vmatmul.mubr.msk.f32.gmra.mrb[50].mxu1 %vm2108_vm10, %v8179_v3  ;;  %7710 = vrot.lane.b32.xlu1 %v7615_v48, %s9453_s16 }
 0xb6f   : > { %7708 = vrot.lane.b32.xlu0 %v7614_v0, %s9453_s16  ;;  %s8839_s16 = sshll.u32 %s9528_s13, 4  ;;  %s9456_s13 = smov [#allocation4]  }
 0xb70   : > { %v7309_v46 = vpop.permute.xlu1 %7308  ;;  %s13853_s27 = scalar_lea.hbm %s13904_s9, %s8839_s16  ;;  %s9387_s23 = sshll.u32 %s9456_s13, 4  ;;  %s9388_s23 = int_to_ptr.vmem [resolvable:$false] %s9387_s23 }
 0xb71   : > { %7382 = vst.msk [vmem:[#allocation3 + $0xb0] sm:$0xff] %vm1254_vm5, %v7309_v46  ;;  %v9225_v57 = vpop.f32.mrb[32].mxu1  ;;  %v7119_v26 = vpop.permute.xlu0 %7118  ;;  %s9389_s29 = scalar_lea.vmem %s9388_s23, 32 }
 0xb72   : > { %v8376_v14 = vadd.f32 %v9225_v57, %v13704_v55  ;;  %7191 = vst.msk [vmem:[#allocation3 + $0xb8] sm:$0xff] %vm1061_vm4, %v7119_v26  ;;  %v8370_v11 = vpop.f32.mrb[33].mxu1  ;;  %7902 = vrot.lane.b32.xlu1 %v7807_v30, %s9454_s17 }
 0xb73   : > { %v8371_v41 = vadd.f32 %v13704_v55, %v8370_v11  ;;  %7900 = vrot.lane.b32.xlu0 %v7806_v2, %s9454_s17  ;;  %s324_s17 = scalar_lea.vmem [#allocation4], %s323_s14 }
 0xb74   : > { %v8530_v50 = vmax.f32 %v8376_v14, 0.0  ;;  %v8073_v10 = vpop.permute.xlu1 %8072 }
 0xb75   : > { %v8529_v47 = vmax.f32 %v8371_v41, 0.0  ;;  %8148 = vst.msk [vmem:[#allocation3 + $0xa0] sm:$0xff] %vm2027_vm9, %v8073_v10  ;;  %v7883_v4 = vpop.permute.xlu0 %7882 }
 0xb76   : > { %v8562_v37 = vsel %vm330_vm0, %v8530_v50, 0.0  ;;  %7957 = vst.msk [vmem:[#allocation3 + $0xa8] sm:$0xff] %vm1834_vm8, %v7883_v4  ;;  %8094 = vrot.lane.b32.xlu1 %v7999_v49, %s9455_s24 }
 0xb77   : > { %v8561_v7 = vsel %vm330_vm0, %v8529_v47, 0.0  ;;  %8092 = vrot.lane.b32.xlu0 %v7998_v39, %s9455_s24  ;;  %s8646_s24 = sshll.u32 %s324_s17, 4  ;;  %s13855_s24 = int_to_ptr.vmem [resolvable:$true] %s8646_s24 }
 0xb78   : > { %v8563_v44 = vadd.f32 %v8562_v37, %v8561_v7  ;;  %v7501_v22 = vpop.permute.xlu1 %7500  ;;  %s9383_s28 = scalar_lea.vmem %s13855_s24, 16  ;;  %p9390_p0 = scmp.lt.s32.totalorder %s13855_s24, %s9388_s23 }
 0xb79   : > { %7574 = vst.msk [vmem:[#allocation3 + $0xb0] sm:$0xff] %vm1447_vm6, %v7501_v22  ;;  %v7311_v18 = vpop.permute.xlu0 %7310  ;;  %p9384_p11 = scmp.ne.s32.totalorder %s13855_s24, %s9383_s28  ;;  %p9391_p1 = scmp.lt.s32.totalorder %s9389_s29, %s9383_s28 }
 0xb7a   : > { %7383 = vst.msk [vmem:[#allocation3 + $0xb8] sm:$0xff] %vm1254_vm5, %v7311_v18 }
 0xb7b   : > { %p9385_p12 = pnand %p9384_p11, %p9545_p5  ;;  %p9392_p2 = por %p9391_p1, %p9390_p0 }
 0xb7c   : > { %v7503_v33 = vpop.permute.xlu1 %7502  ;;  %v8180_v15 = vld [vmem:[#allocation3 + $0xa0] sm:$0xff] }
 0xb7d   : > { %7575 = vst.msk [vmem:[#allocation3 + $0xb8] sm:$0xff] %vm1447_vm6, %v7503_v33  ;;  %v8075_v29 = vpop.permute.xlu0 %8074  ;;  %9253 = vmatprep.mubr.msk.f32.mxu1 %vm2108_vm10, %v8180_v15  ;;  %p9386_p13 = pneg %p9385_p12 }
 0xb7e   : > { %8149 = vst.msk [vmem:[#allocation3 + $0xa8] sm:$0xff] %vm2027_vm9, %v8075_v29 }
 0xb7f   : > { %p9393_p3 = pnand %p9392_p2, %p9386_p13 }
 0xb80   : > { %v7121_v42 = vpop.permute.xlu1 %7120 }
 0xb81   : > { %7192 = vst.msk [vmem:[#allocation3 + $0xc0] sm:$0xff] %vm1061_vm4, %v7121_v42  ;;  %v7693_v25 = vpop.permute.xlu0 %7692 }
 0xb82   : > { %7766 = vst.msk [vmem:[#allocation3 + $0xb0] sm:$0xff] %vm1641_vm7, %v7693_v25 }
 0xb84   : > { %v7885_v34 = vpop.permute.xlu1 %7884 }
 0xb85   : > { %7958 = vst.msk [vmem:[#allocation3 + $0xb0] sm:$0xff] %vm1834_vm8, %v7885_v34  ;;  %v9228_v61 = vpop.f32.mrb[34].mxu1  ;;  %v7695_v21 = vpop.permute.xlu0 %7694  ;;  %v8181_v20 = vld [vmem:[#allocation3 + $0xa8] sm:$0xff] }
 0xb86   : > { %v8386_v43 = vadd.f32 %v9228_v61, %v13704_v55  ;;  %7767 = vst.msk [vmem:[#allocation3 + $0xb8] sm:$0xff] %vm1641_vm7, %v7695_v21  ;;  %v8380_v62 = vpop.f32.mrb[35].mxu1  ;;  %9254 = vmatmul.mubr.msk.f32.gmra.mrb[52].mxu1 %vm2108_vm10, %v8181_v20 }
 0xb87   : > { %v8381_v9 = vadd.f32 %v13704_v55, %v8380_v62 }
 0xb88   : > { %v7313_v28 = vpop.permute.xlu1 %7312  ;;  %v8532_v52 = vmax.f32 %v8386_v43, 0.0 }
 0xb89   : > { %v8531_v24 = vmax.f32 %v8381_v9, 0.0  ;;  %7384 = vst.msk [vmem:[#allocation3 + $0xc0] sm:$0xff] %vm1254_vm5, %v7313_v28  ;;  %v7123_v19 = vpop.permute.xlu0 %7122 }
 0xb8a   : > { %7193 = vst.msk [vmem:[#allocation3 + $0xc8] sm:$0xff] %vm1061_vm4, %v7123_v19  ;;  %v8566_v16 = vsel %vm330_vm0, %v8532_v52, 0.0 }
 0xb8b   : > { %v8564_v60 = vsel %vm330_vm0, %v8531_v24, 0.0 }
 0xb8c   : > { %v8565_v5 = vadd.f32 %v8564_v60, %v8563_v44  ;;  %v8077_v58 = vpop.permute.xlu1 %8076 }
 0xb8d   : > { %8150 = vst.msk [vmem:[#allocation3 + $0xb0] sm:$0xff] %vm2027_vm9, %v8077_v58  ;;  %v7887_v54 = vpop.permute.xlu0 %7886 }
 0xb8e   : > { %7959 = vst.msk [vmem:[#allocation3 + $0xb8] sm:$0xff] %vm1834_vm8, %v7887_v54  ;;  %v8567_v51 = vadd.f32 %v8566_v16, %v8565_v5 }
 0xb90   : > { %v7505_v36 = vpop.permute.xlu1 %7504 }
 0xb91   : > { %7576 = vst.msk [vmem:[#allocation3 + $0xc0] sm:$0xff] %vm1447_vm6, %v7505_v36  ;;  %v7315_v59 = vpop.permute.xlu0 %7314 }
 0xb92   : > { %7385 = vst.msk [vmem:[#allocation3 + $0xc8] sm:$0xff] %vm1254_vm5, %v7315_v59 }
 0xb94   : > { %v7507_v8 = vpop.permute.xlu1 %7506  ;;  %v8182_v35 = vld [vmem:[#allocation3 + $0xb0] sm:$0xff] }
 0xb95   : > { %7577 = vst.msk [vmem:[#allocation3 + $0xc8] sm:$0xff] %vm1447_vm6, %v7507_v8  ;;  %v8079_v38 = vpop.permute.xlu0 %8078  ;;  %9256 = vmatprep.mubr.msk.f32.mxu1 %vm2108_vm10, %v8182_v35 }
 0xb96   : > { %8151 = vst.msk [vmem:[#allocation3 + $0xb8] sm:$0xff] %vm2027_vm9, %v8079_v38 }
 0xb98   : > { %v7125_v56 = vpop.permute.xlu1 %7124 }
 0xb99   : > { %7194 = vst.msk [vmem:[#allocation3 + $0xd0] sm:$0xff] %vm1061_vm4, %v7125_v56  ;;  %v9231_v23 = vpop.f32.mrb[36].mxu1  ;;  %v7697_v27 = vpop.permute.xlu0 %7696 }
 0xb9a   : > { %v8396_v17 = vadd.f32 %v9231_v23, %v13704_v55  ;;  %7768 = vst.msk [vmem:[#allocation3 + $0xc0] sm:$0xff] %vm1641_vm7, %v7697_v27  ;;  %v8390_v12 = vpop.f32.mrb[37].mxu1 }
 0xb9b   : > { %v8391_v45 = vadd.f32 %v13704_v55, %v8390_v12 }
 0xb9c   : > { %v7889_v6 = vpop.permute.xlu1 %7888  ;;  %v8534_v13 = vmax.f32 %v8396_v17, 0.0 }
 0xb9d   : > { %v8533_v63 = vmax.f32 %v8391_v45, 0.0  ;;  %7960 = vst.msk [vmem:[#allocation3 + $0xc0] sm:$0xff] %vm1834_vm8, %v7889_v6  ;;  %v7699_v32 = vpop.permute.xlu0 %7698  ;;  %v8183_v53 = vld [vmem:[#allocation3 + $0xb8] sm:$0xff] }
 0xb9e   : > { %7769 = vst.msk [vmem:[#allocation3 + $0xc8] sm:$0xff] %vm1641_vm7, %v7699_v32  ;;  %9257 = vmatmul.mubr.msk.f32.gmra.mrb[54].mxu1 %vm2108_vm10, %v8183_v53  ;;  %v8570_v0 = vsel %vm330_vm0, %v8534_v13, 0.0 }
 0xb9f   : > { %v8568_v40 = vsel %vm330_vm0, %v8533_v63, 0.0 }
 0xba0   : > { %v8569_v48 = vadd.f32 %v8568_v40, %v8567_v51  ;;  %v7317_v31 = vpop.permute.xlu1 %7316 }
 0xba1   : > { %7386 = vst.msk [vmem:[#allocation3 + $0xd0] sm:$0xff] %vm1254_vm5, %v7317_v31  ;;  %v7127_v1 = vpop.permute.xlu0 %7126 }
 0xba2   : > { %7195 = vst.msk [vmem:[#allocation3 + $0xd8] sm:$0xff] %vm1061_vm4, %v7127_v1  ;;  %v8571_v3 = vadd.f32 %v8570_v0, %v8569_v48 }
 0xba4   : > { %v8081_v30 = vpop.permute.xlu1 %8080 }
 0xba5   : > { %8152 = vst.msk [vmem:[#allocation3 + $0xc0] sm:$0xff] %vm2027_vm9, %v8081_v30  ;;  %v7891_v46 = vpop.permute.xlu0 %7890 }
 0xba6   : > { %7961 = vst.msk [vmem:[#allocation3 + $0xc8] sm:$0xff] %vm1834_vm8, %v7891_v46 }
 0xba8   : > { %v7509_v2 = vpop.permute.xlu1 %7508 }
 0xba9   : > { %7578 = vst.msk [vmem:[#allocation3 + $0xd0] sm:$0xff] %vm1447_vm6, %v7509_v2  ;;  %v7319_v57 = vpop.permute.xlu0 %7318 }
 0xbaa   : > { %7387 = vst.msk [vmem:[#allocation3 + $0xd8] sm:$0xff] %vm1254_vm5, %v7319_v57 }
 0xbac   : > { %v7511_v26 = vpop.permute.xlu1 %7510  ;;  %v8184_v14 = vld [vmem:[#allocation3 + $0xc0] sm:$0xff] }
 0xbad   : > { %7579 = vst.msk [vmem:[#allocation3 + $0xd8] sm:$0xff] %vm1447_vm6, %v7511_v26  ;;  %v8083_v11 = vpop.permute.xlu0 %8082  ;;  %9259 = vmatprep.mubr.msk.f32.mxu1 %vm2108_vm10, %v8184_v14 }
 0xbae   : > { %8153 = vst.msk [vmem:[#allocation3 + $0xc8] sm:$0xff] %vm2027_vm9, %v8083_v11 }
 0xbb0   : > { %v7129_v41 = vpop.permute.xlu1 %7128 }
 0xbb1   : > { %7196 = vst.msk [vmem:[#allocation3 + $0xe0] sm:$0xff] %vm1061_vm4, %v7129_v41  ;;  %v9234_v49 = vpop.f32.mrb[38].mxu1  ;;  %v7701_v50 = vpop.permute.xlu0 %7700 }
 0xbb2   : > { %v8406_v10 = vadd.f32 %v9234_v49, %v13704_v55  ;;  %7770 = vst.msk [vmem:[#allocation3 + $0xd0] sm:$0xff] %vm1641_vm7, %v7701_v50  ;;  %v8400_v39 = vpop.f32.mrb[39].mxu1 }
 0xbb3   : > { %v8401_v47 = vadd.f32 %v13704_v55, %v8400_v39 }
 0xbb4   : > { %v7893_v4 = vpop.permute.xlu1 %7892  ;;  %v8536_v37 = vmax.f32 %v8406_v10, 0.0 }
 0xbb5   : > { %v8535_v7 = vmax.f32 %v8401_v47, 0.0  ;;  %7962 = vst.msk [vmem:[#allocation3 + $0xd0] sm:$0xff] %vm1834_vm8, %v7893_v4  ;;  %v7703_v44 = vpop.permute.xlu0 %7702  ;;  %v8185_v22 = vld [vmem:[#allocation3 + $0xc8] sm:$0xff] }
 0xbb6   : > { %7771 = vst.msk [vmem:[#allocation3 + $0xd8] sm:$0xff] %vm1641_vm7, %v7703_v44  ;;  %9260 = vmatmul.mubr.msk.f32.gmra.mrb[56].mxu1 %vm2108_vm10, %v8185_v22  ;;  %v8574_v29 = vsel %vm330_vm0, %v8536_v37, 0.0 }
 0xbb7   : > { %v8572_v18 = vsel %vm330_vm0, %v8535_v7, 0.0 }
 0xbb8   : > { %v8573_v33 = vadd.f32 %v8572_v18, %v8571_v3  ;;  %v7321_v15 = vpop.permute.xlu1 %7320 }
 0xbb9   : > { %7388 = vst.msk [vmem:[#allocation3 + $0xe0] sm:$0xff] %vm1254_vm5, %v7321_v15  ;;  %v7131_v42 = vpop.permute.xlu0 %7130 }
 0xbba   : > { %7197 = vst.msk [vmem:[#allocation3 + $0xe8] sm:$0xff] %vm1061_vm4, %v7131_v42  ;;  %v8575_v25 = vadd.f32 %v8574_v29, %v8573_v33 }
 0xbbc   : > { %v8085_v34 = vpop.permute.xlu1 %8084 }
 0xbbd   : > { %8154 = vst.msk [vmem:[#allocation3 + $0xd0] sm:$0xff] %vm2027_vm9, %v8085_v34  ;;  %v7895_v61 = vpop.permute.xlu0 %7894 }
 0xbbe   : > { %7963 = vst.msk [vmem:[#allocation3 + $0xd8] sm:$0xff] %vm1834_vm8, %v7895_v61 }
 0xbc0   : > { %v7513_v21 = vpop.permute.xlu1 %7512 }
 0xbc1   : > { %7580 = vst.msk [vmem:[#allocation3 + $0xe0] sm:$0xff] %vm1447_vm6, %v7513_v21  ;;  %v7323_v20 = vpop.permute.xlu0 %7322 }
 0xbc2   : > { %7389 = vst.msk [vmem:[#allocation3 + $0xe8] sm:$0xff] %vm1254_vm5, %v7323_v20 }
 0xbc4   : > { %v7515_v43 = vpop.permute.xlu1 %7514  ;;  %v8186_v62 = vld [vmem:[#allocation3 + $0xd0] sm:$0xff] }
 0xbc5   : > { %7581 = vst.msk [vmem:[#allocation3 + $0xe8] sm:$0xff] %vm1447_vm6, %v7515_v43  ;;  %v8087_v9 = vpop.permute.xlu0 %8086  ;;  %9262 = vmatprep.mubr.msk.f32.mxu1 %vm2108_vm10, %v8186_v62 }
 0xbc6   : > { %8155 = vst.msk [vmem:[#allocation3 + $0xd8] sm:$0xff] %vm2027_vm9, %v8087_v9 }
 0xbc8   : > { %v7133_v28 = vpop.permute.xlu1 %7132 }
 0xbc9   : > { %7198 = vst.msk [vmem:[#allocation3 + $0xf0] sm:$0xff] %vm1061_vm4, %v7133_v28  ;;  %v7705_v52 = vpop.permute.xlu0 %7704  ;;  %v9237_v24 = vpop.f32.mrb[40].mxu1 }
 0xbca   : > { %7772 = vst.msk [vmem:[#allocation3 + $0xe0] sm:$0xff] %vm1641_vm7, %v7705_v52  ;;  %v8416_v19 = vadd.f32 %v9237_v24, %v13704_v55  ;;  %v8410_v60 = vpop.f32.mrb[41].mxu1 }
 0xbcb   : > { %v8411_v5 = vadd.f32 %v13704_v55, %v8410_v60 }
 0xbcc   : > { %v7897_v58 = vpop.permute.xlu1 %7896  ;;  %v8538_v16 = vmax.f32 %v8416_v19, 0.0 }
 0xbcd   : > { %v8537_v54 = vmax.f32 %v8411_v5, 0.0  ;;  %7964 = vst.msk [vmem:[#allocation3 + $0xe0] sm:$0xff] %vm1834_vm8, %v7897_v58  ;;  %v7707_v51 = vpop.permute.xlu0 %7706  ;;  %v8187_v36 = vld [vmem:[#allocation3 + $0xd8] sm:$0xff] }
 0xbce   : > { %7773 = vst.msk [vmem:[#allocation3 + $0xe8] sm:$0xff] %vm1641_vm7, %v7707_v51  ;;  %9263 = vmatmul.mubr.msk.f32.gmra.mrb[58].mxu1 %vm2108_vm10, %v8187_v36  ;;  %v8578_v38 = vsel %vm330_vm0, %v8538_v16, 0.0 }
 0xbcf   : > { %v8576_v59 = vsel %vm330_vm0, %v8537_v54, 0.0 }
 0xbd0   : > { %v8577_v8 = vadd.f32 %v8576_v59, %v8575_v25  ;;  %v7325_v35 = vpop.permute.xlu1 %7324 }
 0xbd1   : > { %7390 = vst.msk [vmem:[#allocation3 + $0xf0] sm:$0xff] %vm1254_vm5, %v7325_v35  ;;  %v7135_v56 = vpop.permute.xlu0 %7134 }
 0xbd2   : > { %7199 = vst.msk [vmem:[#allocation3 + $0xf8] sm:$0xff] %vm1061_vm4, %v7135_v56  ;;  %v8579_v23 = vadd.f32 %v8578_v38, %v8577_v8 }
 0xbd4   : > { %v8089_v27 = vpop.permute.xlu1 %8088 }
 0xbd5   : > { %8156 = vst.msk [vmem:[#allocation3 + $0xe0] sm:$0xff] %vm2027_vm9, %v8089_v27  ;;  %v7899_v17 = vpop.permute.xlu0 %7898 }
 0xbd6   : > { %7965 = vst.msk [vmem:[#allocation3 + $0xe8] sm:$0xff] %vm1834_vm8, %v7899_v17 }
 0xbd8   : > { %v7517_v12 = vpop.permute.xlu1 %7516 }
 0xbd9   : > { %7582 = vst.msk [vmem:[#allocation3 + $0xf0] sm:$0xff] %vm1447_vm6, %v7517_v12  ;;  %v7327_v45 = vpop.permute.xlu0 %7326 }
 0xbda   : > { %7391 = vst.msk [vmem:[#allocation3 + $0xf8] sm:$0xff] %vm1254_vm5, %v7327_v45 }
 0xbdc   : > { %v7519_v6 = vpop.permute.xlu1 %7518  ;;  %v8188_v13 = vld [vmem:[#allocation3 + $0xe0] sm:$0xff] }
 0xbdd   : > { %7583 = vst.msk [vmem:[#allocation3 + $0xf8] sm:$0xff] %vm1447_vm6, %v7519_v6  ;;  %v8091_v63 = vpop.permute.xlu0 %8090  ;;  %9265 = vmatprep.mubr.msk.f32.mxu1 %vm2108_vm10, %v8188_v13 }
 0xbde   : > { %8157 = vst.msk [vmem:[#allocation3 + $0xe8] sm:$0xff] %vm2027_vm9, %v8091_v63 }
 0xbe0   : > { %v7711_v32 = vpop.permute.xlu1 %7710 }
 0xbe1   : > { %v7709_v53 = vpop.permute.xlu0 %7708  ;;  %v9240_v40 = vpop.f32.mrb[42].mxu1  ;;  %7775 = vst.msk [vmem:[#allocation3 + $0xf8] sm:$0xff] %vm1641_vm7, %v7711_v32 }
 0xbe2   : > { %7774 = vst.msk [vmem:[#allocation3 + $0xf0] sm:$0xff] %vm1641_vm7, %v7709_v53  ;;  %v8426_v48 = vadd.f32 %v9240_v40, %v13704_v55  ;;  %v8420_v31 = vpop.f32.mrb[43].mxu1 }
 0xbe3   : > { %v8421_v0 = vadd.f32 %v13704_v55, %v8420_v31 }
 0xbe4   : > { %v7903_v1 = vpop.permute.xlu1 %7902  ;;  %v8540_v3 = vmax.f32 %v8426_v48, 0.0 }
 0xbe5   : > { %v8539_v30 = vmax.f32 %v8421_v0, 0.0  ;;  %v7901_v46 = vpop.permute.xlu0 %7900  ;;  %7967 = vst.msk [vmem:[#allocation3 + $0xf8] sm:$0xff] %vm1834_vm8, %v7903_v1  ;;  %v8189_v2 = vld [vmem:[#allocation3 + $0xe8] sm:$0xff] }
 0xbe6   : > { %7966 = vst.msk [vmem:[#allocation3 + $0xf0] sm:$0xff] %vm1834_vm8, %v7901_v46  ;;  %9266 = vmatmul.mubr.msk.f32.gmra.mrb[60].mxu1 %vm2108_vm10, %v8189_v2  ;;  %v8582_v11 = vsel %vm330_vm0, %v8540_v3, 0.0 }
 0xbe7   : > { %v8580_v57 = vsel %vm330_vm0, %v8539_v30, 0.0 }
 0xbe8   : > { %v8581_v26 = vadd.f32 %v8580_v57, %v8579_v23  ;;  %v8095_v14 = vpop.permute.xlu1 %8094 }
 0xbe9   : > { %v8093_v41 = vpop.permute.xlu0 %8092  ;;  %8159 = vst.msk [vmem:[#allocation3 + $0xf8] sm:$0xff] %vm2027_vm9, %v8095_v14 }
 0xbea   : > { %8158 = vst.msk [vmem:[#allocation3 + $0xf0] sm:$0xff] %vm2027_vm9, %v8093_v41  ;;  %v8583_v49 = vadd.f32 %v8582_v11, %v8581_v26 }
 0xbf0   : > { %v8191_v50 = vld [vmem:[#allocation3 + $0xf8] sm:$0xff] }
 0xbf1   : > { %v8190_v10 = vld [vmem:[#allocation3 + $0xf0] sm:$0xff] }
 0xbf2   : > { %9268 = vmatprep.mubr.msk.f32.mxu1 %vm2108_vm10, %v8190_v10 }
 0xbf3   : > { %9269 = vmatmul.mubr.msk.f32.gmra.mrb[62].mxu1 %vm2108_vm10, %v8191_v50 }
 0xbf9   : > { %v9243_v39 = vpop.f32.mrb[44].mxu1 }
 0xbfa   : > { %v8436_v47 = vadd.f32 %v9243_v39, %v13704_v55  ;;  %v8430_v4 = vpop.f32.mrb[45].mxu1 }
 0xbfb   : > { %v8431_v37 = vadd.f32 %v13704_v55, %v8430_v4 }
 0xbfc   : > { %v8542_v7 = vmax.f32 %v8436_v47, 0.0 }
 0xbfd   : > { %v8541_v44 = vmax.f32 %v8431_v37, 0.0 }
 0xbfe   : > { %v8586_v33 = vsel %vm330_vm0, %v8542_v7, 0.0 }
 0xbff   : > { %v8584_v22 = vsel %vm330_vm0, %v8541_v44, 0.0 }
 0xc00   : > { %v8585_v18 = vadd.f32 %v8584_v22, %v8583_v49 }
 0xc02   : > { %v8587_v15 = vadd.f32 %v8586_v33, %v8585_v18 }
 0xc11   : > { %v9246_v29 = vpop.f32.mrb[46].mxu1 }
 0xc12   : > { %v8446_v42 = vadd.f32 %v9246_v29, %v13704_v55  ;;  %v8440_v25 = vpop.f32.mrb[47].mxu1 }
 0xc13   : > { %v8441_v34 = vadd.f32 %v13704_v55, %v8440_v25 }
 0xc14   : > { %v8544_v61 = vmax.f32 %v8446_v42, 0.0 }
 0xc15   : > { %v8543_v21 = vmax.f32 %v8441_v34, 0.0 }
 0xc16   : > { %v8590_v62 = vsel %vm330_vm0, %v8544_v61, 0.0 }
 0xc17   : > { %v8588_v20 = vsel %vm330_vm0, %v8543_v21, 0.0 }
 0xc18   : > { %v8589_v43 = vadd.f32 %v8588_v20, %v8587_v15 }
 0xc1a   : > { %v8591_v9 = vadd.f32 %v8590_v62, %v8589_v43 }
 0xc29   : > { %v9249_v28 = vpop.f32.mrb[48].mxu1 }
 0xc2a   : > { %v8456_v52 = vadd.f32 %v9249_v28, %v13704_v55  ;;  %v8450_v24 = vpop.f32.mrb[49].mxu1 }
 0xc2b   : > { %v8451_v19 = vadd.f32 %v13704_v55, %v8450_v24 }
 0xc2c   : > { %v8546_v60 = vmax.f32 %v8456_v52, 0.0 }
 0xc2d   : > { %v8545_v5 = vmax.f32 %v8451_v19, 0.0 }
 0xc2e   : > { %v8594_v54 = vsel %vm330_vm0, %v8546_v60, 0.0 }
 0xc2f   : > { %v8592_v58 = vsel %vm330_vm0, %v8545_v5, 0.0 }
 0xc30   : > { %v8593_v16 = vadd.f32 %v8592_v58, %v8591_v9 }
 0xc32   : > { %v8595_v51 = vadd.f32 %v8594_v54, %v8593_v16 }
 0xc41   : > { %v9252_v36 = vpop.f32.mrb[50].mxu1 }
 0xc42   : > { %v8466_v59 = vadd.f32 %v9252_v36, %v13704_v55  ;;  %v8460_v8 = vpop.f32.mrb[51].mxu1 }
 0xc43   : > { %v8461_v35 = vadd.f32 %v13704_v55, %v8460_v8 }
 0xc44   : > { %v8548_v38 = vmax.f32 %v8466_v59, 0.0 }
 0xc45   : > { %v8547_v56 = vmax.f32 %v8461_v35, 0.0 }
 0xc46   : > { %v8598_v17 = vsel %vm330_vm0, %v8548_v38, 0.0 }
 0xc47   : > { %v8596_v23 = vsel %vm330_vm0, %v8547_v56, 0.0 }
 0xc48   : > { %v8597_v27 = vadd.f32 %v8596_v23, %v8595_v51 }
 0xc4a   : > { %v8599_v12 = vadd.f32 %v8598_v17, %v8597_v27 }
 0xc59   : > { %v9255_v45 = vpop.f32.mrb[52].mxu1 }
 0xc5a   : > { %v8476_v6 = vadd.f32 %v9255_v45, %v13704_v55  ;;  %v8470_v13 = vpop.f32.mrb[53].mxu1 }
 0xc5b   : > { %v8471_v63 = vadd.f32 %v13704_v55, %v8470_v13 }
 0xc5c   : > { %v8550_v32 = vmax.f32 %v8476_v6, 0.0 }
 0xc5d   : > { %v8549_v53 = vmax.f32 %v8471_v63, 0.0 }
 0xc5e   : > { %v8602_v31 = vsel %vm330_vm0, %v8550_v32, 0.0 }
 0xc5f   : > { %v8600_v40 = vsel %vm330_vm0, %v8549_v53, 0.0 }
 0xc60   : > { %v8601_v48 = vadd.f32 %v8600_v40, %v8599_v12 }
 0xc62   : > { %v8603_v0 = vadd.f32 %v8602_v31, %v8601_v48 }
 0xc71   : > { %v9258_v1 = vpop.f32.mrb[54].mxu1 }
 0xc72   : > { %v8486_v3 = vadd.f32 %v9258_v1, %v13704_v55  ;;  %v8480_v30 = vpop.f32.mrb[55].mxu1 }
 0xc73   : > { %v8481_v46 = vadd.f32 %v13704_v55, %v8480_v30 }
 0xc74   : > { %v8552_v2 = vmax.f32 %v8486_v3, 0.0 }
 0xc75   : > { %v8551_v57 = vmax.f32 %v8481_v46, 0.0 }
 0xc76   : > { %v8606_v11 = vsel %vm330_vm0, %v8552_v2, 0.0 }
 0xc77   : > { %v8604_v26 = vsel %vm330_vm0, %v8551_v57, 0.0 }
 0xc78   : > { %v8605_v14 = vadd.f32 %v8604_v26, %v8603_v0 }
 0xc7a   : > { %v8607_v41 = vadd.f32 %v8606_v11, %v8605_v14 }
 0xc89   : > { %v9261_v49 = vpop.f32.mrb[56].mxu1 }
 0xc8a   : > { %v8496_v50 = vadd.f32 %v9261_v49, %v13704_v55  ;;  %v8490_v10 = vpop.f32.mrb[57].mxu1 }
 0xc8b   : > { %v8491_v39 = vadd.f32 %v13704_v55, %v8490_v10 }
 0xc8c   : > { %v8554_v47 = vmax.f32 %v8496_v50, 0.0 }
 0xc8d   : > { %v8553_v4 = vmax.f32 %v8491_v39, 0.0 }
 0xc8e   : > { %v8610_v44 = vsel %vm330_vm0, %v8554_v47, 0.0 }
 0xc8f   : > { %v8608_v37 = vsel %vm330_vm0, %v8553_v4, 0.0 }
 0xc90   : > { %v8609_v7 = vadd.f32 %v8608_v37, %v8607_v41 }
 0xc92   : > { %v8611_v22 = vadd.f32 %v8610_v44, %v8609_v7 }
 0xca1   : > { %v9264_v18 = vpop.f32.mrb[58].mxu1 }
 0xca2   : > { %v8506_v33 = vadd.f32 %v9264_v18, %v13704_v55  ;;  %v8500_v15 = vpop.f32.mrb[59].mxu1 }
 0xca3   : > { %v8501_v29 = vadd.f32 %v13704_v55, %v8500_v15 }
 0xca4   : > { %v8556_v42 = vmax.f32 %v8506_v33, 0.0 }
 0xca5   : > { %v8555_v25 = vmax.f32 %v8501_v29, 0.0 }
 0xca6   : > { %v8614_v21 = vsel %vm330_vm0, %v8556_v42, 0.0 }
 0xca7   : > { %v8612_v34 = vsel %vm330_vm0, %v8555_v25, 0.0 }
 0xca8   : > { %v8613_v61 = vadd.f32 %v8612_v34, %v8611_v22 }
 0xcaa   : > { %v8615_v20 = vadd.f32 %v8614_v21, %v8613_v61 }
 0xcb9   : > { %v9267_v43 = vpop.f32.mrb[60].mxu1 }
 0xcba   : > { %v8516_v62 = vadd.f32 %v9267_v43, %v13704_v55  ;;  %v8510_v9 = vpop.f32.mrb[61].mxu1 }
 0xcbb   : > { %v8511_v28 = vadd.f32 %v13704_v55, %v8510_v9 }
 0xcbc   : > { %v8558_v52 = vmax.f32 %v8516_v62, 0.0 }
 0xcbd   : > { %v8557_v24 = vmax.f32 %v8511_v28, 0.0 }
 0xcbe   : > { %v8618_v5 = vsel %vm330_vm0, %v8558_v52, 0.0 }
 0xcbf   : > { %v8616_v19 = vsel %vm330_vm0, %v8557_v24, 0.0 }
 0xcc0   : > { %v8617_v60 = vadd.f32 %v8616_v19, %v8615_v20 }
 0xcc2   : > { %v8619_v58 = vadd.f32 %v8618_v5, %v8617_v60 }
 0xcc6   : > { %v9270_v16 = vpop.f32.mrb[62].mxu1 }
 0xcc7   : > { %v8526_v54 = vadd.f32 %v9270_v16, %v13704_v55  ;;  %v8520_v51 = vpop.f32.mrb[63].mxu1 }
 0xcc8   : > { %v8521_v36 = vadd.f32 %v13704_v55, %v8520_v51 }
 0xcc9   : > { %v8560_v59 = vmax.f32 %v8526_v54, 0.0 }
 0xcca   : > { %v8559_v8 = vmax.f32 %v8521_v36, 0.0 }
 0xccb   : > { %v8622_v56 = vsel %vm330_vm0, %v8560_v59, 0.0 }
 0xccc   : > { %v8620_v35 = vsel %vm330_vm0, %v8559_v8, 0.0 }
 0xccd   : > { %v8621_v38 = vadd.f32 %v8620_v35, %v8619_v58 }
 0xccf   : > { %v8623_v23 = vadd.f32 %v8622_v56, %v8621_v38 }
 0xcd1   : > { %v8624_v27 = vrot.slane %v8623_v23, 4 }
 0xcd3   : > { %v8625_v17 = vadd.f32 %v8624_v27, %v8623_v23 }
 0xcd5   : > { %v8626_v12 = vrot.slane %v8625_v17, 2 }
 0xcd7   : > { %v8627_v45 = vadd.f32 %v8626_v12, %v8625_v17 }
 0xcd9   : > { %v8628_v6 = vrot.slane %v8627_v45, 1 }
 0xcdb   : > { %v8629_v13 = vadd.f32 %v8628_v6, %v8627_v45 }
 0xcdd   : > { %v8630_v55 = vmul.f32 0.00390625, %v8629_v13 }
 0xcdf   : > { %8632 = vst.msk [vmem:[%s324_s17] sm:$0x1] %vm8631_vm11, %v8630_v55 }
 0xce0   : > { %9396 = shalt.err (!%p9393_p3)
}
 0xce1   : > { %s9397_s25 = scalar_lea.hbm %s13853_s27, 16  ;;  %s9401_s17 = scalar_lea.hbm %s13904_s9, 32 }
 0xce2   : > { %p9398_p4 = scmp.ne.s32.totalorder %s13853_s27, %s9397_s25  ;;  %p9402_p9 = scmp.lt.u32.totalorder %s13853_s27, %s13904_s9 }
 0xce3   : > { %p9403_p10 = scmp.lt.u32.totalorder %s9401_s17, %s9397_s25  ;;  %p9405_p12 = scmp.lt.u32.totalorder %s9397_s25, %s13853_s27 }
 0xce4   : > { %p9399_p7 = pnand %p9398_p4, %p9545_p5 }
 0xce5   : > { %p9404_p11 = por %p9403_p10, %p9402_p9 }
 0xce6   : > { %p9400_p8 = pneg %p9399_p7 }
 0xce7   : > { %p9406_p13 = por %p9405_p12, %p9404_p11 }
 0xce9   : > { %p9407_p0 = pnand %p9406_p13, %p9400_p8 }
 0xceb   : > { %9410 = shalt.err (!%p9407_p0)
}
 0xcec   : > { %9335 = dma.vmem_to_hbm [thread:$0]  (%p9545_p5), %s13855_s24, 16, %s13853_s27, %s8634_s22  }
 0xced PF: > { %p9341_p1 = scmp.ge.s32.totalorder %s9445_s12, 2  ;;  %s8658_s28 = sand.u32 1, %s9433_s30  }
 0xcee   : > { %s8659_s13 = scalar_lea.sflag [#allocation5], %s8658_s28 }
 0xcef   : > { %p9338_p2 = pnand %p9341_p1, %p9549_p6 }
 0xcf1   : > { %9428 = dma.done.wait (!%p9338_p2), %s8659_s13, 16  }
 0xcf2   : > { %9430 = vsyncadd (!%p9338_p2), %s8659_s13, 4294967280  ;;  %p19_p3 = scmp.ge.s32.totalorder %s9532_s15, 4   ;;  %s14180_s30 = smov %s9437_s10 }
 0xcf3   : > { %s14181_s10 = smov %s9441_s11  ;;  %s14182_s11 = smov %s9543_s18 }
 0xcf4   : > { %s14183_s12 = smov %s9532_s15  ;;  %21 = sbr.rel (!%p19_p3) target bundleno = 3 (0x3), region = 93 }
 0xcfb   :  { %8663 = vsyncpa [#allocation5], 1 }
 0xcfc   :  { %8665 = vsyncpa [#allocation5 + $0x1], 1 }

</bundles_post_ra>
